<compile_context>
chip_gen: v6e
topology: v6e:2x2x1
jax: 0.10.0
libtpu: 0.0.40
codegen_flags: <defaults>
</compile_context>

<pallas_src>
import functools

import numpy as np
import jax
import jax.numpy as jnp
from jax.experimental import pallas as pl
from jax.experimental.pallas import tpu as pltpu


LANE = 128  # TPU vreg lane width; channels are zero-padded to this multiple


def _round_up(x, m):
    return (x + m - 1) // m * m


def _vmem_limit_bytes():
    """Generation-aware VMEM budget: ~3/4 of physical VMEM."""
    cap = 128 * 1024 * 1024
    try:
        cap = int(getattr(pltpu.get_tpu_info(), "vmem_capacity_bytes", cap))
    except Exception:
        pass
    return int(max(min(cap * 3 // 4, 112 * 1024 * 1024), 32 * 1024 * 1024))


def _pick_th(h_lo, w_lo, cin_p, o_p, f, n_batch, vmem_limit):
    """Largest low-res row tile TH (divisor of h_lo) fitting the VMEM budget."""
    w_hi = w_lo * f
    per_row = (
        4 * w_lo * cin_p                    # x block (bf16, double-buffered)
        + 8 * f * w_hi * o_p                # residual + output blocks
        + 4 * w_lo * o_p * (1 + f * f)      # proj + polyphase planes (f32)
        + 6 * f * (w_hi + 2) * o_p          # node-conv input (f32 + bf16 copy)
        + 4 * f * w_hi * o_p                # node accumulator (f32)
    )
    fixed = (4 * 9 * (cin_p + o_p) * o_p            # weight blocks (bf16, 2 buf)
             + 16 * w_lo * cin_p + 8 * w_hi * o_p   # halo-row blocks
             + (6 << 20))                           # compiler scratch slack
    cap = max((vmem_limit - fixed) // max(per_row, 1), 1)
    cap = int(min(cap, 64, h_lo))
    th = 1
    for d in range(1, h_lo + 1):
        # TH >= 2 keeps the wrapper 2-row halo gather a static slice
        if h_lo % d == 0 and d <= cap and (d >= 2 or h_lo < 2):
            th = d
    if th == 1 and h_lo >= 2:
        th = 2 if h_lo % 2 == 0 else h_lo
    # keep >= 2 grid steps available for v7x megacore when the batch is 1
    if n_batch == 1 and h_lo // th < 2:
        for d in range(th - 1, 1, -1):
            if h_lo % d == 0:
                th = d
                break
    return th


def _phase_taps(f):
    """Per-output-phase (row offset, weight) taps of the fill_up_weights
    bilinear ConvTranspose2d(kernel=2f, stride=f, padding=f//2), one axis."""
    k = 2 * f
    c = (2 * f - 1 - f % 2) / (2.0 * f)
    w1d = [1.0 - abs(i / f - c) for i in range(k)]
    half = f // 2
    taps = []
    for r in range(f):
        t0 = r + half
        if r < half:
            t1, d1 = f + r + half, -1
        else:
            t1, d1 = r - half, 1
        taps.append(((0, w1d[t0]), (d1, w1d[t1])))
    return tuple(taps)


# ----------------------------------------------------------------------------
# Fused per-level kernel:  out = node_conv( upsample(proj_conv(x)) + residual )
# ----------------------------------------------------------------------------
def ida_step_kernel(x_ref, xtop_ref, xbot_ref, res_ref, rtop_ref, rbot_ref,
                    wp_ref, sp_ref, bp_ref, wn_ref, sn_ref, bn_ref,
                    out_ref, *, f, taps, h_lo, h_hi):
    # x_ref    : (TH,  W_lo, Cin)   bf16 low-res tile (rows row0..row0+TH-1)
    # xtop/xbot: (2,   W_lo, Cin)   bf16 halo rows row0-2..row0-1 / +TH..+TH+1
    # res_ref  : (THf, W_hi, O)     bf16 previous-level tile (high-res)
    # rtop/rbot: (1,   W_hi, O)     bf16 halo rows row0*f-1 / row0*f+THf
    # wp_ref   : (9, Cin, O) bf16;  sp/bp: (1, O) f32 folded BN (proj)
    # wn_ref   : (9, O,   O) bf16;  sn/bn: (1, O) f32 folded BN (node)
    # out_ref  : (THf, W_hi, O)     bf16
    TH, W_lo, Cin = x_ref.shape
    THf, W_hi, O = out_ref.shape
    row0 = pl.program_id(1) * TH

    # --- proj-conv input window: rows row0-2..row0+TH+1, 1-px zero W halo ----
    xw = jnp.concatenate([xtop_ref[...], x_ref[...], xbot_ref[...]], axis=0)
    zc = jnp.zeros((TH + 4, 1, Cin), xw.dtype)
    xw = jnp.concatenate([zc, xw, zc], axis=1)            # (TH+4, W_lo+2, Cin)

    # --- proj: 3x3 conv as 9 accumulating tap matmuls + folded BN + ReLU -----
    m_p = (TH + 2) * W_lo
    acc = jnp.zeros((m_p, O), jnp.float32)
    for t in range(9):
        kh, kw = divmod(t, 3)
        lhs = xw[kh:kh + TH + 2, kw:kw + W_lo, :].reshape(m_p, Cin)
        acc = acc + jnp.dot(lhs, wp_ref[t], preferred_element_type=jnp.float32)
    proj = jnp.maximum(acc * sp_ref[0] + bp_ref[0], 0.0)
    proj = proj.reshape(TH + 2, W_lo, O)                  # rows row0-1..row0+TH
    # rows outside the low-res image do not exist for the transposed conv
    prow = row0 - 1 + jax.lax.broadcasted_iota(jnp.int32, (TH + 2, 1, 1), 0)
    proj = jnp.where((prow >= 0) & (prow < h_lo), proj, 0.0)

    # --- polyphase bilinear upsample to high-res rows row0*f-1 .. row0*f+THf -
    zrow = jnp.zeros((1, W_lo, O), proj.dtype)
    projp = jnp.concatenate([zrow, proj, zrow], axis=0)   # (TH+4, W_lo, O)
    zcol = jnp.zeros((TH + 4, 1, O), proj.dtype)
    projp = jnp.concatenate([zcol, projp, zcol], axis=1)  # (TH+4, W_lo+2, O)
    row_planes = []
    for r in range(f):
        col_planes = []
        for s in range(f):
            pr = jnp.zeros((TH + 2, W_lo, O), jnp.float32)
            for dr, ar in taps[r]:
                for dc, ac in taps[s]:
                    pr = pr + (ar * ac) * projp[1 + dr:1 + dr + TH + 2,
                                                1 + dc:1 + dc + W_lo, :]
            col_planes.append(pr)
        row_planes.append(jnp.stack(col_planes, axis=2).reshape(TH + 2, W_hi, O))
    up = jnp.stack(row_planes, axis=1).reshape((TH + 2) * f, W_hi, O)
    up = up[f - 1:f - 1 + THf + 2]                        # (THf+2, W_hi, O)
    urow = row0 * f - 1 + jax.lax.broadcasted_iota(jnp.int32, (THf + 2, 1, 1), 0)
    up = jnp.where((urow >= 0) & (urow < h_hi), up, 0.0)

    # --- node-conv input: upsampled + previous level, 1-px zero halo ---------
    res_mid = jnp.concatenate([rtop_ref[...], res_ref[...], rbot_ref[...]],
                              axis=0).astype(jnp.float32)  # (THf+2, W_hi, O)
    zcol2 = jnp.zeros((THf + 2, 1, O), jnp.float32)
    ni = jnp.concatenate([zcol2, up + res_mid, zcol2],
                         axis=1).astype(jnp.bfloat16)      # (THf+2, W_hi+2, O)

    # --- node: 3x3 conv as 9 accumulating tap matmuls + folded BN + ReLU -----
    m_n = THf * W_hi
    acc2 = jnp.zeros((m_n, O), jnp.float32)
    for t in range(9):
        kh, kw = divmod(t, 3)
        lhs = ni[kh:kh + THf, kw:kw + W_hi, :].reshape(m_n, O)
        acc2 = acc2 + jnp.dot(lhs, wn_ref[t], preferred_element_type=jnp.float32)
    y = jnp.maximum(acc2 * sn_ref[0] + bn_ref[0], 0.0)
    out_ref[...] = y.reshape(THf, W_hi, O).astype(out_ref.dtype)


# ----------------------------------------------------------------------------
# Wrappers
# ----------------------------------------------------------------------------
def _fold_conv_bn(p, cin_p, cout_p):
    """Pad conv weight to lane-dense channel counts and fold BN (eval) into a
    per-channel scale / shift."""
    eps = 1e-5
    _, _, cin_r, cout_r = p["w"].shape
    scale = p["gamma"] / jnp.sqrt(p["var"] + eps)
    shift = (p["b"] - p["mean"]) * scale + p["beta"]
    scale = jnp.pad(scale, (0, cout_p - cout_r)).reshape(1, cout_p)
    shift = jnp.pad(shift, (0, cout_p - cout_r)).reshape(1, cout_p)
    w = jnp.pad(p["w"], ((0, 0), (0, 0),
                         (0, cin_p - cin_r), (0, cout_p - cout_r)))
    w = w.reshape(9, cin_p, cout_p).astype(jnp.bfloat16)
    return w, scale.astype(jnp.float32), shift.astype(jnp.float32)


def ida_step(proj_p, node_p, f, x, res):
    """One fused IDAUp level step: node(up(proj(x)) + res).

    x   : (N, H_lo, W_lo, Cin_p) bf16, lane-padded channels
    res : (N, H_hi, W_hi, O_p)   bf16, lane-padded channels, H_hi = f*H_lo
    Returns (N, H_hi, W_hi, O_p) bf16 (padded channels stay zero).
    """
    assert f >= 2 and f % 2 == 0, "DLAUp up factors are even"
    N, H_lo, W_lo, Cin_p = x.shape
    _, H_hi, W_hi, O_p = res.shape
    assert H_hi == f * H_lo and W_hi == f * W_lo

    wp, sp, bp = _fold_conv_bn(proj_p, Cin_p, O_p)
    wn, sn, bn = _fold_conv_bn(node_p, O_p, O_p)

    vmem_limit = _vmem_limit_bytes()
    TH = _pick_th(H_lo, W_lo, Cin_p, O_p, f, N, vmem_limit)
    n_ht = H_lo // TH
    THf = TH * f

    # Tiny per-tile halo-row side inputs (strided gathers of 2 / 1 rows per
    # tile; no full-tensor jnp.pad round trip through HBM).
    zx = jnp.zeros((N, 1, 2, W_lo, Cin_p), x.dtype)
    zr = jnp.zeros((N, 1, 1, W_hi, O_p), res.dtype)
    if n_ht > 1:
        xr = x.reshape(N, n_ht, TH, W_lo, Cin_p)
        rr = res.reshape(N, n_ht, THf, W_hi, O_p)
        xtop = jnp.concatenate([zx, xr[:, :-1, TH - 2:]], axis=1)
        xbot = jnp.concatenate([xr[:, 1:, :2], zx], axis=1)
        rtop = jnp.concatenate([zr, rr[:, :-1, THf - 1:]], axis=1)
        rbot = jnp.concatenate([rr[:, 1:, :1], zr], axis=1)
    else:
        xtop, xbot, rtop, rbot = zx, zx, zr, zr

    kernel = functools.partial(ida_step_kernel, f=f, taps=_phase_taps(f),
                               h_lo=H_lo, h_hi=H_hi)

    flops = (2 * N * H_lo * W_lo * 9 * Cin_p * O_p        # proj conv
             + 2 * N * H_hi * W_hi * 9 * O_p * O_p        # node conv
             + 8 * N * H_hi * W_hi * O_p)                  # polyphase taps
    bytes_acc = 2 * (x.size + res.size + xtop.size + xbot.size + rtop.size
                     + rbot.size + wp.size + wn.size + N * H_hi * W_hi * O_p) \
        + 4 * (sp.size + bp.size + sn.size + bn.size)

    return pl.pallas_call(
        kernel,
        out_shape=jax.ShapeDtypeStruct((N, H_hi, W_hi, O_p), jnp.bfloat16),
        grid=(N, n_ht),
        in_specs=[
            pl.BlockSpec((None, TH, W_lo, Cin_p), lambda n, h: (n, h, 0, 0)),
            pl.BlockSpec((None, None, 2, W_lo, Cin_p),
                         lambda n, h: (n, h, 0, 0, 0)),
            pl.BlockSpec((None, None, 2, W_lo, Cin_p),
                         lambda n, h: (n, h, 0, 0, 0)),
            pl.BlockSpec((None, THf, W_hi, O_p), lambda n, h: (n, h, 0, 0)),
            pl.BlockSpec((None, None, 1, W_hi, O_p),
                         lambda n, h: (n, h, 0, 0, 0)),
            pl.BlockSpec((None, None, 1, W_hi, O_p),
                         lambda n, h: (n, h, 0, 0, 0)),
            pl.BlockSpec((9, Cin_p, O_p), lambda n, h: (0, 0, 0)),
            pl.BlockSpec((1, O_p), lambda n, h: (0, 0)),
            pl.BlockSpec((1, O_p), lambda n, h: (0, 0)),
            pl.BlockSpec((9, O_p, O_p), lambda n, h: (0, 0, 0)),
            pl.BlockSpec((1, O_p), lambda n, h: (0, 0)),
            pl.BlockSpec((1, O_p), lambda n, h: (0, 0)),
        ],
        out_specs=pl.BlockSpec((None, THf, W_hi, O_p),
                               lambda n, h: (n, h, 0, 0)),
        compiler_params=pltpu.CompilerParams(
            dimension_semantics=("parallel", "parallel"),
            vmem_limit_bytes=vmem_limit),
        cost_estimate=pl.CostEstimate(flops=flops, transcendentals=0,
                                      bytes_accessed=bytes_acc),
    )(x, xtop, xbot, res, rtop, rbot, wp, sp, bp, wn, sn, bn)


def idaup_apply(params, layers, startp, endp):
    for i in range(startp + 1, endp):
        proj = params["proj_%d" % (i - startp)]
        node = params["node_%d" % (i - startp)]
        f = params["up_%d" % (i - startp)]
        layers[i] = ida_step(proj, node, f, layers[i], layers[i - 1])


def dlaup_apply(params, layers):
    """layers: list of NHWC float32 arrays (finest -> coarsest).
    Returns the DLAUp pyramid as NHWC float32 arrays (real channel counts)."""
    startp = params["startp"]
    real_ch = [x.shape[-1] for x in layers]
    # lane-pad channels once up front; everything downstream is lane-dense bf16
    work = [
        jnp.pad(x, ((0, 0), (0, 0), (0, 0),
                    (0, _round_up(c, LANE) - c))).astype(jnp.bfloat16)
        for x, c in zip(layers, real_ch)
    ]
    out = [layers[-1].astype(jnp.float32)]   # coarsest level passes through
    for i in range(len(work) - startp - 1):
        ida = params["ida_%d" % i]
        idaup_apply(ida, work, len(work) - i - 2, len(work))
        out.insert(0, work[-1][..., :ida["o"]].astype(jnp.float32))
    return out


# ----------------------------------------------------------------------------
# Parameter construction (deterministic, mirrors the PyTorch __init__ shapes)
# ----------------------------------------------------------------------------
def make_deform_conv_params(key, chi, cho):
    k1, k2 = jax.random.split(key)
    return dict(
        w=jax.random.normal(k1, (3, 3, chi, cho), jnp.float32) * 0.1,  # HWIO
        b=jax.random.normal(k2, (cho,), jnp.float32) * 0.1,
        gamma=jnp.ones((cho,), jnp.float32),
        beta=jnp.zeros((cho,), jnp.float32),
        mean=jnp.zeros((cho,), jnp.float32),
        var=jnp.ones((cho,), jnp.float32),
    )


def make_idaup_params(key, o, channels, up_f):
    params = {"o": o}
    for i in range(1, len(channels)):
        c = channels[i]
        f = int(up_f[i])
        key, kp, kn = jax.random.split(key, 3)
        params["proj_%d" % i] = make_deform_conv_params(kp, c, o)
        params["node_%d" % i] = make_deform_conv_params(kn, o, o)
        params["up_%d" % i] = f          # bilinear weights are fixed; keep f
    return params


def make_dlaup_params(key, startp, channels, scales):
    channels = list(channels)
    in_channels = list(channels)
    scales = np.array(scales, dtype=int)
    params = {"startp": startp}
    for i in range(len(channels) - 1):
        j = -i - 2
        key, k = jax.random.split(key)
        params["ida_%d" % i] = make_idaup_params(
            k, channels[j], in_channels[j:], list(scales[j:] // scales[j]))
        scales[j + 1:] = scales[j]
        in_channels[j + 1:] = [channels[j] for _ in channels[j + 1:]]
    return params


# ----------------------------------------------------------------------------
# Pure-JAX f32 reference (same DCN-as-plain-conv semantics) for a sanity check
# ----------------------------------------------------------------------------
def _ref_conv_bn_relu(p, x):
    y = jax.lax.conv_general_dilated(
        x, p["w"], window_strides=(1, 1), padding=((1, 1), (1, 1)),
        dimension_numbers=("NHWC", "HWIO", "NHWC"))
    y = y + p["b"]
    scale = p["gamma"] / jnp.sqrt(p["var"] + 1e-5)
    y = (y - p["mean"]) * scale + p["beta"]
    return jnp.maximum(y, 0.0)


def _ref_up(x, f):
    # depthwise ConvTranspose2d(C,C,2f,stride=f,pad=f//2,groups=C), bilinear
    # weights are symmetric so the transposed conv == lhs-dilated correlation.
    n, h, w, c = x.shape
    k, p = 2 * f, f // 2
    ctr = (2 * f - 1 - f % 2) / (2.0 * f)
    w1d = jnp.array([1.0 - abs(i / f - ctr) for i in range(k)], jnp.float32)
    w2d = w1d[:, None] * w1d[None, :]
    rhs = jnp.tile(w2d[:, :, None, None], (1, 1, 1, c))
    return jax.lax.conv_general_dilated(
        x, rhs, window_strides=(1, 1),
        padding=((k - 1 - p, k - 1 - p), (k - 1 - p, k - 1 - p)),
        lhs_dilation=(f, f), dimension_numbers=("NHWC", "HWIO", "NHWC"),
        feature_group_count=c)


def dlaup_reference(params, layers):
    startp = params["startp"]
    work = list(layers)
    out = [work[-1]]
    for i in range(len(work) - startp - 1):
        ida = params["ida_%d" % i]
        sp_ = len(work) - i - 2
        for j in range(sp_ + 1, len(work)):
            proj = ida["proj_%d" % (j - sp_)]
            node = ida["node_%d" % (j - sp_)]
            f = ida["up_%d" % (j - sp_)]
            y = _ref_up(_ref_conv_bn_relu(proj, work[j]), f)
            work[j] = _ref_conv_bn_relu(node, y + work[j - 1])
        out.insert(0, work[-1])
    return out


# ----------------------------------------------------------------------------
# Demo
# ----------------------------------------------------------------------------
if __name__ == "__main__":
    key = jax.random.PRNGKey(0)
    startp = 0
    channels = [4, 8, 16]
    scales = [1, 2, 4]
    base = 32  # finest spatial resolution

    # NCHW inputs, exactly as the PyTorch module would receive them.
    kx, kp = jax.random.split(key)
    layer_keys = jax.random.split(kx, len(channels))
    layers_nchw = [
        jax.random.normal(
            layer_keys[i],
            (2, channels[i], base // scales[i], base // scales[i]),
            jnp.float32)
        for i in range(len(channels))
    ]

    params = make_dlaup_params(kp, startp, channels, scales)

    # Transpose NCHW -> NHWC for the kernels, run, transpose results back.
    layers_nhwc = [jnp.transpose(x, (0, 2, 3, 1)) for x in layers_nchw]
    outs_nhwc = dlaup_apply(params, layers_nhwc)
    outs_nchw = [jnp.transpose(o, (0, 3, 1, 2)) for o in outs_nhwc]
    jax.block_until_ready(outs_nchw)

    # Sanity: output pyramid shapes must match the reference semantics.
    expected = [(2, 4, 32, 32), (2, 8, 16, 16), (2, 16, 8, 8)]
    assert [tuple(o.shape) for o in outs_nchw] == expected
    assert all(bool(jnp.all(jnp.isfinite(o))) for o in outs_nchw)

    # Numerics vs. a pure-JAX f32 reference (tolerance covers bf16 activation
    # storage across the fused pyramid steps).
    refs_nhwc = dlaup_reference(params, layers_nhwc)
    for got, ref in zip(outs_nhwc, refs_nhwc):
        err = float(jnp.max(jnp.abs(got - ref)))
        scale = float(jnp.max(jnp.abs(ref))) + 1e-3
        assert err / scale < 0.1, (err, scale)

    print("KERNEL_OK")
</pallas_src>

<mosaic_0001>
module attributes {stable_mosaic.version = 11 : i64} {
  func.func @ida_step_kernel(%arg0: i32, %arg1: i32, %arg2: memref<1x8x8x128xbf16, #tpu.memory_space<vmem>>, %arg3: memref<1x1x2x8x128xbf16, #tpu.memory_space<vmem>>, %arg4: memref<1x1x2x8x128xbf16, #tpu.memory_space<vmem>>, %arg5: memref<1x16x16x128xbf16, #tpu.memory_space<vmem>>, %arg6: memref<1x1x1x16x128xbf16, #tpu.memory_space<vmem>>, %arg7: memref<1x1x1x16x128xbf16, #tpu.memory_space<vmem>>, %arg8: memref<9x128x128xbf16, #tpu.memory_space<vmem>>, %arg9: memref<1x128xf32, #tpu.memory_space<vmem>>, %arg10: memref<1x128xf32, #tpu.memory_space<vmem>>, %arg11: memref<9x128x128xbf16, #tpu.memory_space<vmem>>, %arg12: memref<1x128xf32, #tpu.memory_space<vmem>>, %arg13: memref<1x128xf32, #tpu.memory_space<vmem>>, %arg14: memref<1x16x16x128xbf16, #tpu.memory_space<vmem>>) attributes {dimension_semantics = [#tpu.dimension_semantics<parallel>, #tpu.dimension_semantics<parallel>], iteration_bounds = array<i64: 2, 1>, scalar_prefetch = 0 : i64, scratch_operands = 0 : i64, tpu.core_type = #tpu.core_type<tc>, window_params = [{transform_indices = @transform_0, window_bounds = array<i64: 1, 8, 8, 128>}, {transform_indices = @transform_1, window_bounds = array<i64: 1, 1, 2, 8, 128>}, {transform_indices = @transform_2, window_bounds = array<i64: 1, 1, 2, 8, 128>}, {transform_indices = @transform_3, window_bounds = array<i64: 1, 16, 16, 128>}, {transform_indices = @transform_4, window_bounds = array<i64: 1, 1, 1, 16, 128>}, {transform_indices = @transform_5, window_bounds = array<i64: 1, 1, 1, 16, 128>}, {pipeline_mode = #tpu.pipeline_mode<synchronous>, transform_indices = @transform_6, window_bounds = array<i64: 9, 128, 128>}, {pipeline_mode = #tpu.pipeline_mode<synchronous>, transform_indices = @transform_7, window_bounds = array<i64: 1, 128>}, {pipeline_mode = #tpu.pipeline_mode<synchronous>, transform_indices = @transform_8, window_bounds = array<i64: 1, 128>}, {pipeline_mode = #tpu.pipeline_mode<synchronous>, transform_indices = @transform_9, window_bounds = array<i64: 9, 128, 128>}, {pipeline_mode = #tpu.pipeline_mode<synchronous>, transform_indices = @transform_10, window_bounds = array<i64: 1, 128>}, {pipeline_mode = #tpu.pipeline_mode<synchronous>, transform_indices = @transform_11, window_bounds = array<i64: 1, 128>}, {transform_indices = @transform_12, window_bounds = array<i64: 1, 16, 16, 128>}]} {
    %c8_i32 = arith.constant 8 : i32
    %0 = arith.muli %arg1, %c8_i32 : i32
    %c0 = arith.constant 0 : index
    %c0_0 = arith.constant 0 : index
    %c0_1 = arith.constant 0 : index
    %c0_2 = arith.constant 0 : index
    %c0_3 = arith.constant 0 : index
    %1 = vector.load %arg3[%c0, %c0_0, %c0_1, %c0_2, %c0_3] : memref<1x1x2x8x128xbf16, #tpu.memory_space<vmem>>, vector<1x1x2x8x128xbf16>
    %2 = vector.shape_cast %1 : vector<1x1x2x8x128xbf16> to vector<2x8x128xbf16>
    %c0_4 = arith.constant 0 : index
    %c0_5 = arith.constant 0 : index
    %c0_6 = arith.constant 0 : index
    %c0_7 = arith.constant 0 : index
    %3 = vector.load %arg2[%c0_4, %c0_5, %c0_6, %c0_7] : memref<1x8x8x128xbf16, #tpu.memory_space<vmem>>, vector<1x8x8x128xbf16>
    %4 = vector.shape_cast %3 : vector<1x8x8x128xbf16> to vector<8x8x128xbf16>
    %c0_8 = arith.constant 0 : index
    %c0_9 = arith.constant 0 : index
    %c0_10 = arith.constant 0 : index
    %c0_11 = arith.constant 0 : index
    %c0_12 = arith.constant 0 : index
    %5 = vector.load %arg4[%c0_8, %c0_9, %c0_10, %c0_11, %c0_12] : memref<1x1x2x8x128xbf16, #tpu.memory_space<vmem>>, vector<1x1x2x8x128xbf16>
    %6 = vector.shape_cast %5 : vector<1x1x2x8x128xbf16> to vector<2x8x128xbf16>
    %7 = tpu.concatenate %2, %4, %6 in 0 : vector<2x8x128xbf16>, vector<8x8x128xbf16>, vector<2x8x128xbf16> -> vector<12x8x128xbf16>
    %cst = arith.constant 0.000000e+00 : bf16
    %8 = vector.broadcast %cst : bf16 to vector<12x1x128xbf16>
    %9 = tpu.concatenate %8, %7, %8 in 1 : vector<12x1x128xbf16>, vector<12x8x128xbf16>, vector<12x1x128xbf16> -> vector<12x10x128xbf16>
    %cst_13 = arith.constant 0.000000e+00 : f32
    %10 = vector.broadcast %cst_13 : f32 to vector<80x128xf32>
    %11 = vector.extract_strided_slice %9 {offsets = [0, 0, 0], sizes = [10, 8, 128], strides = [1, 1, 1]} : vector<12x10x128xbf16> to vector<10x8x128xbf16>
    %12 = vector.shape_cast %11 : vector<10x8x128xbf16> to vector<80x128xbf16>
    %c0_14 = arith.constant 0 : index
    %c0_15 = arith.constant 0 : index
    %c0_16 = arith.constant 0 : index
    %13 = vector.load %arg8[%c0_14, %c0_15, %c0_16] : memref<9x128x128xbf16, #tpu.memory_space<vmem>>, vector<1x128x128xbf16>
    %14 = vector.shape_cast %13 : vector<1x128x128xbf16> to vector<128x128xbf16>
    %cst_17 = arith.constant dense<0.000000e+00> : vector<80x128xf32>
    %15 = tpu.matmul %12, %14, %cst_17 {dimension_numbers = #tpu.dot_dimension_numbers<[1], [0], [0], [1], [0, 0, 1, 1], [], []>} : vector<80x128xbf16>, vector<128x128xbf16>, vector<80x128xf32> -> vector<80x128xf32>
    %16 = arith.addf %10, %15 : vector<80x128xf32>
    %17 = vector.extract_strided_slice %9 {offsets = [0, 1, 0], sizes = [10, 8, 128], strides = [1, 1, 1]} : vector<12x10x128xbf16> to vector<10x8x128xbf16>
    %18 = vector.shape_cast %17 : vector<10x8x128xbf16> to vector<80x128xbf16>
    %c1 = arith.constant 1 : index
    %c0_18 = arith.constant 0 : index
    %c0_19 = arith.constant 0 : index
    %19 = vector.load %arg8[%c1, %c0_18, %c0_19] : memref<9x128x128xbf16, #tpu.memory_space<vmem>>, vector<1x128x128xbf16>
    %20 = vector.shape_cast %19 : vector<1x128x128xbf16> to vector<128x128xbf16>
    %cst_20 = arith.constant dense<0.000000e+00> : vector<80x128xf32>
    %21 = tpu.matmul %18, %20, %cst_20 {dimension_numbers = #tpu.dot_dimension_numbers<[1], [0], [0], [1], [0, 0, 1, 1], [], []>} : vector<80x128xbf16>, vector<128x128xbf16>, vector<80x128xf32> -> vector<80x128xf32>
    %22 = arith.addf %16, %21 : vector<80x128xf32>
    %23 = vector.extract_strided_slice %9 {offsets = [0, 2, 0], sizes = [10, 8, 128], strides = [1, 1, 1]} : vector<12x10x128xbf16> to vector<10x8x128xbf16>
    %24 = vector.shape_cast %23 : vector<10x8x128xbf16> to vector<80x128xbf16>
    %c2 = arith.constant 2 : index
    %c0_21 = arith.constant 0 : index
    %c0_22 = arith.constant 0 : index
    %25 = vector.load %arg8[%c2, %c0_21, %c0_22] : memref<9x128x128xbf16, #tpu.memory_space<vmem>>, vector<1x128x128xbf16>
    %26 = vector.shape_cast %25 : vector<1x128x128xbf16> to vector<128x128xbf16>
    %cst_23 = arith.constant dense<0.000000e+00> : vector<80x128xf32>
    %27 = tpu.matmul %24, %26, %cst_23 {dimension_numbers = #tpu.dot_dimension_numbers<[1], [0], [0], [1], [0, 0, 1, 1], [], []>} : vector<80x128xbf16>, vector<128x128xbf16>, vector<80x128xf32> -> vector<80x128xf32>
    %28 = arith.addf %22, %27 : vector<80x128xf32>
    %29 = vector.extract_strided_slice %9 {offsets = [1, 0, 0], sizes = [10, 8, 128], strides = [1, 1, 1]} : vector<12x10x128xbf16> to vector<10x8x128xbf16>
    %30 = vector.shape_cast %29 : vector<10x8x128xbf16> to vector<80x128xbf16>
    %c3 = arith.constant 3 : index
    %c0_24 = arith.constant 0 : index
    %c0_25 = arith.constant 0 : index
    %31 = vector.load %arg8[%c3, %c0_24, %c0_25] : memref<9x128x128xbf16, #tpu.memory_space<vmem>>, vector<1x128x128xbf16>
    %32 = vector.shape_cast %31 : vector<1x128x128xbf16> to vector<128x128xbf16>
    %cst_26 = arith.constant dense<0.000000e+00> : vector<80x128xf32>
    %33 = tpu.matmul %30, %32, %cst_26 {dimension_numbers = #tpu.dot_dimension_numbers<[1], [0], [0], [1], [0, 0, 1, 1], [], []>} : vector<80x128xbf16>, vector<128x128xbf16>, vector<80x128xf32> -> vector<80x128xf32>
    %34 = arith.addf %28, %33 : vector<80x128xf32>
    %35 = vector.extract_strided_slice %9 {offsets = [1, 1, 0], sizes = [10, 8, 128], strides = [1, 1, 1]} : vector<12x10x128xbf16> to vector<10x8x128xbf16>
    %36 = vector.shape_cast %35 : vector<10x8x128xbf16> to vector<80x128xbf16>
    %c4 = arith.constant 4 : index
    %c0_27 = arith.constant 0 : index
    %c0_28 = arith.constant 0 : index
    %37 = vector.load %arg8[%c4, %c0_27, %c0_28] : memref<9x128x128xbf16, #tpu.memory_space<vmem>>, vector<1x128x128xbf16>
    %38 = vector.shape_cast %37 : vector<1x128x128xbf16> to vector<128x128xbf16>
    %cst_29 = arith.constant dense<0.000000e+00> : vector<80x128xf32>
    %39 = tpu.matmul %36, %38, %cst_29 {dimension_numbers = #tpu.dot_dimension_numbers<[1], [0], [0], [1], [0, 0, 1, 1], [], []>} : vector<80x128xbf16>, vector<128x128xbf16>, vector<80x128xf32> -> vector<80x128xf32>
    %40 = arith.addf %34, %39 : vector<80x128xf32>
    %41 = vector.extract_strided_slice %9 {offsets = [1, 2, 0], sizes = [10, 8, 128], strides = [1, 1, 1]} : vector<12x10x128xbf16> to vector<10x8x128xbf16>
    %42 = vector.shape_cast %41 : vector<10x8x128xbf16> to vector<80x128xbf16>
    %c5 = arith.constant 5 : index
    %c0_30 = arith.constant 0 : index
    %c0_31 = arith.constant 0 : index
    %43 = vector.load %arg8[%c5, %c0_30, %c0_31] : memref<9x128x128xbf16, #tpu.memory_space<vmem>>, vector<1x128x128xbf16>
    %44 = vector.shape_cast %43 : vector<1x128x128xbf16> to vector<128x128xbf16>
    %cst_32 = arith.constant dense<0.000000e+00> : vector<80x128xf32>
    %45 = tpu.matmul %42, %44, %cst_32 {dimension_numbers = #tpu.dot_dimension_numbers<[1], [0], [0], [1], [0, 0, 1, 1], [], []>} : vector<80x128xbf16>, vector<128x128xbf16>, vector<80x128xf32> -> vector<80x128xf32>
    %46 = arith.addf %40, %45 : vector<80x128xf32>
    %47 = vector.extract_strided_slice %9 {offsets = [2, 0, 0], sizes = [10, 8, 128], strides = [1, 1, 1]} : vector<12x10x128xbf16> to vector<10x8x128xbf16>
    %48 = vector.shape_cast %47 : vector<10x8x128xbf16> to vector<80x128xbf16>
    %c6 = arith.constant 6 : index
    %c0_33 = arith.constant 0 : index
    %c0_34 = arith.constant 0 : index
    %49 = vector.load %arg8[%c6, %c0_33, %c0_34] : memref<9x128x128xbf16, #tpu.memory_space<vmem>>, vector<1x128x128xbf16>
    %50 = vector.shape_cast %49 : vector<1x128x128xbf16> to vector<128x128xbf16>
    %cst_35 = arith.constant dense<0.000000e+00> : vector<80x128xf32>
    %51 = tpu.matmul %48, %50, %cst_35 {dimension_numbers = #tpu.dot_dimension_numbers<[1], [0], [0], [1], [0, 0, 1, 1], [], []>} : vector<80x128xbf16>, vector<128x128xbf16>, vector<80x128xf32> -> vector<80x128xf32>
    %52 = arith.addf %46, %51 : vector<80x128xf32>
    %53 = vector.extract_strided_slice %9 {offsets = [2, 1, 0], sizes = [10, 8, 128], strides = [1, 1, 1]} : vector<12x10x128xbf16> to vector<10x8x128xbf16>
    %54 = vector.shape_cast %53 : vector<10x8x128xbf16> to vector<80x128xbf16>
    %c7 = arith.constant 7 : index
    %c0_36 = arith.constant 0 : index
    %c0_37 = arith.constant 0 : index
    %55 = vector.load %arg8[%c7, %c0_36, %c0_37] : memref<9x128x128xbf16, #tpu.memory_space<vmem>>, vector<1x128x128xbf16>
    %56 = vector.shape_cast %55 : vector<1x128x128xbf16> to vector<128x128xbf16>
    %cst_38 = arith.constant dense<0.000000e+00> : vector<80x128xf32>
    %57 = tpu.matmul %54, %56, %cst_38 {dimension_numbers = #tpu.dot_dimension_numbers<[1], [0], [0], [1], [0, 0, 1, 1], [], []>} : vector<80x128xbf16>, vector<128x128xbf16>, vector<80x128xf32> -> vector<80x128xf32>
    %58 = arith.addf %52, %57 : vector<80x128xf32>
    %59 = vector.extract_strided_slice %9 {offsets = [2, 2, 0], sizes = [10, 8, 128], strides = [1, 1, 1]} : vector<12x10x128xbf16> to vector<10x8x128xbf16>
    %60 = vector.shape_cast %59 : vector<10x8x128xbf16> to vector<80x128xbf16>
    %c8 = arith.constant 8 : index
    %c0_39 = arith.constant 0 : index
    %c0_40 = arith.constant 0 : index
    %61 = vector.load %arg8[%c8, %c0_39, %c0_40] : memref<9x128x128xbf16, #tpu.memory_space<vmem>>, vector<1x128x128xbf16>
    %62 = vector.shape_cast %61 : vector<1x128x128xbf16> to vector<128x128xbf16>
    %cst_41 = arith.constant dense<0.000000e+00> : vector<80x128xf32>
    %63 = tpu.matmul %60, %62, %cst_41 {dimension_numbers = #tpu.dot_dimension_numbers<[1], [0], [0], [1], [0, 0, 1, 1], [], []>} : vector<80x128xbf16>, vector<128x128xbf16>, vector<80x128xf32> -> vector<80x128xf32>
    %64 = arith.addf %58, %63 : vector<80x128xf32>
    %c0_42 = arith.constant 0 : index
    %c0_43 = arith.constant 0 : index
    %65 = vector.load %arg9[%c0_42, %c0_43] : memref<1x128xf32, #tpu.memory_space<vmem>>, vector<1x128xf32>
    %66 = vector.shape_cast %65 : vector<1x128xf32> to vector<128xf32>
    %67 = vector.shape_cast %66 : vector<128xf32> to vector<1x128xf32>
    %68 = vector.broadcast %67 : vector<1x128xf32> to vector<80x128xf32>
    %69 = arith.mulf %64, %68 : vector<80x128xf32>
    %c0_44 = arith.constant 0 : index
    %c0_45 = arith.constant 0 : index
    %70 = vector.load %arg10[%c0_44, %c0_45] : memref<1x128xf32, #tpu.memory_space<vmem>>, vector<1x128xf32>
    %71 = vector.shape_cast %70 : vector<1x128xf32> to vector<128xf32>
    %72 = vector.shape_cast %71 : vector<128xf32> to vector<1x128xf32>
    %73 = vector.broadcast %72 : vector<1x128xf32> to vector<80x128xf32>
    %74 = arith.addf %69, %73 : vector<80x128xf32>
    %cst_46 = arith.constant 0.000000e+00 : f32
    %75 = vector.broadcast %cst_46 : f32 to vector<80x128xf32>
    %76 = arith.maximumf %74, %75 : vector<80x128xf32>
    %77 = vector.shape_cast %76 : vector<80x128xf32> to vector<10x8x128xf32>
    %c1_i32 = arith.constant 1 : i32
    %78 = arith.subi %0, %c1_i32 : i32
    %79 = tpu.iota {dimensions = array<i32: 0>} : vector<10x1x1xi32>
    %80 = vector.broadcast %78 : i32 to vector<10x1x1xi32>
    %81 = arith.addi %80, %79 : vector<10x1x1xi32>
    %c0_i32 = arith.constant 0 : i32
    %82 = vector.broadcast %c0_i32 : i32 to vector<10x1x1xi32>
    %83 = arith.cmpi sge, %81, %82 : vector<10x1x1xi32>
    %c8_i32_47 = arith.constant 8 : i32
    %84 = vector.broadcast %c8_i32_47 : i32 to vector<10x1x1xi32>
    %85 = arith.cmpi slt, %81, %84 : vector<10x1x1xi32>
    %86 = arith.andi %83, %85 : vector<10x1x1xi1>
    %cst_48 = arith.constant 0.000000e+00 : f32
    %87 = vector.shape_cast %86 : vector<10x1x1xi1> to vector<10x1x1xi1>
    %88 = vector.broadcast %87 : vector<10x1x1xi1> to vector<10x8x128xi1>
    %89 = vector.broadcast %cst_48 : f32 to vector<10x8x128xf32>
    %90 = arith.select %88, %77, %89 : vector<10x8x128xi1>, vector<10x8x128xf32>
    %cst_49 = arith.constant 0.000000e+00 : f32
    %91 = vector.broadcast %cst_49 : f32 to vector<1x8x128xf32>
    %92 = tpu.concatenate %91, %90, %91 in 0 : vector<1x8x128xf32>, vector<10x8x128xf32>, vector<1x8x128xf32> -> vector<12x8x128xf32>
    %cst_50 = arith.constant 0.000000e+00 : f32
    %93 = vector.broadcast %cst_50 : f32 to vector<12x1x128xf32>
    %94 = tpu.concatenate %93, %92, %93 in 1 : vector<12x1x128xf32>, vector<12x8x128xf32>, vector<12x1x128xf32> -> vector<12x10x128xf32>
    %cst_51 = arith.constant 0.000000e+00 : f32
    %95 = vector.broadcast %cst_51 : f32 to vector<10x8x128xf32>
    %96 = vector.extract_strided_slice %94 {offsets = [1, 1, 0], sizes = [10, 8, 128], strides = [1, 1, 1]} : vector<12x10x128xf32> to vector<10x8x128xf32>
    %cst_52 = arith.constant 5.625000e-01 : f32
    %97 = vector.broadcast %cst_52 : f32 to vector<10x8x128xf32>
    %98 = arith.mulf %97, %96 : vector<10x8x128xf32>
    %99 = arith.addf %95, %98 : vector<10x8x128xf32>
    %100 = vector.extract_strided_slice %94 {offsets = [1, 0, 0], sizes = [10, 8, 128], strides = [1, 1, 1]} : vector<12x10x128xf32> to vector<10x8x128xf32>
    %cst_53 = arith.constant 1.875000e-01 : f32
    %101 = vector.broadcast %cst_53 : f32 to vector<10x8x128xf32>
    %102 = arith.mulf %101, %100 : vector<10x8x128xf32>
    %103 = arith.addf %99, %102 : vector<10x8x128xf32>
    %104 = vector.extract_strided_slice %94 {offsets = [0, 1, 0], sizes = [10, 8, 128], strides = [1, 1, 1]} : vector<12x10x128xf32> to vector<10x8x128xf32>
    %cst_54 = arith.constant 1.875000e-01 : f32
    %105 = vector.broadcast %cst_54 : f32 to vector<10x8x128xf32>
    %106 = arith.mulf %105, %104 : vector<10x8x128xf32>
    %107 = arith.addf %103, %106 : vector<10x8x128xf32>
    %108 = vector.extract_strided_slice %94 {offsets = [0, 0, 0], sizes = [10, 8, 128], strides = [1, 1, 1]} : vector<12x10x128xf32> to vector<10x8x128xf32>
    %cst_55 = arith.constant 6.250000e-02 : f32
    %109 = vector.broadcast %cst_55 : f32 to vector<10x8x128xf32>
    %110 = arith.mulf %109, %108 : vector<10x8x128xf32>
    %111 = arith.addf %107, %110 : vector<10x8x128xf32>
    %cst_56 = arith.constant 0.000000e+00 : f32
    %112 = vector.broadcast %cst_56 : f32 to vector<10x8x128xf32>
    %113 = vector.extract_strided_slice %94 {offsets = [1, 1, 0], sizes = [10, 8, 128], strides = [1, 1, 1]} : vector<12x10x128xf32> to vector<10x8x128xf32>
    %cst_57 = arith.constant 5.625000e-01 : f32
    %114 = vector.broadcast %cst_57 : f32 to vector<10x8x128xf32>
    %115 = arith.mulf %114, %113 : vector<10x8x128xf32>
    %116 = arith.addf %112, %115 : vector<10x8x128xf32>
    %117 = vector.extract_strided_slice %94 {offsets = [1, 2, 0], sizes = [10, 8, 128], strides = [1, 1, 1]} : vector<12x10x128xf32> to vector<10x8x128xf32>
    %cst_58 = arith.constant 1.875000e-01 : f32
    %118 = vector.broadcast %cst_58 : f32 to vector<10x8x128xf32>
    %119 = arith.mulf %118, %117 : vector<10x8x128xf32>
    %120 = arith.addf %116, %119 : vector<10x8x128xf32>
    %121 = vector.extract_strided_slice %94 {offsets = [0, 1, 0], sizes = [10, 8, 128], strides = [1, 1, 1]} : vector<12x10x128xf32> to vector<10x8x128xf32>
    %cst_59 = arith.constant 1.875000e-01 : f32
    %122 = vector.broadcast %cst_59 : f32 to vector<10x8x128xf32>
    %123 = arith.mulf %122, %121 : vector<10x8x128xf32>
    %124 = arith.addf %120, %123 : vector<10x8x128xf32>
    %125 = vector.extract_strided_slice %94 {offsets = [0, 2, 0], sizes = [10, 8, 128], strides = [1, 1, 1]} : vector<12x10x128xf32> to vector<10x8x128xf32>
    %cst_60 = arith.constant 6.250000e-02 : f32
    %126 = vector.broadcast %cst_60 : f32 to vector<10x8x128xf32>
    %127 = arith.mulf %126, %125 : vector<10x8x128xf32>
    %128 = arith.addf %124, %127 : vector<10x8x128xf32>
    %129 = vector.shape_cast %111 : vector<10x8x128xf32> to vector<10x8x1x128xf32>
    %130 = vector.shape_cast %128 : vector<10x8x128xf32> to vector<10x8x1x128xf32>
    %131 = tpu.concatenate %129, %130 in 2 : vector<10x8x1x128xf32>, vector<10x8x1x128xf32> -> vector<10x8x2x128xf32>
    %132 = vector.shape_cast %131 : vector<10x8x2x128xf32> to vector<10x16x128xf32>
    %cst_61 = arith.constant 0.000000e+00 : f32
    %133 = vector.broadcast %cst_61 : f32 to vector<10x8x128xf32>
    %134 = vector.extract_strided_slice %94 {offsets = [1, 1, 0], sizes = [10, 8, 128], strides = [1, 1, 1]} : vector<12x10x128xf32> to vector<10x8x128xf32>
    %cst_62 = arith.constant 5.625000e-01 : f32
    %135 = vector.broadcast %cst_62 : f32 to vector<10x8x128xf32>
    %136 = arith.mulf %135, %134 : vector<10x8x128xf32>
    %137 = arith.addf %133, %136 : vector<10x8x128xf32>
    %138 = vector.extract_strided_slice %94 {offsets = [1, 0, 0], sizes = [10, 8, 128], strides = [1, 1, 1]} : vector<12x10x128xf32> to vector<10x8x128xf32>
    %cst_63 = arith.constant 1.875000e-01 : f32
    %139 = vector.broadcast %cst_63 : f32 to vector<10x8x128xf32>
    %140 = arith.mulf %139, %138 : vector<10x8x128xf32>
    %141 = arith.addf %137, %140 : vector<10x8x128xf32>
    %142 = vector.extract_strided_slice %94 {offsets = [2, 1, 0], sizes = [10, 8, 128], strides = [1, 1, 1]} : vector<12x10x128xf32> to vector<10x8x128xf32>
    %cst_64 = arith.constant 1.875000e-01 : f32
    %143 = vector.broadcast %cst_64 : f32 to vector<10x8x128xf32>
    %144 = arith.mulf %143, %142 : vector<10x8x128xf32>
    %145 = arith.addf %141, %144 : vector<10x8x128xf32>
    %146 = vector.extract_strided_slice %94 {offsets = [2, 0, 0], sizes = [10, 8, 128], strides = [1, 1, 1]} : vector<12x10x128xf32> to vector<10x8x128xf32>
    %cst_65 = arith.constant 6.250000e-02 : f32
    %147 = vector.broadcast %cst_65 : f32 to vector<10x8x128xf32>
    %148 = arith.mulf %147, %146 : vector<10x8x128xf32>
    %149 = arith.addf %145, %148 : vector<10x8x128xf32>
    %cst_66 = arith.constant 0.000000e+00 : f32
    %150 = vector.broadcast %cst_66 : f32 to vector<10x8x128xf32>
    %151 = vector.extract_strided_slice %94 {offsets = [1, 1, 0], sizes = [10, 8, 128], strides = [1, 1, 1]} : vector<12x10x128xf32> to vector<10x8x128xf32>
    %cst_67 = arith.constant 5.625000e-01 : f32
    %152 = vector.broadcast %cst_67 : f32 to vector<10x8x128xf32>
    %153 = arith.mulf %152, %151 : vector<10x8x128xf32>
    %154 = arith.addf %150, %153 : vector<10x8x128xf32>
    %155 = vector.extract_strided_slice %94 {offsets = [1, 2, 0], sizes = [10, 8, 128], strides = [1, 1, 1]} : vector<12x10x128xf32> to vector<10x8x128xf32>
    %cst_68 = arith.constant 1.875000e-01 : f32
    %156 = vector.broadcast %cst_68 : f32 to vector<10x8x128xf32>
    %157 = arith.mulf %156, %155 : vector<10x8x128xf32>
    %158 = arith.addf %154, %157 : vector<10x8x128xf32>
    %159 = vector.extract_strided_slice %94 {offsets = [2, 1, 0], sizes = [10, 8, 128], strides = [1, 1, 1]} : vector<12x10x128xf32> to vector<10x8x128xf32>
    %cst_69 = arith.constant 1.875000e-01 : f32
    %160 = vector.broadcast %cst_69 : f32 to vector<10x8x128xf32>
    %161 = arith.mulf %160, %159 : vector<10x8x128xf32>
    %162 = arith.addf %158, %161 : vector<10x8x128xf32>
    %163 = vector.extract_strided_slice %94 {offsets = [2, 2, 0], sizes = [10, 8, 128], strides = [1, 1, 1]} : vector<12x10x128xf32> to vector<10x8x128xf32>
    %cst_70 = arith.constant 6.250000e-02 : f32
    %164 = vector.broadcast %cst_70 : f32 to vector<10x8x128xf32>
    %165 = arith.mulf %164, %163 : vector<10x8x128xf32>
    %166 = arith.addf %162, %165 : vector<10x8x128xf32>
    %167 = vector.shape_cast %149 : vector<10x8x128xf32> to vector<10x8x1x128xf32>
    %168 = vector.shape_cast %166 : vector<10x8x128xf32> to vector<10x8x1x128xf32>
    %169 = tpu.concatenate %167, %168 in 2 : vector<10x8x1x128xf32>, vector<10x8x1x128xf32> -> vector<10x8x2x128xf32>
    %170 = vector.shape_cast %169 : vector<10x8x2x128xf32> to vector<10x16x128xf32>
    %171 = vector.shape_cast %132 : vector<10x16x128xf32> to vector<10x1x16x128xf32>
    %172 = vector.shape_cast %170 : vector<10x16x128xf32> to vector<10x1x16x128xf32>
    %173 = tpu.concatenate %171, %172 in 1 : vector<10x1x16x128xf32>, vector<10x1x16x128xf32> -> vector<10x2x16x128xf32>
    %174 = vector.shape_cast %173 : vector<10x2x16x128xf32> to vector<20x16x128xf32>
    %175 = vector.extract_strided_slice %174 {offsets = [1, 0, 0], sizes = [18, 16, 128], strides = [1, 1, 1]} : vector<20x16x128xf32> to vector<18x16x128xf32>
    %c2_i32 = arith.constant 2 : i32
    %176 = arith.muli %0, %c2_i32 : i32
    %c1_i32_71 = arith.constant 1 : i32
    %177 = arith.subi %176, %c1_i32_71 : i32
    %178 = tpu.iota {dimensions = array<i32: 0>} : vector<18x1x1xi32>
    %179 = vector.broadcast %177 : i32 to vector<18x1x1xi32>
    %180 = arith.addi %179, %178 : vector<18x1x1xi32>
    %c0_i32_72 = arith.constant 0 : i32
    %181 = vector.broadcast %c0_i32_72 : i32 to vector<18x1x1xi32>
    %182 = arith.cmpi sge, %180, %181 : vector<18x1x1xi32>
    %c16_i32 = arith.constant 16 : i32
    %183 = vector.broadcast %c16_i32 : i32 to vector<18x1x1xi32>
    %184 = arith.cmpi slt, %180, %183 : vector<18x1x1xi32>
    %185 = arith.andi %182, %184 : vector<18x1x1xi1>
    %cst_73 = arith.constant 0.000000e+00 : f32
    %186 = vector.shape_cast %185 : vector<18x1x1xi1> to vector<18x1x1xi1>
    %187 = vector.broadcast %186 : vector<18x1x1xi1> to vector<18x16x128xi1>
    %188 = vector.broadcast %cst_73 : f32 to vector<18x16x128xf32>
    %189 = arith.select %187, %175, %188 : vector<18x16x128xi1>, vector<18x16x128xf32>
    %c0_74 = arith.constant 0 : index
    %c0_75 = arith.constant 0 : index
    %c0_76 = arith.constant 0 : index
    %c0_77 = arith.constant 0 : index
    %c0_78 = arith.constant 0 : index
    %190 = vector.load %arg6[%c0_74, %c0_75, %c0_76, %c0_77, %c0_78] : memref<1x1x1x16x128xbf16, #tpu.memory_space<vmem>>, vector<1x1x1x16x128xbf16>
    %191 = vector.shape_cast %190 : vector<1x1x1x16x128xbf16> to vector<1x16x128xbf16>
    %c0_79 = arith.constant 0 : index
    %c0_80 = arith.constant 0 : index
    %c0_81 = arith.constant 0 : index
    %c0_82 = arith.constant 0 : index
    %192 = vector.load %arg5[%c0_79, %c0_80, %c0_81, %c0_82] : memref<1x16x16x128xbf16, #tpu.memory_space<vmem>>, vector<1x16x16x128xbf16>
    %193 = vector.shape_cast %192 : vector<1x16x16x128xbf16> to vector<16x16x128xbf16>
    %c0_83 = arith.constant 0 : index
    %c0_84 = arith.constant 0 : index
    %c0_85 = arith.constant 0 : index
    %c0_86 = arith.constant 0 : index
    %c0_87 = arith.constant 0 : index
    %194 = vector.load %arg7[%c0_83, %c0_84, %c0_85, %c0_86, %c0_87] : memref<1x1x1x16x128xbf16, #tpu.memory_space<vmem>>, vector<1x1x1x16x128xbf16>
    %195 = vector.shape_cast %194 : vector<1x1x1x16x128xbf16> to vector<1x16x128xbf16>
    %196 = tpu.concatenate %191, %193, %195 in 0 : vector<1x16x128xbf16>, vector<16x16x128xbf16>, vector<1x16x128xbf16> -> vector<18x16x128xbf16>
    %197 = arith.extf %196 : vector<18x16x128xbf16> to vector<18x16x128xf32>
    %cst_88 = arith.constant 0.000000e+00 : f32
    %198 = vector.broadcast %cst_88 : f32 to vector<18x1x128xf32>
    %199 = arith.addf %189, %197 : vector<18x16x128xf32>
    %200 = tpu.concatenate %198, %199, %198 in 1 : vector<18x1x128xf32>, vector<18x16x128xf32>, vector<18x1x128xf32> -> vector<18x18x128xf32>
    %201 = arith.truncf %200 : vector<18x18x128xf32> to vector<18x18x128xbf16>
    %cst_89 = arith.constant 0.000000e+00 : f32
    %202 = vector.broadcast %cst_89 : f32 to vector<256x128xf32>
    %203 = vector.extract_strided_slice %201 {offsets = [0, 0, 0], sizes = [16, 16, 128], strides = [1, 1, 1]} : vector<18x18x128xbf16> to vector<16x16x128xbf16>
    %204 = vector.shape_cast %203 : vector<16x16x128xbf16> to vector<256x128xbf16>
    %c0_90 = arith.constant 0 : index
    %c0_91 = arith.constant 0 : index
    %c0_92 = arith.constant 0 : index
    %205 = vector.load %arg11[%c0_90, %c0_91, %c0_92] : memref<9x128x128xbf16, #tpu.memory_space<vmem>>, vector<1x128x128xbf16>
    %206 = vector.shape_cast %205 : vector<1x128x128xbf16> to vector<128x128xbf16>
    %cst_93 = arith.constant dense<0.000000e+00> : vector<256x128xf32>
    %207 = tpu.matmul %204, %206, %cst_93 {dimension_numbers = #tpu.dot_dimension_numbers<[1], [0], [0], [1], [0, 0, 1, 1], [], []>} : vector<256x128xbf16>, vector<128x128xbf16>, vector<256x128xf32> -> vector<256x128xf32>
    %208 = arith.addf %202, %207 : vector<256x128xf32>
    %209 = vector.extract_strided_slice %201 {offsets = [0, 1, 0], sizes = [16, 16, 128], strides = [1, 1, 1]} : vector<18x18x128xbf16> to vector<16x16x128xbf16>
    %210 = vector.shape_cast %209 : vector<16x16x128xbf16> to vector<256x128xbf16>
    %c1_94 = arith.constant 1 : index
    %c0_95 = arith.constant 0 : index
    %c0_96 = arith.constant 0 : index
    %211 = vector.load %arg11[%c1_94, %c0_95, %c0_96] : memref<9x128x128xbf16, #tpu.memory_space<vmem>>, vector<1x128x128xbf16>
    %212 = vector.shape_cast %211 : vector<1x128x128xbf16> to vector<128x128xbf16>
    %cst_97 = arith.constant dense<0.000000e+00> : vector<256x128xf32>
    %213 = tpu.matmul %210, %212, %cst_97 {dimension_numbers = #tpu.dot_dimension_numbers<[1], [0], [0], [1], [0, 0, 1, 1], [], []>} : vector<256x128xbf16>, vector<128x128xbf16>, vector<256x128xf32> -> vector<256x128xf32>
    %214 = arith.addf %208, %213 : vector<256x128xf32>
    %215 = vector.extract_strided_slice %201 {offsets = [0, 2, 0], sizes = [16, 16, 128], strides = [1, 1, 1]} : vector<18x18x128xbf16> to vector<16x16x128xbf16>
    %216 = vector.shape_cast %215 : vector<16x16x128xbf16> to vector<256x128xbf16>
    %c2_98 = arith.constant 2 : index
    %c0_99 = arith.constant 0 : index
    %c0_100 = arith.constant 0 : index
    %217 = vector.load %arg11[%c2_98, %c0_99, %c0_100] : memref<9x128x128xbf16, #tpu.memory_space<vmem>>, vector<1x128x128xbf16>
    %218 = vector.shape_cast %217 : vector<1x128x128xbf16> to vector<128x128xbf16>
    %cst_101 = arith.constant dense<0.000000e+00> : vector<256x128xf32>
    %219 = tpu.matmul %216, %218, %cst_101 {dimension_numbers = #tpu.dot_dimension_numbers<[1], [0], [0], [1], [0, 0, 1, 1], [], []>} : vector<256x128xbf16>, vector<128x128xbf16>, vector<256x128xf32> -> vector<256x128xf32>
    %220 = arith.addf %214, %219 : vector<256x128xf32>
    %221 = vector.extract_strided_slice %201 {offsets = [1, 0, 0], sizes = [16, 16, 128], strides = [1, 1, 1]} : vector<18x18x128xbf16> to vector<16x16x128xbf16>
    %222 = vector.shape_cast %221 : vector<16x16x128xbf16> to vector<256x128xbf16>
    %c3_102 = arith.constant 3 : index
    %c0_103 = arith.constant 0 : index
    %c0_104 = arith.constant 0 : index
    %223 = vector.load %arg11[%c3_102, %c0_103, %c0_104] : memref<9x128x128xbf16, #tpu.memory_space<vmem>>, vector<1x128x128xbf16>
    %224 = vector.shape_cast %223 : vector<1x128x128xbf16> to vector<128x128xbf16>
    %cst_105 = arith.constant dense<0.000000e+00> : vector<256x128xf32>
    %225 = tpu.matmul %222, %224, %cst_105 {dimension_numbers = #tpu.dot_dimension_numbers<[1], [0], [0], [1], [0, 0, 1, 1], [], []>} : vector<256x128xbf16>, vector<128x128xbf16>, vector<256x128xf32> -> vector<256x128xf32>
    %226 = arith.addf %220, %225 : vector<256x128xf32>
    %227 = vector.extract_strided_slice %201 {offsets = [1, 1, 0], sizes = [16, 16, 128], strides = [1, 1, 1]} : vector<18x18x128xbf16> to vector<16x16x128xbf16>
    %228 = vector.shape_cast %227 : vector<16x16x128xbf16> to vector<256x128xbf16>
    %c4_106 = arith.constant 4 : index
    %c0_107 = arith.constant 0 : index
    %c0_108 = arith.constant 0 : index
    %229 = vector.load %arg11[%c4_106, %c0_107, %c0_108] : memref<9x128x128xbf16, #tpu.memory_space<vmem>>, vector<1x128x128xbf16>
    %230 = vector.shape_cast %229 : vector<1x128x128xbf16> to vector<128x128xbf16>
    %cst_109 = arith.constant dense<0.000000e+00> : vector<256x128xf32>
    %231 = tpu.matmul %228, %230, %cst_109 {dimension_numbers = #tpu.dot_dimension_numbers<[1], [0], [0], [1], [0, 0, 1, 1], [], []>} : vector<256x128xbf16>, vector<128x128xbf16>, vector<256x128xf32> -> vector<256x128xf32>
    %232 = arith.addf %226, %231 : vector<256x128xf32>
    %233 = vector.extract_strided_slice %201 {offsets = [1, 2, 0], sizes = [16, 16, 128], strides = [1, 1, 1]} : vector<18x18x128xbf16> to vector<16x16x128xbf16>
    %234 = vector.shape_cast %233 : vector<16x16x128xbf16> to vector<256x128xbf16>
    %c5_110 = arith.constant 5 : index
    %c0_111 = arith.constant 0 : index
    %c0_112 = arith.constant 0 : index
    %235 = vector.load %arg11[%c5_110, %c0_111, %c0_112] : memref<9x128x128xbf16, #tpu.memory_space<vmem>>, vector<1x128x128xbf16>
    %236 = vector.shape_cast %235 : vector<1x128x128xbf16> to vector<128x128xbf16>
    %cst_113 = arith.constant dense<0.000000e+00> : vector<256x128xf32>
    %237 = tpu.matmul %234, %236, %cst_113 {dimension_numbers = #tpu.dot_dimension_numbers<[1], [0], [0], [1], [0, 0, 1, 1], [], []>} : vector<256x128xbf16>, vector<128x128xbf16>, vector<256x128xf32> -> vector<256x128xf32>
    %238 = arith.addf %232, %237 : vector<256x128xf32>
    %239 = vector.extract_strided_slice %201 {offsets = [2, 0, 0], sizes = [16, 16, 128], strides = [1, 1, 1]} : vector<18x18x128xbf16> to vector<16x16x128xbf16>
    %240 = vector.shape_cast %239 : vector<16x16x128xbf16> to vector<256x128xbf16>
    %c6_114 = arith.constant 6 : index
    %c0_115 = arith.constant 0 : index
    %c0_116 = arith.constant 0 : index
    %241 = vector.load %arg11[%c6_114, %c0_115, %c0_116] : memref<9x128x128xbf16, #tpu.memory_space<vmem>>, vector<1x128x128xbf16>
    %242 = vector.shape_cast %241 : vector<1x128x128xbf16> to vector<128x128xbf16>
    %cst_117 = arith.constant dense<0.000000e+00> : vector<256x128xf32>
    %243 = tpu.matmul %240, %242, %cst_117 {dimension_numbers = #tpu.dot_dimension_numbers<[1], [0], [0], [1], [0, 0, 1, 1], [], []>} : vector<256x128xbf16>, vector<128x128xbf16>, vector<256x128xf32> -> vector<256x128xf32>
    %244 = arith.addf %238, %243 : vector<256x128xf32>
    %245 = vector.extract_strided_slice %201 {offsets = [2, 1, 0], sizes = [16, 16, 128], strides = [1, 1, 1]} : vector<18x18x128xbf16> to vector<16x16x128xbf16>
    %246 = vector.shape_cast %245 : vector<16x16x128xbf16> to vector<256x128xbf16>
    %c7_118 = arith.constant 7 : index
    %c0_119 = arith.constant 0 : index
    %c0_120 = arith.constant 0 : index
    %247 = vector.load %arg11[%c7_118, %c0_119, %c0_120] : memref<9x128x128xbf16, #tpu.memory_space<vmem>>, vector<1x128x128xbf16>
    %248 = vector.shape_cast %247 : vector<1x128x128xbf16> to vector<128x128xbf16>
    %cst_121 = arith.constant dense<0.000000e+00> : vector<256x128xf32>
    %249 = tpu.matmul %246, %248, %cst_121 {dimension_numbers = #tpu.dot_dimension_numbers<[1], [0], [0], [1], [0, 0, 1, 1], [], []>} : vector<256x128xbf16>, vector<128x128xbf16>, vector<256x128xf32> -> vector<256x128xf32>
    %250 = arith.addf %244, %249 : vector<256x128xf32>
    %251 = vector.extract_strided_slice %201 {offsets = [2, 2, 0], sizes = [16, 16, 128], strides = [1, 1, 1]} : vector<18x18x128xbf16> to vector<16x16x128xbf16>
    %252 = vector.shape_cast %251 : vector<16x16x128xbf16> to vector<256x128xbf16>
    %c8_122 = arith.constant 8 : index
    %c0_123 = arith.constant 0 : index
    %c0_124 = arith.constant 0 : index
    %253 = vector.load %arg11[%c8_122, %c0_123, %c0_124] : memref<9x128x128xbf16, #tpu.memory_space<vmem>>, vector<1x128x128xbf16>
    %254 = vector.shape_cast %253 : vector<1x128x128xbf16> to vector<128x128xbf16>
    %cst_125 = arith.constant dense<0.000000e+00> : vector<256x128xf32>
    %255 = tpu.matmul %252, %254, %cst_125 {dimension_numbers = #tpu.dot_dimension_numbers<[1], [0], [0], [1], [0, 0, 1, 1], [], []>} : vector<256x128xbf16>, vector<128x128xbf16>, vector<256x128xf32> -> vector<256x128xf32>
    %256 = arith.addf %250, %255 : vector<256x128xf32>
    %c0_126 = arith.constant 0 : index
    %c0_127 = arith.constant 0 : index
    %257 = vector.load %arg12[%c0_126, %c0_127] : memref<1x128xf32, #tpu.memory_space<vmem>>, vector<1x128xf32>
    %258 = vector.shape_cast %257 : vector<1x128xf32> to vector<128xf32>
    %259 = vector.shape_cast %258 : vector<128xf32> to vector<1x128xf32>
    %260 = vector.broadcast %259 : vector<1x128xf32> to vector<256x128xf32>
    %261 = arith.mulf %256, %260 : vector<256x128xf32>
    %c0_128 = arith.constant 0 : index
    %c0_129 = arith.constant 0 : index
    %262 = vector.load %arg13[%c0_128, %c0_129] : memref<1x128xf32, #tpu.memory_space<vmem>>, vector<1x128xf32>
    %263 = vector.shape_cast %262 : vector<1x128xf32> to vector<128xf32>
    %264 = vector.shape_cast %263 : vector<128xf32> to vector<1x128xf32>
    %265 = vector.broadcast %264 : vector<1x128xf32> to vector<256x128xf32>
    %266 = arith.addf %261, %265 : vector<256x128xf32>
    %cst_130 = arith.constant 0.000000e+00 : f32
    %267 = vector.broadcast %cst_130 : f32 to vector<256x128xf32>
    %268 = arith.maximumf %266, %267 : vector<256x128xf32>
    %269 = vector.shape_cast %268 : vector<256x128xf32> to vector<16x16x128xf32>
    %270 = arith.truncf %269 : vector<16x16x128xf32> to vector<16x16x128xbf16>
    %c0_131 = arith.constant 0 : index
    %c0_132 = arith.constant 0 : index
    %c0_133 = arith.constant 0 : index
    %c0_134 = arith.constant 0 : index
    %271 = vector.load %arg14[%c0_131, %c0_132, %c0_133, %c0_134] : memref<1x16x16x128xbf16, #tpu.memory_space<vmem>>, vector<1x16x16x128xbf16>
    %272 = vector.shape_cast %271 : vector<1x16x16x128xbf16> to vector<16x16x128xbf16>
    %273 = vector.shape_cast %270 : vector<16x16x128xbf16> to vector<1x16x16x128xbf16>
    tpu.vector_store %arg14[%c0_131, %c0_132, %c0_133, %c0_134], %273 {strides = array<i32>} : memref<1x16x16x128xbf16, #tpu.memory_space<vmem>>, vector<1x16x16x128xbf16>,
    return
  }
  func.func @transform_0(%arg0: i32, %arg1: i32) -> (i32, i32, i32, i32) {
    %c0_i32 = arith.constant 0 : i32
    %c0_i32_0 = arith.constant 0 : i32
    %c0_i32_1 = arith.constant 0 : i32
    return %arg0, %arg1, %c0_i32, %c0_i32_0 : i32, i32, i32, i32
  }
  func.func @transform_1(%arg0: i32, %arg1: i32) -> (i32, i32, i32, i32, i32) {
    %c0_i32 = arith.constant 0 : i32
    %c0_i32_0 = arith.constant 0 : i32
    %c0_i32_1 = arith.constant 0 : i32
    %c0_i32_2 = arith.constant 0 : i32
    return %arg0, %arg1, %c0_i32, %c0_i32_0, %c0_i32_1 : i32, i32, i32, i32, i32
  }
  func.func @transform_2(%arg0: i32, %arg1: i32) -> (i32, i32, i32, i32, i32) {
    %c0_i32 = arith.constant 0 : i32
    %c0_i32_0 = arith.constant 0 : i32
    %c0_i32_1 = arith.constant 0 : i32
    %c0_i32_2 = arith.constant 0 : i32
    return %arg0, %arg1, %c0_i32, %c0_i32_0, %c0_i32_1 : i32, i32, i32, i32, i32
  }
  func.func @transform_3(%arg0: i32, %arg1: i32) -> (i32, i32, i32, i32) {
    %c0_i32 = arith.constant 0 : i32
    %c0_i32_0 = arith.constant 0 : i32
    %c0_i32_1 = arith.constant 0 : i32
    return %arg0, %arg1, %c0_i32, %c0_i32_0 : i32, i32, i32, i32
  }
  func.func @transform_4(%arg0: i32, %arg1: i32) -> (i32, i32, i32, i32, i32) {
    %c0_i32 = arith.constant 0 : i32
    %c0_i32_0 = arith.constant 0 : i32
    %c0_i32_1 = arith.constant 0 : i32
    %c0_i32_2 = arith.constant 0 : i32
    return %arg0, %arg1, %c0_i32, %c0_i32_0, %c0_i32_1 : i32, i32, i32, i32, i32
  }
  func.func @transform_5(%arg0: i32, %arg1: i32) -> (i32, i32, i32, i32, i32) {
    %c0_i32 = arith.constant 0 : i32
    %c0_i32_0 = arith.constant 0 : i32
    %c0_i32_1 = arith.constant 0 : i32
    %c0_i32_2 = arith.constant 0 : i32
    return %arg0, %arg1, %c0_i32, %c0_i32_0, %c0_i32_1 : i32, i32, i32, i32, i32
  }
  func.func @transform_6(%arg0: i32, %arg1: i32) -> (i32, i32, i32) {
    %c0_i32 = arith.constant 0 : i32
    %c0_i32_0 = arith.constant 0 : i32
    %c0_i32_1 = arith.constant 0 : i32
    %c0_i32_2 = arith.constant 0 : i32
    return %c0_i32, %c0_i32_0, %c0_i32_1 : i32, i32, i32
  }
  func.func @transform_7(%arg0: i32, %arg1: i32) -> (i32, i32) {
    %c0_i32 = arith.constant 0 : i32
    %c0_i32_0 = arith.constant 0 : i32
    %c0_i32_1 = arith.constant 0 : i32
    return %c0_i32, %c0_i32_0 : i32, i32
  }
  func.func @transform_8(%arg0: i32, %arg1: i32) -> (i32, i32) {
    %c0_i32 = arith.constant 0 : i32
    %c0_i32_0 = arith.constant 0 : i32
    %c0_i32_1 = arith.constant 0 : i32
    return %c0_i32, %c0_i32_0 : i32, i32
  }
  func.func @transform_9(%arg0: i32, %arg1: i32) -> (i32, i32, i32) {
    %c0_i32 = arith.constant 0 : i32
    %c0_i32_0 = arith.constant 0 : i32
    %c0_i32_1 = arith.constant 0 : i32
    %c0_i32_2 = arith.constant 0 : i32
    return %c0_i32, %c0_i32_0, %c0_i32_1 : i32, i32, i32
  }
  func.func @transform_10(%arg0: i32, %arg1: i32) -> (i32, i32) {
    %c0_i32 = arith.constant 0 : i32
    %c0_i32_0 = arith.constant 0 : i32
    %c0_i32_1 = arith.constant 0 : i32
    return %c0_i32, %c0_i32_0 : i32, i32
  }
  func.func @transform_11(%arg0: i32, %arg1: i32) -> (i32, i32) {
    %c0_i32 = arith.constant 0 : i32
    %c0_i32_0 = arith.constant 0 : i32
    %c0_i32_1 = arith.constant 0 : i32
    return %c0_i32, %c0_i32_0 : i32, i32
  }
  func.func @transform_12(%arg0: i32, %arg1: i32) -> (i32, i32, i32, i32) {
    %c0_i32 = arith.constant 0 : i32
    %c0_i32_0 = arith.constant 0 : i32
    %c0_i32_1 = arith.constant 0 : i32
    return %arg0, %arg1, %c0_i32, %c0_i32_0 : i32, i32, i32, i32
  }
}

</mosaic_0001>

<bundles_post_ra>
// kernel: tpu_custom_call.1
= control target key start
LH: loop header
LB: loop body
LE: loop exit
PB: predicated region body
PF: predicated region fallthrough
CT: control target
= control target key end

     0   :  { %s18892_s0 = inlined_call_operand.hbm [shape: bf16[2,8,8,128], index: 0, kind: input, shape index: {}]   ;;  %s18893_s1 = inlined_call_operand.hbm [shape: bf16[2,1,2,8,128], index: 1, kind: input, shape index: {}]   ;;  %s18894_s2 = inlined_call_operand.hbm [shape: bf16[2,1,2,8,128], index: 2, kind: input, shape index: {}]   ;;  %s18895_s3 = inlined_call_operand.hbm [shape: bf16[2,16,16,128], index: 3, kind: input, shape index: {}]   ;;  %s18896_s4 = inlined_call_operand.hbm [shape: bf16[2,1,1,16,128], index: 4, kind: input, shape index: {}]   ;;  %s18897_s5 = inlined_call_operand.hbm [shape: bf16[2,1,1,16,128], index: 5, kind: input, shape index: {}]   ;;  %s18898_s6 = inlined_call_operand.hbm [shape: bf16[9,128,128], index: 6, kind: input, shape index: {}]   ;;  %s18899_s7 = inlined_call_operand.vmem [shape: f32[1,128], index: 7, kind: input, shape index: {}]   ;;  %s18900_s8 = inlined_call_operand.vmem [shape: f32[1,128], index: 8, kind: input, shape index: {}]   ;;  %s18901_s9 = inlined_call_operand.hbm [shape: bf16[9,128,128], index: 9, kind: input, shape index: {}]   ;;  %s18902_s10 = inlined_call_operand.vmem [shape: f32[1,128], index: 10, kind: input, shape index: {}]   ;;  %s18903_s11 = inlined_call_operand.vmem [shape: f32[1,128], index: 11, kind: input, shape index: {}]   ;;  %s18904_s12 = inlined_call_operand.hbm [shape: bf16[2,16,16,128], index: 12, kind: output, shape index: {}]  }
   0x1   :  { %19114 = sst [smem:[#allocation161_spill]] %s18893_s1 }
   0x2   :  { %19115 = sst [smem:[#allocation162_spill]] %s18898_s6 }
   0x3   :  { %19116 = sst [smem:[#allocation163_spill]] %s18899_s7 }
   0x4   :  { %19117 = sst [smem:[#allocation164_spill]] %s18900_s8 }
   0x5   :  { %19118 = sst [smem:[#allocation165_spill]] %s18902_s10 }
   0x6   :  { %19119 = sst [smem:[#allocation166_spill]] %s18903_s11 }
   0x7   :  { %19120 = sst [smem:[#allocation167_spill]] %s18904_s12 }
   0x8   :  { %17 = vsyncpa [#allocation3], 0 }
   0x9   :  { %19 = vsyncpa [#allocation3 + $0x1], 0 }
   0xa   :  { %20 = vsyncpa [#allocation6], 0 }
   0xb   :  { %22 = vsyncpa [#allocation6 + $0x1], 0 }
   0xc   :  { %23 = vsyncpa [#allocation9], 0 }
   0xd   :  { %25 = vsyncpa [#allocation9 + $0x1], 0 }
   0xe   :  { %26 = vsyncpa [#allocation12], 0 }
   0xf   :  { %28 = vsyncpa [#allocation12 + $0x1], 0 }
  0x10   :  { %29 = vsyncpa [#allocation15], 0 }
  0x11   :  { %30 = vsyncpa [#allocation4], 0 }
  0x12   :  { %32 = vsyncpa [#allocation4 + $0x1], 0  ;;  %s14331_s21 = smov 0   ;;  %s14333_s22 = smov 0  }
  0x13   :  { %s14335_s23 = smov 0   ;;  %s14337_s24 = smov 0  }
  0x14   :  { %s14339_s25 = smov 0   ;;  %s14341_s26 = smov 0  }
  0x15 LB: > { %19121 = sst [smem:[#allocation24_spill]] %s14226_s21  ;;  %s14362_s27 = sadd.s32 4294967295, %s14246_s26   ;;  %s14246_s26 = sphi %s14341_s26, %s38_s26   ;;  %s14242_s25 = sphi %s14339_s25, %s19691_s25   ;;  %s14238_s24 = sphi %s14337_s24, %s19690_s24   ;;  %s14234_s23 = sphi %s14335_s23, %s19688_s23   ;;  %s14230_s22 = sphi %s14333_s22, %s19687_s22   ;;  %s14226_s21 = sphi %s14331_s21, %s19686_s21  }
  0x16   : > { %19122 = sst [smem:[#allocation25_spill]] %s14230_s22  ;;  %s11832_s28 = sadd.s32 4294967294, %s14246_s26  }
  0x17   : > { %19123 = sst [smem:[#allocation26_spill]] %s14234_s23  ;;  %p66_p0 = scmp.ne.s32.totalorder %s14234_s23, %s14230_s22 }
  0x18   : > { %19124 = sst [smem:[#allocation27_spill]] %s14238_s24  ;;  %p67_p1 = scmp.eq.s32.totalorder %s14246_s26, 0 }
  0x19   : > { %19125 = sst [smem:[#allocation28_spill]] %s14246_s26  ;;  %p72_p2 = scmp.ne.s32.totalorder %s14230_s22, %s14226_s21 }
  0x1a   : > { %19126 = sst [smem:[#allocation29_spill]] %s14362_s27  ;;  %p18905_p3 = scmp.eq.s32.totalorder %s14362_s27, 0 }
  0x1b   : > { %p364_p4 = scmp.eq.s32.totalorder %s14362_s27, 1  ;;  %p14373_p5 = por %p67_p1, %p66_p0 }
  0x1c   : > { %p370_p6 = scmp.eq.s32.totalorder %s11832_s28, 1  ;;  %p14379_p7 = por %p18905_p3, %p72_p2 }
  0x1d   : > { %p14383_p8 = por %p364_p4, %p66_p0  ;;  %p11833_p10 = scmp.ge.s32.totalorder %s14246_s26, 1 }
  0x1e   : > { %s19128_s13 = scalar_select %p14379_p7, 1, 0 }
  0x1f   : > { %s19130_s14 = scalar_select %p14383_p8, 1, 0 }
  0x20   : > { %19129 = sst [smem:[#allocation30_spill]] %s19128_s13  ;;  %p14387_p9 = por %p370_p6, %p72_p2 }
  0x21   : > { %19131 = sst [smem:[#allocation31_spill]] %s19130_s14  ;;  %p377_p11 = scmp.lt.s32.totalorder %s14246_s26, 3 }
  0x22   : > { %s19132_s15 = scalar_select %p14387_p9, 1, 0 }
  0x23   : > { %p14393_p12 = pnand %p11833_p10, %p377_p11  ;;  %s14248_s17 = smov [#allocation13]  }
  0x24   : > { %19133 = sst [smem:[#allocation32_spill]] %s19132_s15  ;;  %s389_s18 = sshll.u32 %s14248_s17, 4  ;;  %s390_s18 = int_to_ptr.vmem [resolvable:$true] %s389_s18 }
  0x25   : > { %s19134_s16 = scalar_select %p14393_p12, 1, 0 }
  0x26   : > { %p13671_p13 = pneg %p14393_p12  ;;  %p13703_p1 = scmp.lt.s32.totalorder %s14246_s26, 2 }
  0x27   : > { %19135 = sst [smem:[#allocation33_spill]] %s19134_s16  ;;  %s50_s28 = sadd.s32 1, %s14242_s25 }
  0x28   : > { %p14403_p4 = pnand %p13671_p13, %p18905_p3  ;;  %p14409_p2 = pnand %p13703_p1, %p14373_p5 }
  0x29   : > { %p14414_p6 = scmp.ge.s32.totalorder %s50_s28, 2  ;;  %s13937_s29 = scalar_lea.vmem %s390_s18, 9216 }
  0x2a   : > { %p13928_p10 = pneg %p14403_p4  ;;  %p13938_p11 = scmp.ne.s32.totalorder %s390_s18, %s13937_s29 }
  0x2b   : > { %p13945_p3 = scmp.lt.s32.totalorder %s390_s18, %s390_s18  ;;  %p13946_p9 = scmp.lt.s32.totalorder %s13937_s29, %s13937_s29 }
  0x2c   : > { %p13940_p13 = pnand %p13938_p11, %p13928_p10 }
  0x2d   : > { %p13947_p8 = por %p13946_p9, %p13945_p3 }
  0x2e   : > { %p13941_p0 = pneg %p13940_p13 }
  0x30   : > { %p13948_p5 = pnand %p13947_p8, %p13941_p0 }
  0x32   : > { %13951 = shalt.err (!%p13948_p5)
}
  0x33   : > { %s18912_s30 = smov 64   ;;  %s18914_s15 = smov 4  }
  0x34   : > { %s19139_s6 = sld [smem:[#allocation162_spill]]  ;;  %s14432_s12 = sand.u32 1, %s14234_s23  }
  0x35   : > { %s19693_s28 = smov (%p14414_p6, %s50_s28), 0  ;;  %s14439_s14 = sand.u32 1, %s14246_s26  }
  0x36   : > { %19140 = sst [smem:[#allocation34_spill]] %s19693_s28  ;;  %s14442_s24 = sshll.u32 %s14432_s12, 3 }
  0x37   : > { %s54_s11 = ssub.s32 %s14242_s25, %s19693_s28  ;;  %s14447_s10 = sshll.u32 %s14242_s25, 7 }
  0x38   : > { %p57_p3 = scmp.eq.s32.totalorder %s54_s11, 0  ;;  %s455_s21 = scalar_lea.vmem [#allocation5], %s14442_s24 }
  0x39   : > { %s19141_s29 = sadd.s32 1, %s14234_s23  ;;  %s19143_s1 = sld [smem:[#allocation161_spill]] }
  0x3a   : > { %13674 = dma.hbm_to_vmem [thread:$0]  (!%p14403_p4), %s19139_s6, 9216, %s390_s18, [#allocation12], %s18912_s30, %s18912_s30, %s18914_s15  }
  0x3b   : > { %s464_s18 = sshll.u32 %s455_s21, 4  ;;  %s452_s26 = scalar_lea.sflag [#allocation6], %s14439_s14  ;;  %s465_s18 = int_to_ptr.vmem [resolvable:$true] %s464_s18 }
  0x3c   : > { %s14453_s30 = scalar_select %p57_p3, %s14234_s23, %s19141_s29  }
  0x3d   : > { %p14462_p8 = pneg %p14409_p2  ;;  %s13965_s11 = scalar_lea.vmem %s465_s18, 128 }
  0x3e   : > { %19142 = sst [smem:[#allocation35_spill]] %s14453_s30  ;;  %p13966_p9 = scmp.ne.s32.totalorder %s465_s18, %s13965_s11 }
  0x3f   : > { %s463_s6 = scalar_lea.hbm %s19143_s1, %s14447_s10  ;;  %s14251_s21 = smov [#allocation5]  }
  0x40   : > { %p13968_p0 = pnand %p13966_p9, %p14462_p8  ;;  %s13970_s29 = sshll.u32 %s14251_s21, 4  ;;  %s13971_s29 = int_to_ptr.vmem [resolvable:$false] %s13970_s29 }
  0x41   : > { %s13972_s28 = scalar_lea.vmem %s13971_s29, 256  ;;  %p13973_p6 = scmp.lt.s32.totalorder %s465_s18, %s13971_s29 }
  0x42   : > { %p13969_p1 = pneg %p13968_p0  ;;  %p13974_p11 = scmp.lt.s32.totalorder %s13972_s28, %s13965_s11 }
  0x44   : > { %p13975_p13 = por %p13974_p11, %p13973_p6 }
  0x46   : > { %p13976_p5 = pnand %p13975_p13, %p13969_p1 }
  0x48   : > { %13979 = shalt.err (!%p13976_p5)
}
  0x49   : > { %s19145_s15 = smov 4   ;;  %s19146_s17 = smov 64  }
  0x4a   : > { %13684 = dma.hbm_to_vmem [thread:$0]  (!%p14409_p2), %s463_s6, 128, %s465_s18, %s452_s26, %s19146_s17, %s19146_s17, %s19145_s15  }
  0x4b   : > { %s11846_s21 = sshll.u32 %s14432_s12, 7  ;;  %s12326_s1 = sshll.u32 %s14242_s25, 11 }
  0x4c   : > { %s510_s28 = scalar_lea.hbm %s18895_s3, %s12326_s1  ;;  %s501_s11 = scalar_lea.vmem [#allocation8], %s11846_s21 }
  0x4d   : > { %s511_s23 = sshll.u32 %s501_s11, 4  ;;  %s498_s7 = scalar_lea.sflag [#allocation9], %s14439_s14  ;;  %s512_s23 = int_to_ptr.vmem [resolvable:$true] %s511_s23 }
  0x4e   : > { %s13993_s27 = scalar_lea.vmem %s512_s23, 2048  ;;  %s14252_s13 = smov [#allocation8]  }
  0x4f   : > { %p13994_p3 = scmp.ne.s32.totalorder %s512_s23, %s13993_s27  ;;  %s13998_s22 = sshll.u32 %s14252_s13, 4  ;;  %s13999_s22 = int_to_ptr.vmem [resolvable:$false] %s13998_s22 }
  0x50   : > { %s14000_s16 = scalar_lea.vmem %s13999_s22, 4096  ;;  %p14001_p1 = scmp.lt.s32.totalorder %s512_s23, %s13999_s22 }
  0x51   : > { %p13996_p9 = pnand %p13994_p3, %p14462_p8  ;;  %p14002_p6 = scmp.lt.s32.totalorder %s14000_s16, %s13993_s27 }
  0x53   : > { %p13997_p0 = pneg %p13996_p9  ;;  %p14003_p11 = por %p14002_p6, %p14001_p1 }
  0x55   : > { %p14004_p13 = pnand %p14003_p11, %p13997_p0 }
  0x57   : > { %14007 = shalt.err (!%p14004_p13)
}
  0x58   : > { %13690 = dma.hbm_to_vmem [thread:$0]  (!%p14409_p2), %s510_s28, 2048, %s512_s23, %s498_s7, %s19146_s17, %s19146_s17, %s19145_s15  }
  0x59   : > { %s14253_s1 = smov [#allocation14]   ;;  %s11837_s13 = sshll.u32 %s14432_s12, 5 }
  0x5a   : > { %s408_s6 = sshll.u32 %s14253_s1, 4  ;;  %s409_s6 = int_to_ptr.vmem [resolvable:$true] %s408_s6 }
  0x5b   : > { %s14019_s30 = scalar_lea.vmem %s409_s6, 9216  ;;  %p14027_p0 = scmp.lt.s32.totalorder %s409_s6, %s409_s6 }
  0x5c   : > { %p14020_p5 = scmp.ne.s32.totalorder %s409_s6, %s14019_s30  ;;  %p14028_p1 = scmp.lt.s32.totalorder %s14019_s30, %s14019_s30 }
  0x5e   : > { %p14022_p3 = pnand %p14020_p5, %p13928_p10  ;;  %p14029_p6 = por %p14028_p1, %p14027_p0 }
  0x60   : > { %p14023_p9 = pneg %p14022_p3 }
  0x62   : > { %p14030_p11 = pnand %p14029_p6, %p14023_p9 }
  0x64   : > { %14033 = shalt.err (!%p14030_p11)
}
  0x65   : > { %13677 = dma.hbm_to_vmem [thread:$0]  (!%p14403_p4), %s18901_s9, 9216, %s409_s6, [#allocation15], %s19146_s17, %s19146_s17, %s19145_s15  }
  0x66   : > { %s12323_s27 = sshll.u32 %s14242_s25, 9  ;;  %s432_s29 = scalar_lea.vmem [#allocation2], %s11837_s13 }
  0x67   : > { %s440_s21 = scalar_lea.hbm %s18892_s0, %s12323_s27  ;;  %s441_s28 = sshll.u32 %s432_s29, 4  ;;  %s442_s28 = int_to_ptr.vmem [resolvable:$true] %s441_s28 }
  0x68   : > { %s429_s11 = scalar_lea.sflag [#allocation3], %s14432_s12  ;;  %s14047_s19 = scalar_lea.vmem %s442_s28, 512 }
  0x69   : > { %p14048_p10 = scmp.ne.s32.totalorder %s442_s28, %s14047_s19  ;;  %s14254_s1 = smov [#allocation2]  }
  0x6a   : > { %s14052_s30 = sshll.u32 %s14254_s1, 4  ;;  %s14053_s30 = int_to_ptr.vmem [resolvable:$false] %s14052_s30 }
  0x6b   : > { %p14050_p13 = pnand %p14048_p10, %p14462_p8  ;;  %s14054_s22 = scalar_lea.vmem %s14053_s30, 1024 }
  0x6c   : > { %p14055_p3 = scmp.lt.s32.totalorder %s442_s28, %s14053_s30  ;;  %p14056_p4 = scmp.lt.s32.totalorder %s14054_s22, %s14047_s19 }
  0x6d   : > { %p14051_p5 = pneg %p14050_p13 }
  0x6e   : > { %p14057_p9 = por %p14056_p4, %p14055_p3 }
  0x70   : > { %p14058_p0 = pnand %p14057_p9, %p14051_p5 }
  0x72   : > { %14061 = shalt.err (!%p14058_p0)
}
  0x73   : > { %13681 = dma.hbm_to_vmem [thread:$0]  (!%p14409_p2), %s440_s21, 512, %s442_s28, %s429_s11, %s19146_s17, %s19146_s17, %s19145_s15  }
  0x74   : > { %s486_s13 = scalar_lea.hbm %s18894_s2, %s14447_s10  ;;  %s478_s23 = scalar_lea.vmem [#allocation7], %s14442_s24 }
  0x75   : > { %s487_s27 = sshll.u32 %s478_s23, 4  ;;  %s14255_s18 = smov [#allocation7]   ;;  %s488_s27 = int_to_ptr.vmem [resolvable:$true] %s487_s27 }
  0x76   : > { %s14075_s16 = scalar_lea.vmem %s488_s27, 128  ;;  %s14080_s29 = sshll.u32 %s14255_s18, 4  ;;  %s14081_s29 = int_to_ptr.vmem [resolvable:$false] %s14080_s29 }
  0x77   : > { %p14076_p1 = scmp.ne.s32.totalorder %s488_s27, %s14075_s16  ;;  %s14082_s19 = scalar_lea.vmem %s14081_s29, 256 }
  0x78   : > { %p14083_p10 = scmp.lt.s32.totalorder %s488_s27, %s14081_s29  ;;  %p14084_p13 = scmp.lt.s32.totalorder %s14082_s19, %s14075_s16 }
  0x79   : > { %p14078_p6 = pnand %p14076_p1, %p14462_p8 }
  0x7a   : > { %p14085_p5 = por %p14084_p13, %p14083_p10 }
  0x7b   : > { %p14079_p11 = pneg %p14078_p6 }
  0x7d   : > { %p14086_p3 = pnand %p14085_p5, %p14079_p11 }
  0x7f   : > { %14089 = shalt.err (!%p14086_p3)
}
  0x80   : > { %13687 = dma.hbm_to_vmem [thread:$0]  (!%p14409_p2), %s486_s13, 128, %s488_s27, %s452_s26, %s19146_s17, %s19146_s17, %s19145_s15  }
  0x81   : > { %s533_s11 = scalar_lea.hbm %s18896_s4, %s14447_s10  ;;  %s525_s1 = scalar_lea.vmem [#allocation10], %s14442_s24 }
  0x82   : > { %s534_s30 = sshll.u32 %s525_s1, 4  ;;  %s14256_s12 = smov [#allocation10]   ;;  %s535_s30 = int_to_ptr.vmem [resolvable:$true] %s534_s30 }
  0x83   : > { %s14103_s22 = scalar_lea.vmem %s535_s30, 128  ;;  %s14108_s6 = sshll.u32 %s14256_s12, 4  ;;  %s14109_s6 = int_to_ptr.vmem [resolvable:$false] %s14108_s6 }
  0x84   : > { %p14104_p4 = scmp.ne.s32.totalorder %s535_s30, %s14103_s22  ;;  %s14110_s23 = scalar_lea.vmem %s14109_s6, 256 }
  0x85   : > { %p14111_p1 = scmp.lt.s32.totalorder %s535_s30, %s14109_s6  ;;  %p14112_p6 = scmp.lt.s32.totalorder %s14110_s23, %s14103_s22 }
  0x86   : > { %p14106_p9 = pnand %p14104_p4, %p14462_p8 }
  0x87   : > { %p14113_p11 = por %p14112_p6, %p14111_p1 }
  0x88   : > { %p14107_p0 = pneg %p14106_p9 }
  0x8a   : > { %p14114_p10 = pnand %p14113_p11, %p14107_p0 }
  0x8c   : > { %14117 = shalt.err (!%p14114_p10)
}
  0x8d   : > { %13693 = dma.hbm_to_vmem [thread:$0]  (!%p14409_p2), %s533_s11, 128, %s535_s30, %s498_s7, %s19146_s17, %s19146_s17, %s19145_s15  }
  0x8e   : > { %s556_s27 = scalar_lea.hbm %s18897_s5, %s14447_s10  ;;  %s548_s16 = scalar_lea.vmem [#allocation11], %s14442_s24 }
  0x8f   : > { %s557_s18 = sshll.u32 %s548_s16, 4  ;;  %s545_s29 = scalar_lea.sflag [#allocation12], %s14439_s14  ;;  %s558_s18 = int_to_ptr.vmem [resolvable:$true] %s557_s18 }
  0x90   : > { %s14131_s19 = scalar_lea.vmem %s558_s18, 128  ;;  %s14257_s21 = smov [#allocation11]  }
  0x91   : > { %p14132_p13 = scmp.ne.s32.totalorder %s558_s18, %s14131_s19  ;;  %s14136_s28 = sshll.u32 %s14257_s21, 4  ;;  %s14137_s28 = int_to_ptr.vmem [resolvable:$false] %s14136_s28 }
  0x92   : > { %s14138_s1 = scalar_lea.vmem %s14137_s28, 256  ;;  %p14139_p4 = scmp.lt.s32.totalorder %s558_s18, %s14137_s28 }
  0x93   : > { %p14134_p5 = pnand %p14132_p13, %p14462_p8  ;;  %p14140_p9 = scmp.lt.s32.totalorder %s14138_s1, %s14131_s19 }
  0x95   : > { %p14135_p3 = pneg %p14134_p5  ;;  %p14141_p0 = por %p14140_p9, %p14139_p4 }
  0x97   : > { %p14142_p1 = pnand %p14141_p0, %p14135_p3 }
  0x99   : > { %14145 = shalt.err (!%p14142_p1)
}
  0x9a   : > { %13696 = dma.hbm_to_vmem [thread:$0]  (!%p14409_p2), %s556_s27, 128, %s558_s18, %s545_s29, %s19146_s17, %s19146_s17, %s19145_s15  }
  0x9b   : > { %569 = sbr.rel (%p14393_p12) target bundleno = 1525 (0x5f5), region = 68 }
  0xa0   : > { %s19148_s8 = sld [smem:[#allocation25_spill]] }
  0xa6   : > { %s14558_s24 = sand.u32 1, %s19148_s8  }
  0xa7   : > { %s11856_s14 = sshll.u32 %s14558_s24, 5  ;;  %s572_s11 = scalar_lea.sflag [#allocation3], %s14558_s24 }
  0xa8   : > { %s14562_s30 = scalar_lea.vmem [#allocation2], %s11856_s14 }
  0xa9   : > { %14197 = dma.done.wait (%p14379_p7), %s572_s11, 512  }
  0xaa   : > { %14199 = vsyncadd (%p14379_p7), %s572_s11, 4294966784  ;;  %s19150_s20 = sld [smem:[#allocation29_spill]]  ;;  %s14570_s17 = sshll.u32 %s14558_s24, 3 }
  0xab   : > { %s584_s12 = scalar_lea.vmem [#allocation5], %s14570_s17 }
  0xb0   : > { %s580_s15 = sand.u32 1, %s19150_s20  }
  0xb1   : > { %s581_s22 = scalar_lea.sflag [#allocation6], %s580_s15 }
  0xb2   : > { %14201 = dma.done.wait (%p14379_p7), %s581_s22, 256  }
  0xb3   : > { %14203 = vsyncadd (%p14379_p7), %s581_s22, 4294967040  ;;  %s11859_s6 = sshll.u32 %s14558_s24, 7  ;;  %s593_s23 = scalar_lea.vmem [#allocation7], %s14570_s17 }
  0xb4   : > { %s599_s26 = scalar_lea.sflag [#allocation9], %s580_s15  ;;  %s14581_s13 = scalar_lea.vmem [#allocation8], %s11859_s6 }
  0xb5   : > { %14205 = dma.done.wait (%p14379_p7), %s599_s26, 2176  }
  0xb6   : > { %14207 = vsyncadd (%p14379_p7), %s599_s26, 4294965120  ;;  %s611_s27 = scalar_lea.vmem [#allocation10], %s14570_s17  ;;  %s617_s16 = scalar_lea.sflag [#allocation12], %s580_s15 }
  0xb7   : > { %s620_s18 = scalar_lea.vmem [#allocation11], %s14570_s17 }
  0xb8   : > { %14209 = dma.done.wait (%p14379_p7), %s617_s16, 128  }
  0xb9   : > { %14211 = vsyncadd (%p14379_p7), %s617_s16, 4294967168  ;;  %p19151_p12 = scmp.eq.s32.totalorder %s19150_s20, 0 }
  0xbb   : > { %14213 = dma.done.wait (%p19151_p12), [#allocation12], 9216   ;;  %p19152_p2 = pmov %p19151_p12 }
  0xbd   : > { %14215 = vsyncadd (%p19152_p2), [#allocation12], 4294958080  ;;  %p19153_p8 = pmov %p19152_p2 }
  0xbe   : > { %p19154_p6 = pmov %p19152_p2 }
  0xbf   : > { %14217 = dma.done.wait (%p19153_p8), [#allocation15], 9216  }
  0xc0   : > { %14219 = vsyncadd (%p19154_p6), [#allocation15], 4294958080  ;;  %v14258_v0 = vmov 0.0   ;;  %vm14259_vm0 = vmmov 0   ;;  %v13766_v1 = vld [vmem:[#allocation13 + $0x78] sm:$0xff]   ;;  %v13768_v3 = vld [vmem:[#allocation13 + $0x70] sm:$0xff]  }
  0xc1   : > { %12877 = vmatprep.subr.bf16.mxu0 %v14258_v0  ;;  %12913 = vmatprep.subr.bf16.mxu1 %v14258_v0  ;;  %v13767_v2 = vld [vmem:[#allocation13 + $0x38] sm:$0xff]   ;;  %v13769_v4 = vld [vmem:[#allocation13 + $0x30] sm:$0xff]   ;;  %v13770_v5 = vld [vmem:[#allocation13 + $0x68] sm:$0xff]   ;;  %vm844_vm1 = vsmask.f32 256  ;;  %vm843_vm3 = vcmask 1040384  }
  0xc2   : > { %12893 = vmatprep.mubr.msk.bf16.mxu0 %vm14259_vm0, %v14258_v0  ;;  %12929 = vmatprep.mubr.msk.bf16.mxu1 %vm14259_vm0, %v14258_v0  ;;  %v13771_v6 = vld [vmem:[#allocation13 + $0x28] sm:$0xff]   ;;  %v13772_v7 = vld [vmem:[#allocation13 + $0x60] sm:$0xff]   ;;  %vm859_vm2 = vsmask.f32 4352  ;;  %v13774_v9 = vld [vmem:[#allocation13 + $0x58] sm:$0xff]   ;;  %vm858_vm4 = vcmask 1044480  }
  0xc3   : > { %12878 = vmatpush3.bf16.msra.mxu0 %v13766_v1  ;;  %12914 = vmatpush3.bf16.msra.mxu1 %v13767_v2  ;;  %v13773_v8 = vld [vmem:[#allocation13 + $0x20] sm:$0xff]   ;;  %v13775_v10 = vld [vmem:[#allocation13 + $0x18] sm:$0xff]   ;;  %v13776_v13 = vld [vmem:[#allocation13 + $0x50] sm:$0xff]   ;;  %vm939_vm7 = vsmask.f32 3328  ;;  %vm1371_vm10 = vcmask 1042432  }
  0xc4   : > { %12879 = vmatprep.subr.bf16.mxu0 %v14258_v0  ;;  %12915 = vmatprep.subr.bf16.mxu1 %v14258_v0  ;;  %v13782_v11 = vld [vmem:[%s584_s12] ss:$0 sps:$4 sm:$0xff]   ;;  %v13783_v12 = vld [vmem:[%s584_s12 + $0x4] ss:$0 sps:$4 sm:$0xff]   ;;  %v13777_v14 = vld [vmem:[#allocation13 + $0x10] sm:$0xff]   ;;  %vm1372_vm11 = vcmask 1046532  }
  0xc5   : > { %v748_v15 = vshrl.u32 %v13782_v11, 16  ;;  %v751_v16 = vshll.u32 %v13782_v11, 16  ;;  %v755_v17 = vshrl.u32 %v13783_v12, 16  ;;  %v758_v18 = vshll.u32 %v13783_v12, 16  ;;  %vm14622_vm5 = vmand %vm843_vm3, %vm844_vm1  ;;  %v13786_v22 = vld [vmem:[%s14562_s30] ss:$0 sps:$4 sm:$0xff]  }
  0xc6   : > { %vm14629_vm6 = vmand %vm858_vm4, %vm859_vm2  ;;  %v13778_v23 = vld [vmem:[#allocation13 + $0x48] sm:$0xff]   ;;  %v13787_v25 = vld [vmem:[%s14562_s30 + $0x4] ss:$0 sps:$4 sm:$0xff]   ;;  %v762_v28 = vshrl.u32 %v13786_v22, 16  ;;  %v765_v30 = vshll.u32 %v13786_v22, 16  ;;  %s19164_s21 = sld [smem:[#allocation163_spill]] }
  0xc7   : > { %12880 = vmatpush3.bf16.msra.mxu0 %v13768_v3  ;;  %12916 = vmatpush3.bf16.msra.mxu1 %v13769_v4  ;;  %v750_v20 = vrot.slane %v748_v15, 7  ;;  %v757_v24 = vrot.slane %v755_v17, 7  ;;  %v13779_v26 = vld [vmem:[#allocation13 + $0x8] sm:$0xff]   ;;  %v769_v31 = vshrl.u32 %v13787_v25, 16  ;;  %vm940_vm8 = vsmask.f32 7440  ;;  %vm14945_vm12 = vmor %vm1371_vm10, %vm1372_vm11 }
  0xc8   : > { %12881 = vmatprep.subr.bf16.mxu0 %v14258_v0  ;;  %12917 = vmatprep.subr.bf16.mxu1 %v14258_v0  ;;  %v764_v33 = vrot.slane %v762_v28, 7  ;;  %v772_v36 = vshll.u32 %v13787_v25, 16  ;;  %v13780_v37 = vld [vmem:[#allocation13 + $0x40] sm:$0xff]   ;;  %v14661_v46 = vld [vmem:[%s14562_s30 + $0x8] ss:$0 sps:$4 sm:$0xff]   ;;  %v13789_v58 = vld [vmem:[#allocation13 + $0xf8] sm:$0xff]  }
  0xc9   : > { %v753_v27 = vor.u32 %v751_v16, %v750_v20  ;;  %v760_v29 = vor.u32 %v758_v18, %v757_v24  ;;  %v13781_v38 = vld [vmem:[#allocation13] sm:$0xff]   ;;  %v771_v42 = vrot.slane %v769_v31, 7  ;;  %v776_v3 = vshrl.u32 %v14661_v46, 16  ;;  %vm14684_vm9 = vmor %vm939_vm7, %vm940_vm8  ;;  %v13797_v15 = vld [vmem:[%s14562_s30 + $0x10] ss:$0 sps:$4 sm:$0xff]   ;;  %s19166_s8 = sld [smem:[#allocation164_spill]] }
  0xca   : > { %v767_v45 = vor.u32 %v765_v30, %v764_v33  ;;  %v13798_v22 = vld [vmem:[%s14562_s30 + $0x14] ss:$0 sps:$4 sm:$0xff]   ;;  %v13784_v28 = vld [vmem:[#allocation13 + $0xb8] sm:$0xff]   ;;  %v13849_v4 = vld [vmem:[#allocation13 + $0x200] sm:$0xff]   ;;  %vm2914_vm13 = vcmask 1046528   ;;  %vm14262_vm15 = vmmov 1  }
  0xcb   : > { %12882 = vmatpush3.bf16.msra.mxu0 %v13770_v5  ;;  %12918 = vmatpush3.bf16.msra.mxu1 %v13771_v6  ;;  %v846_v32 = vsel %vm14622_vm5, 0, %v753_v27  ;;  %v847_v34 = vsel %vm14622_vm5, 0, %v760_v29  ;;  %v774_v57 = vor.u32 %v772_v36, %v771_v42  ;;  %vm16840_vm14 = vmneg %vm843_vm3  ;;  %vm8729_vm1 = vsmask.f32 7424  ;;  %s19664_s17 = sld [smem:[#allocation165_spill]]  ;;  %s18723_s26 = scalar_lea.vmem [#allocation16], %s11859_s6 }
  0xcc   : > { %12883 = vmatprep.subr.bf16.mxu0 %v14258_v0  ;;  %12919 = vmatprep.subr.bf16.mxu1 %v14258_v0  ;;  %v861_v35 = vsel %vm14629_vm6, %v846_v32, 0  ;;  %v14645_v39 = vsel %vm14629_vm6, %v847_v34, 0  ;;  %v848_v62 = vsel %vm14622_vm5, 0, %v767_v45  ;;  %v13794_v45 = vld [vmem:[#allocation13 + $0xe8] sm:$0xff]   ;;  %s19165_s28 = smov %s19164_s21  ;;  %s19677_s6 = sld [smem:[#allocation27_spill]] }
  0xcd   : > { %v14647_v40 = vcombine.low %v861_v35, %v861_v35  ;;  %v14649_v41 = vcombine.high %v861_v35, %v861_v35  ;;  %v14654_v43 = vcombine.low %v14645_v39, %v14645_v39  ;;  %v14658_v44 = vcombine.high %v14645_v39, %v14645_v39  ;;  %s11601_s16 = sshll.u32 %s18723_s26, 4  ;;  %s19679_s19 = sld [smem:[#allocation167_spill]]  ;;  %s18842_s16 = int_to_ptr.vmem [resolvable:$true] %s11601_s16 }
  0xce   : > { %v11910_v53 = vcombine.low %v861_v35, %v14645_v39  ;;  %v849_v1 = vsel %vm14622_vm5, 0, %v774_v57  ;;  %v14678_v2 = vsel %vm14629_vm6, %v848_v62, 0  ;;  %s11585_s1 = scalar_lea.sflag [#allocation4], %s14558_s24  ;;  %s14146_s7 = scalar_lea.vmem %s18842_s16, 2048 }
  0xcf   : > { %12884 = vmatpush3.bf16.msra.mxu0 %v13772_v7  ;;  %12920 = vmatpush3.bf16.msra.mxu1 %v13773_v8  ;;  %v943_v47 = vshrl.u32 %v14647_v40, 16  ;;  %v946_v48 = vshll.u32 %v14647_v40, 16  ;;  %v952_v49 = vshll.u32 %v14649_v41, 16  ;;  %v957_v50 = vshrl.u32 %v14654_v43, 16  ;;  %p14147_p7 = scmp.ne.s32.totalorder %s18842_s16, %s14146_s7  ;;  %s14263_s10 = smov [#allocation16]  }
  0xd0   : > { %12885 = vmatprep.subr.bf16.mxu0 %v14258_v0  ;;  %12921 = vmatprep.subr.bf16.mxu1 %v14258_v0  ;;  %v960_v51 = vshll.u32 %v14654_v43, 16  ;;  %v966_v52 = vshll.u32 %v14658_v44, 16  ;;  %v14690_v6 = vsel %vm14629_vm6, %v849_v1, 0  ;;  %v14694_v7 = vcombine.low %v14678_v2, %v14678_v2  ;;  %s14150_s14 = sshll.u32 %s14263_s10, 4  ;;  %s14151_s14 = int_to_ptr.vmem [resolvable:$false] %s14150_s14 }
  0xd1   : > { %v945_v54 = vrot.slane %v943_v47, 4  ;;  %v948_v55 = vrot.slane %v946_v48, 5  ;;  %v954_v56 = vrot.slane %v952_v49, 5  ;;  %v959_v59 = vrot.slane %v957_v50, 4  ;;  %s14152_s11 = scalar_lea.vmem %s14151_s14, 4096  ;;  %p14153_p5 = scmp.lt.s32.totalorder %s18842_s16, %s14151_s14 }
  0xd2   : > { %v962_v60 = vrot.slane %v960_v51, 5  ;;  %v968_v61 = vrot.slane %v966_v52, 5  ;;  %v14698_v8 = vcombine.high %v14678_v2, %v14678_v2  ;;  %v14703_v11 = vcombine.low %v14690_v6, %v14690_v6  ;;  %v13785_v51 = vld [vmem:[#allocation13 + $0xb0] sm:$0xff]   ;;  %p14154_p3 = scmp.lt.s32.totalorder %s14152_s11, %s14146_s7 }
  0xd3   : > { %12886 = vmatpush3.bf16.msra.mxu0 %v13774_v9  ;;  %12922 = vmatpush3.bf16.msra.mxu1 %v13775_v10  ;;  %v949_v63 = vor.u32 %v948_v55, %v945_v54  ;;  %v13792_v9 = vld [vmem:[%s14562_s30 + $0xc] ss:$0 sps:$4 sm:$0xff]   ;;  %v14707_v12 = vcombine.high %v14690_v6, %v14690_v6  ;;  %v971_v17 = vshrl.u32 %v14694_v7, 16  ;;  %v974_v18 = vshll.u32 %v14694_v7, 16 }
  0xd4   : > { %12887 = vmatprep.subr.bf16.mxu0 %v14258_v0  ;;  %12923 = vmatprep.subr.bf16.mxu1 %v14258_v0  ;;  %v963_v5 = vor.u32 %v962_v60, %v959_v59  ;;  %v980_v20 = vshll.u32 %v14698_v8, 16  ;;  %v985_v24 = vshrl.u32 %v14703_v11, 16  ;;  %v988_v25 = vshll.u32 %v14703_v11, 16  ;;  %p14155_p4 = por %p14154_p3, %p14153_p5 }
  0xd5   : > { %v950_v10 = vrot.slane %v949_v63, 4  ;;  %v973_v29 = vrot.slane %v971_v17, 4  ;;  %v976_v30 = vrot.slane %v974_v18, 5  ;;  %v783_v42 = vshrl.u32 %v13792_v9, 16 }
  0xd6   : > { %v964_v16 = vrot.slane %v963_v5, 4  ;;  %v982_v31 = vrot.slane %v980_v20, 5  ;;  %v987_v33 = vrot.slane %v985_v24, 4  ;;  %v990_v34 = vrot.slane %v988_v25, 5 }
  0xd7   : > { %12888 = vmatpush3.bf16.msra.mxu0 %v13776_v13  ;;  %12924 = vmatpush3.bf16.msra.mxu1 %v13777_v14  ;;  %v14711_v13 = vcombine.low %v14678_v2, %v14690_v6  ;;  %v13790_v14 = vld [vmem:[#allocation13 + $0xf0] sm:$0xff]   ;;  %v977_v36 = vor.u32 %v976_v30, %v973_v29  ;;  %v786_v48 = vshll.u32 %v13792_v9, 16  ;;  %v790_v49 = vshrl.u32 %v13797_v15, 16  ;;  %v14757_v9 = vld [vmem:[%s14562_s30 + $0x18] ss:$0 sps:$4 sm:$0xff]  }
  0xd8   : > { %12889 = vmatprep.subr.bf16.mxu0 %v14258_v0  ;;  %12925 = vmatprep.subr.bf16.mxu1 %v14258_v0  ;;  %v14728_v27 = vsel %vm14684_vm9, %v964_v16, %v968_v61  ;;  %v991_v47 = vor.u32 %v990_v34, %v987_v33  ;;  %v793_v50 = vshll.u32 %v13797_v15, 16  ;;  %v785_v54 = vrot.slane %v783_v42, 7 }
  0xd9   : > { %v978_v52 = vrot.slane %v977_v36, 4  ;;  %v797_v55 = vshrl.u32 %v13798_v22, 16  ;;  %v792_v57 = vrot.slane %v790_v49, 7  ;;  %v804_v24 = vshrl.u32 %v14757_v9, 16  ;;  %v13802_v49 = vld [vmem:[#allocation13 + $0xd0] sm:$0xff]  }
  0xda   : > { %v788_v60 = vor.u32 %v786_v48, %v785_v54 }
  0xdb   : > { %12890 = vmatpush3.bf16.msra.mxu0 %v13778_v23  ;;  %12926 = vmatpush3.bf16.msra.mxu1 %v13779_v26  ;;  %v955_v23 = vsel %vm14684_vm9, %v950_v10, %v954_v56  ;;  %v994_v26 = vshll.u32 %v14707_v12, 16  ;;  %v13796_v56 = vld [vmem:[#allocation13 + $0xe0] sm:$0xff]   ;;  %v14739_v59 = vsel %vm14684_vm9, %v978_v52, %v982_v31  ;;  %v799_v62 = vrot.slane %v797_v55, 7 }
  0xdc   : > { %12891 = vmatprep.subr.bf16.mxu0 %v14258_v0  ;;  %12927 = vmatprep.subr.bf16.mxu1 %v14258_v0  ;;  %v11897_v32 = vcombine.low %v955_v23, %v14728_v27  ;;  %v11961_v1 = vcombine.low %v14728_v27, %v14739_v59  ;;  %v795_v5 = vor.u32 %v793_v50, %v792_v57  ;;  %v851_v15 = vsel %vm14622_vm5, 0, %v788_v60  ;;  %v13800_v23 = vld [vmem:[#allocation13 + $0xd8] sm:$0xff]   ;;  %v13837_v27 = vld [vmem:[#allocation13 + $0x1d0] sm:$0xff]  }
  0xdd   : > { %v996_v35 = vrot.slane %v994_v26, 5  ;;  %v14776_v18 = vsel %vm14629_vm6, %v851_v15, 0  ;;  %v13804_v57 = vld [vmem:[%s14562_s30 + $0x1c] ss:$0 sps:$4 sm:$0xff]  }
  0xde   : > { %v14783_v25 = vcombine.low %v14776_v18, %v14776_v18  ;;  %v14787_v26 = vcombine.high %v14776_v18, %v14776_v18 }
  0xdf   : > { %12892 = vmatpush3.bf16.msra.mxu0 %v13780_v37  ;;  %12928 = vmatpush3.bf16.msra.mxu1 %v13781_v38  ;;  %v778_v37 = vrot.slane %v776_v3, 7  ;;  %v779_v38 = vshll.u32 %v14661_v46, 16  ;;  %v992_v46 = vrot.slane %v991_v47, 4 }
  0xe0   : > { %12949 = vmatprep.subr.bf16.mxu0 %v14258_v0  ;;  %12985 = vmatprep.subr.bf16.mxu1 %v14258_v0 }
  0xe1   : > { %v14747_v63 = vsel %vm14684_vm9, %v992_v46, %v996_v35 }
  0xe2   : > { %12930 = vmatmul.mubr.bf16.vlgmr.msra.gmra.mxu1 %v11910_v53  ;;  %12894 = vmatmul.mubr.bf16.vlgmr.msra.gmra.mxu0 %v11897_v32  ;;  %v781_v53 = vor.u32 %v779_v38, %v778_v37  ;;  %v14761_v10 = vcombine.low %v14739_v59, %v14747_v63  ;;  %v13793_v32 = vld [vmem:[#allocation13 + $0xa0] sm:$0xff]   ;;  %v1013_v37 = vshrl.u32 %v14783_v25, 16  ;;  %v1016_v38 = vshll.u32 %v14783_v25, 16 }
  0xe3   : > { %12933 = vmatprep.mubr.msk.bf16.mxu1 %vm14259_vm0, %v14258_v0  ;;  %12986 = vmatpush3.bf16.msra.mxu1 %v13789_v58  ;;  %v800_v58 = vshll.u32 %v13798_v22, 16  ;;  %v852_v22 = vsel %vm14622_vm5, 0, %v795_v5  ;;  %v13830_v59 = vld [vmem:[#allocation13 + $0x1a0] sm:$0xff]  }
  0xe4   : > { %12987 = vmatprep.subr.bf16.mxu1 %v14258_v0  ;;  %12950 = vmatpush3.bf16.msra.mxu0 %v13784_v28  ;;  %v850_v61 = vsel %vm14622_vm5, 0, %v781_v53  ;;  %v14801_v34 = vsel %vm14629_vm6, %v852_v22, 0  ;;  %v1018_v52 = vrot.slane %v1016_v38, 5  ;;  %v13799_v38 = vld [vmem:[#allocation13 + $0x90] sm:$0xff]  }
  0xe5   : > { %12897 = vmatprep.mubr.msk.bf16.mxu0 %vm14259_vm0, %v14258_v0  ;;  %12951 = vmatprep.subr.bf16.mxu0 %v14258_v0  ;;  %v14753_v3 = vsel %vm14629_vm6, %v850_v61, 0  ;;  %v802_v20 = vor.u32 %v800_v58, %v799_v62  ;;  %v14817_v48 = vcombine.low %v14801_v34, %v14801_v34  ;;  %v14823_v53 = vcombine.high %v14801_v34, %v14801_v34  ;;  %v13795_v61 = vld [vmem:[#allocation13 + $0x98] sm:$0xff]  }
  0xe6   : > { %v14767_v16 = vcombine.low %v14753_v3, %v14753_v3  ;;  %v14771_v17 = vcombine.high %v14753_v3, %v14753_v3  ;;  %v14795_v31 = vcombine.low %v14753_v3, %v14776_v18 }
  0xe7   : > { %12988 = vmatpush3.bf16.msra.mxu1 %v13790_v14  ;;  %v13788_v14 = vld [vmem:[#allocation13 + $0xa8] sm:$0xff]   ;;  %v853_v33 = vsel %vm14622_vm5, 0, %v802_v20  ;;  %v1030_v62 = vshll.u32 %v14817_v48, 16  ;;  %v1036_v5 = vshll.u32 %v14823_v53, 16 }
  0xe8   : > { %12989 = vmatprep.subr.bf16.mxu1 %v14258_v0  ;;  %12952 = vmatpush3.bf16.msra.mxu0 %v13785_v51  ;;  %v999_v28 = vshrl.u32 %v14767_v16, 16  ;;  %v1002_v29 = vshll.u32 %v14767_v16, 16  ;;  %v1008_v30 = vshll.u32 %v14771_v17, 16  ;;  %v14813_v47 = vsel %vm14629_vm6, %v853_v33, 0 }
  0xe9   : > { %12953 = vmatprep.subr.bf16.mxu0 %v14258_v0  ;;  %v1015_v51 = vrot.slane %v1013_v37, 4  ;;  %v14827_v55 = vcombine.low %v14813_v47, %v14813_v47  ;;  %v14831_v46 = vcombine.high %v14813_v47, %v14813_v47  ;;  %v14848_v37 = vcombine.low %v14801_v34, %v14813_v47 }
  0xea   : > { %12934 = vmatmul.mubr.bf16.gmra.mxu1 %v14711_v13  ;;  %12898 = vmatmul.mubr.bf16.gmra.mxu0 %v14761_v10  ;;  %v1001_v35 = vrot.slane %v999_v28, 4  ;;  %v1004_v36 = vrot.slane %v1002_v29, 5  ;;  %v1010_v42 = vrot.slane %v1008_v30, 5  ;;  %v1032_v29 = vrot.slane %v1030_v62, 5 }
  0xeb   : > { %12937 = vmatprep.mubr.msk.bf16.mxu1 %vm14259_vm0, %v14258_v0  ;;  %12990 = vmatpush3.bf16.msra.mxu1 %v13794_v45  ;;  %v1022_v45 = vshll.u32 %v14787_v26, 16  ;;  %v1019_v60 = vor.u32 %v1018_v52, %v1015_v51  ;;  %v1041_v15 = vshrl.u32 %v14827_v55, 16  ;;  %v1044_v20 = vshll.u32 %v14827_v55, 16 }
  0xec   : > { %12991 = vmatprep.subr.bf16.mxu1 %v14258_v0  ;;  %12954 = vmatpush3.bf16.msra.mxu0 %v13788_v14  ;;  %v1005_v50 = vor.u32 %v1004_v36, %v1001_v35  ;;  %v1050_v22 = vshll.u32 %v14831_v46, 16  ;;  %v1038_v30 = vrot.slane %v1036_v5, 5 }
  0xed   : > { %12901 = vmatprep.mubr.msk.bf16.mxu0 %vm14259_vm0, %v14258_v0  ;;  %12955 = vmatprep.subr.bf16.mxu0 %v14258_v0  ;;  %v1024_v54 = vrot.slane %v1022_v45, 5  ;;  %v1020_v28 = vrot.slane %v1019_v60, 4  ;;  %v1043_v33 = vrot.slane %v1041_v15, 4  ;;  %v1046_v35 = vrot.slane %v1044_v20, 5 }
  0xee   : > { %v1006_v58 = vrot.slane %v1005_v50, 4  ;;  %v1052_v36 = vrot.slane %v1050_v22, 5  ;;  %v807_v50 = vshll.u32 %v14757_v9, 16 }
  0xef   : > { %12992 = vmatpush3.bf16.msra.mxu1 %v13796_v56  ;;  %v1027_v56 = vshrl.u32 %v14817_v48, 16  ;;  %v14853_v45 = vsel %vm14684_vm9, %v1020_v28, %v1024_v54  ;;  %v1047_v52 = vor.u32 %v1046_v35, %v1043_v33 }
  0xf0   : > { %12993 = vmatprep.subr.bf16.mxu1 %v14258_v0  ;;  %12956 = vmatpush3.bf16.msra.mxu0 %v13793_v32  ;;  %v13805_v32 = vld [vmem:[#allocation13 + $0xc8] sm:$0xff]  }
  0xf1   : > { %12957 = vmatprep.subr.bf16.mxu0 %v14258_v0  ;;  %v1029_v14 = vrot.slane %v1027_v56, 4  ;;  %v811_v56 = vshrl.u32 %v13804_v57, 16  ;;  %v1048_v9 = vrot.slane %v1047_v52, 4 }
  0xf2   : > { %12938 = vmatmul.mubr.bf16.gmra.mxu1 %v14795_v31 }
  0xf3   : > { %12941 = vmatprep.mubr.msk.bf16.mxu1 %vm14259_vm0, %v14258_v0  ;;  %12994 = vmatpush3.bf16.msra.mxu1 %v13800_v23  ;;  %v14844_v23 = vsel %vm14684_vm9, %v1006_v58, %v1010_v42  ;;  %v1033_v42 = vor.u32 %v1032_v29, %v1029_v14  ;;  %v814_v58 = vshll.u32 %v13804_v57, 16  ;;  %v13801_v57 = vld [vmem:[#allocation13 + $0x88] sm:$0xff]   ;;  %v14878_v14 = vsel %vm14684_vm9, %v1048_v9, %v1052_v36  ;;  %v13806_v36 = vld [vmem:[#allocation13 + $0x80] sm:$0xff]  }
  0xf4   : > { %12995 = vmatprep.subr.bf16.mxu1 %v14258_v0  ;;  %12958 = vmatpush3.bf16.msra.mxu0 %v13795_v61  ;;  %v14860_v51 = vcombine.low %v14844_v23, %v14853_v45  ;;  %v813_v61 = vrot.slane %v811_v56, 7 }
  0xf5   : > { %12959 = vmatprep.subr.bf16.mxu0 %v14258_v0  ;;  %v1034_v54 = vrot.slane %v1033_v42, 4 }
  0xf6   : > { %12902 = vmatmul.mubr.bf16.gmra.mxu0 %v14860_v51  ;;  %v816_v15 = vor.u32 %v814_v58, %v813_v61 }
  0xf7   : > { %12996 = vmatpush3.bf16.msra.mxu1 %v13802_v49  ;;  %v806_v49 = vrot.slane %v804_v24, 7  ;;  %v13807_v24 = vld [vmem:[#allocation13 + $0xc0] sm:$0xff]   ;;  %12905 = vmatprep.mubr.msk.bf16.mxu0 %vm14259_vm0, %v14258_v0  ;;  %v14872_v62 = vsel %vm14684_vm9, %v1034_v54, %v1038_v30 }
  0xf8   : > { %12997 = vmatprep.subr.bf16.mxu1 %v14258_v0  ;;  %12960 = vmatpush3.bf16.msra.mxu0 %v13799_v38  ;;  %v14895_v29 = vcombine.low %v14872_v62, %v14878_v14  ;;  %v855_v30 = vsel %vm14622_vm5, 0, %v816_v15 }
  0xf9   : > { %v809_v60 = vor.u32 %v807_v50, %v806_v49  ;;  %12961 = vmatprep.subr.bf16.mxu0 %v14258_v0 }
  0xfa   : > { %12942 = vmatmul.mubr.bf16.gmra.mxu1 %v14848_v37 }
  0xfb   : > { %12945 = vmatprep.mubr.msk.bf16.mxu1 %vm14259_vm0, %v14258_v0  ;;  %12998 = vmatpush3.bf16.msra.mxu1 %v13805_v32  ;;  %v854_v5 = vsel %vm14622_vm5, 0, %v809_v60  ;;  %v14902_v32 = vsel %vm14629_vm6, %v855_v30, 0 }
  0xfc   : > { %12999 = vmatprep.subr.bf16.mxu1 %v14258_v0  ;;  %v14883_v20 = vsel %vm14629_vm6, %v854_v5, 0  ;;  %12962 = vmatpush3.bf16.msra.mxu0 %v13801_v57  ;;  %v14908_v38 = vcombine.low %v14902_v32, %v14902_v32  ;;  %v14912_v42 = vcombine.high %v14902_v32, %v14902_v32  ;;  %v13821_v5 = vld [vmem:[%s593_s23] ss:$0 sps:$4 sm:$0xff]  }
  0xfd   : > { %v14887_v22 = vcombine.low %v14883_v20, %v14883_v20  ;;  %v14891_v28 = vcombine.high %v14883_v20, %v14883_v20  ;;  %v14917_v50 = vcombine.low %v14883_v20, %v14902_v32  ;;  %12963 = vmatprep.subr.bf16.mxu0 %v14258_v0 }
  0xfe   : > { %12906 = vmatmul.mubr.bf16.gmra.mxu0 %v14895_v29  ;;  %v1069_v58 = vshrl.u32 %v14908_v38, 16  ;;  %v1072_v54 = vshll.u32 %v14908_v38, 16  ;;  %v1078_v60 = vshll.u32 %v14912_v42, 16 }
  0xff   : > { %13000 = vmatpush3.bf16.msra.mxu1 %v13807_v24  ;;  %v1055_v33 = vshrl.u32 %v14887_v22, 16  ;;  %v1058_v35 = vshll.u32 %v14887_v22, 16  ;;  %v1064_v49 = vshll.u32 %v14891_v28, 16  ;;  %12909 = vmatprep.mubr.msk.bf16.mxu0 %vm14259_vm0, %v14258_v0 }
 0x100   : > { %13057 = vmatprep.subr.bf16.mxu1 %v14258_v0  ;;  %12964 = vmatpush3.bf16.msra.mxu0 %v13806_v36  ;;  %v1071_v61 = vrot.slane %v1069_v58, 4  ;;  %v1074_v57 = vrot.slane %v1072_v54, 5  ;;  %v1380_v58 = vrot.slane %v14658_v44, 5  ;;  %v11923_v54 = vrot.slane %v14647_v40, 9  ;;  %v13812_v40 = vld [vmem:[#allocation13 + $0x170] sm:$0xff]  }
 0x101   : > { %v1057_v52 = vrot.slane %v1055_v33, 4  ;;  %v1060_v56 = vrot.slane %v1058_v35, 5  ;;  %v1066_v9 = vrot.slane %v1064_v49, 5  ;;  %13021 = vmatprep.subr.bf16.mxu0 %v14258_v0  ;;  %v1080_v33 = vrot.slane %v1078_v60, 5 }
 0x102   : > { %12946 = vmatmul.mubr.bf16.gmra.mxu1 %v14917_v50  ;;  %v1075_v30 = vor.u32 %v1074_v57, %v1071_v61  ;;  %v11946_v35 = vcombine.low %v14645_v39, %v14678_v2  ;;  %v11924_v39 = vrot.slane %v14654_v43, 9  ;;  %v818_v2 = vshrl.u32 %v13821_v5, 16 }
 0x103   : > { %v1061_v24 = vor.u32 %v1060_v56, %v1057_v52  ;;  %13001 = vmatprep.mubr.msk.bf16.mxu1 %vm14259_vm0, %v14258_v0  ;;  %v13811_v52 = vld [vmem:[#allocation13 + $0x178] sm:$0xff]   ;;  %v1376_v56 = vrot.slane %v14649_v41, 5  ;;  %v11962_v41 = vcombine.low %v14747_v63, %v14844_v23  ;;  %v11963_v44 = vcombine.low %v14853_v45, %v14872_v62  ;;  %v13834_v63 = vld [vmem:[#allocation13 + $0x190] sm:$0xff]  }
 0x104   : > { %v1076_v49 = vrot.slane %v1075_v30, 4  ;;  %v14970_v57 = vsel %vm14945_vm12, %v11924_v39, %v1380_v58  ;;  %v820_v30 = vrot.slane %v818_v2, 7  ;;  %v11926_v61 = vrot.slane %v14703_v11, 9  ;;  %v13810_v2 = vld [vmem:[#allocation13 + $0x128] sm:$0xff]  }
 0x105   : > { %v1062_v15 = vrot.slane %v1061_v24, 4  ;;  %v1377_v43 = vsel %vm14945_vm12, %v11923_v54, %v1376_v56  ;;  %v11925_v56 = vrot.slane %v14694_v7, 9  ;;  %v1384_v54 = vrot.slane %v14698_v8, 5 }
 0x106   : > { %v14943_v60 = vsel %vm14684_vm9, %v1076_v49, %v1080_v33  ;;  %v821_v33 = vshll.u32 %v13821_v5, 16  ;;  %v11933_v49 = vcombine.low %v1377_v43, %v14970_v57  ;;  %v1388_v58 = vrot.slane %v14707_v12, 5  ;;  %v13818_v12 = vld [vmem:[#allocation13 + $0x158] sm:$0xff]  }
 0x107   : > { %v14936_v36 = vsel %vm14684_vm9, %v1062_v15, %v1066_v9  ;;  %v11947_v15 = vcombine.low %v14690_v6, %v14753_v3  ;;  %v13816_v6 = vld [vmem:[#allocation13 + $0x160] sm:$0xff]   ;;  %v13809_v3 = vld [vmem:[#allocation13 + $0x130] sm:$0xff]   ;;  %v14987_v7 = vsel %vm14945_vm12, %v11925_v56, %v1384_v54  ;;  %v11948_v11 = vcombine.low %v14776_v18, %v14801_v34  ;;  %v13822_v56 = vld [vmem:[#allocation13 + $0x148] sm:$0xff]  }
 0x108   : > { %v14952_v9 = vcombine.low %v14936_v36, %v14943_v60  ;;  %v823_v39 = vor.u32 %v821_v33, %v820_v30  ;;  %v14991_v8 = vsel %vm14945_vm12, %v11926_v61, %v1388_v58  ;;  %v1392_v43 = vrot.slane %v14771_v17, 5  ;;  %v13820_v30 = vld [vmem:[#allocation13 + $0x150] sm:$0xff]  }
 0x109   : > { %v15003_v61 = vcombine.low %v14987_v7, %v14991_v8  ;;  %v11928_v18 = vrot.slane %v14783_v25, 9  ;;  %v1400_v33 = vrot.slane %v14823_v53, 5  ;;  %v11930_v25 = vrot.slane %v14827_v55, 9 }
 0x10a   : > { %13002 = vmatmul.mubr.bf16.vlgmr.msra.gmra.mxu1 %v11946_v35  ;;  %12910 = vmatmul.mubr.bf16.gmra.mxu0 %v14952_v9  ;;  %v13814_v35 = vld [vmem:[#allocation13 + $0x168] sm:$0xff]   ;;  %v856_v5 = vsel %vm14622_vm5, 0, %v823_v39  ;;  %v1408_v53 = vrot.slane %v14891_v28, 5  ;;  %v11932_v55 = vrot.slane %v14908_v38, 9  ;;  %v13848_v28 = vld [vmem:[%s593_s23 + $0x4] ss:$0 sps:$4 sm:$0xff]   ;;  %v19163_v45 = vcombine.low %v14878_v14, %v14936_v36 }
 0x10b   : > { %13005 = vmatprep.mubr.msk.bf16.mxu1 %vm14259_vm0, %v14258_v0  ;;  %13058 = vmatpush3.bf16.msra.mxu1 %v13811_v52  ;;  %v13808_v52 = vld [vmem:[#allocation13 + $0x138] sm:$0xff]   ;;  %v15008_v34 = vsel %vm14629_vm6, %v856_v5, 0  ;;  %v13817_v5 = vld [vmem:[#allocation13 + $0x110] sm:$0xff]   ;;  %s19665_s23 = sld [smem:[#allocation166_spill]] }
 0x10c   : > { %13059 = vmatprep.subr.bf16.mxu1 %v14258_v0  ;;  %12965 = vmatprep.mubr.msk.bf16.mxu0 %vm14259_vm0, %v14258_v0  ;;  %v15014_v17 = vcombine.low %v15008_v34, %v15008_v34  ;;  %v13815_v38 = vld [vmem:[#allocation13 + $0x118] sm:$0xff]  }
 0x10d   : > { %v13841_v14 = vld [vmem:[#allocation13 + $0x238] sm:$0xff]  }
 0x10e   : > { %v1746_v54 = vshrl.u32 %v15014_v17, 16  ;;  %v1749_v58 = vshll.u32 %v15014_v17, 16  ;;  %v11974_v39 = vrot.slane %v15014_v17, 9  ;;  %v13819_v17 = vld [vmem:[#allocation13 + $0x108] sm:$0xff]  }
 0x10f   : > { %13060 = vmatpush3.bf16.msra.mxu1 %v13812_v40  ;;  %v11927_v40 = vrot.slane %v14767_v16, 9  ;;  %v11929_v16 = vrot.slane %v14817_v48, 9  ;;  %v11931_v48 = vrot.slane %v14887_v22, 9  ;;  %v11949_v22 = vcombine.low %v14813_v47, %v14883_v20 }
 0x110   : > { %13061 = vmatprep.subr.bf16.mxu1 %v14258_v0  ;;  %v11960_v47 = vcombine.high %v15008_v34, %v15008_v34  ;;  %v825_v20 = vshrl.u32 %v13848_v28, 16 }
 0x112   : > { %13006 = vmatmul.mubr.bf16.gmra.mxu1 %v11947_v15  ;;  %12966 = vmatmul.mubr.bf16.vlgmr.msra.gmra.mxu0 %v11933_v49  ;;  %v1396_v15 = vrot.slane %v14787_v26, 5  ;;  %v1404_v26 = vrot.slane %v14831_v46, 5  ;;  %v1412_v49 = vrot.slane %v14912_v42, 5  ;;  %v828_v42 = vshll.u32 %v13848_v28, 16 }
 0x113   : > { %13009 = vmatprep.mubr.msk.bf16.mxu1 %vm14259_vm0, %v14258_v0  ;;  %13062 = vmatpush3.bf16.msra.mxu1 %v13814_v35  ;;  %v13813_v35 = vld [vmem:[#allocation13 + $0x120] sm:$0xff]   ;;  %v1755_v28 = vshll.u32 %v11960_v47, 16 }
 0x114   : > { %13063 = vmatprep.subr.bf16.mxu1 %v14258_v0  ;;  %13022 = vmatpush3.bf16.msra.mxu0 %v13808_v52  ;;  %v15026_v52 = vsel %vm14945_vm12, %v11927_v40, %v1392_v43  ;;  %v15035_v46 = vsel %vm14945_vm12, %v11928_v18, %v1396_v15  ;;  %v15062_v40 = vsel %vm14945_vm12, %v11929_v16, %v1400_v33  ;;  %v1748_v15 = vrot.slane %v1746_v54, 4 }
 0x115   : > { %12969 = vmatprep.mubr.msk.bf16.mxu0 %vm14259_vm0, %v14258_v0  ;;  %13023 = vmatprep.subr.bf16.mxu0 %v14258_v0  ;;  %v15066_v43 = vsel %vm14945_vm12, %v11930_v25, %v1404_v26  ;;  %v11950_v18 = vcombine.low %v14902_v32, %v15008_v34  ;;  %v11975_v26 = vcombine.low %v14970_v57, %v14987_v7 }
 0x116   : > { %v15079_v33 = vcombine.low %v15062_v40, %v15066_v43  ;;  %v11976_v24 = vcombine.low %v14991_v8, %v15026_v52  ;;  %v11977_v8 = vcombine.low %v15035_v46, %v15062_v40 }
 0x117   : > { %13064 = vmatpush3.bf16.msra.mxu1 %v13816_v6  ;;  %v15048_v6 = vcombine.low %v15026_v52, %v15035_v46  ;;  %v13835_v52 = vld [vmem:[#allocation13 + $0x1d8] sm:$0xff]   ;;  %v13838_v46 = vld [vmem:[#allocation13 + $0x1c8] sm:$0xff]  }
 0x118   : > { %13065 = vmatprep.subr.bf16.mxu1 %v14258_v0  ;;  %13024 = vmatpush3.bf16.msra.mxu0 %v13809_v3  ;;  %v13824_v3 = vld [vmem:[#allocation13 + $0x140] sm:$0xff]  }
 0x119   : > { %13025 = vmatprep.subr.bf16.mxu0 %v14258_v0 }
 0x11a   : > { %13010 = vmatmul.mubr.bf16.gmra.mxu1 %v11948_v11  ;;  %12970 = vmatmul.mubr.bf16.gmra.mxu0 %v15003_v61  ;;  %v1920_v11 = vrot.slane %v11960_v47, 5 }
 0x11b   : > { %13013 = vmatprep.mubr.msk.bf16.mxu1 %vm14259_vm0, %v14258_v0  ;;  %13066 = vmatpush3.bf16.msra.mxu1 %v13818_v12  ;;  %v827_v12 = vrot.slane %v825_v20, 7  ;;  %v13825_v20 = vld [vmem:[#allocation13 + $0x1b8] sm:$0xff]  }
 0x11c   : > { %13067 = vmatprep.subr.bf16.mxu1 %v14258_v0  ;;  %13026 = vmatpush3.bf16.msra.mxu0 %v13810_v2  ;;  %v15108_v57 = vsel %vm14945_vm12, %v11974_v39, %v1920_v11  ;;  %v13831_v39 = vld [vmem:[#allocation13 + $0x1e8] sm:$0xff]  }
 0x11d   : > { %12973 = vmatprep.mubr.msk.bf16.mxu0 %vm14259_vm0, %v14258_v0  ;;  %13027 = vmatprep.subr.bf16.mxu0 %v14258_v0  ;;  %v830_v2 = vor.u32 %v828_v42, %v827_v12  ;;  %v13833_v42 = vld [vmem:[#allocation13 + $0x1e0] sm:$0xff]   ;;  %v13827_v11 = vld [vmem:[#allocation13 + $0x1a8] sm:$0xff]   ;;  %v13832_v12 = vld [vmem:[#allocation13 + $0x198] sm:$0xff]  }
 0x11f   : > { %13068 = vmatpush3.bf16.msra.mxu1 %v13820_v30  ;;  %v857_v30 = vsel %vm14622_vm5, 0, %v830_v2 }
 0x120   : > { %13069 = vmatprep.subr.bf16.mxu1 %v14258_v0  ;;  %13028 = vmatpush3.bf16.msra.mxu0 %v13813_v35  ;;  %v1751_v35 = vrot.slane %v1749_v58, 5  ;;  %v15075_v16 = vsel %vm14629_vm6, %v857_v30, 0  ;;  %v13828_v58 = vld [vmem:[#allocation13 + $0x1f8] sm:$0xff]  }
 0x121   : > { %13029 = vmatprep.subr.bf16.mxu0 %v14258_v0  ;;  %v15084_v32 = vcombine.low %v15075_v16, %v15075_v16  ;;  %v15088_v19 = vcombine.high %v15075_v16, %v15075_v16 }
 0x122   : > { %13014 = vmatmul.mubr.bf16.gmra.mxu1 %v11949_v22  ;;  %12974 = vmatmul.mubr.bf16.gmra.mxu0 %v15048_v6  ;;  %v1409_v22 = vsel %vm14945_vm12, %v11931_v48, %v1408_v53  ;;  %v1752_v54 = vor.u32 %v1751_v35, %v1748_v15  ;;  %v13844_v15 = vld [vmem:[#allocation13 + $0x220] sm:$0xff]   ;;  %v13846_v35 = vld [vmem:[#allocation13 + $0x210] sm:$0xff]  }
 0x123   : > { %13017 = vmatprep.mubr.msk.bf16.mxu1 %vm14259_vm0, %v14258_v0  ;;  %13070 = vmatpush3.bf16.msra.mxu1 %v13822_v56  ;;  %v12008_v21 = vrot.slane %v15084_v32, 9  ;;  %v2403_v25 = vrot.slane %v15088_v19, 5  ;;  %v13823_v56 = vld [vmem:[#allocation13 + $0x100] sm:$0xff]   ;;  %v2237_v36 = vshrl.u32 %v15084_v32, 16 }
 0x124   : > { %13071 = vmatprep.subr.bf16.mxu1 %v14258_v0  ;;  %13030 = vmatpush3.bf16.msra.mxu0 %v13815_v38  ;;  %v15104_v38 = vsel %vm14945_vm12, %v11932_v55, %v1412_v49  ;;  %v15120_v47 = vrot.slane %v1752_v54, 4  ;;  %v15122_v55 = vrot.slane %v1755_v28, 5  ;;  %v13829_v49 = vld [vmem:[#allocation13 + $0x1f0] sm:$0xff]  }
 0x125   : > { %12977 = vmatprep.mubr.msk.bf16.mxu0 %vm14259_vm0, %v14258_v0  ;;  %13031 = vmatprep.subr.bf16.mxu0 %v14258_v0  ;;  %v15112_v7 = vsel %vm14945_vm12, %v12008_v21, %v2403_v25  ;;  %v15118_v53 = vcombine.low %v1409_v22, %v15104_v38  ;;  %v11979_v23 = vcombine.low %v15104_v38, %v15108_v57  ;;  %v2239_v40 = vrot.slane %v2237_v36, 4 }
 0x126   : > { %v12009_v48 = vcombine.low %v15108_v57, %v15112_v7  ;;  %v1758_v62 = vsel %vm14684_vm9, %v15120_v47, %v15122_v55 }
 0x127   : > { %13072 = vmatpush3.bf16.msra.mxu1 %v13824_v3  ;;  %v13826_v3 = vld [vmem:[#allocation13 + $0x1b0] sm:$0xff]   ;;  %v11965_v2 = vcombine.low %v14943_v60, %v1758_v62  ;;  %v2240_v60 = vshll.u32 %v15084_v32, 16 }
 0x128   : > { %13129 = vmatprep.subr.bf16.mxu1 %v14258_v0  ;;  %13032 = vmatpush3.bf16.msra.mxu0 %v13817_v5  ;;  %v13840_v5 = vld [vmem:[#allocation13 + $0x1c0] sm:$0xff]  }
 0x129   : > { %13033 = vmatprep.subr.bf16.mxu0 %v14258_v0 }
 0x12a   : > { %13018 = vmatmul.mubr.bf16.gmra.mxu1 %v11950_v18  ;;  %12978 = vmatmul.mubr.bf16.gmra.mxu0 %v15079_v33 }
 0x12b   : > { %13073 = vmatprep.mubr.msk.bf16.mxu1 %vm14259_vm0, %v14258_v0  ;;  %12981 = vmatprep.mubr.msk.bf16.mxu0 %vm14259_vm0, %v14258_v0 }
 0x12c   : > { %13034 = vmatpush3.bf16.msra.mxu0 %v13819_v17 }
 0x12d   : > { %13035 = vmatprep.subr.bf16.mxu0 %v14258_v0 }
 0x130   : > { %13036 = vmatpush3.bf16.msra.mxu0 %v13823_v56 }
 0x131   : > { %13093 = vmatprep.subr.bf16.mxu0 %v14258_v0 }
 0x132   : > { %13074 = vmatmul.mubr.bf16.vlgmr.msra.gmra.mxu1 %v11975_v26  ;;  %12982 = vmatmul.mubr.bf16.gmra.mxu0 %v15118_v53 }
 0x133   : > { %13077 = vmatprep.mubr.msk.bf16.mxu1 %vm14259_vm0, %v14258_v0  ;;  %13130 = vmatpush3.bf16.msra.mxu1 %v13828_v58 }
 0x134   : > { %13131 = vmatprep.subr.bf16.mxu1 %v14258_v0  ;;  %13037 = vmatprep.mubr.msk.bf16.mxu0 %vm14259_vm0, %v14258_v0 }
 0x137   : > { %13132 = vmatpush3.bf16.msra.mxu1 %v13829_v49 }
 0x138   : > { %13133 = vmatprep.subr.bf16.mxu1 %v14258_v0 }
 0x13a   : > { %13078 = vmatmul.mubr.bf16.gmra.mxu1 %v11976_v24  ;;  %13038 = vmatmul.mubr.bf16.vlgmr.msra.gmra.mxu0 %v11961_v1  ;;  %v11978_v1 = vcombine.low %v15066_v43, %v1409_v22  ;;  %v2242_v43 = vrot.slane %v2240_v60, 5 }
 0x13b   : > { %13081 = vmatprep.mubr.msk.bf16.mxu1 %vm14259_vm0, %v14258_v0  ;;  %13134 = vmatpush3.bf16.msra.mxu1 %v13831_v39 }
 0x13c   : > { %13135 = vmatprep.subr.bf16.mxu1 %v14258_v0  ;;  %13094 = vmatpush3.bf16.msra.mxu0 %v13825_v20  ;;  %v2243_v18 = vor.u32 %v2242_v43, %v2239_v40 }
 0x13d   : > { %13041 = vmatprep.mubr.msk.bf16.mxu0 %vm14259_vm0, %v14258_v0  ;;  %13095 = vmatprep.subr.bf16.mxu0 %v14258_v0 }
 0x13e   : > { %v2244_v30 = vrot.slane %v2243_v18, 4 }
 0x13f   : > { %13136 = vmatpush3.bf16.msra.mxu1 %v13833_v42 }
 0x140   : > { %13137 = vmatprep.subr.bf16.mxu1 %v14258_v0  ;;  %13096 = vmatpush3.bf16.msra.mxu0 %v13826_v3 }
 0x141   : > { %13097 = vmatprep.subr.bf16.mxu0 %v14258_v0 }
 0x142   : > { %13082 = vmatmul.mubr.bf16.gmra.mxu1 %v11977_v8  ;;  %13042 = vmatmul.mubr.bf16.gmra.mxu0 %v11962_v41  ;;  %v13836_v41 = vld [vmem:[#allocation13 + $0x188] sm:$0xff]  }
 0x143   : > { %13085 = vmatprep.mubr.msk.bf16.mxu1 %vm14259_vm0, %v14258_v0  ;;  %13138 = vmatpush3.bf16.msra.mxu1 %v13835_v52 }
 0x144   : > { %13139 = vmatprep.subr.bf16.mxu1 %v14258_v0  ;;  %13098 = vmatpush3.bf16.msra.mxu0 %v13827_v11 }
 0x145   : > { %13045 = vmatprep.mubr.msk.bf16.mxu0 %vm14259_vm0, %v14258_v0  ;;  %13099 = vmatprep.subr.bf16.mxu0 %v14258_v0 }
 0x147   : > { %13140 = vmatpush3.bf16.msra.mxu1 %v13837_v27 }
 0x148   : > { %13141 = vmatprep.subr.bf16.mxu1 %v14258_v0  ;;  %13100 = vmatpush3.bf16.msra.mxu0 %v13830_v59 }
 0x149   : > { %13101 = vmatprep.subr.bf16.mxu0 %v14258_v0 }
 0x14a   : > { %13086 = vmatmul.mubr.bf16.gmra.mxu1 %v11978_v1  ;;  %13046 = vmatmul.mubr.bf16.gmra.mxu0 %v11963_v44  ;;  %v13839_v44 = vld [vmem:[#allocation13 + $0x180] sm:$0xff]  }
 0x14b   : > { %13089 = vmatprep.mubr.msk.bf16.mxu1 %vm14259_vm0, %v14258_v0  ;;  %13142 = vmatpush3.bf16.msra.mxu1 %v13838_v46 }
 0x14c   : > { %13143 = vmatprep.subr.bf16.mxu1 %v14258_v0  ;;  %13102 = vmatpush3.bf16.msra.mxu0 %v13832_v12 }
 0x14d   : > { %13049 = vmatprep.mubr.msk.bf16.mxu0 %vm14259_vm0, %v14258_v0  ;;  %13103 = vmatprep.subr.bf16.mxu0 %v14258_v0 }
 0x14f   : > { %13144 = vmatpush3.bf16.msra.mxu1 %v13840_v5 }
 0x150   : > { %13104 = vmatpush3.bf16.msra.mxu0 %v13834_v63 }
 0x151   : > { %13105 = vmatprep.subr.bf16.mxu0 %v14258_v0 }
 0x152   : > { %13090 = vmatmul.mubr.bf16.gmra.mxu1 %v11979_v23  ;;  %13050 = vmatmul.mubr.bf16.gmra.mxu0 %v19163_v45 }
 0x153   : > { %13145 = vmatprep.mubr.msk.bf16.mxu1 %vm14259_vm0, %v14258_v0  ;;  %13053 = vmatprep.mubr.msk.bf16.mxu0 %vm14259_vm0, %v14258_v0 }
 0x154   : > { %13106 = vmatpush3.bf16.msra.mxu0 %v13836_v41 }
 0x155   : > { %13107 = vmatprep.subr.bf16.mxu0 %v14258_v0 }
 0x158   : > { %13108 = vmatpush3.bf16.msra.mxu0 %v13839_v44 }
 0x159   : > { %13165 = vmatprep.subr.bf16.mxu0 %v14258_v0 }
 0x15a   : > { %13146 = vmatmul.mubr.bf16.vlgmr.msra.gmra.mxu1 %v14761_v10  ;;  %13054 = vmatmul.mubr.bf16.gmra.mxu0 %v11965_v2  ;;  %v13842_v10 = vld [vmem:[#allocation13 + $0x230] sm:$0xff]  }
 0x15b   : > { %13149 = vmatprep.mubr.msk.bf16.mxu1 %vm14259_vm0, %v14258_v0  ;;  %13109 = vmatprep.mubr.msk.bf16.mxu0 %vm14259_vm0, %v14258_v0 }
 0x162   : > { %13150 = vmatmul.mubr.bf16.gmra.mxu1 %v14860_v51  ;;  %13110 = vmatmul.mubr.bf16.vlgmr.msra.gmra.mxu0 %v14711_v13  ;;  %v13843_v51 = vld [vmem:[#allocation13 + $0x228] sm:$0xff]   ;;  %v2246_v13 = vshll.u32 %v15088_v19, 16 }
 0x163   : > { %13153 = vmatprep.mubr.msk.bf16.mxu1 %vm14259_vm0, %v14258_v0  ;;  %13166 = vmatpush3.bf16.msra.mxu0 %v13841_v14 }
 0x164   : > { %13113 = vmatprep.mubr.msk.bf16.mxu0 %vm14259_vm0, %v14258_v0  ;;  %13167 = vmatprep.subr.bf16.mxu0 %v14258_v0  ;;  %v2248_v17 = vrot.slane %v2246_v13, 5 }
 0x167   : > { %13168 = vmatpush3.bf16.msra.mxu0 %v13842_v10 }
 0x168   : > { %13169 = vmatprep.subr.bf16.mxu0 %v14258_v0 }
 0x16a   : > { %13154 = vmatmul.mubr.bf16.gmra.mxu1 %v14895_v29  ;;  %13114 = vmatmul.mubr.bf16.gmra.mxu0 %v14795_v31  ;;  %v13845_v29 = vld [vmem:[#allocation13 + $0x218] sm:$0xff]   ;;  %v2249_v31 = vsel %vm14684_vm9, %v2244_v30, %v2248_v17 }
 0x16b   : > { %13157 = vmatprep.mubr.msk.bf16.mxu1 %vm14259_vm0, %v14258_v0  ;;  %13170 = vmatpush3.bf16.msra.mxu0 %v13843_v51  ;;  %v11999_v32 = vcombine.low %v1758_v62, %v2249_v31 }
 0x16c   : > { %13117 = vmatprep.mubr.msk.bf16.mxu0 %vm14259_vm0, %v14258_v0  ;;  %13171 = vmatprep.subr.bf16.mxu0 %v14258_v0 }
 0x16f   : > { %13172 = vmatpush3.bf16.msra.mxu0 %v13844_v15 }
 0x170   : > { %13173 = vmatprep.subr.bf16.mxu0 %v14258_v0 }
 0x172   : > { %13158 = vmatmul.mubr.bf16.gmra.mxu1 %v14952_v9  ;;  %13118 = vmatmul.mubr.bf16.gmra.mxu0 %v14848_v37  ;;  %v13847_v9 = vld [vmem:[#allocation13 + $0x208] sm:$0xff]   ;;  %v11988_v37 = vcombine.low %v15008_v34, %v15075_v16 }
 0x173   : > { %13161 = vmatprep.mubr.msk.bf16.mxu1 %vm14259_vm0, %v14258_v0  ;;  %13174 = vmatpush3.bf16.msra.mxu0 %v13845_v29 }
 0x174   : > { %13121 = vmatprep.mubr.msk.bf16.mxu0 %vm14259_vm0, %v14258_v0  ;;  %13175 = vmatprep.subr.bf16.mxu0 %v14258_v0 }
 0x177   : > { %13176 = vmatpush3.bf16.msra.mxu0 %v13846_v35 }
 0x178   : > { %13177 = vmatprep.subr.bf16.mxu0 %v14258_v0 }
 0x17a   : > { %13162 = vmatmul.mubr.bf16.gmra.mxu1 %v11999_v32  ;;  %13122 = vmatmul.mubr.bf16.gmra.mxu0 %v14917_v50 }
 0x17b   : > { %13125 = vmatprep.mubr.msk.bf16.mxu0 %vm14259_vm0, %v14258_v0  ;;  %13178 = vmatpush3.bf16.msra.mxu0 %v13847_v9 }
 0x17c   : > { %13179 = vmatprep.subr.bf16.mxu0 %v14258_v0 }
 0x17f   : > { %13180 = vmatpush3.bf16.msra.mxu0 %v13849_v4 }
 0x182   : > { %13126 = vmatmul.mubr.bf16.gmra.mxu0 %v11988_v37 }
 0x183   : > { %13181 = vmatprep.mubr.msk.bf16.mxu0 %vm14259_vm0, %v14258_v0 }
 0x18a   : > { %13182 = vmatmul.mubr.bf16.vlgmr.msra.gmra.mxu0 %v15003_v61 }
 0x18b   : > { %13185 = vmatprep.mubr.msk.bf16.mxu0 %vm14259_vm0, %v14258_v0 }
 0x192   : > { %13186 = vmatmul.mubr.bf16.gmra.mxu0 %v15048_v6 }
 0x193   : > { %13189 = vmatprep.mubr.msk.bf16.mxu0 %vm14259_vm0, %v14258_v0 }
 0x19a   : > { %13190 = vmatmul.mubr.bf16.gmra.mxu0 %v15079_v33 }
 0x19b   : > { %13193 = vmatprep.mubr.msk.bf16.mxu0 %vm14259_vm0, %v14258_v0 }
 0x1a2   : > { %v1332_v50 = vpop.f32.mrf.mxu1  ;;  %13194 = vmatmul.mubr.bf16.gmra.mxu0 %v15118_v53  ;;  %v1201_v61 = vpop.f32.mrf.mxu0 }
 0x1a3   : > { %13197 = vmatprep.mubr.msk.bf16.mxu0 %vm14259_vm0, %v14258_v0  ;;  %vm16870_vm0 = vmpackc.low %vm14262_vm15, %vm16840_vm14 }
 0x1a4   : > { %v12931_v34 = vpop.f32.mrf.mxu1  ;;  %v12895_v21 = vpop.f32.mrf.mxu0 }
 0x1a6   : > { %v1335_v16 = vpop.f32.mrf.mxu1  ;;  %v1204_v25 = vpop.f32.mrf.mxu0 }
 0x1a7   : > { %v1336_v22 = vadd.f32 %v1335_v16, %v1204_v25 }
 0x1a8   : > { %v12932_v19 = vpop.f32.mrf.mxu1  ;;  %v12896_v56 = vpop.f32.mrf.mxu0 }
 0x1aa   : > { %v1340_v6 = vpop.f32.mrf.mxu1  ;;  %13198 = vmatmul.mubr.bf16.gmra.mxu0 %v12009_v48  ;;  %v1209_v54 = vpop.f32.mrf.mxu0 }
 0x1ab   : > { %v1341_v38 = vadd.f32 %v1340_v6, %v1209_v54 }
 0x1ac   : > { %v12935_v26 = vpop.f32.mrf.mxu1  ;;  %v12899_v58 = vpop.f32.mrf.mxu0 }
 0x1ae   : > { %v1343_v33 = vpop.f32.mrf.mxu1  ;;  %v1212_v47 = vpop.f32.mrf.mxu0 }
 0x1af   : > { %v1344_v49 = vadd.f32 %v1343_v33, %v1212_v47 }
 0x1b0   : > { %v12936_v28 = vpop.f32.mrf.mxu1  ;;  %v12900_v24 = vpop.f32.mrf.mxu0 }
 0x1b2   : > { %v1348_v53 = vpop.f32.mrf.mxu1 }
 0x1b4   : > { %v12939_v55 = vpop.f32.mrf.mxu1 }
 0x1b6   : > { %v1351_v39 = vpop.f32.mrf.mxu1  ;;  %v1217_v3 = vpop.f32.mrf.mxu0 }
 0x1b7   : > { %v1349_v52 = vadd.f32 %v1348_v53, %v1217_v3 }
 0x1b8   : > { %v12940_v20 = vpop.f32.mrf.mxu1  ;;  %v12903_v11 = vpop.f32.mrf.mxu0 }
 0x1ba   : > { %v1356_v42 = vpop.f32.mrf.mxu1  ;;  %v1220_v59 = vpop.f32.mrf.mxu0 }
 0x1bb   : > { %v1352_v7 = vadd.f32 %v1351_v39, %v1220_v59 }
 0x1bc   : > { %v12943_v8 = vpop.f32.mrf.mxu1  ;;  %v12904_v48 = vpop.f32.mrf.mxu0 }
 0x1be   : > { %v1359_v27 = vpop.f32.mrf.mxu1  ;;  %v1225_v1 = vpop.f32.mrf.mxu0 }
 0x1bf   : > { %v1357_v12 = vadd.f32 %v1356_v42, %v1225_v1 }
 0x1c0   : > { %v12944_v57 = vpop.f32.mrf.mxu1  ;;  %v12907_v5 = vpop.f32.mrf.mxu0 }
 0x1c2   : > { %v1364_v46 = vpop.f32.mrf.mxu1  ;;  %v1228_v23 = vpop.f32.mrf.mxu0 }
 0x1c3   : > { %v1360_v45 = vadd.f32 %v1359_v27, %v1228_v23 }
 0x1c4   : > { %v12947_v63 = vpop.f32.mrf.mxu1  ;;  %v12908_v62 = vpop.f32.mrf.mxu0 }
 0x1c6   : > { %v1367_v41 = vpop.f32.mrf.mxu1 }
 0x1c8   : > { %v12948_v44 = vpop.f32.mrf.mxu1 }
 0x1ca   : > { %v1693_v2 = vpop.f32.mrf.mxu1  ;;  %v1233_v36 = vpop.f32.mrf.mxu0 }
 0x1cb   : > { %v1365_v60 = vadd.f32 %v1364_v46, %v1233_v36 }
 0x1cc   : > { %v13003_v14 = vpop.f32.mrf.mxu1  ;;  %v12911_v40 = vpop.f32.mrf.mxu0 }
 0x1ce   : > { %v1696_v10 = vpop.f32.mrf.mxu1  ;;  %v1236_v51 = vpop.f32.mrf.mxu0 }
 0x1d0   : > { %v13004_v43 = vpop.f32.mrf.mxu1  ;;  %v12912_v13 = vpop.f32.mrf.mxu0 }
 0x1d2   : > { %v1701_v18 = vpop.f32.mrf.mxu1  ;;  %v1533_v30 = vpop.f32.mrf.mxu0 }
 0x1d4   : > { %v13007_v15 = vpop.f32.mrf.mxu1  ;;  %v12967_v29 = vpop.f32.mrf.mxu0 }
 0x1d6   : > { %v1704_v17 = vpop.f32.mrf.mxu1  ;;  %v1536_v35 = vpop.f32.mrf.mxu0 }
 0x1d7   : > { %v1573_v32 = vadd.f32 %v1536_v35, %v1336_v22 }
 0x1d8   : > { %v13008_v31 = vpop.f32.mrf.mxu1  ;;  %v12968_v4 = vpop.f32.mrf.mxu0 }
 0x1d9   : > { %v1733_v37 = vadd.f32 %v1696_v10, %v1573_v32 }
 0x1da   : > { %v1709_v9 = vpop.f32.mrf.mxu1  ;;  %v1541_v34 = vpop.f32.mrf.mxu0 }
 0x1db   : > { %v1574_v16 = vadd.f32 %v1541_v34, %v1341_v38 }
 0x1dc   : > { %v13011_v50 = vpop.f32.mrf.mxu1  ;;  %v12971_v19 = vpop.f32.mrf.mxu0 }
 0x1dd   : > { %v1734_v21 = vadd.f32 %v1701_v18, %v1574_v16 }
 0x1de   : > { %v1712_v61 = vpop.f32.mrf.mxu1  ;;  %v1544_v25 = vpop.f32.mrf.mxu0 }
 0x1df   : > { %v1575_v26 = vadd.f32 %v1544_v25, %v1344_v49 }
 0x1e0   : > { %v13012_v6 = vpop.f32.mrf.mxu1  ;;  %v12972_v33 = vpop.f32.mrf.mxu0 }
 0x1e1   : > { %v1735_v54 = vadd.f32 %v1704_v17, %v1575_v26 }
 0x1e2   : > { %v1717_v56 = vpop.f32.mrf.mxu1  ;;  %v1549_v58 = vpop.f32.mrf.mxu0 }
 0x1e3   : > { %v1576_v53 = vadd.f32 %v1549_v58, %v1349_v52 }
 0x1e4   : > { %v13015_v28 = vpop.f32.mrf.mxu1  ;;  %v12975_v22 = vpop.f32.mrf.mxu0 }
 0x1e5   : > { %v1736_v55 = vadd.f32 %v1709_v9, %v1576_v53 }
 0x1e6   : > { %v1720_v47 = vpop.f32.mrf.mxu1  ;;  %v1552_v39 = vpop.f32.mrf.mxu0 }
 0x1e7   : > { %v1577_v20 = vadd.f32 %v1552_v39, %v1352_v7 }
 0x1e8   : > { %v13016_v24 = vpop.f32.mrf.mxu1  ;;  %v12976_v38 = vpop.f32.mrf.mxu0 }
 0x1e9   : > { %v1737_v3 = vadd.f32 %v1712_v61, %v1577_v20 }
 0x1ea   : > { %v1725_v42 = vpop.f32.mrf.mxu1  ;;  %v1557_v11 = vpop.f32.mrf.mxu0 }
 0x1eb   : > { %v1578_v27 = vadd.f32 %v1557_v11, %v1357_v12 }
 0x1ec   : > { %v13019_v8 = vpop.f32.mrf.mxu1  ;;  %v12979_v49 = vpop.f32.mrf.mxu0 }
 0x1ed   : > { %v1738_v57 = vadd.f32 %v1717_v56, %v1578_v27 }
 0x1ee   : > { %v1728_v59 = vpop.f32.mrf.mxu1  ;;  %v1560_v1 = vpop.f32.mrf.mxu0 }
 0x1ef   : > { %v1579_v46 = vadd.f32 %v1560_v1, %v1360_v45 }
 0x1f0   : > { %v13020_v48 = vpop.f32.mrf.mxu1  ;;  %v12980_v52 = vpop.f32.mrf.mxu0 }
 0x1f1   : > { %v1739_v63 = vadd.f32 %v1720_v47, %v1579_v46 }
 0x1f2   : > { %v2032_v5 = vpop.f32.mrf.mxu1  ;;  %v1565_v41 = vpop.f32.mrf.mxu0 }
 0x1f3   : > { %v1580_v62 = vadd.f32 %v1565_v41, %v1365_v60 }
 0x1f4   : > { %v13075_v23 = vpop.f32.mrf.mxu1  ;;  %v12983_v7 = vpop.f32.mrf.mxu0 }
 0x1f5   : > { %v1740_v2 = vadd.f32 %v1725_v42, %v1580_v62 }
 0x1f6   : > { %v2035_v44 = vpop.f32.mrf.mxu1  ;;  %v1568_v36 = vpop.f32.mrf.mxu0 }
 0x1f8   : > { %v13076_v14 = vpop.f32.mrf.mxu1  ;;  %v12984_v40 = vpop.f32.mrf.mxu0 }
 0x1fa   : > { %v2040_v10 = vpop.f32.mrf.mxu1  ;;  %v1869_v43 = vpop.f32.mrf.mxu0 }
 0x1fc   : > { %v13079_v12 = vpop.f32.mrf.mxu1  ;;  %v13039_v18 = vpop.f32.mrf.mxu0 }
 0x1fe   : > { %v2043_v51 = vpop.f32.mrf.mxu1  ;;  %v1872_v15 = vpop.f32.mrf.mxu0 }
 0x1ff   : > { %v1909_v45 = vadd.f32 %v1872_v15, %v1733_v37 }
 0x200   : > { %v13080_v13 = vpop.f32.mrf.mxu1  ;;  %v13040_v17 = vpop.f32.mrf.mxu0 }
 0x201   : > { %v2072_v29 = vadd.f32 %v2035_v44, %v1909_v45 }
 0x202   : > { %v2048_v30 = vpop.f32.mrf.mxu1  ;;  %v1877_v35 = vpop.f32.mrf.mxu0 }
 0x203   : > { %v1910_v60 = vadd.f32 %v1877_v35, %v1734_v21 }
 0x204   : > { %v13083_v31 = vpop.f32.mrf.mxu1  ;;  %v13043_v9 = vpop.f32.mrf.mxu0 }
 0x205   : > { %v2073_v4 = vadd.f32 %v2040_v10, %v1910_v60 }
 0x206   : > { %v2051_v32 = vpop.f32.mrf.mxu1  ;;  %v1880_v34 = vpop.f32.mrf.mxu0 }
 0x207   : > { %v1911_v16 = vadd.f32 %v1880_v34, %v1735_v54 }
 0x208   : > { %v13084_v50 = vpop.f32.mrf.mxu1  ;;  %v13044_v19 = vpop.f32.mrf.mxu0 }
 0x209   : > { %v2074_v6 = vadd.f32 %v2043_v51, %v1911_v16 }
 0x20a   : > { %v2056_v61 = vpop.f32.mrf.mxu1  ;;  %v1885_v26 = vpop.f32.mrf.mxu0 }
 0x20b   : > { %v1912_v56 = vadd.f32 %v1885_v26, %v1736_v55 }
 0x20c   : > { %v13087_v25 = vpop.f32.mrf.mxu1  ;;  %v13047_v37 = vpop.f32.mrf.mxu0 }
 0x20d   : > { %v2075_v28 = vadd.f32 %v2048_v30, %v1912_v56 }
 0x20e   : > { %v2059_v33 = vpop.f32.mrf.mxu1  ;;  %v1888_v53 = vpop.f32.mrf.mxu0 }
 0x20f   : > { %v1913_v47 = vadd.f32 %v1888_v53, %v1737_v3 }
 0x210   : > { %v13088_v58 = vpop.f32.mrf.mxu1  ;;  %v13048_v21 = vpop.f32.mrf.mxu0 }
 0x211   : > { %v2076_v24 = vadd.f32 %v2051_v32, %v1913_v47 }
 0x212   : > { %v2064_v22 = vpop.f32.mrf.mxu1  ;;  %v1893_v20 = vpop.f32.mrf.mxu0 }
 0x213   : > { %v1914_v42 = vadd.f32 %v1893_v20, %v1738_v57 }
 0x214   : > { %v13091_v39 = vpop.f32.mrf.mxu1  ;;  %v13051_v54 = vpop.f32.mrf.mxu0 }
 0x215   : > { %v2077_v8 = vadd.f32 %v2056_v61, %v1914_v42 }
 0x216   : > { %v2067_v38 = vpop.f32.mrf.mxu1  ;;  %v1896_v27 = vpop.f32.mrf.mxu0 }
 0x217   : > { %v1915_v59 = vadd.f32 %v1896_v27, %v1739_v63  ;;  %v13851_v38 = vld [vmem:[#allocation14 + $0x38] sm:$0xff]  }
 0x218   : > { %v13092_v11 = vpop.f32.mrf.mxu1  ;;  %v13052_v55 = vpop.f32.mrf.mxu0  ;;  %13249 = vmatprep.subr.bf16.mxu0 %v13851_v38 }
 0x219   : > { %v2078_v48 = vadd.f32 %v2059_v33, %v1915_v59  ;;  %13250 = vmatpush3.bf16.msra.mxu0 %v13851_v38 }
 0x21a   : > { %v2352_v49 = vpop.f32.mrf.mxu1  ;;  %v1901_v46 = vpop.f32.mrf.mxu0 }
 0x21b   : > { %v1916_v5 = vadd.f32 %v1901_v46, %v1740_v2 }
 0x21c   : > { %v13147_v1 = vpop.f32.mrf.mxu1  ;;  %v13055_v3 = vpop.f32.mrf.mxu0 }
 0x21d   : > { %v2079_v23 = vadd.f32 %v2064_v22, %v1916_v5  ;;  %v15258_v3 = vld [vmem:[%s19164_s21] ss:$0 sm:$0xff] }
 0x21e   : > { %v2355_v52 = vpop.f32.mrf.mxu1  ;;  %v1904_v62 = vpop.f32.mrf.mxu0 }
 0x220   : > { %v13148_v41 = vpop.f32.mrf.mxu1  ;;  %v13056_v7 = vpop.f32.mrf.mxu0 }
 0x222   : > { %v2360_v44 = vpop.f32.mrf.mxu1  ;;  %v2184_v14 = vpop.f32.mrf.mxu0 }
 0x224   : > { %v13151_v57 = vpop.f32.mrf.mxu1  ;;  %v13111_v10 = vpop.f32.mrf.mxu0 }
 0x226   : > { %v2363_v36 = vpop.f32.mrf.mxu1  ;;  %v2187_v12 = vpop.f32.mrf.mxu0 }
 0x227   : > { %v2224_v63 = vadd.f32 %v2187_v12, %v2072_v29 }
 0x228   : > { %v13152_v40 = vpop.f32.mrf.mxu1  ;;  %v13112_v51 = vpop.f32.mrf.mxu0 }
 0x229   : > { %v2392_v18 = vadd.f32 %v2355_v52, %v2224_v63  ;;  %v14260_v63 = vmov 1983009808  }
 0x22a   : > { %v2368_v43 = vpop.f32.mrf.mxu1  ;;  %v2192_v15 = vpop.f32.mrf.mxu0 }
 0x22b   : > { %v2225_v2 = vadd.f32 %v2192_v15, %v2073_v4  ;;  %v12367_v15 = vld [vmem:[%s14581_s13] sm:$0xff]  }
 0x22c   : > { %v13155_v13 = vpop.f32.mrf.mxu1  ;;  %v13115_v30 = vpop.f32.mrf.mxu0 }
 0x22d   : > { %v2393_v17 = vadd.f32 %v2360_v44, %v2225_v2  ;;  %v3106_v30 = vlaneseq }
 0x22e   : > { %v2371_v45 = vpop.f32.mrf.mxu1  ;;  %v2195_v35 = vpop.f32.mrf.mxu0 }
 0x22f   : > { %v2226_v60 = vadd.f32 %v2195_v35, %v2074_v6 }
 0x230   : > { %v13156_v31 = vpop.f32.mrf.mxu1  ;;  %v13116_v9 = vpop.f32.mrf.mxu0 }
 0x231   : > { %v15242_v50 = vadd.f32 %v2363_v36, %v2226_v60 }
 0x232   : > { %v2376_v32 = vpop.f32.mrf.mxu1  ;;  %v2200_v16 = vpop.f32.mrf.mxu0 }
 0x233   : > { %v2227_v61 = vadd.f32 %v2200_v16, %v2075_v28  ;;  %v13853_v16 = vld [vmem:[#allocation14 + $0x30] sm:$0xff]  }
 0x234   : > { %v13159_v34 = vpop.f32.mrf.mxu1  ;;  %v13119_v19 = vpop.f32.mrf.mxu0  ;;  %13251 = vmatprep.subr.bf16.mxu0 %v13853_v16 }
 0x235   : > { %v15244_v25 = vadd.f32 %v2368_v43, %v2227_v61  ;;  %v6879_v43 = vunpack.c.l.s4 %v14260_v63  ;;  %v12369_v19 = vunpack.c.h.bf16 %v12367_v15  ;;  %13252 = vmatpush3.bf16.msra.mxu0 %v13853_v16 }
 0x236   : > { %v2379_v29 = vpop.f32.mrf.mxu1  ;;  %v2203_v56 = vpop.f32.mrf.mxu0 }
 0x237   : > { %v2228_v4 = vadd.f32 %v2203_v56, %v2076_v24 }
 0x238   : > { %v13160_v26 = vpop.f32.mrf.mxu1  ;;  %v13120_v37 = vpop.f32.mrf.mxu0 }
 0x239   : > { %v15246_v58 = vadd.f32 %v2371_v45, %v2228_v4  ;;  %v6880_v26 = vunpack.c.0.s8 %v6879_v43 }
 0x23a   : > { %v2384_v33 = vpop.f32.mrf.mxu1  ;;  %v2208_v6 = vpop.f32.mrf.mxu0 }
 0x23b   : > { %v2229_v47 = vadd.f32 %v2208_v6, %v2077_v8  ;;  %v13850_v8 = vld [vmem:[#allocation14 + $0x78] sm:$0xff]  }
 0x23c   : > { %v13163_v53 = vpop.f32.mrf.mxu1  ;;  %v13123_v21 = vpop.f32.mrf.mxu0  ;;  %13201 = vmatprep.subr.bf16.mxu1 %v13850_v8 }
 0x23d   : > { %v15248_v39 = vadd.f32 %v2376_v32, %v2229_v47  ;;  %13202 = vmatpush3.bf16.msra.mxu1 %v13850_v8  ;;  %v14261_v32 = vmov 1966171168   ;;  %v3107_v47 = vshrl.u32 %v3106_v30, 7 }
 0x23e   : > { %v2387_v22 = vpop.f32.mrf.mxu1  ;;  %v2211_v28 = vpop.f32.mrf.mxu0  ;;  %v3104_v9 = vunpack.c.l.s4 %v14261_v32 }
 0x23f   : > { %v2230_v42 = vadd.f32 %v2211_v28, %v2078_v48  ;;  %v2681_v48 = vrot.slane %v14258_v0, 7  ;;  %v12368_v22 = vunpack.c.l.bf16 %v12367_v15  ;;  %v15347_v16 = vsub.s32 0, %v3107_v47 }
 0x240   : > { %v13164_v20 = vpop.f32.mrf.mxu1  ;;  %v13124_v54 = vpop.f32.mrf.mxu0 }
 0x241   : > { %v15250_v11 = vadd.f32 %v2379_v29, %v2230_v42  ;;  %v2702_v7 = vsel %vm843_vm3, 0.0, %v2681_v48  ;;  %v2712_v14 = vsel %vm843_vm3, %v2681_v48, 0.0 }
 0x242   : > { %v2216_v24 = vpop.f32.mrf.mxu0  ;;  %v2849_v10 = vmul.f32 0.0625, %v2702_v7  ;;  %v3003_v13 = vmul.f32 0.0625, %v2712_v14 }
 0x243   : > { %v2231_v27 = vadd.f32 %v2216_v24, %v2079_v23  ;;  %v15263_v23 = vld [vmem:[%s19166_s8] ss:$0 sm:$0xff]  ;;  %v3105_v24 = vunpack.c.0.s8 %v3104_v9 }
 0x244   : > { %v13127_v59 = vpop.f32.mrf.mxu0  ;;  %v3021_v60 = vrot.slane %v2849_v10, 1  ;;  %v15293_v54 = vrot.slane %v2849_v10, 7 }
 0x245   : > { %v15252_v49 = vadd.f32 %v2384_v33, %v2231_v27  ;;  %v15295_v27 = vsub.s32 %v6880_v26, %v3107_v47  ;;  %v6928_v59 = vcombine.high %v12369_v19, %v12369_v19 }
 0x246   : > { %v2219_v55 = vpop.f32.mrf.mxu0  ;;  %19169 = vst [vmem:[#allocation38_spill] sm:$0xff] %v15293_v54 }
 0x247   : > { %v15322_v10 = vrot.slane %v12368_v22, %v15295_v27  ;;  %v15343_v9 = vrot.slane %v12369_v19, %v15295_v27 }
 0x248   : > { %v13128_v1 = vpop.f32.mrf.mxu0 }
 0x24a   : > { %v2507_v46 = vpop.f32.mrf.mxu0 }
 0x24c   : > { %v13183_v5 = vpop.f32.mrf.mxu0 }
 0x24e   : > { %v2510_v52 = vpop.f32.mrf.mxu0 }
 0x24f   : > { %v2547_v41 = vadd.f32 %v2510_v52, %v2392_v18  ;;  %v15270_v18 = vmul.f32 0.1875, %v2702_v7  ;;  %v13852_v52 = vld [vmem:[#allocation14 + $0x70] sm:$0xff]   ;;  %v6911_v7 = vcombine.high %v12368_v22, %v12368_v22 }
 0x250   : > { %v13184_v62 = vpop.f32.mrf.mxu0  ;;  %13203 = vmatprep.subr.bf16.mxu1 %v13852_v52 }
 0x251   : > { %v2564_v44 = vmul.f32 %v15258_v3, %v2547_v41  ;;  %13204 = vmatpush3.bf16.msra.mxu1 %v13852_v52  ;;  %v15339_v30 = vrot.slane %v6911_v7, %v15295_v27 }
 0x252   : > { %v2515_v57 = vpop.f32.mrf.mxu0 }
 0x253   : > { %v2581_v0 = vadd.f32 %v15263_v23, %v2564_v44  ;;  %v2548_v36 = vadd.f32 %v2515_v57, %v2393_v17  ;;  %v15277_v17 = vmul.f32 0.1875, %v2712_v14  ;;  %v15318_v14 = vsub.s32 %v3105_v24, %v3107_v47 }
 0x254   : > { %v13187_v40 = vpop.f32.mrf.mxu0 }
 0x255   : > { %v2591_v12 = vmax.f32 %v2581_v0, 0.0  ;;  %v2565_v51 = vmul.f32 %v15258_v3, %v2548_v36  ;;  %19167 = vst [vmem:[#allocation36_spill] sm:$0xff] %v15277_v17  ;;  %v15325_v40 = vrot.slane %v6928_v59, %v15295_v27 }
 0x256   : > { %v2518_v2 = vpop.f32.mrf.mxu0 }
 0x257   : > { %v2682_v45 = vrot.slane %v2591_v12, 7  ;;  %v2582_v31 = vadd.f32 %v15263_v23, %v2565_v51  ;;  %v15275_v35 = vadd.f32 %v2518_v2, %v15242_v50  ;;  %v15285_v50 = vrot.slane %v3003_v13, 1 }
 0x258   : > { %v13188_v34 = vpop.f32.mrf.mxu0 }
 0x259   : > { %v2703_v61 = vsel %vm843_vm3, 0.0, %v2682_v45  ;;  %v2713_v29 = vsel %vm843_vm3, %v2682_v45, 0.0  ;;  %19168 = vst [vmem:[#allocation37_spill] sm:$0xff] %v15285_v50  ;;  %v2592_v33 = vmax.f32 %v2582_v31, 0.0  ;;  %v15314_v44 = vsel %vm2914_vm13, %v3021_v60, %v15285_v50 }
 0x25a   : > { %v15281_v56 = vmul.f32 0.1875, %v2703_v61  ;;  %v15283_v4 = vmul.f32 0.1875, %v2713_v29  ;;  %v2523_v37 = vpop.f32.mrf.mxu0  ;;  %v2724_v53 = vmul.f32 0.5625, %v2703_v61  ;;  %v2725_v6 = vmul.f32 0.5625, %v2713_v29  ;;  %19170 = vst [vmem:[#allocation39_spill] sm:$0xff] %v15314_v44 }
 0x25b   : > { %v15291_v42 = vadd.f32 %v2523_v37, %v15244_v25  ;;  %v2683_v46 = vrot.slane %v2592_v33, 7  ;;  %v15332_v51 = vmul.f32 0.0625, %v2703_v61  ;;  %v15334_v13 = vmul.f32 0.0625, %v2713_v29 }
 0x25c   : > { %v2783_v21 = vrot.slane %v15281_v56, 7  ;;  %v2918_v20 = vrot.slane %v15281_v56, 1  ;;  %v2919_v28 = vrot.slane %v15283_v4, 1  ;;  %v13191_v38 = vpop.f32.mrf.mxu0 }
 0x25d   : > { %v2704_v12 = vsel %vm843_vm3, 0.0, %v2683_v46  ;;  %v3024_v37 = vrot.slane %v15332_v51, 1 }
 0x25e   : > { %v15297_v55 = vadd.f32 %v2783_v21, %v2724_v53  ;;  %v2920_v8 = vsel %vm2914_vm13, %v2918_v20, %v2919_v28  ;;  %v15300_v1 = vadd.f32 %v2919_v28, %v2725_v6  ;;  %v15302_v5 = vpop.f32.mrf.mxu0  ;;  %v15304_v48 = vadd.f32 %v2783_v21, %v2725_v6 }
 0x25f   : > { %v15306_v25 = vadd.f32 %v2920_v8, %v2724_v53  ;;  %v15345_v34 = vmul.f32 0.1875, %v2704_v12  ;;  %v18928_v53 = vrot.slane %v15334_v13, 1  ;;  %v2714_v21 = vsel %vm843_vm3, %v2683_v46, 0.0 }
 0x260   : > { %v2831_v41 = vadd.f32 %v15297_v55, %v15270_v18  ;;  %v2986_v62 = vadd.f32 %v15300_v1, %v15277_v17  ;;  %v13192_v57 = vpop.f32.mrf.mxu0  ;;  %v2832_v43 = vadd.f32 %v15277_v17, %v15304_v48  ;;  %v2868_v8 = vrot.slane %v15332_v51, 7 }
 0x261   : > { %v2985_v0 = vadd.f32 %v15306_v25, %v15270_v18  ;;  %v2784_v59 = vrot.slane %v15345_v34, 7  ;;  %v3026_v46 = vsel %vm2914_vm13, %v3024_v37, %v18928_v53  ;;  %v2726_v57 = vmul.f32 0.5625, %v2704_v12 }
 0x262   : > { %v2885_v36 = vadd.f32 %v15293_v54, %v2831_v41  ;;  %v15328_v63 = vpop.f32.mrf.mxu0  ;;  %v3067_v2 = vadd.f32 %v15285_v50, %v2986_v62  ;;  %v2886_v33 = vadd.f32 %v15293_v54, %v2832_v43  ;;  %v2851_v41 = vmul.f32 0.0625, %v2704_v12 }
 0x263   : > { %v3066_v15 = vadd.f32 %v15314_v44, %v2985_v0  ;;  %v15371_v62 = vmul.f32 %v15258_v3, %v15275_v35  ;;  %v2727_v0 = vmul.f32 0.5625, %v2714_v21  ;;  %v15390_v12 = vmul.f32 0.1875, %v2714_v21 }
 0x264   : > { %v3102_v45 = vcombine.high %v2885_v36, %v2885_v36  ;;  %v13195_v31 = vpop.f32.mrf.mxu0  ;;  %v3109_v6 = vrot.slane %v2885_v36, %v15318_v14  ;;  %v3814_v22 = vrot.slane %v3067_v2, %v15318_v14  ;;  %v3157_v7 = vrot.slane %v2886_v33, %v15318_v14 }
 0x265   : > { %v3759_v60 = vcombine.high %v3066_v15, %v3066_v15  ;;  %v3766_v32 = vrot.slane %v3066_v15, %v15318_v14  ;;  %v15385_v31 = vadd.f32 %v2784_v59, %v2727_v0  ;;  %v15392_v33 = vrot.slane %v2851_v41, 7 }
 0x266   : > { %v15353_v26 = vpop.f32.mrf.mxu0  ;;  %v3116_v47 = vrot.slane %v3102_v45, %v15318_v14  ;;  %v3117_v36 = vcombine.high %v3109_v6, %v3109_v6  ;;  %v3821_v51 = vrot.slane %v3814_v22, %v15318_v14  ;;  %v15383_v45 = vadd.f32 %v2784_v59, %v2726_v57 }
 0x267   : > { %v3773_v19 = vrot.slane %v3759_v60, %v15318_v14  ;;  %v3774_v28 = vcombine.high %v3766_v32, %v3766_v32  ;;  %v3782_v15 = vrot.slane %v3766_v32, %v15318_v14  ;;  %v3005_v37 = vmul.f32 0.0625, %v2714_v21 }
 0x268   : > { %v13196_v20 = vpop.f32.mrf.mxu0  ;;  %v3118_v43 = vcombine.high %v3116_v47, %v3116_v47  ;;  %v3125_v32 = vrot.slane %v3109_v6, %v15318_v14  ;;  %v15396_v22 = vrot.slane %v3116_v47, %v15318_v14  ;;  %v4357_v24 = vrot.slane %v3821_v51, %v15347_v16 }
 0x269   : > { %v3775_v52 = vcombine.high %v3773_v19, %v3773_v19  ;;  %v15380_v2 = vrot.slane %v3773_v19, %v15318_v14  ;;  %v3796_v35 = vrot.slane %v3774_v28, %v15318_v14  ;;  %v3164_v19 = vrot.slane %v3157_v7, %v15318_v14 }
 0x26a   : > { %v2921_v20 = vrot.slane %v15345_v34, 1  ;;  %v3139_v28 = vrot.slane %v3117_v36, %v15318_v14  ;;  %v3146_v59 = vrot.slane %v3118_v43, %v15318_v14  ;;  %v2833_v6 = vadd.f32 %v15383_v45, %v15281_v56 }
 0x26b   : > { %v15388_v60 = vrot.slane %v3775_v52, %v15318_v14  ;;  %v3804_v52 = vcombine.high %v3782_v15, %v3782_v15  ;;  %v3805_v38 = vcombine.high %v15380_v2, %v15380_v2  ;;  %v3806_v21 = vcombine.high %v3796_v35, %v3796_v35 }
 0x26c   : > { %v2834_v47 = vadd.f32 %v15283_v4, %v15385_v31  ;;  %v2922_v36 = vrot.slane %v15390_v12, 1  ;;  %v3027_v61 = vrot.slane %v2851_v41, 1  ;;  %v15412_v43 = vrot.slane %v3005_v37, 1 }
 0x26d   : > { %v3807_v7 = vcombine.high %v15388_v60, %v15388_v60  ;;  %v2887_v15 = vadd.f32 %v2868_v8, %v2833_v6  ;;  %v4760_v29 = vadd.f32 %v15297_v55, %v15345_v34  ;;  %v4761_v53 = vadd.f32 %v15390_v12, %v15304_v48 }
 0x26e   : > { %v15414_v51 = vadd.f32 %v2868_v8, %v2834_v47  ;;  %v3150_v50 = vcombine.high %v3146_v59, %v3146_v59  ;;  %v4329_v44 = vrot.slane %v3796_v35, %v15347_v16  ;;  %v2923_v54 = vsel %vm2914_vm13, %v2921_v20, %v2922_v36 }
 0x26f   : > { %v15422_v17 = vadd.f32 %v2922_v36, %v2727_v0  ;;  %v4333_v41 = vrot.slane %v3804_v52, %v15347_v16  ;;  %v4341_v37 = vrot.slane %v15380_v2, %v15347_v16  ;;  %v15427_v8 = vadd.f32 %v2923_v54, %v2726_v57  ;;  %v13854_v2 = vld [vmem:[#allocation14 + $0x28] sm:$0xff]  }
 0x270   : > { %v15431_v55 = vsel %vm2914_vm13, %v3027_v61, %v15412_v43  ;;  %v4782_v35 = vadd.f32 %v4760_v29, %v15392_v33  ;;  %v15437_v20 = vadd.f32 %v4761_v53, %v15392_v33  ;;  %v4800_v0 = vadd.f32 %v15306_v25, %v15345_v34  ;;  %13253 = vmatprep.subr.bf16.mxu0 %v13854_v2 }
 0x271   : > { %v2988_v48 = vadd.f32 %v15422_v17, %v15283_v4  ;;  %v4353_v52 = vrot.slane %v3807_v7, %v15347_v16  ;;  %v4693_v54 = vsel %vm843_vm3, %v3164_v19, %v4357_v24  ;;  %v2987_v57 = vadd.f32 %v15427_v8, %v15281_v56  ;;  %13254 = vmatpush3.bf16.msra.mxu0 %v13854_v2 }
 0x272   : > { %v3165_v61 = vcombine.high %v2887_v15, %v2887_v15  ;;  %v19171_v6 = vrot.slane %v15334_v13, 1  ;;  %v3172_v29 = vrot.slane %v2887_v15, %v15318_v14  ;;  %v4801_v53 = vadd.f32 %v15300_v1, %v15390_v12 }
 0x273   : > { %v15451_v47 = vadd.f32 %v4800_v0, %v15431_v55  ;;  %v4337_v25 = vrot.slane %v3806_v21, %v15347_v16  ;;  %v4345_v24 = vrot.slane %v15388_v60, %v15347_v16  ;;  %v4349_v56 = vrot.slane %v3805_v38, %v15347_v16 }
 0x274   : > { %v3069_v4 = vadd.f32 %v19171_v6, %v2988_v48  ;;  %v3068_v19 = vadd.f32 %v3026_v46, %v2987_v57  ;;  %v3147_v7 = vcombine.high %v3125_v32, %v3125_v32  ;;  %v3148_v13 = vcombine.high %v15396_v22, %v15396_v22 }
 0x275   : > { %v15460_v36 = vadd.f32 %v4801_v53, %v15412_v43  ;;  %v2583_v1 = vadd.f32 %v15263_v23, %v15371_v62  ;;  %v3149_v15 = vcombine.high %v3139_v28, %v3139_v28  ;;  %v4686_v21 = vsel %vm843_vm3, %v3139_v28, %v4329_v44  ;;  %v15475_v62 = vpop.f32.mrf.mxu0 }
 0x276   : > { %v4692_v60 = vsel %vm843_vm3, %v3150_v50, %v4353_v52  ;;  %v3179_v38 = vrot.slane %v3165_v61, %v15318_v14  ;;  %v4687_v46 = vsel %vm843_vm3, %v3147_v7, %v4333_v41  ;;  %v4689_v32 = vsel %vm843_vm3, %v15396_v22, %v4341_v37 }
 0x277   : > { %v19172_v48 = vcombine.high %v15325_v40, %v15325_v40  ;;  %v3180_v57 = vcombine.high %v3172_v29, %v3172_v29  ;;  %v15478_v2 = vsel %vm843_vm3, %v3149_v15, %v4337_v25  ;;  %v4690_v50 = vsel %vm843_vm3, %v3146_v59, %v4345_v24  ;;  %v13199_v61 = vpop.f32.mrf.mxu0 }
 0x278   : > { %v4691_v44 = vsel %vm843_vm3, %v3148_v13, %v4349_v56  ;;  %v3877_v28 = vrot.slane %v3069_v4, %v15318_v14  ;;  %v15484_v41 = vadd.f32 %v15325_v40, %v4692_v60  ;;  %v3220_v22 = vrot.slane %v15414_v51, %v15318_v14 }
 0x279   : > { %v15473_v0 = vadd.f32 %v19172_v48, %v4693_v54  ;;  %v3822_v37 = vcombine.high %v3068_v19, %v3068_v19  ;;  %v4922_v52 = vcombine.high %v4782_v35, %v4782_v35  ;;  %v13855_v54 = vld [vmem:[#allocation14 + $0x68] sm:$0xff]   ;;  %v3181_v6 = vcombine.high %v3179_v38, %v3179_v38  ;;  %v2542_v7 = vpop.f32.mrf.mxu0 }
 0x27a   : > { %v15489_v53 = vrot.slane %v3172_v29, %v15318_v14  ;;  %v15492_v59 = vrot.slane %v3179_v38, %v15318_v14  ;;  %v3829_v25 = vrot.slane %v3068_v19, %v15318_v14  ;;  %v15496_v4 = vadd.f32 %v15322_v10, %v4686_v21  ;;  %13205 = vmatprep.subr.bf16.mxu1 %v13855_v54 }
 0x27b   : > { %v19175_v40 = vcombine.high %v15322_v10, %v15322_v10  ;;  %v19176_v24 = vcombine.high %v15339_v30, %v15339_v30  ;;  %v15509_v29 = vrot.slane %v3180_v57, %v15318_v14  ;;  %v15512_v19 = vadd.f32 %v15343_v9, %v4690_v50  ;;  %13206 = vmatpush3.bf16.msra.mxu1 %v13855_v54 }
 0x27c   : > { %19173 = vst [vmem:[#allocation40_spill] sm:$0xff] %v15489_v53  ;;  %19174 = vst [vmem:[#allocation41_spill] sm:$0xff] %v15492_v59  ;;  %v19178_v13 = vcombine.high %v15343_v9, %v15343_v9  ;;  %v15520_v10 = vrot.slane %v3877_v28, %v15318_v14  ;;  %v15523_v21 = vrot.slane %v4782_v35, %v15318_v14 }
 0x27d   : > { %v15501_v51 = vadd.f32 %v19175_v40, %v4687_v46  ;;  %v15506_v56 = vadd.f32 %v19176_v24, %v4689_v32  ;;  %19177 = vst [vmem:[#allocation42_spill] sm:$0xff] %v15509_v29  ;;  %v15528_v38 = vrot.slane %v3220_v22, %v15318_v14  ;;  %v15531_v46 = vrot.slane %v3822_v37, %v15318_v14  ;;  %v13200_v32 = vpop.f32.mrf.mxu0 }
 0x27e   : > { %v15517_v15 = vadd.f32 %v19178_v13, %v4691_v44  ;;  %19179 = vst [vmem:[#allocation43_spill] sm:$0xff] %v15520_v10  ;;  %v15534_v9 = vrot.slane %v4922_v52, %v15318_v14  ;;  %v15537_v48 = vrot.slane %v3181_v6, %v15318_v14  ;;  %v3837_v50 = vcombine.high %v3829_v25, %v3829_v25 }
 0x27f   : > { %19180 = vst [vmem:[#allocation44_spill] sm:$0xff] %v15528_v38  ;;  %v15546_v28 = vrot.slane %v3829_v25, %v15318_v14  ;;  %v4977_v22 = vrot.slane %v15437_v20, %v15318_v14  ;;  %v2593_v37 = vmax.f32 %v2583_v1, 0.0  ;;  %v5579_v61 = vcombine.high %v15451_v47, %v15451_v47 }
 0x280   : > { %19181 = vst [vmem:[#allocation45_spill] sm:$0xff] %v15537_v48  ;;  %v5586_v6 = vrot.slane %v15451_v47, %v15318_v14  ;;  %v3838_v25 = vcombine.high %v15531_v46, %v15531_v46  ;;  %v15562_v40 = vrot.slane %v15531_v46, %v15318_v14  ;;  %v15567_v24 = vrot.slane %v3837_v50, %v15318_v14 }
 0x281   : > { %v2684_v1 = vrot.slane %v2593_v37, 7  ;;  %v15571_v7 = vrot.slane %v15523_v21, %v15318_v14  ;;  %v15575_v47 = vadd.f32 %v15302_v5, %v15246_v58  ;;  %v15579_v13 = vadd.f32 %v15328_v63, %v15248_v39 }
 0x282   : > { %19182 = vst [vmem:[#allocation46_spill] sm:$0xff] %v15562_v40  ;;  %19183 = vst [vmem:[#allocation47_spill] sm:$0xff] %v15567_v24  ;;  %v3867_v46 = vcombine.high %v15546_v28, %v15546_v28  ;;  %v15587_v37 = vadd.f32 %v15353_v26, %v15250_v11  ;;  %v5593_v52 = vrot.slane %v5579_v61, %v15318_v14  ;;  %v13858_v24 = vld [vmem:[#allocation14 + $0x18] sm:$0xff]  }
 0x283   : > { %v2705_v32 = vsel %vm843_vm3, 0.0, %v2684_v1  ;;  %v2715_v50 = vsel %vm843_vm3, %v2684_v1, 0.0  ;;  %v5594_v57 = vcombine.high %v5586_v6, %v5586_v6 }
 0x284   : > { %v15590_v58 = vmul.f32 0.1875, %v2705_v32  ;;  %v15592_v5 = vmul.f32 0.1875, %v2715_v50  ;;  %v2728_v39 = vmul.f32 0.5625, %v2705_v32  ;;  %v2729_v63 = vmul.f32 0.5625, %v2715_v50 }
 0x285   : > { %v2852_v44 = vmul.f32 0.0625, %v2705_v32  ;;  %v3006_v35 = vmul.f32 0.0625, %v2715_v50 }
 0x286   : > { %v2785_v28 = vrot.slane %v15590_v58, 7  ;;  %v2924_v20 = vrot.slane %v15590_v58, 1  ;;  %v2925_v1 = vrot.slane %v15592_v5, 1  ;;  %v4762_v11 = vadd.f32 %v15383_v45, %v15590_v58 }
 0x287   : > { %v15599_v26 = vrot.slane %v2852_v44, 7  ;;  %v3030_v61 = vrot.slane %v2852_v44, 1  ;;  %v15601_v54 = vrot.slane %v3006_v35, 1  ;;  %v4763_v60 = vadd.f32 %v15592_v5, %v15385_v31 }
 0x288   : > { %v15605_v38 = vadd.f32 %v2785_v28, %v2728_v39  ;;  %v15607_v32 = vadd.f32 %v2785_v28, %v2729_v63  ;;  %v2926_v50 = vsel %vm2914_vm13, %v2924_v20, %v2925_v1  ;;  %v15610_v10 = vadd.f32 %v2925_v1, %v2729_v63 }
 0x289   : > { %v15612_v59 = vadd.f32 %v2926_v50, %v2728_v39  ;;  %v15616_v45 = vsel %vm2914_vm13, %v3030_v61, %v15601_v54  ;;  %v4784_v35 = vadd.f32 %v4762_v11, %v15599_v26  ;;  %v15620_v44 = vadd.f32 %v4763_v60, %v15599_v26 }
 0x28a   : > { %v2835_v31 = vadd.f32 %v15605_v38, %v15345_v34  ;;  %v2836_v28 = vadd.f32 %v15390_v12, %v15607_v32  ;;  %v2990_v20 = vadd.f32 %v15610_v10, %v15390_v12  ;;  %v4802_v39 = vadd.f32 %v15427_v8, %v15590_v58 }
 0x28b   : > { %v5595_v63 = vcombine.high %v5593_v52, %v5593_v52  ;;  %v2989_v1 = vadd.f32 %v15612_v59, %v15345_v34  ;;  %v4803_v60 = vadd.f32 %v15422_v17, %v15592_v5  ;;  %v2567_v11 = vmul.f32 %v15258_v3, %v15291_v42 }
 0x28c   : > { %v2889_v61 = vadd.f32 %v15392_v33, %v2835_v31  ;;  %v2890_v50 = vadd.f32 %v15392_v33, %v2836_v28  ;;  %v3071_v53 = vadd.f32 %v15412_v43, %v2990_v20  ;;  %v15640_v12 = vadd.f32 %v4802_v39, %v15616_v45 }
 0x28d   : > { %v15643_v8 = vrot.slane %v4977_v22, %v15318_v14  ;;  %v5602_v34 = vrot.slane %v5586_v6, %v15318_v14  ;;  %v3070_v29 = vadd.f32 %v15431_v55, %v2989_v1  ;;  %v15648_v17 = vadd.f32 %v4803_v60, %v15601_v54 }
 0x28e   : > { %v15651_v42 = vrot.slane %v3838_v25, %v15318_v14  ;;  %v15656_v43 = vrot.slane %v5593_v52, %v15318_v14  ;;  %v5634_v22 = vrot.slane %v15460_v36, %v15318_v14  ;;  %v15663_v55 = vrot.slane %v5594_v57, %v15318_v14 }
 0x28f   : > { %19184 = vst [vmem:[#allocation48_spill] sm:$0xff] %v15643_v8  ;;  %v3228_v31 = vcombine.high %v2889_v61, %v2889_v61  ;;  %v2584_v28 = vadd.f32 %v15263_v23, %v2567_v11  ;;  %v15669_v20 = vrot.slane %v5595_v63, %v15318_v14  ;;  %v3235_v52 = vrot.slane %v2889_v61, %v15318_v14 }
 0x290   : > { %19185 = vst [vmem:[#allocation49_spill] sm:$0xff] %v15651_v42  ;;  %v3885_v39 = vcombine.high %v3070_v29, %v3070_v29  ;;  %v15675_v1 = vrot.slane %v3867_v46, %v15347_v16  ;;  %v5624_v57 = vcombine.high %v5602_v34, %v5602_v34  ;;  %v4985_v60 = vcombine.high %v4784_v35, %v4784_v35 }
 0x291   : > { %v15682_v63 = vrot.slane %v5634_v22, %v15318_v14  ;;  %v3892_v61 = vrot.slane %v3070_v29, %v15318_v14  ;;  %v3242_v34 = vrot.slane %v3228_v31, %v15318_v14  ;;  %v2594_v36 = vmax.f32 %v2584_v28, 0.0 }
 0x292   : > { %19186 = vst [vmem:[#allocation50_spill] sm:$0xff] %v15675_v1  ;;  %v3243_v25 = vcombine.high %v3235_v52, %v3235_v52  ;;  %v3899_v6 = vrot.slane %v3885_v39, %v15318_v14  ;;  %v3940_v22 = vrot.slane %v3071_v53, %v15318_v14  ;;  %v15695_v1 = vrot.slane %v5624_v57, %v15347_v16  ;;  %v13856_v57 = vld [vmem:[#allocation14 + $0x20] sm:$0xff]  }
 0x293   : > { %19187 = vst [vmem:[#allocation51_spill] sm:$0xff] %v15682_v63  ;;  %v15700_v33 = vrot.slane %v4784_v35, %v15318_v14  ;;  %v15703_v31 = vrot.slane %v4985_v60, %v15318_v14  ;;  %v15708_v46 = vrot.slane %v3235_v52, %v15318_v14  ;;  %v3283_v53 = vrot.slane %v2890_v50, %v15318_v14 }
 0x294   : > { %19188 = vst [vmem:[#allocation52_spill] sm:$0xff] %v15695_v1  ;;  %v3900_v39 = vcombine.high %v3892_v61, %v3892_v61  ;;  %v3244_v11 = vcombine.high %v3242_v34, %v3242_v34  ;;  %v15712_v40 = vrot.slane %v3242_v34, %v15318_v14  ;;  %v15715_v35 = vrot.slane %v3892_v61, %v15318_v14 }
 0x295   : > { %19189 = vst [vmem:[#allocation53_spill] sm:$0xff] %v15700_v33  ;;  %19190 = vst [vmem:[#allocation54_spill] sm:$0xff] %v15703_v31  ;;  %v2685_v29 = vrot.slane %v2594_v36, 7  ;;  %v15718_v60 = vrot.slane %v3243_v25, %v15318_v14  ;;  %v3901_v42 = vcombine.high %v3899_v6, %v3899_v6  ;;  %v15721_v28 = vrot.slane %v3940_v22, %v15318_v14 }
 0x296   : > { %19191 = vst [vmem:[#allocation55_spill] sm:$0xff] %v15708_v46  ;;  %19192 = vst [vmem:[#allocation56_spill] sm:$0xff] %v15712_v40  ;;  %v15725_v50 = vmul.f32 %v15258_v3, %v15575_v47  ;;  %13255 = vmatprep.subr.bf16.mxu0 %v13856_v57  ;;  %v15733_v36 = vrot.slane %v15700_v33, %v15318_v14  ;;  %v15739_v47 = vrot.slane %v3283_v53, %v15318_v14  ;;  %v13857_v53 = vld [vmem:[#allocation14 + $0x60] sm:$0xff]  }
 0x297   : > { %19193 = vst [vmem:[#allocation57_spill] sm:$0xff] %v15718_v60  ;;  %19194 = vst [vmem:[#allocation58_spill] sm:$0xff] %v15721_v28  ;;  %v2706_v25 = vsel %vm843_vm3, 0.0, %v2685_v29  ;;  %13256 = vmatpush3.bf16.msra.mxu0 %v13856_v57  ;;  %v15742_v22 = vrot.slane %v3899_v6, %v15318_v14  ;;  %v2716_v52 = vsel %vm843_vm3, %v2685_v29, 0.0  ;;  %v15746_v61 = vrot.slane %v3244_v11, %v15318_v14  ;;  %v13860_v28 = vld [vmem:[#allocation14 + $0x10] sm:$0xff]  }
 0x298   : > { %19195 = vst [vmem:[#allocation59_spill] sm:$0xff] %v15733_v36  ;;  %19196 = vst [vmem:[#allocation60_spill] sm:$0xff] %v15739_v47  ;;  %v15751_v57 = vrot.slane %v3900_v39, %v15318_v14  ;;  %v15758_v6 = vrot.slane %v3901_v42, %v15318_v14  ;;  %v15762_v11 = vmul.f32 0.1875, %v2706_v25  ;;  %13257 = vmatprep.subr.bf16.mxu0 %v13858_v24  ;;  %v2730_v34 = vmul.f32 0.5625, %v2706_v25 }
 0x299   : > { %19197 = vst [vmem:[#allocation61_spill] sm:$0xff] %v15742_v22  ;;  %19198 = vst [vmem:[#allocation62_spill] sm:$0xff] %v15746_v61  ;;  %v5642_v36 = vcombine.high %v15640_v12, %v15640_v12  ;;  %v15768_v39 = vrot.slane %v15640_v12, %v15318_v14  ;;  %v15770_v47 = vmul.f32 0.1875, %v2716_v52  ;;  %v2731_v42 = vmul.f32 0.5625, %v2716_v52  ;;  %13207 = vmatprep.subr.bf16.mxu1 %v13857_v53 }
 0x29a   : > { %19199 = vst [vmem:[#allocation63_spill] sm:$0xff] %v15751_v57  ;;  %19200 = vst [vmem:[#allocation64_spill] sm:$0xff] %v15758_v6  ;;  %v2786_v40 = vrot.slane %v15762_v11, 7  ;;  %v2853_v46 = vmul.f32 0.0625, %v2706_v25  ;;  %v2927_v29 = vrot.slane %v15762_v11, 1  ;;  %v3007_v61 = vmul.f32 0.0625, %v2716_v52  ;;  %13208 = vmatpush3.bf16.msra.mxu1 %v13857_v53 }
 0x29b   : > { %13258 = vmatpush3.bf16.msra.mxu0 %v13858_v24  ;;  %v2928_v60 = vrot.slane %v15770_v47, 1  ;;  %v4764_v33 = vadd.f32 %v15605_v38, %v15762_v11  ;;  %v4765_v12 = vadd.f32 %v15770_v47, %v15607_v32  ;;  %v4804_v38 = vadd.f32 %v15612_v59, %v15762_v11  ;;  %v13859_v32 = vld [vmem:[#allocation14 + $0x58] sm:$0xff]  }
 0x29c   : > { %v15779_v31 = vadd.f32 %v2786_v40, %v2730_v34  ;;  %v15781_v24 = vadd.f32 %v2786_v40, %v2731_v42  ;;  %v15783_v48 = vrot.slane %v2853_v46, 7  ;;  %v3033_v25 = vrot.slane %v2853_v46, 1  ;;  %13259 = vmatprep.subr.bf16.mxu0 %v13860_v28  ;;  %13209 = vmatprep.subr.bf16.mxu1 %v13859_v32 }
 0x29d   : > { %v2929_v8 = vsel %vm2914_vm13, %v2927_v29, %v2928_v60  ;;  %v15786_v63 = vadd.f32 %v2928_v60, %v2731_v42  ;;  %v15788_v52 = vrot.slane %v3007_v61, 1  ;;  %v13862_v60 = vld [vmem:[#allocation14 + $0x8] sm:$0xff]   ;;  %v4805_v29 = vadd.f32 %v15610_v10, %v15770_v47 }
 0x29e   : > { %v2837_v40 = vadd.f32 %v15779_v31, %v15590_v58  ;;  %v2838_v1 = vadd.f32 %v15592_v5, %v15781_v24  ;;  %v15796_v46 = vadd.f32 %v2929_v8, %v2730_v34  ;;  %v15799_v53 = vadd.f32 %v4764_v33, %v15783_v48  ;;  %13210 = vmatpush3.bf16.msra.mxu1 %v13859_v32  ;;  %v13863_v32 = vld [vmem:[#allocation14] sm:$0xff]  }
 0x29f   : > { %13260 = vmatpush3.bf16.msra.mxu0 %v13860_v28  ;;  %v2992_v61 = vadd.f32 %v15786_v63, %v15592_v5  ;;  %v15805_v59 = vsel %vm2914_vm13, %v3033_v25, %v15788_v52  ;;  %v15808_v28 = vadd.f32 %v4765_v12, %v15783_v48  ;;  %v5697_v12 = vrot.slane %v15648_v17, %v15318_v14 }
 0x2a0   : > { %v2891_v8 = vadd.f32 %v15599_v26, %v2837_v40  ;;  %v2892_v33 = vadd.f32 %v15599_v26, %v2838_v1  ;;  %v2991_v34 = vadd.f32 %v15796_v46, %v15590_v58  ;;  %v15817_v5 = vadd.f32 %v4804_v38, %v15805_v59  ;;  %v13861_v40 = vld [vmem:[#allocation14 + $0x50] sm:$0xff]   ;;  %13261 = vmatprep.subr.bf16.mxu0 %v13862_v60 }
 0x2a1   : > { %v3073_v10 = vadd.f32 %v15601_v54, %v2992_v61  ;;  %v15825_v25 = vadd.f32 %v4805_v29, %v15788_v52  ;;  %v5656_v26 = vrot.slane %v5642_v36, %v15318_v14  ;;  %v5040_v54 = vrot.slane %v15620_v44, %v15318_v14  ;;  %13211 = vmatprep.subr.bf16.mxu1 %v13861_v40 }
 0x2a2   : > { %v3072_v1 = vadd.f32 %v15616_v45, %v2991_v34  ;;  %v3291_v38 = vcombine.high %v2891_v8, %v2891_v8  ;;  %v5657_v61 = vcombine.high %v15768_v39, %v15768_v39  ;;  %v19201_v36 = vcombine.high %v15715_v35, %v15715_v35  ;;  %13212 = vmatpush3.bf16.msra.mxu1 %v13861_v40 }
 0x2a3   : > { %13262 = vmatpush3.bf16.msra.mxu0 %v13862_v60  ;;  %v4003_v29 = vrot.slane %v3073_v10, %v15318_v14  ;;  %v5665_v34 = vrot.slane %v15768_v39, %v15318_v14  ;;  %v3346_v44 = vrot.slane %v2892_v33, %v15318_v14  ;;  %v15850_v17 = vrot.slane %v5697_v12, %v15318_v14 }
 0x2a4   : > { %v15842_v45 = vrot.slane %v19201_v36, %v15347_v16  ;;  %v3298_v10 = vrot.slane %v2891_v8, %v15318_v14  ;;  %v3305_v42 = vrot.slane %v3291_v38, %v15318_v14  ;;  %13263 = vmatprep.subr.bf16.mxu0 %v13863_v32  ;;  %v13864_v36 = vld [vmem:[#allocation14 + $0x48] sm:$0xff]   ;;  %v5658_v58 = vcombine.high %v5656_v26, %v5656_v26 }
 0x2a5   : > { %19203 = vst [vmem:[#allocation66_spill] sm:$0xff] %v15850_v17  ;;  %v4010_v35 = vrot.slane %v4003_v29, %v15318_v14  ;;  %v3955_v39 = vrot.slane %v3072_v1, %v15318_v14  ;;  %v15859_v33 = vrot.slane %v5040_v54, %v15318_v14  ;;  %v15862_v12 = vrot.slane %v5656_v26, %v15318_v14 }
 0x2a6   : > { %19202 = vst [vmem:[#allocation65_spill] sm:$0xff] %v15842_v45  ;;  %v3948_v45 = vcombine.high %v3072_v1, %v3072_v1  ;;  %v15865_v8 = vrot.slane %v5657_v61, %v15318_v14  ;;  %13213 = vmatprep.subr.bf16.mxu1 %v13864_v36  ;;  %v3353_v38 = vrot.slane %v3346_v44, %v15318_v14 }
 0x2a7   : > { %13264 = vmatpush3.bf16.msra.mxu0 %v13863_v32  ;;  %19204 = vst [vmem:[#allocation67_spill] sm:$0xff] %v15859_v33  ;;  %19205 = vst [vmem:[#allocation68_spill] sm:$0xff] %v15862_v12  ;;  %v4453_v40 = vrot.slane %v4010_v35, %v15347_v16  ;;  %v5048_v29 = vcombine.high %v15799_v53, %v15799_v53  ;;  %v2585_v1 = vadd.f32 %v15263_v23, %v15725_v50 }
 0x2a8   : > { %19206 = vst [vmem:[#allocation69_spill] sm:$0xff] %v15865_v8  ;;  %v2569_v32 = vmul.f32 %v15258_v3, %v15579_v13  ;;  %13214 = vmatpush3.bf16.msra.mxu1 %v13864_v36  ;;  %v5687_v26 = vcombine.high %v5665_v34, %v5665_v34  ;;  %v3306_v61 = vcombine.high %v3298_v10, %v3298_v10 }
 0x2a9   : > { %v3307_v60 = vcombine.high %v3305_v42, %v3305_v42  ;;  %v15878_v35 = vrot.slane %v5658_v58, %v15318_v14  ;;  %v3962_v44 = vrot.slane %v3948_v45, %v15318_v14  ;;  %v3963_v22 = vcombine.high %v3955_v39, %v3955_v39 }
 0x2aa   : > { %v15882_v6 = vsel %vm843_vm3, %v3353_v38, %v4453_v40  ;;  %v15892_v34 = vrot.slane %v15799_v53, %v15318_v14  ;;  %v15897_v45 = vrot.slane %v3298_v10, %v15318_v14  ;;  %v15900_v36 = vrot.slane %v3305_v42, %v15318_v14 }
 0x2ab   : > { %19207 = vst [vmem:[#allocation70_spill] sm:$0xff] %v15878_v35  ;;  %19208 = vst [vmem:[#allocation71_spill] sm:$0xff] %v15882_v6  ;;  %v15903_v40 = vrot.slane %v5048_v29, %v15318_v14  ;;  %v15906_v38 = vrot.slane %v5687_v26, %v15347_v16  ;;  %v15909_v54 = vrot.slane %v3306_v61, %v15318_v14 }
 0x2ac   : > { %19209 = vst [vmem:[#allocation72_spill] sm:$0xff] %v15892_v34  ;;  %19210 = vst [vmem:[#allocation73_spill] sm:$0xff] %v15897_v45  ;;  %v15912_v53 = vrot.slane %v3307_v60, %v15318_v14  ;;  %v3971_v13 = vrot.slane %v3955_v39, %v15318_v14  ;;  %v3964_v58 = vcombine.high %v3962_v44, %v3962_v44  ;;  %v2595_v39 = vmax.f32 %v2585_v1, 0.0 }
 0x2ad   : > { %19211 = vst [vmem:[#allocation74_spill] sm:$0xff] %v15900_v36  ;;  %19212 = vst [vmem:[#allocation75_spill] sm:$0xff] %v15903_v40  ;;  %v15916_v10 = vrot.slane %v3962_v44, %v15318_v14  ;;  %v15919_v42 = vrot.slane %v3963_v22, %v15318_v14  ;;  %v5103_v29 = vrot.slane %v15808_v28, %v15318_v14 }
 0x2ae   : > { %19213 = vst [vmem:[#allocation76_spill] sm:$0xff] %v15906_v38  ;;  %19214 = vst [vmem:[#allocation77_spill] sm:$0xff] %v15909_v54  ;;  %v15929_v60 = vrot.slane %v15892_v34, %v15318_v14  ;;  %v5705_v26 = vcombine.high %v15817_v5, %v15817_v5  ;;  %v3993_v3 = vcombine.high %v3971_v13, %v3971_v13  ;;  %v2686_v1 = vrot.slane %v2595_v39, 7 }
 0x2af   : > { %19215 = vst [vmem:[#allocation78_spill] sm:$0xff] %v15912_v53  ;;  %19216 = vst [vmem:[#allocation79_spill] sm:$0xff] %v15916_v10  ;;  %v15944_v6 = vrot.slane %v3964_v58, %v15318_v14  ;;  %v3994_v22 = vcombine.high %v15916_v10, %v15916_v10  ;;  %v3995_v44 = vcombine.high %v15919_v42, %v15919_v42 }
 0x2b0   : > { %19217 = vst [vmem:[#allocation80_spill] sm:$0xff] %v15919_v42  ;;  %19218 = vst [vmem:[#allocation81_spill] sm:$0xff] %v15929_v60  ;;  %v15951_v28 = vrot.slane %v5103_v29, %v15318_v14  ;;  %v5712_v50 = vrot.slane %v15817_v5, %v15318_v14  ;;  %v2707_v13 = vsel %vm843_vm3, 0.0, %v2686_v1  ;;  %v2717_v58 = vsel %vm843_vm3, %v2686_v1, 0.0 }
 0x2b1   : > { %19219 = vst [vmem:[#allocation82_spill] sm:$0xff] %v15944_v6  ;;  %v5719_v39 = vrot.slane %v5705_v26, %v15318_v14  ;;  %v15960_v53 = vmul.f32 0.1875, %v2707_v13  ;;  %v15962_v36 = vmul.f32 0.1875, %v2717_v58  ;;  %v2586_v45 = vadd.f32 %v15263_v23, %v2569_v32 }
 0x2b2   : > { %19220 = vst [vmem:[#allocation83_spill] sm:$0xff] %v15951_v28  ;;  %v2732_v29 = vmul.f32 0.5625, %v2707_v13  ;;  %v2733_v54 = vmul.f32 0.5625, %v2717_v58  ;;  %v2854_v28 = vmul.f32 0.0625, %v2707_v13  ;;  %v3008_v60 = vmul.f32 0.0625, %v2717_v58 }
 0x2b3   : > { %v2787_v61 = vrot.slane %v15960_v53, 7  ;;  %v2930_v5 = vrot.slane %v15960_v53, 1  ;;  %v2931_v42 = vrot.slane %v15962_v36, 1  ;;  %v4766_v1 = vadd.f32 %v15779_v31, %v15960_v53 }
 0x2b4   : > { %v15970_v26 = vrot.slane %v2854_v28, 7  ;;  %v3036_v34 = vrot.slane %v2854_v28, 1  ;;  %v15972_v40 = vrot.slane %v3008_v60, 1  ;;  %v4767_v23 = vadd.f32 %v15962_v36, %v15781_v24 }
 0x2b5   : > { %v15976_v32 = vadd.f32 %v2787_v61, %v2732_v29  ;;  %v15978_v13 = vadd.f32 %v2787_v61, %v2733_v54  ;;  %v2932_v58 = vsel %vm2914_vm13, %v2930_v5, %v2931_v42  ;;  %v15981_v57 = vadd.f32 %v2931_v42, %v2733_v54 }
 0x2b6   : > { %v15983_v33 = vadd.f32 %v2932_v58, %v2732_v29  ;;  %v15987_v31 = vsel %vm2914_vm13, %v3036_v34, %v15972_v40  ;;  %v4788_v60 = vadd.f32 %v4766_v1, %v15970_v26  ;;  %v15991_v28 = vadd.f32 %v4767_v23, %v15970_v26 }
 0x2b7   : > { %v2839_v24 = vadd.f32 %v15976_v32, %v15762_v11  ;;  %v2840_v61 = vadd.f32 %v15770_v47, %v15978_v13  ;;  %v2994_v54 = vadd.f32 %v15981_v57, %v15770_v47  ;;  %v4806_v42 = vadd.f32 %v15796_v46, %v15960_v53 }
 0x2b8   : > { %v16002_v34 = vrot.slane %v3993_v3, %v15347_v16  ;;  %v5720_v29 = vcombine.high %v5712_v50, %v5712_v50  ;;  %v2993_v5 = vadd.f32 %v15983_v33, %v15762_v11  ;;  %v4807_v1 = vadd.f32 %v15786_v63, %v15962_v36 }
 0x2b9   : > { %v2893_v23 = vadd.f32 %v15783_v48, %v2839_v24  ;;  %v2894_v58 = vadd.f32 %v15783_v48, %v2840_v61  ;;  %v3075_v17 = vadd.f32 %v15788_v52, %v2994_v54  ;;  %v16012_v47 = vadd.f32 %v4806_v42, %v15987_v31 }
 0x2ba   : > { %19221 = vst [vmem:[#allocation84_spill] sm:$0xff] %v16002_v34  ;;  %v5721_v3 = vcombine.high %v5719_v39, %v5719_v39  ;;  %v3074_v34 = vadd.f32 %v15805_v59, %v2993_v5  ;;  %v16018_v11 = vadd.f32 %v4807_v1, %v15972_v40  ;;  %v3996_v63 = vcombine.high %v15944_v6, %v15944_v6 }
 0x2bb   : > { %v16023_v24 = vrot.slane %v3995_v44, %v15347_v16  ;;  %v4066_v48 = vrot.slane %v3075_v17, %v15318_v14  ;;  %v2596_v52 = vmax.f32 %v2586_v45, 0.0  ;;  %v5728_v61 = vrot.slane %v5712_v50, %v15318_v14 }
 0x2bc   : > { %v16028_v54 = vrot.slane %v5719_v39, %v15318_v14  ;;  %v5760_v59 = vrot.slane %v15825_v25, %v15318_v14  ;;  %v3354_v42 = vcombine.high %v2893_v23, %v2893_v23  ;;  %v16035_v1 = vrot.slane %v3994_v22, %v15347_v16 }
 0x2bd   : > { %19222 = vst [vmem:[#allocation85_spill] sm:$0xff] %v16023_v24  ;;  %v16038_v44 = vrot.slane %v5720_v29, %v15318_v14  ;;  %v3409_v17 = vrot.slane %v2894_v58, %v15318_v14  ;;  %v16042_v50 = vrot.slane %v5721_v3, %v15318_v14  ;;  %v3361_v45 = vrot.slane %v2893_v23, %v15318_v14 }
 0x2be   : > { %19223 = vst [vmem:[#allocation86_spill] sm:$0xff] %v16028_v54  ;;  %19224 = vst [vmem:[#allocation87_spill] sm:$0xff] %v16035_v1  ;;  %v4073_v39 = vrot.slane %v4066_v48, %v15318_v14  ;;  %v5111_v25 = vcombine.high %v4788_v60, %v4788_v60  ;;  %v16047_v46 = vrot.slane %v3996_v63, %v15347_v16  ;;  %v2687_v1 = vrot.slane %v2596_v52, 7  ;;  %v13866_v54 = vld [vmem:[#allocation14 + $0xb8] sm:$0xff]  }
 0x2bf   : > { %19225 = vst [vmem:[#allocation88_spill] sm:$0xff] %v16038_v44  ;;  %19226 = vst [vmem:[#allocation89_spill] sm:$0xff] %v16042_v50  ;;  %v4011_v5 = vcombine.high %v3074_v34, %v3074_v34  ;;  %v4018_v22 = vrot.slane %v3074_v34, %v15318_v14  ;;  %v5750_v6 = vcombine.high %v5728_v61, %v5728_v61 }
 0x2c0   : > { %19227 = vst [vmem:[#allocation90_spill] sm:$0xff] %v16047_v46  ;;  %v16053_v58 = vrot.slane %v5760_v59, %v15318_v14  ;;  %v3368_v3 = vrot.slane %v3354_v42, %v15318_v14  ;;  %v3416_v48 = vrot.slane %v3409_v17, %v15318_v14  ;;  %v4485_v63 = vrot.slane %v4073_v39, %v15347_v16 }
 0x2c1   : > { %v16061_v46 = vrot.slane %v4788_v60, %v15318_v14  ;;  %v3369_v61 = vcombine.high %v3361_v45, %v3361_v45  ;;  %v16068_v59 = vrot.slane %v5111_v25, %v15318_v14  ;;  %v4025_v42 = vrot.slane %v4011_v5, %v15318_v14 }
 0x2c2   : > { %19228 = vst [vmem:[#allocation91_spill] sm:$0xff] %v16053_v58  ;;  %v4026_v23 = vcombine.high %v4018_v22, %v4018_v22  ;;  %v16072_v17 = vsel %vm843_vm3, %v3416_v48, %v4485_v63  ;;  %v2708_v39 = vsel %vm843_vm3, 0.0, %v2687_v1  ;;  %v16078_v29 = vrot.slane %v5750_v6, %v15347_v16 }
 0x2c3   : > { %19229 = vst [vmem:[#allocation92_spill] sm:$0xff] %v16061_v46  ;;  %19230 = vst [vmem:[#allocation93_spill] sm:$0xff] %v16068_v59  ;;  %v3370_v34 = vcombine.high %v3368_v3, %v3368_v3  ;;  %v16083_v25 = vrot.slane %v3361_v45, %v15318_v14  ;;  %v4034_v5 = vrot.slane %v4018_v22, %v15318_v14  ;;  %v2718_v63 = vsel %vm843_vm3, %v2687_v1, 0.0 }
 0x2c4   : > { %19231 = vst [vmem:[#allocation94_spill] sm:$0xff] %v16072_v17  ;;  %19232 = vst [vmem:[#allocation95_spill] sm:$0xff] %v16078_v29  ;;  %v16090_v17 = vrot.slane %v3368_v3, %v15318_v14  ;;  %v16093_v6 = vrot.slane %v3369_v61, %v15318_v14  ;;  %v16097_v60 = vmul.f32 0.1875, %v2708_v39  ;;  %v4027_v45 = vcombine.high %v4025_v42, %v4025_v42  ;;  %v13865_v29 = vld [vmem:[#allocation14 + $0x40] sm:$0xff]  }
 0x2c5   : > { %19233 = vst [vmem:[#allocation96_spill] sm:$0xff] %v16083_v25  ;;  %v16100_v10 = vrot.slane %v4025_v42, %v15318_v14  ;;  %v16103_v22 = vrot.slane %v4026_v23, %v15318_v14  ;;  %v16107_v1 = vrot.slane %v16061_v46, %v15318_v14  ;;  %v16110_v3 = vrot.slane %v3370_v34, %v15318_v14 }
 0x2c6   : > { %19234 = vst [vmem:[#allocation97_spill] sm:$0xff] %v16090_v17  ;;  %19235 = vst [vmem:[#allocation98_spill] sm:$0xff] %v16093_v6  ;;  %v2734_v61 = vmul.f32 0.5625, %v2708_v39  ;;  %v2735_v48 = vmul.f32 0.5625, %v2718_v63  ;;  %v2788_v52 = vrot.slane %v16097_v60, 7  ;;  %v4056_v24 = vcombine.high %v4034_v5, %v4034_v5  ;;  %13215 = vmatprep.subr.bf16.mxu1 %v13865_v29 }
 0x2c7   : > { %19236 = vst [vmem:[#allocation99_spill] sm:$0xff] %v16100_v10  ;;  %19237 = vst [vmem:[#allocation100_spill] sm:$0xff] %v16103_v22  ;;  %v16115_v42 = vmul.f32 0.1875, %v2718_v63  ;;  %v2855_v58 = vmul.f32 0.0625, %v2708_v39  ;;  %v16126_v50 = vrot.slane %v4027_v45, %v15318_v14  ;;  %v4057_v5 = vcombine.high %v16100_v10, %v16100_v10  ;;  %13216 = vmatpush3.bf16.msra.mxu1 %v13865_v29 }
 0x2c8   : > { %19238 = vst [vmem:[#allocation101_spill] sm:$0xff] %v16107_v1  ;;  %19239 = vst [vmem:[#allocation102_spill] sm:$0xff] %v16110_v3  ;;  %v16121_v46 = vadd.f32 %v2788_v52, %v2734_v61  ;;  %v16123_v34 = vadd.f32 %v2788_v52, %v2735_v48  ;;  %v4058_v39 = vcombine.high %v16103_v22, %v16103_v22  ;;  %v2933_v25 = vrot.slane %v16097_v60, 1 }
 0x2c9   : > { %19240 = vst [vmem:[#allocation103_spill] sm:$0xff] %v16126_v50  ;;  %v5768_v52 = vcombine.high %v16012_v47, %v16012_v47  ;;  %v16142_v17 = vrot.slane %v2855_v58, 7  ;;  %v2934_v6 = vrot.slane %v16115_v42, 1  ;;  %v3009_v23 = vmul.f32 0.0625, %v2718_v63  ;;  %13297 = vmatprep.subr.bf16.mxu1 %v13866_v54 }
 0x2ca   : > { %v2841_v59 = vadd.f32 %v16121_v46, %v15960_v53  ;;  %v2842_v45 = vadd.f32 %v15962_v36, %v16123_v34  ;;  %v3039_v22 = vrot.slane %v2855_v58, 1  ;;  %v4768_v44 = vadd.f32 %v15976_v32, %v16097_v60 }
 0x2cb   : > { %v2935_v38 = vsel %vm2914_vm13, %v2933_v25, %v2934_v6  ;;  %v16151_v12 = vadd.f32 %v2934_v6, %v2735_v48  ;;  %v16153_v35 = vrot.slane %v3009_v23, 1  ;;  %v4769_v8 = vadd.f32 %v16115_v42, %v15978_v13 }
 0x2cc   : > { %v2895_v1 = vadd.f32 %v15970_v26, %v2841_v59  ;;  %v2896_v3 = vadd.f32 %v15970_v26, %v2842_v45  ;;  %v16158_v29 = vrot.slane %v4056_v24, %v15347_v16  ;;  %v5775_v58 = vrot.slane %v16012_v47, %v15318_v14 }
 0x2cd   : > { %v16164_v32 = vadd.f32 %v2935_v38, %v2734_v61  ;;  %v4059_v54 = vcombine.high %v16126_v50, %v16126_v50  ;;  %v2996_v59 = vadd.f32 %v16151_v12, %v15962_v36  ;;  %v4790_v25 = vadd.f32 %v4768_v44, %v16142_v17 }
 0x2ce   : > { %19241 = vst [vmem:[#allocation104_spill] sm:$0xff] %v16158_v29  ;;  %v16172_v13 = vadd.f32 %v4769_v8, %v16142_v17  ;;  %v5823_v24 = vrot.slane %v16018_v11, %v15318_v14  ;;  %v16180_v38 = vsel %vm2914_vm13, %v3039_v22, %v16153_v35  ;;  %v3417_v47 = vcombine.high %v2895_v1, %v2895_v1 }
 0x2cf   : > { %v2995_v48 = vadd.f32 %v16164_v32, %v15960_v53  ;;  %v5782_v63 = vrot.slane %v5768_v52, %v15318_v14  ;;  %v3077_v36 = vadd.f32 %v15972_v40, %v2996_v59  ;;  %v4808_v44 = vadd.f32 %v15983_v33, %v16097_v60 }
 0x2d0   : > { %v4809_v8 = vadd.f32 %v15981_v57, %v16115_v42  ;;  %v16189_v11 = vrot.slane %v4058_v39, %v15347_v16  ;;  %v5783_v6 = vcombine.high %v5775_v58, %v5775_v58  ;;  %v3424_v22 = vrot.slane %v2895_v1, %v15318_v14 }
 0x2d1   : > { %v3076_v53 = vadd.f32 %v15987_v31, %v2995_v48  ;;  %v3472_v61 = vrot.slane %v2896_v3, %v15318_v14  ;;  %v4129_v23 = vrot.slane %v3077_v36, %v15318_v14  ;;  %v16196_v40 = vadd.f32 %v4808_v44, %v16180_v38 }
 0x2d2   : > { %19242 = vst [vmem:[#allocation105_spill] sm:$0xff] %v16189_v11  ;;  %v16199_v33 = vadd.f32 %v4809_v8, %v16153_v35  ;;  %v5166_v57 = vrot.slane %v15991_v28, %v15318_v14  ;;  %v5791_v39 = vrot.slane %v5775_v58, %v15318_v14  ;;  %v3431_v52 = vrot.slane %v3417_v47, %v15318_v14 }
 0x2d3   : > { %v4074_v31 = vcombine.high %v3076_v53, %v3076_v53  ;;  %v5784_v45 = vcombine.high %v5782_v63, %v5782_v63  ;;  %v16206_v1 = vrot.slane %v5823_v24, %v15318_v14  ;;  %v4081_v3 = vrot.slane %v3076_v53, %v15318_v14 }
 0x2d4   : > { %v4136_v59 = vrot.slane %v4129_v23, %v15318_v14  ;;  %v16213_v36 = vrot.slane %v5782_v63, %v15318_v14  ;;  %v16216_v28 = vrot.slane %v5783_v6, %v15318_v14  ;;  %v16220_v47 = vrot.slane %v4057_v5, %v15347_v16 }
 0x2d5   : > { %19243 = vst [vmem:[#allocation106_spill] sm:$0xff] %v16206_v1  ;;  %v4088_v58 = vrot.slane %v4074_v31, %v15318_v14  ;;  %v3432_v24 = vcombine.high %v3424_v22, %v3424_v22  ;;  %v3479_v44 = vrot.slane %v3472_v61, %v15318_v14  ;;  %v16225_v53 = vrot.slane %v4059_v54, %v15347_v16 }
 0x2d6   : > { %19244 = vst [vmem:[#allocation107_spill] sm:$0xff] %v16220_v47  ;;  %v4517_v8 = vrot.slane %v4136_v59, %v15347_v16  ;;  %v16228_v23 = vrot.slane %v5166_v57, %v15318_v14  ;;  %v5813_v63 = vcombine.high %v5791_v39, %v5791_v39  ;;  %v3433_v48 = vcombine.high %v3431_v52, %v3431_v52  ;;  %v13922_v39 = vld [vmem:[%s19165_s28] ss:$0 sm:$0xff] }
 0x2d7   : > { %19245 = vst [vmem:[#allocation108_spill] sm:$0xff] %v16225_v53  ;;  %v16231_v6 = vrot.slane %v5784_v45, %v15318_v14  ;;  %v4089_v31 = vcombine.high %v4081_v3, %v4081_v3  ;;  %v4090_v57 = vcombine.high %v4088_v58, %v4088_v58  ;;  %v5174_v59 = vcombine.high %v4790_v25, %v4790_v25 }
 0x2d8   : > { %19246 = vst [vmem:[#allocation109_spill] sm:$0xff] %v16228_v23  ;;  %v16236_v26 = vsel %vm843_vm3, %v3479_v44, %v4517_v8  ;;  %v16245_v45 = vrot.slane %v3424_v22, %v15318_v14  ;;  %v16248_v5 = vrot.slane %v3431_v52, %v15318_v14  ;;  %v16251_v44 = vrot.slane %v3432_v24, %v15318_v14 }
 0x2d9   : > { %19247 = vst [vmem:[#allocation110_spill] sm:$0xff] %v16236_v26  ;;  %v16254_v8 = vrot.slane %v5813_v63, %v15347_v16  ;;  %v16257_v61 = vrot.slane %v3433_v48, %v15318_v14  ;;  %v4097_v54 = vrot.slane %v4081_v3, %v15318_v14  ;;  %v16261_v26 = vrot.slane %v4088_v58, %v15318_v14 }
 0x2da   : > { %19248 = vst [vmem:[#allocation111_spill] sm:$0xff] %v16245_v45  ;;  %19249 = vst [vmem:[#allocation112_spill] sm:$0xff] %v16248_v5  ;;  %v16268_v24 = vrot.slane %v4089_v31, %v15318_v14  ;;  %v16271_v63 = vrot.slane %v4790_v25, %v15318_v14  ;;  %v16274_v48 = vrot.slane %v4090_v57, %v15318_v14 }
 0x2db   : > { %19250 = vst [vmem:[#allocation113_spill] sm:$0xff] %v16251_v44  ;;  %19251 = vst [vmem:[#allocation114_spill] sm:$0xff] %v16254_v8  ;;  %v16277_v3 = vrot.slane %v5174_v59, %v15318_v14  ;;  %v5831_v58 = vcombine.high %v16196_v40, %v16196_v40  ;;  %v2570_v52 = vmul.f32 %v13922_v39, %v15587_v37  ;;  %v16300_v37 = vld [vmem:[%s19166_s8] ss:$0 sm:$0xff] }
 0x2dc   : > { %19252 = vst [vmem:[#allocation115_spill] sm:$0xff] %v16257_v61  ;;  %19253 = vst [vmem:[#allocation116_spill] sm:$0xff] %v16261_v26  ;;  %v5229_v59 = vrot.slane %v16172_v13, %v15318_v14  ;;  %v4119_v53 = vcombine.high %v4097_v54, %v4097_v54  ;;  %v4120_v47 = vcombine.high %v16261_v26, %v16261_v26 }
 0x2dd   : > { %19254 = vst [vmem:[#allocation117_spill] sm:$0xff] %v16268_v24  ;;  %19255 = vst [vmem:[#allocation118_spill] sm:$0xff] %v16271_v63  ;;  %v2587_v25 = vadd.f32 %v16300_v37, %v2570_v52  ;;  %v4121_v57 = vcombine.high %v16268_v24, %v16268_v24  ;;  %v16309_v22 = vrot.slane %v16271_v63, %v15318_v14 }
 0x2de   : > { %19256 = vst [vmem:[#allocation119_spill] sm:$0xff] %v16274_v48  ;;  %19257 = vst [vmem:[#allocation120_spill] sm:$0xff] %v16277_v3  ;;  %v5838_v54 = vrot.slane %v16196_v40, %v15318_v14  ;;  %v4122_v31 = vcombine.high %v16274_v48, %v16274_v48  ;;  %v5845_v52 = vrot.slane %v5831_v58, %v15318_v14 }
 0x2df   : > { %19258 = vst [vmem:[#allocation121_spill] sm:$0xff] %v16309_v22  ;;  %v2597_v5 = vmax.f32 %v2587_v25, 0.0  ;;  %v16323_v44 = vrot.slane %v5229_v59, %v15318_v14  ;;  %v2554_v40 = vadd.f32 %v15475_v62, %v15252_v49  ;;  %v16328_v22 = vrot.slane %v4119_v53, %v15347_v16 }
 0x2e0   : > { %v16333_v58 = vrot.slane %v4120_v47, %v15347_v16  ;;  %v16336_v45 = vrot.slane %v4121_v57, %v15347_v16  ;;  %v5846_v13 = vcombine.high %v5838_v54, %v5838_v54  ;;  %v5854_v59 = vrot.slane %v5838_v54, %v15318_v14 }
 0x2e1   : > { %19259 = vst [vmem:[#allocation122_spill] sm:$0xff] %v16323_v44  ;;  %19260 = vst [vmem:[#allocation123_spill] sm:$0xff] %v16328_v22  ;;  %v2688_v25 = vrot.slane %v2597_v5, 7  ;;  %v5886_v26 = vrot.slane %v16199_v33, %v15318_v14  ;;  %v16342_v49 = vrot.slane %v4122_v31, %v15347_v16  ;;  %v5847_v62 = vcombine.high %v5845_v52, %v5845_v52 }
 0x2e2   : > { %19261 = vst [vmem:[#allocation124_spill] sm:$0xff] %v16333_v58  ;;  %19262 = vst [vmem:[#allocation125_spill] sm:$0xff] %v16336_v45  ;;  %v16347_v47 = vrot.slane %v5845_v52, %v15318_v14  ;;  %v2571_v58 = vmul.f32 %v13922_v39, %v2554_v40 }
 0x2e3   : > { %19263 = vst [vmem:[#allocation126_spill] sm:$0xff] %v16342_v49  ;;  %v2709_v53 = vsel %vm843_vm3, 0.0, %v2688_v25  ;;  %v2719_v61 = vsel %vm843_vm3, %v2688_v25, 0.0 }
 0x2e4   : > { %19264 = vst [vmem:[#allocation127_spill] sm:$0xff] %v16347_v47  ;;  %v16349_v5 = vmul.f32 0.1875, %v2709_v53  ;;  %v16351_v57 = vmul.f32 0.1875, %v2719_v61  ;;  %v2736_v54 = vmul.f32 0.5625, %v2709_v53  ;;  %v2737_v48 = vmul.f32 0.5625, %v2719_v61 }
 0x2e5   : > { %v2856_v45 = vmul.f32 0.0625, %v2709_v53  ;;  %v3010_v33 = vmul.f32 0.0625, %v2719_v61 }
 0x2e6   : > { %v2789_v31 = vrot.slane %v16349_v5, 7  ;;  %v2936_v49 = vrot.slane %v16349_v5, 1  ;;  %v2937_v22 = vrot.slane %v16351_v57, 1  ;;  %v4770_v25 = vadd.f32 %v16121_v46, %v16349_v5 }
 0x2e7   : > { %v16358_v52 = vrot.slane %v2856_v45, 7  ;;  %v3042_v24 = vrot.slane %v2856_v45, 1  ;;  %v16360_v44 = vrot.slane %v3010_v33, 1  ;;  %v4771_v39 = vadd.f32 %v16351_v57, %v16123_v34 }
 0x2e8   : > { %v16364_v40 = vadd.f32 %v2789_v31, %v2736_v54  ;;  %v16366_v61 = vadd.f32 %v2789_v31, %v2737_v48  ;;  %v2938_v53 = vsel %vm2914_vm13, %v2936_v49, %v2937_v22  ;;  %v16369_v63 = vadd.f32 %v2937_v22, %v2737_v48 }
 0x2e9   : > { %v16371_v3 = vadd.f32 %v2938_v53, %v2736_v54  ;;  %v16375_v46 = vsel %vm2914_vm13, %v3042_v24, %v16360_v44  ;;  %v4792_v45 = vadd.f32 %v4770_v25, %v16358_v52  ;;  %v16379_v33 = vadd.f32 %v4771_v39, %v16358_v52 }
 0x2ea   : > { %v2843_v34 = vadd.f32 %v16364_v40, %v16097_v60  ;;  %v2844_v49 = vadd.f32 %v16115_v42, %v16366_v61  ;;  %v2998_v22 = vadd.f32 %v16369_v63, %v16115_v42  ;;  %v4810_v48 = vadd.f32 %v16164_v32, %v16349_v5  ;;  %v12363_v32 = vld [vmem:[%s611_s27] sm:$0xff]   ;;  %s12361_s27 = sshll.u32 %s19677_s6, 11 }
 0x2eb   : > { %v16390_v24 = vrot.slane %v5846_v13, %v15318_v14  ;;  %v5876_v54 = vcombine.high %v5854_v59, %v5854_v59  ;;  %v2997_v31 = vadd.f32 %v16371_v3, %v16097_v60  ;;  %v4811_v25 = vadd.f32 %v16151_v12, %v16351_v57  ;;  %s18840_s21 = scalar_lea.hbm %s19679_s19, %s12361_s27 }
 0x2ec   : > { %v2897_v39 = vadd.f32 %v16142_v17, %v2843_v34  ;;  %v2898_v53 = vadd.f32 %v16142_v17, %v2844_v49  ;;  %v3079_v50 = vadd.f32 %v16153_v35, %v2998_v22  ;;  %v16400_v42 = vadd.f32 %v4810_v48, %v16375_v46 }
 0x2ed   : > { %19265 = vst [vmem:[#allocation128_spill] sm:$0xff] %v16390_v24  ;;  %v16405_v13 = vrot.slane %v5886_v26, %v15318_v14  ;;  %v3078_v59 = vadd.f32 %v16180_v38, %v2997_v31  ;;  %v16409_v60 = vadd.f32 %v4811_v25, %v16360_v44  ;;  %v2588_v12 = vadd.f32 %v16300_v37, %v2571_v58 }
 0x2ee   : > { %v16413_v34 = vrot.slane %v5847_v62, %v15318_v14  ;;  %v3480_v17 = vcombine.high %v2897_v39, %v2897_v39  ;;  %v4192_v49 = vrot.slane %v3079_v50, %v15318_v14  ;;  %v12364_v48 = vunpack.c.l.bf16 %v12363_v32 }
 0x2ef   : > { %19266 = vst [vmem:[#allocation129_spill] sm:$0xff] %v16405_v13  ;;  %v16425_v37 = vrot.slane %v5876_v54, %v15347_v16  ;;  %v3487_v58 = vrot.slane %v2897_v39, %v15318_v14  ;;  %v3535_v62 = vrot.slane %v2898_v53, %v15318_v14  ;;  %v4137_v31 = vcombine.high %v3078_v59, %v3078_v59 }
 0x2f0   : > { %19267 = vst [vmem:[#allocation130_spill] sm:$0xff] %v16413_v34  ;;  %v4199_v50 = vrot.slane %v4192_v49, %v15318_v14  ;;  %v5237_v25 = vcombine.high %v4792_v45, %v4792_v45  ;;  %v2598_v35 = vmax.f32 %v2588_v12, 0.0  ;;  %v16430_v26 = vunpack.c.h.bf16 %v12363_v32 }
 0x2f1   : > { %19268 = vst [vmem:[#allocation131_spill] sm:$0xff] %v16425_v37  ;;  %v3494_v54 = vrot.slane %v3480_v17, %v15318_v14  ;;  %v4144_v37 = vrot.slane %v3078_v59, %v15318_v14  ;;  %v6877_v39 = vcombine.high %v12364_v48, %v12364_v48  ;;  %v16439_v53 = vrot.slane %v12364_v48, %v15295_v27 }
 0x2f2   : > { %v16443_v49 = vadd.f32 %v15339_v30, %v15478_v2  ;;  %v7955_v32 = vcombine.low %v15496_v4, %v15501_v51  ;;  %v3495_v12 = vcombine.high %v3487_v58, %v3487_v58  ;;  %v3542_v38 = vrot.slane %v3535_v62, %v15318_v14 }
 0x2f3   : > { %v4151_v22 = vrot.slane %v4137_v31, %v15318_v14  ;;  %v4549_v17 = vrot.slane %v4199_v50, %v15347_v16  ;;  %v16451_v59 = vrot.slane %v4792_v45, %v15318_v14  ;;  %v16454_v48 = vrot.slane %v5237_v25, %v15318_v14 }
 0x2f4   : > { %v2689_v13 = vrot.slane %v2598_v35, 7  ;;  %v3496_v2 = vcombine.high %v3494_v54, %v3494_v54  ;;  %v4152_v47 = vcombine.high %v4144_v37, %v4144_v37  ;;  %v16463_v51 = vrot.slane %v16430_v26, %v15295_v27 }
 0x2f5   : > { %19269 = vst [vmem:[#allocation132_spill] sm:$0xff] %v16451_v59  ;;  %19270 = vst [vmem:[#allocation133_spill] sm:$0xff] %v16454_v48  ;;  %v16459_v4 = vsel %vm843_vm3, %v3542_v38, %v4549_v17  ;;  %v16466_v62 = vrot.slane %v3487_v58, %v15318_v14  ;;  %v4160_v45 = vrot.slane %v4144_v37, %v15318_v14 }
 0x2f6   : > { %19271 = vst [vmem:[#allocation134_spill] sm:$0xff] %v16459_v4  ;;  %v16472_v31 = vrot.slane %v7955_v32, %v15295_v27  ;;  %v16475_v50 = vrot.slane %v3494_v54, %v15318_v14  ;;  %v16478_v38 = vrot.slane %v3495_v12, %v15318_v14  ;;  %v4153_v25 = vcombine.high %v4151_v22, %v4151_v22 }
 0x2f7   : > { %19272 = vst [vmem:[#allocation135_spill] sm:$0xff] %v16466_v62  ;;  %v16481_v17 = vrot.slane %v6877_v39, %v15295_v27  ;;  %v2710_v35 = vsel %vm843_vm3, 0.0, %v2689_v13  ;;  %v16491_v54 = vrot.slane %v3496_v2, %v15318_v14  ;;  %v16494_v12 = vrot.slane %v4151_v22, %v15318_v14 }
 0x2f8   : > { %19273 = vst [vmem:[#allocation136_spill] sm:$0xff] %v16475_v50  ;;  %19274 = vst [vmem:[#allocation137_spill] sm:$0xff] %v16478_v38  ;;  %v16497_v39 = vrot.slane %v4152_v47, %v15318_v14  ;;  %v2720_v30 = vsel %vm843_vm3, %v2689_v13, 0.0  ;;  %v4182_v37 = vcombine.high %v4160_v45, %v4160_v45  ;;  %v16504_v4 = vrot.slane %v16451_v59, %v15318_v14 }
 0x2f9   : > { %19275 = vst [vmem:[#allocation138_spill] sm:$0xff] %v16491_v54  ;;  %19276 = vst [vmem:[#allocation139_spill] sm:$0xff] %v16494_v12  ;;  %v2770_v32 = vmul.f32 0.1875, %v2710_v35  ;;  %v16511_v47 = vrot.slane %v4153_v25, %v15318_v14  ;;  %v2738_v48 = vmul.f32 0.5625, %v2710_v35  ;;  %v2739_v13 = vmul.f32 0.5625, %v2720_v30 }
 0x2fa   : > { %19277 = vst [vmem:[#allocation140_spill] sm:$0xff] %v16497_v39  ;;  %19278 = vst [vmem:[#allocation141_spill] sm:$0xff] %v16504_v4  ;;  %v2830_v24 = vmul.f32 0.1875, %v2720_v30  ;;  %v2857_v58 = vmul.f32 0.0625, %v2710_v35  ;;  %v4183_v62 = vcombine.high %v16494_v12, %v16494_v12  ;;  %v4184_v2 = vcombine.high %v16497_v39, %v16497_v39 }
 0x2fb   : > { %v2790_v34 = vrot.slane %v2770_v32, 7  ;;  %v16522_v25 = vrot.slane %v4182_v37, %v15347_v16  ;;  %v4185_v45 = vcombine.high %v16511_v47, %v16511_v47  ;;  %v2939_v4 = vrot.slane %v2770_v32, 1 }
 0x2fc   : > { %v2875_v54 = vrot.slane %v2857_v58, 7  ;;  %v2940_v59 = vrot.slane %v2830_v24, 1  ;;  %v5894_v10 = vcombine.high %v16400_v42, %v16400_v42  ;;  %v3011_v50 = vmul.f32 0.0625, %v2720_v30 }
 0x2fd   : > { %19279 = vst [vmem:[#allocation142_spill] sm:$0xff] %v16522_v25  ;;  %v16526_v38 = vadd.f32 %v2790_v34, %v2738_v48  ;;  %v16528_v35 = vadd.f32 %v2790_v34, %v2739_v13  ;;  %v4772_v25 = vadd.f32 %v16364_v40, %v2770_v32  ;;  %v4773_v39 = vadd.f32 %v2830_v24, %v16366_v61 }
 0x2fe   : > { %v2941_v12 = vsel %vm2914_vm13, %v2939_v4, %v2940_v59  ;;  %v16539_v34 = vadd.f32 %v2940_v59, %v2739_v13  ;;  %v5901_v11 = vrot.slane %v16400_v42, %v15318_v14  ;;  %v16550_v8 = vrot.slane %v4184_v2, %v15347_v16 }
 0x2ff   : > { %v2845_v37 = vadd.f32 %v16526_v38, %v16349_v5  ;;  %v2846_v22 = vadd.f32 %v16351_v57, %v16528_v35  ;;  %v16547_v1 = vadd.f32 %v2941_v12, %v2738_v48  ;;  %v5949_v59 = vrot.slane %v16409_v60, %v15318_v14 }
 0x300   : > { %v3000_v40 = vadd.f32 %v16539_v34, %v16351_v57  ;;  %v16556_v30 = vadd.f32 %v4772_v25, %v2875_v54  ;;  %v3045_v42 = vrot.slane %v2857_v58, 1  ;;  %v3046_v4 = vrot.slane %v3011_v50, 1 }
 0x301   : > { %v2899_v29 = vadd.f32 %v16358_v52, %v2845_v37  ;;  %v2900_v23 = vadd.f32 %v16358_v52, %v2846_v22  ;;  %v2999_v61 = vadd.f32 %v16547_v1, %v16349_v5  ;;  %v16563_v48 = vrot.slane %v4183_v62, %v15347_v16 }
 0x302   : > { %v3081_v12 = vadd.f32 %v16360_v44, %v3000_v40  ;;  %v16566_v60 = vadd.f32 %v4773_v39, %v2875_v54  ;;  %v5292_v57 = vrot.slane %v16379_v33, %v15318_v14  ;;  %v5908_v2 = vrot.slane %v5894_v10, %v15318_v14 }
 0x303   : > { %v3543_v13 = vcombine.high %v2899_v29, %v2899_v29  ;;  %v5909_v22 = vcombine.high %v5901_v11, %v5901_v11  ;;  %v3080_v5 = vadd.f32 %v16375_v46, %v2999_v61  ;;  %v5917_v50 = vrot.slane %v5901_v11, %v15318_v14 }
 0x304   : > { %v16574_v58 = vrot.slane %v5949_v59, %v15318_v14  ;;  %v4255_v62 = vrot.slane %v3081_v12, %v15318_v14  ;;  %v4812_v25 = vadd.f32 %v16371_v3, %v2770_v32  ;;  %v3047_v44 = vsel %vm2914_vm13, %v3045_v42, %v3046_v4 }
 0x305   : > { %v3550_v54 = vrot.slane %v2899_v29, %v15318_v14  ;;  %v3557_v33 = vrot.slane %v3543_v13, %v15318_v14  ;;  %v3598_v10 = vrot.slane %v2900_v23, %v15318_v14  ;;  %v4200_v39 = vcombine.high %v3080_v5, %v3080_v5 }
 0x306   : > { %v4207_v46 = vrot.slane %v3080_v5, %v15318_v14  ;;  %v4262_v11 = vrot.slane %v4255_v62, %v15318_v14  ;;  %v4813_v37 = vadd.f32 %v16369_v63, %v2830_v24  ;;  %v16586_v59 = vrot.slane %v4185_v45, %v15347_v16 }
 0x307   : > { %v5910_v40 = vcombine.high %v5908_v2, %v5908_v2  ;;  %v16589_v3 = vrot.slane %v5908_v2, %v15318_v14  ;;  %v16592_v29 = vrot.slane %v5909_v22, %v15318_v14  ;;  %v16595_v32 = vrot.slane %v5292_v57, %v15318_v14 }
 0x308   : > { %v4214_v23 = vrot.slane %v4200_v39, %v15318_v14  ;;  %v4581_v61 = vrot.slane %v4262_v11, %v15347_v16  ;;  %v5939_v24 = vcombine.high %v5917_v50, %v5917_v50  ;;  %v3605_v45 = vrot.slane %v3598_v10, %v15318_v14 }
 0x309   : > { %v4837_v42 = vadd.f32 %v4812_v25, %v3047_v44  ;;  %v16602_v13 = vadd.f32 %v4813_v37, %v3046_v4  ;;  %v3558_v2 = vcombine.high %v3550_v54, %v3550_v54  ;;  %v3559_v22 = vcombine.high %v3557_v33, %v3557_v33  ;;  %v19289_v4 = vld [vmem:[#allocation38_spill] sm:$0xff] }
 0x30a   : > { %v4215_v57 = vcombine.high %v4207_v46, %v4207_v46  ;;  %v16607_v5 = vrot.slane %v5910_v40, %v15318_v14  ;;  %v16614_v10 = vsel %vm843_vm3, %v3605_v45, %v4581_v61  ;;  %v4216_v25 = vcombine.high %v4214_v23, %v4214_v23  ;;  %v19282_v40 = vld [vmem:[#allocation36_spill] sm:$0xff] }
 0x30b   : > { %19280 = vst [vmem:[#allocation143_spill] sm:$0xff] %v16614_v10  ;;  %v4223_v44 = vrot.slane %v4207_v46, %v15318_v14  ;;  %v4774_v39 = vadd.f32 %v16526_v38, %v15270_v18  ;;  %v16622_v11 = vrot.slane %v5939_v24, %v15347_v16  ;;  %v16625_v37 = vrot.slane %v3550_v54, %v15318_v14 }
 0x30c   : > { %v4775_v52 = vadd.f32 %v19282_v40, %v16528_v35  ;;  %v5300_v61 = vcombine.high %v16556_v30, %v16556_v30  ;;  %v16632_v45 = vrot.slane %v3557_v33, %v15318_v14  ;;  %v16635_v46 = vrot.slane %v3558_v2, %v15318_v14 }
 0x30d   : > { %19281 = vst [vmem:[#allocation144_spill] sm:$0xff] %v16625_v37  ;;  %v16638_v38 = vrot.slane %v3559_v22, %v15318_v14  ;;  %v16641_v24 = vrot.slane %v4215_v57, %v15318_v14  ;;  %v16646_v35 = vrot.slane %v4214_v23, %v15318_v14  ;;  %v4814_v12 = vadd.f32 %v16547_v1, %v15270_v18 }
 0x30e   : > { %19283 = vst [vmem:[#allocation36_spill] sm:$0xff] %v16632_v45  ;;  %19284 = vst [vmem:[#allocation145_spill] sm:$0xff] %v16635_v46  ;;  %v4815_v33 = vadd.f32 %v16539_v34, %v19282_v40  ;;  %v16655_v22 = vrot.slane %v4216_v25, %v15318_v14  ;;  %v4245_v57 = vcombine.high %v4223_v44, %v4223_v44 }
 0x30f   : > { %19285 = vst [vmem:[#allocation146_spill] sm:$0xff] %v16638_v38  ;;  %19286 = vst [vmem:[#allocation147_spill] sm:$0xff] %v16641_v24  ;;  %v4796_v62 = vadd.f32 %v4774_v39, %v19289_v4  ;;  %v4797_v23 = vadd.f32 %v4775_v52, %v19289_v4  ;;  %v5307_v18 = vrot.slane %v16556_v30, %v15318_v14  ;;  %v19290_v4 = vld [vmem:[#allocation39_spill] sm:$0xff]  ;;  %v19292_v30 = vld [vmem:[#allocation37_spill] sm:$0xff] }
 0x310   : > { %19287 = vst [vmem:[#allocation148_spill] sm:$0xff] %v16646_v35  ;;  %19288 = vst [vmem:[#allocation149_spill] sm:$0xff] %v16655_v22  ;;  %v5314_v1 = vrot.slane %v5300_v61, %v15318_v14  ;;  %v4247_v39 = vcombine.high %v16641_v24, %v16641_v24  ;;  %v4246_v52 = vcombine.high %v16646_v35, %v16646_v35 }
 0x311   : > { %v16675_v40 = vadd.f32 %v4814_v12, %v19290_v4  ;;  %v4840_v61 = vadd.f32 %v4815_v33, %v19292_v30  ;;  %v5957_v54 = vcombine.high %v4837_v42, %v4837_v42  ;;  %v4248_v34 = vcombine.high %v16655_v22, %v16655_v22 }
 0x312   : > { %v16683_v44 = vrot.slane %v4245_v57, %v15347_v16  ;;  %v5315_v50 = vcombine.high %v5307_v18, %v5307_v18  ;;  %v5316_v63 = vcombine.high %v5314_v1, %v5314_v1  ;;  %v5964_v12 = vrot.slane %v4837_v42, %v15318_v14 }
 0x313   : > { %19291 = vst [vmem:[#allocation38_spill] sm:$0xff] %v16675_v40  ;;  %v5971_v4 = vrot.slane %v5957_v54, %v15318_v14  ;;  %v16690_v33 = vrot.slane %v4247_v39, %v15347_v16  ;;  %v16695_v25 = vrot.slane %v5307_v18, %v15318_v14  ;;  %v16698_v57 = vrot.slane %v5314_v1, %v15318_v14 }
 0x314   : > { %19293 = vst [vmem:[#allocation39_spill] sm:$0xff] %v16683_v44  ;;  %v5355_v2 = vrot.slane %v16566_v60, %v15318_v14  ;;  %v5972_v10 = vcombine.high %v5964_v12, %v5964_v12  ;;  %v5980_v42 = vrot.slane %v5964_v12, %v15318_v14  ;;  %v16704_v54 = vrot.slane %v4246_v52, %v15347_v16 }
 0x315   : > { %19294 = vst [vmem:[#allocation37_spill] sm:$0xff] %v16690_v33  ;;  %v5973_v38 = vcombine.high %v5971_v4, %v5971_v4  ;;  %v5363_v39 = vcombine.high %v4796_v62, %v4796_v62  ;;  %v16707_v45 = vrot.slane %v4796_v62, %v15318_v14  ;;  %v6012_v18 = vrot.slane %v16602_v13, %v15318_v14 }
 0x316   : > { %19295 = vst [vmem:[#allocation150_spill] sm:$0xff] %v16704_v54  ;;  %v16712_v1 = vrot.slane %v4248_v34, %v15347_v16  ;;  %v16715_v30 = vrot.slane %v5315_v50, %v15318_v14  ;;  %v16718_v60 = vrot.slane %v5316_v63, %v15318_v14  ;;  %v5418_v12 = vrot.slane %v4797_v23, %v15318_v14 }
 0x317   : > { %19296 = vst [vmem:[#allocation151_spill] sm:$0xff] %v16707_v45  ;;  %v16726_v54 = vrot.slane %v5971_v4, %v15318_v14  ;;  %v16729_v13 = vrot.slane %v5972_v10, %v15318_v14  ;;  %v16732_v50 = vrot.slane %v5355_v2, %v15318_v14  ;;  %v16735_v63 = vrot.slane %v5973_v38, %v15318_v14 }
 0x318   : > { %19297 = vst [vmem:[#allocation152_spill] sm:$0xff] %v16712_v1  ;;  %v6002_v34 = vcombine.high %v5980_v42, %v5980_v42  ;;  %v6075_v23 = vrot.slane %v4840_v61, %v15318_v14  ;;  %v16739_v52 = vrot.slane %v5363_v39, %v15318_v14  ;;  %v16745_v4 = vrot.slane %v16707_v45, %v15318_v14 }
 0x319   : > { %19298 = vst [vmem:[#allocation153_spill] sm:$0xff] %v16732_v50  ;;  %v16748_v10 = vrot.slane %v6012_v18, %v15318_v14  ;;  %v5425_v61 = vrot.slane %v5418_v12, %v15318_v14  ;;  %v19303_v62 = vcombine.high %v16430_v26, %v16430_v26  ;;  %v6909_v2 = vcombine.high %v16463_v51, %v16463_v51 }
 0x31a   : > { %19299 = vst [vmem:[#allocation154_spill] sm:$0xff] %v16739_v52  ;;  %19300 = vst [vmem:[#allocation155_spill] sm:$0xff] %v16745_v4  ;;  %v6082_v42 = vrot.slane %v6075_v23, %v15318_v14  ;;  %v16764_v4 = vrot.slane %v16675_v40, %v15318_v14  ;;  %v16771_v23 = vrot.slane %v6002_v34, %v15347_v16  ;;  %v13870_v40 = vld [vmem:[#allocation14 + $0xf8] sm:$0xff]  }
 0x31b   : > { %19301 = vst [vmem:[#allocation156_spill] sm:$0xff] %v16748_v10  ;;  %v6908_v45 = vrot.slane %v19303_v62, %v15295_v27  ;;  %v19305_v34 = vcombine.high %v16439_v53, %v16439_v53  ;;  %v19306_v39 = vcombine.high %v16481_v17, %v16481_v17  ;;  %v19307_v26 = vcombine.low %v16443_v49, %v15506_v56 }
 0x31c   : > { %19302 = vst [vmem:[#allocation157_spill] sm:$0xff] %v16764_v4  ;;  %v6370_v38 = vrot.slane %v6082_v42, %v15347_v16  ;;  %v7938_v52 = vcombine.low %v16463_v51, %v6909_v2  ;;  %v4952_v56 = vrot.slane %v15534_v9, %v15318_v14  ;;  %13345 = vmatprep.subr.bf16.mxu0 %v13870_v40 }
 0x31d   : > { %v7921_v42 = vcombine.low %v16439_v53, %v19305_v34  ;;  %v7922_v18 = vcombine.low %v16481_v17, %v19306_v39  ;;  %v7970_v62 = vrot.slane %v19307_v26, %v15295_v27  ;;  %v6910_v4 = vcombine.high %v6908_v45, %v6908_v45 }
 0x31e   : > { %v16785_v12 = vsel %vm843_vm3, %v5425_v61, %v6370_v38  ;;  %v7972_v38 = vcombine.low %v15512_v19, %v15517_v15  ;;  %v19308_v53 = vcombine.low %v15484_v41, %v15473_v0  ;;  %v7946_v51 = vrot.slane %v7938_v52, %v15295_v27 }
 0x31f   : > { %19304 = vst [vmem:[#allocation158_spill] sm:$0xff] %v16785_v12  ;;  %v7929_v34 = vrot.slane %v7921_v42, %v15295_v27  ;;  %v7936_v17 = vrot.slane %v7922_v18, %v15295_v27  ;;  %v7971_v39 = vcombine.low %v16472_v31, %v7970_v62  ;;  %v7939_v49 = vcombine.low %v6908_v45, %v6910_v4 }
 0x320   : > { %v7987_v61 = vrot.slane %v19308_v53, %v15295_v27  ;;  %v7980_v2 = vrot.slane %v7972_v38, %v15295_v27  ;;  %v19309_v19 = vcombine.high %v15523_v21, %v15523_v21  ;;  %v19310_v18 = vcombine.high %v15534_v9, %v15534_v9 }
 0x321   : > { %v7937_v41 = vcombine.low %v7929_v34, %v7936_v17  ;;  %v8536_v15 = vrot.slane %v7971_v39, 7  ;;  %v4967_v42 = vcombine.high %v15571_v7, %v15571_v7  ;;  %v7953_v45 = vrot.slane %v7939_v49, %v15295_v27 }
 0x322   : > { %v4959_v0 = vrot.slane %v19309_v19, %v15318_v14  ;;  %v4966_v31 = vrot.slane %v19310_v18, %v15318_v14  ;;  %v7988_v52 = vcombine.low %v7980_v2, %v7987_v61  ;;  %v4968_v4 = vcombine.high %v4952_v56, %v4952_v56  ;;  %v19317_v18 = vld [vmem:[#allocation52_spill] sm:$0xff] }
 0x323   : > { %v8533_v62 = vrot.slane %v7937_v41, 7  ;;  %v19311_v21 = vcombine.high %v15663_v55, %v15663_v55  ;;  %v6134_v9 = vrot.slane %v15669_v20, %v15347_v16  ;;  %v7954_v34 = vcombine.low %v7946_v51, %v7953_v45 }
 0x324   : > { %v4969_v26 = vcombine.high %v4959_v0, %v4959_v0  ;;  %v4970_v38 = vcombine.high %v4966_v31, %v4966_v31  ;;  %v8537_v17 = vrot.slane %v7988_v52, 7  ;;  %v19312_v7 = vcombine.high %v15656_v43, %v15656_v43 }
 0x325   : > { %v6126_v53 = vrot.slane %v19311_v21, %v15347_v16  ;;  %v19313_v39 = vcombine.high %v15669_v20, %v15669_v20  ;;  %v8641_v2 = vsel %vm843_vm3, 0.0, %v8533_v62  ;;  %v19316_v51 = vrot.slane %v15663_v55, %v15347_v16  ;;  %v12514_v21 = vld [vmem:[%s14581_s13 + $0x8] sm:$0xff]  }
 0x326   : > { %v6138_v61 = vrot.slane %v19312_v7, %v15347_v16  ;;  %v6452_v45 = vsel %vm843_vm3, %v4967_v42, %v19317_v18  ;;  %v8534_v20 = vrot.slane %v7954_v34, 7  ;;  %v8538_v7 = vsel %vm843_vm3, %v8536_v15, %v8537_v17 }
 0x327   : > { %v6142_v49 = vrot.slane %v19313_v39, %v15347_v16  ;;  %v6451_v41 = vsel %vm843_vm3, %v4959_v0, %v19316_v51  ;;  %v6453_v52 = vsel %vm843_vm3, %v4969_v26, %v6126_v53  ;;  %v19318_v39 = vrot.slane %v15656_v43, %v15347_v16  ;;  %v19320_v51 = vld [vmem:[#allocation51_spill] sm:$0xff]  ;;  %v19322_v53 = vld [vmem:[#allocation48_spill] sm:$0xff] }
 0x328   : > { %v6455_v1 = vsel %vm843_vm3, %v4966_v31, %v6134_v9  ;;  %v16858_v55 = vpack.c.bf16 %v8538_v7, %v8536_v15  ;;  %v6456_v0 = vsel %vm843_vm3, %v4968_v4, %v6138_v61  ;;  %v19321_v26 = vrot.slane %v19320_v51, %v15347_v16 }
 0x329   : > { %v6454_v12 = vsel %vm843_vm3, %v4952_v56, %v19318_v39  ;;  %v6457_v42 = vsel %vm843_vm3, %v4970_v38, %v6142_v49  ;;  %v8535_v18 = vsel %vm843_vm3, %v8533_v62, %v8534_v20  ;;  %v12372_v56 = vunpack.c.l.bf16 %v12514_v21 }
 0x32a   : > { %19319 = vst [vmem:[#allocation52_spill] sm:$0xff] %v16858_v55  ;;  %v6458_v34 = vsel %vm843_vm3, %v19322_v53, %v19321_v26  ;;  %v12373_v31 = vunpack.c.h.bf16 %v12514_v21  ;;  %v8659_v4 = vsel %vm843_vm3, %v8534_v20, 0.0  ;;  %v16875_v38 = vpack.c.bf16 %v8535_v18, %v8641_v2 }
 0x32b   : > { %v12038_v9 = vpack.c.bf16 %v8535_v18, %v8533_v62  ;;  %v16877_v61 = vpack.c.bf16 %v8659_v4, %v8659_v4  ;;  %v6945_v49 = vcombine.high %v12372_v56, %v12372_v56  ;;  %v6952_v39 = vrot.slane %v12372_v56, %v15295_v27 }
 0x32c   : > { %19325 = vst [vmem:[#allocation51_spill] sm:$0xff] %v16875_v38  ;;  %v6962_v51 = vcombine.high %v12373_v31, %v12373_v31  ;;  %v6969_v19 = vrot.slane %v12373_v31, %v15295_v27  ;;  %v8731_v21 = vshrl.u32 %v16875_v38, 16  ;;  %v8733_v20 = vshll.u32 %v16875_v38, 16 }
 0x32d   : > { %19326 = vst [vmem:[#allocation48_spill] sm:$0xff] %v16877_v61  ;;  %13265 = vmatprep.mubr.msk.bf16.mxu0 %vm16870_vm0, %v12038_v9  ;;  %v8738_v2 = vshll.u32 %v16877_v61, 16  ;;  %v8642_v62 = vsel %vm843_vm3, 0.0, %v8536_v15  ;;  %v6959_v26 = vrot.slane %v6945_v49, %v15295_v27  ;;  %v6960_v53 = vcombine.high %v6952_v39, %v6952_v39 }
 0x32e   : > { %13266 = vmatmul.mubr.msk.bf16.vlgmr.msra.gmra.mxu0 %vm16870_vm0, %v16858_v55  ;;  %v6976_v18 = vrot.slane %v6962_v51, %v15295_v27  ;;  %v6977_v56 = vcombine.high %v6969_v19, %v6969_v19  ;;  %v7649_v31 = vadd.f32 %v6952_v39, %v6451_v41  ;;  %v7653_v4 = vadd.f32 %v6969_v19, %v6455_v1 }
 0x32f   : > { %v8735_v9 = vrot.slane %v8733_v20, 1  ;;  %v8740_v22 = vrot.slane %v8738_v2, 1  ;;  %13346 = vmatpush3.bf16.msra.mxu0 %v13870_v40  ;;  %v6961_v38 = vcombine.high %v6959_v26, %v6959_v26  ;;  %v7650_v61 = vadd.f32 %v6960_v53, %v6452_v45  ;;  %v19329_v40 = vld [vmem:[#allocation45_spill] sm:$0xff] }
 0x330   : > { %v6978_v35 = vcombine.high %v6976_v18, %v6976_v18  ;;  %v7651_v33 = vadd.f32 %v6959_v26, %v6453_v52  ;;  %v7654_v15 = vadd.f32 %v6977_v56, %v6456_v0  ;;  %v7655_v37 = vadd.f32 %v6976_v18, %v6457_v42  ;;  %v19333_v42 = vld [vmem:[#allocation46_spill] sm:$0xff] }
 0x331   : > { %v8736_v44 = vor.u32 %v8735_v9, %v8731_v21  ;;  %v8660_v55 = vsel %vm843_vm3, %v8537_v17, 0.0  ;;  %v7652_v46 = vadd.f32 %v6961_v38, %v6454_v12  ;;  %v7989_v24 = vcombine.low %v7649_v31, %v7650_v61  ;;  %v19338_v56 = vld [vmem:[#allocation50_spill] sm:$0xff]  ;;  %v19339_v31 = vld [vmem:[#allocation40_spill] sm:$0xff] }
 0x332   : > { %v7656_v49 = vadd.f32 %v6978_v35, %v6458_v34  ;;  %v16893_v50 = vpack.c.bf16 %v8538_v7, %v8642_v62  ;;  %v8006_v51 = vcombine.low %v7653_v4, %v7654_v15  ;;  %v16896_v41 = vpack.c.bf16 %v8660_v55, %v8660_v55  ;;  %v19337_v62 = vld [vmem:[#allocation42_spill] sm:$0xff] }
 0x333   : > { %v8741_v1 = vsel %vm8729_vm1, %v8736_v44, %v8740_v22  ;;  %v3213_v39 = vcombine.high %v19329_v40, %v19329_v40  ;;  %v7990_v45 = vcombine.low %v7651_v33, %v7652_v46  ;;  %v7997_v52 = vrot.slane %v7989_v24, %v15295_v27  ;;  %v19330_v22 = vld [vmem:[#allocation47_spill] sm:$0xff] }
 0x334   : > { %19327 = vst [vmem:[#allocation159_spill] sm:$0xff] %v16893_v50  ;;  %19328 = vst [vmem:[#allocation160_spill] sm:$0xff] %v16896_v41  ;;  %v8007_v0 = vcombine.low %v7655_v37, %v7656_v49  ;;  %13217 = vmatprep.mubr.bf16.mxu1 %v8741_v1  ;;  %v8743_v17 = vshrl.u32 %v16893_v50, 16  ;;  %v8014_v35 = vrot.slane %v8006_v51, %v15295_v27  ;;  %v8745_v12 = vshll.u32 %v16893_v50, 16  ;;  %v19332_v37 = vld [vmem:[#allocation49_spill] sm:$0xff]  ;;  %v12515_v51 = vld [vmem:[%s14581_s13 + $0x10] sm:$0xff]  }
 0x335   : > { %v8750_v7 = vshll.u32 %v16896_v41, 16  ;;  %v19331_v44 = vcombine.high %v19330_v22, %v19330_v22  ;;  %v8004_v46 = vrot.slane %v7990_v45, %v15295_v27  ;;  %v4377_v33 = vrot.slane %v19332_v37, %v15347_v16  ;;  %v19356_v50 = vld [vmem:[#allocation59_spill] sm:$0xff] }
 0x336   : > { %v8021_v24 = vrot.slane %v8007_v0, %v15295_v27  ;;  %v19334_v34 = vcombine.high %v19333_v42, %v19333_v42  ;;  %v8747_v61 = vrot.slane %v8745_v12, 1  ;;  %v19335_v21 = vcombine.high %v19332_v37, %v19332_v37  ;;  %v19343_v0 = vld [vmem:[#allocation41_spill] sm:$0xff]  ;;  %v19347_v37 = vld [vmem:[#allocation44_spill] sm:$0xff] }
 0x337   : > { %v4369_v55 = vrot.slane %v19331_v44, %v15347_v16  ;;  %v8752_v19 = vrot.slane %v8750_v7, 1  ;;  %v19336_v2 = vrot.slane %v19330_v22, %v15347_v16  ;;  %v8005_v53 = vcombine.low %v7997_v52, %v8004_v46  ;;  %v13871_v22 = vld [vmem:[#allocation14 + $0xf0] sm:$0xff]  }
 0x338   : > { %v4381_v38 = vrot.slane %v19334_v34, %v15347_v16  ;;  %v4385_v20 = vrot.slane %v19335_v21, %v15347_v16  ;;  %v8022_v18 = vcombine.low %v8014_v35, %v8021_v24  ;;  %v19340_v4 = vcombine.high %v19339_v31, %v19339_v31  ;;  %v13867_v34 = vld [vmem:[#allocation14 + $0xb0] sm:$0xff]   ;;  %13347 = vmatprep.subr.bf16.mxu0 %v13871_v22 }
 0x339   : > { %v4694_v26 = vsel %vm843_vm3, %v19337_v62, %v19336_v2  ;;  %v19341_v15 = vcombine.high %v19337_v62, %v19337_v62  ;;  %v8748_v1 = vor.u32 %v8747_v61, %v8743_v17  ;;  %v19342_v45 = vrot.slane %v19333_v42, %v15347_v16  ;;  %v19345_v17 = vld [vmem:[#allocation43_spill] sm:$0xff]  ;;  %v19349_v21 = vld [vmem:[#allocation54_spill] sm:$0xff]  ;;  %v19350_v62 = vld [vmem:[#allocation53_spill] sm:$0xff]  ;;  %13348 = vmatpush3.bf16.msra.mxu0 %v13871_v22 }
 0x33a   : > { %v4695_v9 = vsel %vm843_vm3, %v19340_v4, %v19338_v56  ;;  %v4698_v35 = vsel %vm843_vm3, %v19329_v40, %v4377_v33  ;;  %v19344_v12 = vcombine.high %v19343_v0, %v19343_v0  ;;  %v8539_v44 = vrot.slane %v8005_v53, 7  ;;  %v13868_v22 = vld [vmem:[#allocation14 + $0xa8] sm:$0xff]  }
 0x33b   : > { %v4696_v49 = vsel %vm843_vm3, %v19341_v15, %v4369_v55  ;;  %v4697_v52 = vsel %vm843_vm3, %v19343_v0, %v19342_v45  ;;  %v8540_v46 = vrot.slane %v8022_v18, 7  ;;  %v4700_v55 = vsel %vm843_vm3, %v3213_v39, %v4385_v20  ;;  %v13924_v15 = vld [vmem:[#allocation14 + $0xb8] sm:$0xff]  }
 0x33c   : > { %v4699_v7 = vsel %vm843_vm3, %v19344_v12, %v4381_v38  ;;  %v19346_v24 = vrot.slane %v19345_v17, %v15347_v16  ;;  %v16954_v61 = vsel %vm8729_vm1, %v8748_v1, %v8752_v19  ;;  %v12376_v40 = vunpack.c.l.bf16 %v12515_v51 }
 0x33d   : > { %19348 = vst [vmem:[#allocation45_spill] sm:$0xff] %v16954_v61  ;;  %v12377_v33 = vunpack.c.h.bf16 %v12515_v51  ;;  %v16958_v38 = vrot.slane %v19349_v21, %v15318_v14  ;;  %v8541_v2 = vsel %vm843_vm3, %v8539_v44, %v8540_v46  ;;  %v8643_v39 = vsel %vm843_vm3, 0.0, %v8539_v44  ;;  %13218 = vmatmul.mubr.bf16.vlgmr.msra.gmra.mxu1 %v16954_v61 }
 0x33e   : > { %v4701_v42 = vsel %vm843_vm3, %v19347_v37, %v19346_v24  ;;  %v8661_v20 = vsel %vm843_vm3, %v8540_v46, 0.0  ;;  %v19351_v19 = vcombine.high %v19350_v62, %v19350_v62  ;;  %v16970_v18 = vpack.c.bf16 %v8541_v2, %v8643_v39  ;;  %13298 = vmatpush3.bf16.msra.mxu1 %v13924_v15 }
 0x33f   : > { %v16972_v56 = vpack.c.bf16 %v8541_v2, %v8539_v44  ;;  %v16974_v31 = vpack.c.bf16 %v8661_v20, %v8661_v20  ;;  %v6979_v4 = vcombine.high %v12376_v40, %v12376_v40  ;;  %v6986_v51 = vrot.slane %v12376_v40, %v15295_v27  ;;  %13299 = vmatprep.subr.bf16.mxu1 %v13867_v34 }
 0x340   : > { %v16968_v53 = vrot.slane %v19351_v19, %v15318_v14  ;;  %19352 = vst [vmem:[#allocation47_spill] sm:$0xff] %v16970_v18  ;;  %v6996_v1 = vcombine.high %v12377_v33, %v12377_v33  ;;  %v7003_v45 = vrot.slane %v12377_v33, %v15295_v27  ;;  %v19355_v0 = vcombine.high %v19349_v21, %v19349_v21 }
 0x341   : > { %19353 = vst [vmem:[#allocation49_spill] sm:$0xff] %v16972_v56  ;;  %19354 = vst [vmem:[#allocation46_spill] sm:$0xff] %v16974_v31  ;;  %13269 = vmatprep.mubr.msk.bf16.mxu0 %vm16870_vm0, %v16972_v56  ;;  %v8755_v44 = vshrl.u32 %v16970_v18, 16  ;;  %v8757_v46 = vshll.u32 %v16970_v18, 16  ;;  %v8762_v17 = vshll.u32 %v16974_v31, 16  ;;  %v6993_v24 = vrot.slane %v6979_v4, %v15295_v27  ;;  %v13869_v56 = vld [vmem:[#allocation14 + $0xa0] sm:$0xff]  }
 0x342   : > { %v5029_v12 = vrot.slane %v19355_v0, %v15318_v14  ;;  %v6994_v37 = vcombine.high %v6986_v51, %v6986_v51  ;;  %v7010_v40 = vrot.slane %v6996_v1, %v15295_v27  ;;  %v7011_v33 = vcombine.high %v7003_v45, %v7003_v45  ;;  %13300 = vmatpush3.bf16.msra.mxu1 %v13867_v34  ;;  %v19358_v34 = vld [vmem:[#allocation69_spill] sm:$0xff] }
 0x343   : > { %v7657_v21 = vadd.f32 %v6986_v51, %v4694_v26  ;;  %v8759_v2 = vrot.slane %v8757_v46, 1  ;;  %v8764_v39 = vrot.slane %v8762_v17, 1  ;;  %v6995_v20 = vcombine.high %v6993_v24, %v6993_v24  ;;  %13301 = vmatprep.subr.bf16.mxu1 %v13868_v22  ;;  %v19361_v46 = vld [vmem:[#allocation68_spill] sm:$0xff] }
 0x344   : > { %v7659_v62 = vadd.f32 %v6993_v24, %v4696_v49  ;;  %v7012_v19 = vcombine.high %v7010_v40, %v7010_v40  ;;  %v7658_v15 = vadd.f32 %v6994_v37, %v4695_v9  ;;  %v7661_v0 = vadd.f32 %v7003_v45, %v4698_v35 }
 0x345   : > { %v7662_v61 = vadd.f32 %v7011_v33, %v4699_v7  ;;  %v8760_v18 = vor.u32 %v8759_v2, %v8755_v44  ;;  %v7660_v41 = vadd.f32 %v6995_v20, %v4697_v52  ;;  %v7663_v31 = vadd.f32 %v7010_v40, %v4700_v55  ;;  %v13873_v52 = vld [vmem:[#allocation14 + $0xe8] sm:$0xff]   ;;  %v19360_v44 = vld [vmem:[#allocation70_spill] sm:$0xff]  ;;  %v12516_v20 = vld [vmem:[%s14581_s13 + $0x18] sm:$0xff]  }
 0x346   : > { %v5030_v4 = vcombine.high %v19356_v50, %v19356_v50  ;;  %v7664_v1 = vadd.f32 %v7012_v19, %v4701_v42  ;;  %v8023_v10 = vcombine.low %v7657_v21, %v7658_v15  ;;  %v5031_v51 = vcombine.high %v16958_v38, %v16958_v38  ;;  %13302 = vmatpush3.bf16.msra.mxu1 %v13868_v22  ;;  %v19365_v21 = vld [vmem:[#allocation76_spill] sm:$0xff] }
 0x347   : > { %v8040_v26 = vcombine.low %v7661_v0, %v7662_v61  ;;  %v16995_v49 = vsel %vm8729_vm1, %v8760_v18, %v8764_v39  ;;  %v8024_v9 = vcombine.low %v7659_v62, %v7660_v41  ;;  %v5032_v35 = vcombine.high %v16968_v53, %v16968_v53  ;;  %v13872_v41 = vld [vmem:[#allocation14 + $0x98] sm:$0xff]   ;;  %13303 = vmatprep.subr.bf16.mxu1 %v13869_v56 }
 0x348   : > { %19357 = vst [vmem:[#allocation42_spill] sm:$0xff] %v16995_v49  ;;  %v5033_v7 = vcombine.high %v5029_v12, %v5029_v12  ;;  %13221 = vmatprep.mubr.bf16.mxu1 %v16995_v49  ;;  %v8031_v50 = vrot.slane %v8023_v10, %v15295_v27  ;;  %v8041_v55 = vcombine.low %v7663_v31, %v7664_v1 }
 0x349   : > { %v8048_v42 = vrot.slane %v8040_v26, %v15295_v27  ;;  %v19359_v61 = vcombine.high %v19358_v34, %v19358_v34  ;;  %v8038_v45 = vrot.slane %v8024_v9, %v15295_v27  ;;  %v6166_v22 = vrot.slane %v19360_v44, %v15347_v16  ;;  %13349 = vmatprep.subr.bf16.mxu0 %v13873_v52 }
 0x34a   : > { %v19362_v17 = vcombine.high %v19361_v46, %v19361_v46  ;;  %v19363_v10 = vcombine.high %v19360_v44, %v19360_v44  ;;  %v8055_v37 = vrot.slane %v8041_v55, %v15295_v27  ;;  %v19364_v40 = vrot.slane %v19358_v34, %v15347_v16  ;;  %13304 = vmatpush3.bf16.msra.mxu1 %v13869_v56  ;;  %v19373_v44 = vld [vmem:[#allocation64_spill] sm:$0xff] }
 0x34b   : > { %v6158_v18 = vrot.slane %v19359_v61, %v15347_v16  ;;  %v6460_v2 = vsel %vm843_vm3, %v5030_v4, %v19365_v21  ;;  %v8039_v62 = vcombine.low %v8031_v50, %v8038_v45  ;;  %v19366_v19 = vrot.slane %v19361_v46, %v15347_v16  ;;  %v19367_v4 = vld [vmem:[#allocation66_spill] sm:$0xff]  ;;  %13305 = vmatprep.subr.bf16.mxu1 %v13872_v41 }
 0x34c   : > { %v6170_v24 = vrot.slane %v19362_v17, %v15347_v16  ;;  %v6174_v31 = vrot.slane %v19363_v10, %v15347_v16  ;;  %v6459_v33 = vsel %vm843_vm3, %v16968_v53, %v19364_v40  ;;  %v6463_v0 = vsel %vm843_vm3, %v5029_v12, %v6166_v22  ;;  %13350 = vmatpush3.bf16.msra.mxu0 %v13873_v52 }
 0x34d   : > { %v6461_v39 = vsel %vm843_vm3, %v5032_v35, %v6158_v18  ;;  %v6462_v15 = vsel %vm843_vm3, %v16958_v38, %v19366_v19  ;;  %v8056_v53 = vcombine.low %v8048_v42, %v8055_v37  ;;  %v19368_v9 = vrot.slane %v19367_v4, %v15347_v16  ;;  %v19369_v35 = vld [vmem:[#allocation67_spill] sm:$0xff]  ;;  %v19370_v38 = vld [vmem:[#allocation62_spill] sm:$0xff] }
 0x34e   : > { %v6464_v1 = vsel %vm843_vm3, %v5031_v51, %v6170_v24  ;;  %v6465_v26 = vsel %vm843_vm3, %v5033_v7, %v6174_v31  ;;  %v12380_v55 = vunpack.c.l.bf16 %v12516_v20  ;;  %v8542_v34 = vrot.slane %v8039_v62, 7  ;;  %v19371_v51 = vld [vmem:[#allocation63_spill] sm:$0xff]  ;;  %v19374_v24 = vld [vmem:[#allocation61_spill] sm:$0xff]  ;;  %13306 = vmatpush3.bf16.msra.mxu1 %v13872_v41 }
 0x34f   : > { %v6466_v50 = vsel %vm843_vm3, %v19369_v35, %v19368_v9  ;;  %v12381_v61 = vunpack.c.h.bf16 %v12516_v20  ;;  %v3276_v12 = vcombine.high %v19370_v38, %v19370_v38  ;;  %v19372_v56 = vcombine.high %v19371_v51, %v19371_v51 }
 0x350   : > { %v8543_v7 = vrot.slane %v8056_v53, 7  ;;  %v7013_v18 = vcombine.high %v12380_v55, %v12380_v55  ;;  %v7020_v45 = vrot.slane %v12380_v55, %v15295_v27  ;;  %v4409_v22 = vrot.slane %v19373_v44, %v15347_v16 }
 0x351   : > { %v4401_v42 = vrot.slane %v19372_v56, %v15347_v16  ;;  %v8644_v46 = vsel %vm843_vm3, 0.0, %v8542_v34  ;;  %v7030_v52 = vcombine.high %v12381_v61, %v12381_v61  ;;  %v7037_v17 = vrot.slane %v12381_v61, %v15295_v27 }
 0x352   : > { %v19375_v10 = vcombine.high %v19374_v24, %v19374_v24  ;;  %v8544_v37 = vsel %vm843_vm3, %v8542_v34, %v8543_v7  ;;  %v7027_v40 = vrot.slane %v7013_v18, %v15295_v27  ;;  %v7028_v21 = vcombine.high %v7020_v45, %v7020_v45 }
 0x353   : > { %v7665_v20 = vadd.f32 %v7020_v45, %v6459_v33  ;;  %v17057_v62 = vpack.c.bf16 %v8544_v37, %v8644_v46  ;;  %v17059_v19 = vpack.c.bf16 %v8544_v37, %v8542_v34  ;;  %v7044_v53 = vrot.slane %v7030_v52, %v15295_v27  ;;  %v19380_v37 = vld [vmem:[#allocation57_spill] sm:$0xff] }
 0x354   : > { %v4413_v31 = vrot.slane %v19375_v10, %v15347_v16  ;;  %v7045_v4 = vcombine.high %v7037_v17, %v7037_v17  ;;  %v7029_v9 = vcombine.high %v7027_v40, %v7027_v40  ;;  %v7666_v35 = vadd.f32 %v7028_v21, %v6460_v2 }
 0x355   : > { %19376 = vst [vmem:[#allocation50_spill] sm:$0xff] %v17057_v62  ;;  %v7667_v55 = vadd.f32 %v7027_v40, %v6461_v39  ;;  %v7669_v61 = vadd.f32 %v7037_v17, %v6463_v0  ;;  %13270 = vmatmul.mubr.msk.bf16.gmra.mxu0 %vm16870_vm0, %v17059_v19  ;;  %v7046_v41 = vcombine.high %v7044_v53, %v7044_v53  ;;  %v8662_v33 = vsel %vm843_vm3, %v8543_v7, 0.0 }
 0x356   : > { %v7670_v56 = vadd.f32 %v7045_v4, %v6464_v1  ;;  %v7671_v18 = vadd.f32 %v7044_v53, %v6465_v26  ;;  %v7668_v45 = vadd.f32 %v7029_v9, %v6462_v15  ;;  %v8057_v46 = vcombine.low %v7665_v20, %v7666_v35  ;;  %v19381_v53 = vld [vmem:[#allocation65_spill] sm:$0xff]  ;;  %v19382_v4 = vld [vmem:[#allocation55_spill] sm:$0xff] }
 0x357   : > { %v17066_v34 = vpack.c.bf16 %v8662_v33, %v8662_v33  ;;  %v8767_v52 = vshrl.u32 %v17057_v62, 16  ;;  %v7672_v10 = vadd.f32 %v7046_v41, %v6466_v50  ;;  %v8769_v39 = vshll.u32 %v17057_v62, 16  ;;  %v12517_v33 = vld [vmem:[%s14581_s13 + $0x20] sm:$0xff]  }
 0x358   : > { %v8074_v2 = vcombine.low %v7669_v61, %v7670_v56  ;;  %v19378_v0 = vcombine.high %v19373_v44, %v19373_v44  ;;  %v8058_v1 = vcombine.low %v7667_v55, %v7668_v45  ;;  %v8065_v26 = vrot.slane %v8057_v46, %v15295_v27  ;;  %v19386_v56 = vld [vmem:[#allocation56_spill] sm:$0xff]  ;;  %v13875_v46 = vld [vmem:[#allocation14 + $0x90] sm:$0xff]  }
 0x359   : > { %19377 = vst [vmem:[#allocation40_spill] sm:$0xff] %v17066_v34  ;;  %v8774_v15 = vshll.u32 %v17066_v34, 16  ;;  %v19379_v7 = vrot.slane %v19371_v51, %v15347_v16  ;;  %v8075_v40 = vcombine.low %v7671_v18, %v7672_v10  ;;  %v8771_v20 = vrot.slane %v8769_v39, 1  ;;  %v13874_v45 = vld [vmem:[#allocation14 + $0xe0] sm:$0xff]   ;;  %13307 = vmatprep.subr.bf16.mxu1 %v13875_v46 }
 0x35a   : > { %v4417_v17 = vrot.slane %v19378_v0, %v15347_v16  ;;  %v8082_v21 = vrot.slane %v8074_v2, %v15295_v27  ;;  %v19383_v44 = vcombine.high %v19382_v4, %v19382_v4  ;;  %v8072_v35 = vrot.slane %v8058_v1, %v15295_v27  ;;  %13351 = vmatprep.subr.bf16.mxu0 %v13874_v45 }
 0x35b   : > { %v4702_v50 = vsel %vm843_vm3, %v19380_v37, %v19379_v7  ;;  %v8776_v55 = vrot.slane %v8774_v15, 1  ;;  %v19384_v61 = vcombine.high %v19380_v37, %v19380_v37  ;;  %v19385_v41 = vrot.slane %v19374_v24, %v15347_v16  ;;  %v19388_v15 = vld [vmem:[#allocation58_spill] sm:$0xff]  ;;  %v19390_v37 = vld [vmem:[#allocation60_spill] sm:$0xff]  ;;  %13352 = vmatpush3.bf16.msra.mxu0 %v13874_v45  ;;  %13308 = vmatpush3.bf16.msra.mxu1 %v13875_v46 }
 0x35c   : > { %v4703_v9 = vsel %vm843_vm3, %v19383_v44, %v19381_v53  ;;  %v8089_v10 = vrot.slane %v8075_v40, %v15295_v27  ;;  %v8772_v2 = vor.u32 %v8771_v20, %v8767_v52  ;;  %v4706_v39 = vsel %vm843_vm3, %v19370_v38, %v4409_v22  ;;  %v19392_v40 = vld [vmem:[#allocation75_spill] sm:$0xff]  ;;  %v19393_v20 = vld [vmem:[#allocation72_spill] sm:$0xff] }
 0x35d   : > { %v4704_v51 = vsel %vm843_vm3, %v19384_v61, %v4401_v42  ;;  %v4705_v18 = vsel %vm843_vm3, %v19386_v56, %v19385_v41  ;;  %v19387_v0 = vcombine.high %v19386_v56, %v19386_v56  ;;  %v8073_v1 = vcombine.low %v8065_v26, %v8072_v35 }
 0x35e   : > { %v4708_v24 = vsel %vm843_vm3, %v3276_v12, %v4417_v17  ;;  %v19389_v7 = vrot.slane %v19388_v15, %v15347_v16  ;;  %v12384_v4 = vunpack.c.l.bf16 %v12517_v33  ;;  %v8090_v52 = vcombine.low %v8082_v21, %v8089_v10 }
 0x35f   : > { %v4707_v42 = vsel %vm843_vm3, %v19387_v0, %v4413_v31  ;;  %v17112_v38 = vsel %vm8729_vm1, %v8772_v2, %v8776_v55  ;;  %v12385_v22 = vunpack.c.h.bf16 %v12517_v33  ;;  %v17116_v31 = vrot.slane %v19392_v40, %v15318_v14 }
 0x360   : > { %v4709_v53 = vsel %vm843_vm3, %v19390_v37, %v19389_v7  ;;  %19391 = vst [vmem:[#allocation41_spill] sm:$0xff] %v17112_v38  ;;  %v8545_v12 = vrot.slane %v8073_v1, 7  ;;  %13222 = vmatmul.mubr.bf16.gmra.mxu1 %v17112_v38  ;;  %v7047_v17 = vcombine.high %v12384_v4, %v12384_v4  ;;  %v7054_v26 = vrot.slane %v12384_v4, %v15295_v27 }
 0x361   : > { %v19394_v21 = vcombine.high %v19393_v20, %v19393_v20  ;;  %v8546_v35 = vrot.slane %v8090_v52, 7  ;;  %v7064_v55 = vcombine.high %v12385_v22, %v12385_v22  ;;  %v7071_v61 = vrot.slane %v12385_v22, %v15295_v27 }
 0x362   : > { %v19395_v41 = vcombine.high %v19392_v40, %v19392_v40  ;;  %v8645_v33 = vsel %vm843_vm3, 0.0, %v8545_v12  ;;  %v7061_v45 = vrot.slane %v7047_v17, %v15295_v27  ;;  %v7062_v46 = vcombine.high %v7054_v26, %v7054_v26 }
 0x363   : > { %v5085_v44 = vrot.slane %v19394_v21, %v15318_v14  ;;  %v7673_v10 = vadd.f32 %v7054_v26, %v4702_v50  ;;  %v8547_v2 = vsel %vm843_vm3, %v8545_v12, %v8546_v35  ;;  %v8663_v0 = vsel %vm843_vm3, %v8546_v35, 0.0 }
 0x364   : > { %v5092_v56 = vrot.slane %v19395_v41, %v15318_v14  ;;  %v7078_v1 = vrot.slane %v7064_v55, %v15295_v27  ;;  %v7079_v15 = vcombine.high %v7071_v61, %v7071_v61  ;;  %v17134_v7 = vpack.c.bf16 %v8547_v2, %v8645_v33 }
 0x365   : > { %v17136_v37 = vpack.c.bf16 %v8547_v2, %v8545_v12  ;;  %v17138_v4 = vpack.c.bf16 %v8663_v0, %v8663_v0  ;;  %v7063_v52 = vcombine.high %v7061_v45, %v7061_v45  ;;  %v7674_v40 = vadd.f32 %v7062_v46, %v4703_v9 }
 0x366   : > { %19396 = vst [vmem:[#allocation43_spill] sm:$0xff] %v17134_v7  ;;  %v7080_v22 = vcombine.high %v7078_v1, %v7078_v1  ;;  %v7675_v20 = vadd.f32 %v7061_v45, %v4704_v51  ;;  %v7677_v17 = vadd.f32 %v7071_v61, %v4706_v39  ;;  %v8779_v50 = vshrl.u32 %v17134_v7, 16  ;;  %v19398_v51 = vld [vmem:[#allocation81_spill] sm:$0xff]  ;;  %v13876_v61 = vld [vmem:[#allocation14 + $0xd8] sm:$0xff]  }
 0x367   : > { %19397 = vst [vmem:[#allocation44_spill] sm:$0xff] %v17138_v4  ;;  %13273 = vmatprep.mubr.msk.bf16.mxu0 %vm16870_vm0, %v17136_v37  ;;  %v8781_v26 = vshll.u32 %v17134_v7, 16  ;;  %v8786_v21 = vshll.u32 %v17138_v4, 16  ;;  %v7676_v35 = vadd.f32 %v7063_v52, %v4705_v18  ;;  %v7678_v12 = vadd.f32 %v7079_v15, %v4707_v42  ;;  %13353 = vmatprep.subr.bf16.mxu0 %v13876_v61  ;;  %v19420_v7 = vld [vmem:[#allocation85_spill] sm:$0xff] }
 0x368   : > { %v7679_v55 = vadd.f32 %v7078_v1, %v4708_v24  ;;  %v7680_v41 = vadd.f32 %v7080_v22, %v4709_v53  ;;  %v8091_v33 = vcombine.low %v7673_v10, %v7674_v40  ;;  %v5093_v39 = vcombine.high %v19398_v51, %v19398_v51  ;;  %v19399_v1 = vld [vmem:[#allocation88_spill] sm:$0xff]  ;;  %v19401_v22 = vld [vmem:[#allocation89_spill] sm:$0xff]  ;;  %13354 = vmatpush3.bf16.msra.mxu0 %v13876_v61 }
 0x369   : > { %v8783_v2 = vrot.slane %v8781_v26, 1  ;;  %v8788_v0 = vrot.slane %v8786_v21, 1  ;;  %v8092_v9 = vcombine.low %v7675_v20, %v7676_v35  ;;  %v8108_v46 = vcombine.low %v7677_v17, %v7678_v12 }
 0x36a   : > { %v8099_v45 = vrot.slane %v8091_v33, %v15295_v27  ;;  %v8109_v38 = vcombine.low %v7679_v55, %v7680_v41  ;;  %v5094_v49 = vcombine.high %v17116_v31, %v17116_v31  ;;  %v5095_v42 = vcombine.high %v5085_v44, %v5085_v44  ;;  %v19407_v41 = vld [vmem:[#allocation95_spill] sm:$0xff] }
 0x36b   : > { %v8784_v4 = vor.u32 %v8783_v2, %v8779_v50  ;;  %v8106_v18 = vrot.slane %v8092_v9, %v15295_v27  ;;  %v5096_v24 = vcombine.high %v5092_v56, %v5092_v56  ;;  %v8116_v53 = vrot.slane %v8108_v46, %v15295_v27  ;;  %v19403_v50 = vld [vmem:[#allocation86_spill] sm:$0xff] }
 0x36c   : > { %v8123_v10 = vrot.slane %v8109_v38, %v15295_v27  ;;  %v19400_v15 = vcombine.high %v19399_v1, %v19399_v1  ;;  %v6198_v40 = vrot.slane %v19401_v22, %v15347_v16  ;;  %v19404_v26 = vcombine.high %v19403_v50, %v19403_v50 }
 0x36d   : > { %v17161_v20 = vsel %vm8729_vm1, %v8784_v4, %v8788_v0  ;;  %v8107_v17 = vcombine.low %v8099_v45, %v8106_v18  ;;  %v19405_v38 = vcombine.high %v19401_v22, %v19401_v22  ;;  %v19406_v55 = vrot.slane %v19399_v1, %v15347_v16  ;;  %v12518_v0 = vld [vmem:[%s14581_s13 + $0x28] sm:$0xff]   ;;  %v19412_v22 = vld [vmem:[#allocation80_spill] sm:$0xff] }
 0x36e   : > { %v6190_v52 = vrot.slane %v19400_v15, %v15347_v16  ;;  %19402 = vst [vmem:[#allocation54_spill] sm:$0xff] %v17161_v20  ;;  %v6202_v21 = vrot.slane %v19404_v26, %v15347_v16  ;;  %13225 = vmatprep.mubr.bf16.mxu1 %v17161_v20  ;;  %v8124_v12 = vcombine.low %v8116_v53, %v8123_v10  ;;  %v19409_v53 = vld [vmem:[#allocation91_spill] sm:$0xff]  ;;  %v12388_v1 = vunpack.c.l.bf16 %v12518_v0 }
 0x36f   : > { %v6206_v35 = vrot.slane %v19405_v38, %v15347_v16  ;;  %v6467_v4 = vsel %vm843_vm3, %v5085_v44, %v19406_v55  ;;  %v6468_v33 = vsel %vm843_vm3, %v5093_v39, %v19407_v41  ;;  %v8548_v9 = vrot.slane %v8107_v17, 7  ;;  %v19411_v10 = vld [vmem:[#allocation83_spill] sm:$0xff]  ;;  %v19414_v17 = vld [vmem:[#allocation77_spill] sm:$0xff] }
 0x370   : > { %v6469_v2 = vsel %vm843_vm3, %v5095_v42, %v6190_v52  ;;  %v19408_v51 = vrot.slane %v19403_v50, %v15347_v16  ;;  %v6471_v45 = vsel %vm843_vm3, %v5092_v56, %v6198_v40  ;;  %v6472_v46 = vsel %vm843_vm3, %v5094_v49, %v6202_v21  ;;  %v19415_v49 = vld [vmem:[#allocation84_spill] sm:$0xff]  ;;  %v19416_v40 = vld [vmem:[#allocation73_spill] sm:$0xff] }
 0x371   : > { %v8549_v18 = vrot.slane %v8124_v12, 7  ;;  %v6473_v44 = vsel %vm843_vm3, %v5096_v24, %v6206_v35  ;;  %v19410_v39 = vrot.slane %v19409_v53, %v15347_v16  ;;  %v8646_v15 = vsel %vm843_vm3, 0.0, %v8548_v9 }
 0x372   : > { %v6470_v61 = vsel %vm843_vm3, %v17116_v31, %v19408_v51  ;;  %v12389_v52 = vunpack.c.h.bf16 %v12518_v0  ;;  %v19413_v31 = vrot.slane %v19412_v22, %v15347_v16  ;;  %v19417_v24 = vcombine.high %v19416_v40, %v19416_v40 }
 0x373   : > { %v6474_v42 = vsel %vm843_vm3, %v19411_v10, %v19410_v39  ;;  %v8550_v26 = vsel %vm843_vm3, %v8548_v9, %v8549_v18  ;;  %v7081_v21 = vcombine.high %v12388_v1, %v12388_v1  ;;  %v7088_v38 = vrot.slane %v12388_v1, %v15295_v27 }
 0x374   : > { %v17199_v56 = vsel %vm843_vm3, %v19414_v17, %v19413_v31  ;;  %v17206_v50 = vsel %vm843_vm3, %v19417_v24, %v19415_v49  ;;  %v8664_v35 = vsel %vm843_vm3, %v8549_v18, 0.0  ;;  %v17211_v12 = vpack.c.bf16 %v8550_v26, %v8646_v15 }
 0x375   : > { %v17213_v55 = vpack.c.bf16 %v8550_v26, %v8548_v9  ;;  %v7098_v41 = vcombine.high %v12389_v52, %v12389_v52  ;;  %v7105_v0 = vrot.slane %v12389_v52, %v15295_v27  ;;  %v7095_v51 = vrot.slane %v7081_v21, %v15295_v27  ;;  %v13877_v21 = vld [vmem:[#allocation14 + $0xd0] sm:$0xff]  }
 0x376   : > { %19418 = vst [vmem:[#allocation53_spill] sm:$0xff] %v17211_v12  ;;  %v7096_v53 = vcombine.high %v7088_v38, %v7088_v38  ;;  %v7681_v39 = vadd.f32 %v7088_v38, %v6467_v4  ;;  %v17217_v10 = vpack.c.bf16 %v8664_v35, %v8664_v35  ;;  %v8791_v9 = vshrl.u32 %v17211_v12, 16  ;;  %v13878_v38 = vld [vmem:[#allocation14 + $0x88] sm:$0xff]   ;;  %13355 = vmatprep.subr.bf16.mxu0 %v13877_v21 }
 0x377   : > { %13274 = vmatmul.mubr.msk.bf16.gmra.mxu0 %vm16870_vm0, %v17213_v55  ;;  %v7112_v1 = vrot.slane %v7098_v41, %v15295_v27  ;;  %v7113_v18 = vcombine.high %v7105_v0, %v7105_v0  ;;  %v7685_v15 = vadd.f32 %v7105_v0, %v6471_v45  ;;  %v7097_v22 = vcombine.high %v7095_v51, %v7095_v51 }
 0x378   : > { %19419 = vst [vmem:[#allocation59_spill] sm:$0xff] %v17217_v10  ;;  %v7682_v31 = vadd.f32 %v7096_v53, %v6468_v33  ;;  %v7683_v49 = vadd.f32 %v7095_v51, %v6469_v2  ;;  %v8793_v52 = vshll.u32 %v17211_v12, 16  ;;  %v8798_v26 = vshll.u32 %v17217_v10, 16  ;;  %v19422_v53 = vld [vmem:[#allocation79_spill] sm:$0xff]  ;;  %13309 = vmatprep.subr.bf16.mxu1 %v13878_v38  ;;  %13356 = vmatpush3.bf16.msra.mxu0 %v13877_v21  ;;  %v13879_v10 = vld [vmem:[#allocation14 + $0xc8] sm:$0xff]  }
 0x379   : > { %v7114_v40 = vcombine.high %v7112_v1, %v7112_v1  ;;  %v7686_v4 = vadd.f32 %v7113_v18, %v6472_v46  ;;  %v7687_v24 = vadd.f32 %v7112_v1, %v6473_v44  ;;  %v7684_v35 = vadd.f32 %v7097_v22, %v6470_v61  ;;  %v19424_v44 = vld [vmem:[#allocation74_spill] sm:$0xff]  ;;  %13310 = vmatpush3.bf16.msra.mxu1 %v13878_v38 }
 0x37a   : > { %v8125_v20 = vcombine.low %v7681_v39, %v7682_v31  ;;  %v8795_v41 = vrot.slane %v8793_v52, 1  ;;  %v19421_v45 = vcombine.high %v19414_v17, %v19414_v17  ;;  %v8800_v51 = vrot.slane %v8798_v26, 1  ;;  %v12519_v18 = vld [vmem:[%s14581_s13 + $0x30] sm:$0xff]   ;;  %13357 = vmatprep.subr.bf16.mxu0 %v13879_v10 }
 0x37b   : > { %v7688_v2 = vadd.f32 %v7114_v40, %v6474_v42  ;;  %v8142_v0 = vcombine.low %v7685_v15, %v7686_v4  ;;  %v19423_v46 = vrot.slane %v19422_v53, %v15347_v16  ;;  %v8126_v61 = vcombine.low %v7683_v49, %v7684_v35  ;;  %v19425_v31 = vld [vmem:[#allocation82_spill] sm:$0xff]  ;;  %v19428_v40 = vld [vmem:[#allocation87_spill] sm:$0xff]  ;;  %v19434_v53 = vld [vmem:[#allocation92_spill] sm:$0xff] }
 0x37c   : > { %v4712_v33 = vsel %vm843_vm3, %v19421_v45, %v19420_v7  ;;  %v8133_v39 = vrot.slane %v8125_v20, %v15295_v27  ;;  %v8796_v22 = vor.u32 %v8795_v41, %v8791_v9  ;;  %v19426_v17 = vrot.slane %v19425_v31, %v15347_v16  ;;  %v19427_v7 = vld [vmem:[#allocation78_spill] sm:$0xff]  ;;  %13358 = vmatpush3.bf16.msra.mxu0 %v13879_v10 }
 0x37d   : > { %v4713_v1 = vsel %vm843_vm3, %v19424_v44, %v19423_v46  ;;  %v8143_v15 = vcombine.low %v7687_v24, %v7688_v2  ;;  %v8150_v52 = vrot.slane %v8142_v0, %v15295_v27  ;;  %v19429_v4 = vcombine.high %v19424_v44, %v19424_v44  ;;  %v19430_v49 = vld [vmem:[#allocation90_spill] sm:$0xff]  ;;  %v19433_v2 = vld [vmem:[#allocation93_spill] sm:$0xff] }
 0x37e   : > { %v4714_v42 = vsel %vm843_vm3, %v19427_v7, %v19426_v17  ;;  %v19431_v20 = vcombine.high %v19427_v7, %v19427_v7  ;;  %v8140_v35 = vrot.slane %v8126_v61, %v15295_v27  ;;  %v17256_v21 = vsel %vm8729_vm1, %v8796_v22, %v8800_v51 }
 0x37f   : > { %v4715_v26 = vsel %vm843_vm3, %v19429_v4, %v19428_v40  ;;  %19432 = vst [vmem:[#allocation69_spill] sm:$0xff] %v17256_v21  ;;  %v12392_v24 = vunpack.c.l.bf16 %v12519_v18  ;;  %v12393_v41 = vunpack.c.h.bf16 %v12519_v18  ;;  %v8157_v45 = vrot.slane %v8143_v15, %v15295_v27  ;;  %13226 = vmatmul.mubr.bf16.gmra.mxu1 %v17256_v21  ;;  %v19437_v15 = vld [vmem:[#allocation101_spill] sm:$0xff] }
 0x380   : > { %v4716_v9 = vsel %vm843_vm3, %v19431_v20, %v19430_v49  ;;  %v17262_v0 = vrot.slane %v19433_v2, %v15318_v14  ;;  %v19435_v46 = vcombine.high %v19434_v53, %v19434_v53  ;;  %v19436_v51 = vcombine.high %v19433_v2, %v19433_v2 }
 0x381   : > { %v8141_v18 = vcombine.low %v8133_v39, %v8140_v35  ;;  %v7115_v61 = vcombine.high %v12392_v24, %v12392_v24  ;;  %v7122_v22 = vrot.slane %v12392_v24, %v15295_v27  ;;  %v7132_v31 = vcombine.high %v12393_v41, %v12393_v41 }
 0x382   : > { %v17268_v38 = vrot.slane %v19435_v46, %v15318_v14  ;;  %v17274_v44 = vrot.slane %v19436_v51, %v15318_v14  ;;  %v8158_v17 = vcombine.low %v8150_v52, %v8157_v45  ;;  %v7139_v7 = vrot.slane %v12393_v41, %v15295_v27 }
 0x383   : > { %v5156_v40 = vcombine.high %v19437_v15, %v19437_v15  ;;  %v5157_v4 = vcombine.high %v17262_v0, %v17262_v0  ;;  %v8551_v49 = vrot.slane %v8141_v18, 7  ;;  %v7129_v20 = vrot.slane %v7115_v61, %v15295_v27 }
 0x384   : > { %v7130_v2 = vcombine.high %v7122_v22, %v7122_v22  ;;  %v7146_v53 = vrot.slane %v7132_v31, %v15295_v27  ;;  %v8552_v39 = vrot.slane %v8158_v17, 7  ;;  %v7147_v35 = vcombine.high %v7139_v7, %v7139_v7 }
 0x385   : > { %v7689_v24 = vadd.f32 %v7122_v22, %v17199_v56  ;;  %v7693_v46 = vadd.f32 %v7139_v7, %v4714_v42  ;;  %v8647_v52 = vsel %vm843_vm3, 0.0, %v8551_v49  ;;  %v7131_v41 = vcombine.high %v7129_v20, %v7129_v20  ;;  %v13880_v42 = vld [vmem:[#allocation14 + $0xc0] sm:$0xff]   ;;  %v19439_v7 = vld [vmem:[#allocation71_spill] sm:$0xff] }
 0x386   : > { %v7148_v45 = vcombine.high %v7146_v53, %v7146_v53  ;;  %v7690_v51 = vadd.f32 %v7130_v2, %v17206_v50  ;;  %v8553_v15 = vsel %vm843_vm3, %v8551_v49, %v8552_v39  ;;  %v8665_v18 = vsel %vm843_vm3, %v8552_v39, 0.0  ;;  %13359 = vmatprep.subr.bf16.mxu0 %v13880_v42 }
 0x387   : > { %v7691_v21 = vadd.f32 %v7129_v20, %v4712_v33  ;;  %v7694_v61 = vadd.f32 %v7147_v35, %v4715_v26  ;;  %v17289_v12 = vpack.c.bf16 %v8553_v15, %v8647_v52  ;;  %v17291_v31 = vpack.c.bf16 %v8553_v15, %v8551_v49  ;;  %13360 = vmatpush3.bf16.msra.mxu0 %v13880_v42 }
 0x388   : > { %v17293_v17 = vpack.c.bf16 %v8665_v18, %v8665_v18  ;;  %v7692_v56 = vadd.f32 %v7131_v41, %v4713_v1  ;;  %v7695_v22 = vadd.f32 %v7146_v53, %v4716_v9  ;;  %v7696_v34 = vadd.f32 %v7148_v45, %v19439_v7 }
 0x389   : > { %v8159_v62 = vcombine.low %v7689_v24, %v7690_v51  ;;  %v8176_v50 = vcombine.low %v7693_v46, %v7694_v61  ;;  %13277 = vmatprep.mubr.msk.bf16.mxu0 %vm16870_vm0, %v17291_v31  ;;  %v8803_v33 = vshrl.u32 %v17289_v12, 16  ;;  %v8805_v26 = vshll.u32 %v17289_v12, 16 }
 0x38a   : > { %19438 = vst [vmem:[#allocation70_spill] sm:$0xff] %v17293_v17  ;;  %v8810_v49 = vshll.u32 %v17293_v17, 16  ;;  %v8160_v20 = vcombine.low %v7691_v21, %v7692_v56  ;;  %v8177_v9 = vcombine.low %v7695_v22, %v7696_v34  ;;  %v5158_v53 = vcombine.high %v17268_v38, %v17268_v38  ;;  %v13881_v22 = vld [vmem:[#allocation14 + $0x80] sm:$0xff]  }
 0x38b   : > { %v8167_v1 = vrot.slane %v8159_v62, %v15295_v27  ;;  %v8184_v2 = vrot.slane %v8176_v50, %v15295_v27  ;;  %v8807_v39 = vrot.slane %v8805_v26, 1  ;;  %v5159_v46 = vcombine.high %v17274_v44, %v17274_v44  ;;  %v19444_v50 = vld [vmem:[#allocation114_spill] sm:$0xff]  ;;  %13311 = vmatprep.subr.bf16.mxu1 %v13881_v22 }
 0x38c   : > { %v8812_v35 = vrot.slane %v8810_v49, 1  ;;  %v8174_v24 = vrot.slane %v8160_v20, %v15295_v27  ;;  %v8191_v21 = vrot.slane %v8177_v9, %v15295_v27  ;;  %v19440_v62 = vcombine.high %v16216_v28, %v16216_v28  ;;  %v12520_v20 = vld [vmem:[%s14581_s13 + $0x38] sm:$0xff]   ;;  %13312 = vmatpush3.bf16.msra.mxu1 %v13881_v22 }
 0x38d   : > { %v6230_v10 = vrot.slane %v16231_v6, %v15347_v16  ;;  %v19441_v52 = vcombine.high %v16213_v36, %v16213_v36  ;;  %v8808_v45 = vor.u32 %v8807_v39, %v8803_v33  ;;  %v19442_v15 = vcombine.high %v16231_v6, %v16231_v6 }
 0x38e   : > { %v6222_v34 = vrot.slane %v19440_v62, %v15347_v16  ;;  %v8175_v51 = vcombine.low %v8167_v1, %v8174_v24  ;;  %v19443_v61 = vrot.slane %v16216_v28, %v15347_v16  ;;  %v8192_v7 = vcombine.low %v8184_v2, %v8191_v21  ;;  %v19452_v21 = vld [vmem:[#allocation98_spill] sm:$0xff] }
 0x38f   : > { %v6234_v41 = vrot.slane %v19441_v52, %v15347_v16  ;;  %v6238_v18 = vrot.slane %v19442_v15, %v15347_v16  ;;  %v6476_v26 = vsel %vm843_vm3, %v5156_v40, %v19444_v50  ;;  %v19445_v49 = vrot.slane %v16213_v36, %v15347_v16  ;;  %v19447_v36 = vld [vmem:[#allocation106_spill] sm:$0xff] }
 0x390   : > { %v6475_v56 = vsel %vm843_vm3, %v17268_v38, %v19443_v61  ;;  %v6477_v33 = vsel %vm843_vm3, %v5158_v53, %v6222_v34  ;;  %v17339_v28 = vsel %vm8729_vm1, %v8808_v45, %v8812_v35  ;;  %v8554_v1 = vrot.slane %v8175_v51, 7  ;;  %v19453_v34 = vld [vmem:[#allocation104_spill] sm:$0xff] }
 0x391   : > { %v6478_v6 = vsel %vm843_vm3, %v17262_v0, %v19445_v49  ;;  %19446 = vst [vmem:[#allocation68_spill] sm:$0xff] %v17339_v28  ;;  %v6479_v38 = vsel %vm843_vm3, %v17274_v44, %v6230_v10  ;;  %v6480_v42 = vsel %vm843_vm3, %v5157_v4, %v6234_v41  ;;  %13229 = vmatprep.mubr.bf16.mxu1 %v17339_v28  ;;  %v8555_v40 = vrot.slane %v8192_v7, 7  ;;  %v19449_v0 = vld [vmem:[#allocation109_spill] sm:$0xff]  ;;  %v19450_v44 = vld [vmem:[#allocation100_spill] sm:$0xff] }
 0x392   : > { %v6481_v9 = vsel %vm843_vm3, %v5159_v46, %v6238_v18  ;;  %v19448_v2 = vrot.slane %v19447_v36, %v15347_v16  ;;  %v12396_v39 = vunpack.c.l.bf16 %v12520_v20  ;;  %v12397_v35 = vunpack.c.h.bf16 %v12520_v20  ;;  %v19454_v46 = vld [vmem:[#allocation96_spill] sm:$0xff] }
 0x393   : > { %v8648_v24 = vsel %vm843_vm3, 0.0, %v8554_v1  ;;  %v19451_v4 = vrot.slane %v19450_v44, %v15347_v16  ;;  %v19455_v10 = vcombine.high %v19454_v46, %v19454_v46  ;;  %v8556_v41 = vsel %vm843_vm3, %v8554_v1, %v8555_v40 }
 0x394   : > { %v6482_v53 = vsel %vm843_vm3, %v19449_v0, %v19448_v2  ;;  %v7149_v45 = vcombine.high %v12396_v39, %v12396_v39  ;;  %v7156_v51 = vrot.slane %v12396_v39, %v15295_v27  ;;  %v8666_v15 = vsel %vm843_vm3, %v8555_v40, 0.0  ;;  %v13882_v39 = vld [vmem:[#allocation14 + $0x138] sm:$0xff]  }
 0x395   : > { %v17357_v62 = vsel %vm843_vm3, %v19452_v21, %v19451_v4  ;;  %v17364_v52 = vsel %vm843_vm3, %v19455_v10, %v19453_v34  ;;  %v17369_v18 = vpack.c.bf16 %v8556_v41, %v8554_v1  ;;  %v7166_v61 = vcombine.high %v12397_v35, %v12397_v35  ;;  %13393 = vmatprep.subr.bf16.mxu1 %v13882_v39  ;;  %v19463_v39 = vld [vmem:[#allocation103_spill] sm:$0xff] }
 0x396   : > { %v7173_v22 = vrot.slane %v12397_v35, %v15295_v27  ;;  %v17372_v7 = vpack.c.bf16 %v8556_v41, %v8648_v24  ;;  %v7163_v50 = vrot.slane %v7149_v45, %v15295_v27  ;;  %v7164_v49 = vcombine.high %v7156_v51, %v7156_v51 }
 0x397   : > { %v7697_v20 = vadd.f32 %v7156_v51, %v6475_v56  ;;  %v17375_v36 = vpack.c.bf16 %v8666_v15, %v8666_v15  ;;  %13278 = vmatmul.mubr.msk.bf16.gmra.mxu0 %vm16870_vm0, %v17369_v18  ;;  %v7180_v2 = vrot.slane %v7166_v61, %v15295_v27  ;;  %v19458_v15 = vld [vmem:[#allocation105_spill] sm:$0xff] }
 0x398   : > { %19456 = vst [vmem:[#allocation76_spill] sm:$0xff] %v17372_v7  ;;  %v7181_v40 = vcombine.high %v7173_v22, %v7173_v22  ;;  %v7701_v1 = vadd.f32 %v7173_v22, %v6479_v38  ;;  %v8815_v0 = vshrl.u32 %v17372_v7, 16  ;;  %v7165_v35 = vcombine.high %v7163_v50, %v7163_v50 }
 0x399   : > { %19457 = vst [vmem:[#allocation66_spill] sm:$0xff] %v17375_v36  ;;  %v7698_v24 = vadd.f32 %v7164_v49, %v6476_v26  ;;  %v7699_v44 = vadd.f32 %v7163_v50, %v6477_v33  ;;  %v8817_v4 = vshll.u32 %v17372_v7, 16  ;;  %v7182_v56 = vcombine.high %v7180_v2, %v7180_v2  ;;  %v19460_v50 = vld [vmem:[#allocation99_spill] sm:$0xff] }
 0x39a   : > { %v7702_v34 = vadd.f32 %v7181_v40, %v6480_v42  ;;  %v7703_v46 = vadd.f32 %v7180_v2, %v6481_v9  ;;  %v8822_v10 = vshll.u32 %v17375_v36, 16  ;;  %v7700_v41 = vadd.f32 %v7165_v35, %v6478_v6  ;;  %v19462_v42 = vld [vmem:[#allocation97_spill] sm:$0xff]  ;;  %v12521_v2 = vld [vmem:[%s14581_s13 + $0x40] sm:$0xff]  }
 0x39b   : > { %v8193_v45 = vcombine.low %v7697_v20, %v7698_v24  ;;  %v8819_v51 = vrot.slane %v8817_v4, 1  ;;  %v19459_v38 = vcombine.high %v19452_v21, %v19452_v21  ;;  %v7704_v26 = vadd.f32 %v7182_v56, %v6482_v53  ;;  %v19465_v21 = vld [vmem:[#allocation102_spill] sm:$0xff]  ;;  %v19466_v4 = vld [vmem:[#allocation107_spill] sm:$0xff] }
 0x39c   : > { %v8210_v22 = vcombine.low %v7701_v1, %v7702_v34  ;;  %v8824_v33 = vrot.slane %v8822_v10, 1  ;;  %v19461_v49 = vrot.slane %v19460_v50, %v15347_v16  ;;  %v8194_v40 = vcombine.low %v7699_v44, %v7700_v41  ;;  %v19468_v10 = vld [vmem:[#allocation108_spill] sm:$0xff] }
 0x39d   : > { %v4720_v61 = vsel %vm843_vm3, %v19459_v38, %v19458_v15  ;;  %v8201_v6 = vrot.slane %v8193_v45, %v15295_v27  ;;  %v8820_v20 = vor.u32 %v8819_v51, %v8815_v0  ;;  %v19464_v35 = vrot.slane %v19463_v39, %v15347_v16  ;;  %v19471_v38 = vld [vmem:[#allocation120_spill] sm:$0xff] }
 0x39e   : > { %v4721_v9 = vsel %vm843_vm3, %v19462_v42, %v19461_v49  ;;  %v8211_v53 = vcombine.low %v7703_v46, %v7704_v26  ;;  %v8218_v1 = vrot.slane %v8210_v22, %v15295_v27  ;;  %v19467_v56 = vcombine.high %v19462_v42, %v19462_v42  ;;  %v19472_v22 = vld [vmem:[#allocation118_spill] sm:$0xff] }
 0x39f   : > { %v4722_v24 = vsel %vm843_vm3, %v19465_v21, %v19464_v35  ;;  %v19469_v44 = vcombine.high %v19465_v21, %v19465_v21  ;;  %v8208_v41 = vrot.slane %v8194_v40, %v15295_v27  ;;  %v17414_v45 = vsel %vm8729_vm1, %v8820_v20, %v8824_v33 }
 0x3a0   : > { %v4723_v34 = vsel %vm843_vm3, %v19467_v56, %v19466_v4  ;;  %19470 = vst [vmem:[#allocation67_spill] sm:$0xff] %v17414_v45  ;;  %v12400_v46 = vunpack.c.l.bf16 %v12521_v2  ;;  %v12401_v51 = vunpack.c.h.bf16 %v12521_v2  ;;  %v8225_v15 = vrot.slane %v8211_v53, %v15295_v27  ;;  %13230 = vmatmul.mubr.bf16.gmra.mxu1 %v17414_v45  ;;  %v19475_v53 = vld [vmem:[#allocation121_spill] sm:$0xff] }
 0x3a1   : > { %v4724_v0 = vsel %vm843_vm3, %v19469_v44, %v19468_v10  ;;  %v17420_v26 = vrot.slane %v19471_v38, %v15318_v14  ;;  %v19473_v50 = vcombine.high %v19472_v22, %v19472_v22  ;;  %v19474_v33 = vcombine.high %v19471_v38, %v19471_v38 }
 0x3a2   : > { %v8209_v2 = vcombine.low %v8201_v6, %v8208_v41  ;;  %v7183_v40 = vcombine.high %v12400_v46, %v12400_v46  ;;  %v7190_v20 = vrot.slane %v12400_v46, %v15295_v27  ;;  %v7200_v39 = vcombine.high %v12401_v51, %v12401_v51 }
 0x3a3   : > { %v5211_v49 = vrot.slane %v19473_v50, %v15318_v14  ;;  %v17430_v42 = vrot.slane %v19474_v33, %v15318_v14  ;;  %v8226_v35 = vcombine.low %v8218_v1, %v8225_v15  ;;  %v7207_v21 = vrot.slane %v12401_v51, %v15295_v27 }
 0x3a4   : > { %v5219_v4 = vcombine.high %v19475_v53, %v19475_v53  ;;  %v5220_v56 = vcombine.high %v17420_v26, %v17420_v26  ;;  %v8557_v10 = vrot.slane %v8209_v2, 7  ;;  %v7197_v44 = vrot.slane %v7183_v40, %v15295_v27 }
 0x3a5   : > { %v7198_v38 = vcombine.high %v7190_v20, %v7190_v20  ;;  %v7214_v22 = vrot.slane %v7200_v39, %v15295_v27  ;;  %v8558_v6 = vrot.slane %v8226_v35, 7  ;;  %v7215_v41 = vcombine.high %v7207_v21, %v7207_v21 }
 0x3a6   : > { %v7705_v46 = vadd.f32 %v7190_v20, %v17357_v62  ;;  %v7709_v50 = vadd.f32 %v7207_v21, %v4722_v24  ;;  %v8649_v1 = vsel %vm843_vm3, 0.0, %v8557_v10  ;;  %v7199_v51 = vcombine.high %v7197_v44, %v7197_v44  ;;  %v19479_v20 = vld [vmem:[#allocation94_spill] sm:$0xff] }
 0x3a7   : > { %v7216_v15 = vcombine.high %v7214_v22, %v7214_v22  ;;  %v7706_v33 = vadd.f32 %v7198_v38, %v17364_v52  ;;  %v8559_v53 = vsel %vm843_vm3, %v8557_v10, %v8558_v6  ;;  %v8667_v2 = vsel %vm843_vm3, %v8558_v6, 0.0 }
 0x3a8   : > { %v7707_v45 = vadd.f32 %v7197_v44, %v4720_v61  ;;  %v7710_v40 = vadd.f32 %v7215_v41, %v4723_v34  ;;  %v17445_v28 = vpack.c.bf16 %v8559_v53, %v8649_v1  ;;  %v17447_v39 = vpack.c.bf16 %v8559_v53, %v8557_v10  ;;  %v19480_v1 = vld [vmem:[#allocation128_spill] sm:$0xff] }
 0x3a9   : > { %v17449_v35 = vpack.c.bf16 %v8667_v2, %v8667_v2  ;;  %v7708_v62 = vadd.f32 %v7199_v51, %v4721_v9  ;;  %v7711_v24 = vadd.f32 %v7214_v22, %v4724_v0  ;;  %v7712_v21 = vadd.f32 %v7216_v15, %v19479_v20 }
 0x3aa   : > { %19476 = vst [vmem:[#allocation62_spill] sm:$0xff] %v17445_v28  ;;  %19477 = vst [vmem:[#allocation63_spill] sm:$0xff] %v17447_v39  ;;  %v8227_v36 = vcombine.low %v7705_v46, %v7706_v33  ;;  %v8244_v7 = vcombine.low %v7709_v50, %v7710_v40  ;;  %13281 = vmatprep.mubr.msk.bf16.mxu0 %vm16870_vm0, %v17447_v39  ;;  %v8827_v52 = vshrl.u32 %v17445_v28, 16  ;;  %v8829_v61 = vshll.u32 %v17445_v28, 16 }
 0x3ab   : > { %19478 = vst [vmem:[#allocation64_spill] sm:$0xff] %v17449_v35  ;;  %v8834_v34 = vshll.u32 %v17449_v35, 16  ;;  %v8228_v10 = vcombine.low %v7707_v45, %v7708_v62  ;;  %v8245_v38 = vcombine.low %v7711_v24, %v7712_v21  ;;  %v5221_v0 = vcombine.high %v5211_v49, %v5211_v49 }
 0x3ac   : > { %v8235_v44 = vrot.slane %v8227_v36, %v15295_v27  ;;  %v8252_v9 = vrot.slane %v8244_v7, %v15295_v27  ;;  %v8831_v22 = vrot.slane %v8829_v61, 1  ;;  %v5222_v46 = vcombine.high %v17430_v42, %v17430_v42  ;;  %v19482_v36 = vld [vmem:[#allocation130_spill] sm:$0xff]  ;;  %v19483_v7 = vld [vmem:[#allocation127_spill] sm:$0xff] }
 0x3ad   : > { %v8836_v6 = vrot.slane %v8834_v34, 1  ;;  %v8242_v41 = vrot.slane %v8228_v10, %v15295_v27  ;;  %v8259_v50 = vrot.slane %v8245_v38, %v15295_v27  ;;  %v19481_v45 = vcombine.high %v19480_v1, %v19480_v1  ;;  %v19487_v34 = vld [vmem:[#allocation131_spill] sm:$0xff] }
 0x3ae   : > { %v6262_v15 = vrot.slane %v19482_v36, %v15347_v16  ;;  %v19484_v33 = vcombine.high %v19483_v7, %v19483_v7  ;;  %v8832_v2 = vor.u32 %v8831_v22, %v8827_v52  ;;  %v19485_v62 = vcombine.high %v19482_v36, %v19482_v36  ;;  %v12522_v22 = vld [vmem:[%s14581_s13 + $0x48] sm:$0xff]  }
 0x3af   : > { %v6254_v51 = vrot.slane %v19481_v45, %v15347_v16  ;;  %v8243_v40 = vcombine.low %v8235_v44, %v8242_v41  ;;  %v19486_v20 = vrot.slane %v19480_v1, %v15347_v16  ;;  %v8260_v61 = vcombine.low %v8252_v9, %v8259_v50  ;;  %v19490_v50 = vld [vmem:[#allocation129_spill] sm:$0xff] }
 0x3b0   : > { %v6266_v53 = vrot.slane %v19484_v33, %v15347_v16  ;;  %v6270_v24 = vrot.slane %v19485_v62, %v15347_v16  ;;  %v6484_v10 = vsel %vm843_vm3, %v5219_v4, %v19487_v34  ;;  %v19488_v52 = vrot.slane %v19483_v7, %v15347_v16  ;;  %v19493_v33 = vld [vmem:[#allocation117_spill] sm:$0xff]  ;;  %v17519_v62 = vld [vmem:[#allocation14 + $0x178] sm:$0xff]  }
 0x3b1   : > { %v6483_v21 = vsel %vm843_vm3, %v5211_v49, %v19486_v20  ;;  %v6485_v38 = vsel %vm843_vm3, %v5221_v0, %v6254_v51  ;;  %v17492_v41 = vsel %vm8729_vm1, %v8832_v2, %v8836_v6  ;;  %v8560_v45 = vrot.slane %v8243_v40, 7  ;;  %v19492_v51 = vld [vmem:[#allocation122_spill] sm:$0xff]  ;;  %v19497_v2 = vld [vmem:[#allocation111_spill] sm:$0xff]  ;;  %13441 = vmatprep.subr.bf16.mxu0 %v17519_v62 }
 0x3b2   : > { %v6486_v44 = vsel %vm843_vm3, %v17420_v26, %v19488_v52  ;;  %19489 = vst [vmem:[#allocation61_spill] sm:$0xff] %v17492_v41  ;;  %v6487_v49 = vsel %vm843_vm3, %v17430_v42, %v6262_v15  ;;  %v6488_v9 = vsel %vm843_vm3, %v5220_v56, %v6266_v53  ;;  %13233 = vmatprep.mubr.bf16.mxu1 %v17492_v41  ;;  %v8561_v4 = vrot.slane %v8260_v61, 7  ;;  %v19495_v15 = vld [vmem:[#allocation113_spill] sm:$0xff]  ;;  %v19496_v53 = vld [vmem:[#allocation123_spill] sm:$0xff] }
 0x3b3   : > { %v6489_v0 = vsel %vm843_vm3, %v5222_v46, %v6270_v24  ;;  %v19491_v1 = vrot.slane %v19490_v50, %v15347_v16  ;;  %v12404_v36 = vunpack.c.l.bf16 %v12522_v22  ;;  %v12405_v6 = vunpack.c.h.bf16 %v12522_v22 }
 0x3b4   : > { %v8650_v7 = vsel %vm843_vm3, 0.0, %v8560_v45  ;;  %v19494_v42 = vrot.slane %v19493_v33, %v15347_v16  ;;  %v19498_v46 = vcombine.high %v19497_v2, %v19497_v2  ;;  %v8562_v24 = vsel %vm843_vm3, %v8560_v45, %v8561_v4 }
 0x3b5   : > { %v6490_v26 = vsel %vm843_vm3, %v19492_v51, %v19491_v1  ;;  %v7217_v20 = vcombine.high %v12404_v36, %v12404_v36  ;;  %v7224_v61 = vrot.slane %v12404_v36, %v15295_v27  ;;  %v8668_v34 = vsel %vm843_vm3, %v8561_v4, 0.0 }
 0x3b6   : > { %v17510_v56 = vsel %vm843_vm3, %v19495_v15, %v19494_v42  ;;  %v17517_v40 = vsel %vm843_vm3, %v19498_v46, %v19496_v53  ;;  %v17524_v52 = vpack.c.bf16 %v8562_v24, %v8560_v45  ;;  %v7234_v22 = vcombine.high %v12405_v6, %v12405_v6 }
 0x3b7   : > { %v7241_v50 = vrot.slane %v12405_v6, %v15295_v27  ;;  %v17527_v1 = vpack.c.bf16 %v8562_v24, %v8650_v7  ;;  %v7231_v51 = vrot.slane %v7217_v20, %v15295_v27  ;;  %v7232_v33 = vcombine.high %v7224_v61, %v7224_v61 }
 0x3b8   : > { %19499 = vst [vmem:[#allocation57_spill] sm:$0xff] %v17524_v52  ;;  %v7713_v42 = vadd.f32 %v7224_v61, %v6483_v21  ;;  %v17531_v53 = vpack.c.bf16 %v8668_v34, %v8668_v34  ;;  %13282 = vmatmul.mubr.msk.bf16.gmra.mxu0 %vm16870_vm0, %v17524_v52  ;;  %v7248_v45 = vrot.slane %v7234_v22, %v15295_v27  ;;  %v19502_v52 = vld [vmem:[#allocation125_spill] sm:$0xff] }
 0x3b9   : > { %19500 = vst [vmem:[#allocation65_spill] sm:$0xff] %v17527_v1  ;;  %v7249_v4 = vcombine.high %v7241_v50, %v7241_v50  ;;  %v7717_v36 = vadd.f32 %v7241_v50, %v6487_v49  ;;  %v8839_v6 = vshrl.u32 %v17527_v1, 16  ;;  %v7233_v7 = vcombine.high %v7231_v51, %v7231_v51 }
 0x3ba   : > { %19501 = vst [vmem:[#allocation55_spill] sm:$0xff] %v17531_v53  ;;  %v7714_v2 = vadd.f32 %v7232_v33, %v6484_v10  ;;  %v7715_v46 = vadd.f32 %v7231_v51, %v6485_v38  ;;  %v8841_v24 = vshll.u32 %v17527_v1, 16  ;;  %v7250_v20 = vcombine.high %v7248_v45, %v7248_v45  ;;  %v19504_v38 = vld [vmem:[#allocation116_spill] sm:$0xff] }
 0x3bb   : > { %v7718_v21 = vadd.f32 %v7249_v4, %v6488_v9  ;;  %v7719_v61 = vadd.f32 %v7248_v45, %v6489_v0  ;;  %v8846_v34 = vshll.u32 %v17531_v53, 16  ;;  %v7716_v41 = vadd.f32 %v7233_v7, %v6486_v44  ;;  %v19506_v33 = vld [vmem:[#allocation112_spill] sm:$0xff]  ;;  %v12523_v0 = vld [vmem:[%s14581_s13 + $0x50] sm:$0xff]   ;;  %v19507_v4 = vld [vmem:[#allocation119_spill] sm:$0xff] }
 0x3bc   : > { %v8261_v35 = vcombine.low %v7713_v42, %v7714_v2  ;;  %v8843_v28 = vrot.slane %v8841_v24, 1  ;;  %v19503_v49 = vcombine.high %v19495_v15, %v19495_v15  ;;  %v7720_v50 = vadd.f32 %v7250_v20, %v6490_v26  ;;  %v19509_v15 = vld [vmem:[#allocation115_spill] sm:$0xff]  ;;  %v19510_v2 = vld [vmem:[#allocation124_spill] sm:$0xff] }
 0x3bd   : > { %v8278_v39 = vcombine.low %v7717_v36, %v7718_v21  ;;  %v8848_v10 = vrot.slane %v8846_v34, 1  ;;  %v19505_v51 = vrot.slane %v19504_v38, %v15347_v16  ;;  %v8262_v45 = vcombine.low %v7715_v46, %v7716_v41  ;;  %v19512_v21 = vld [vmem:[#allocation126_spill] sm:$0xff]  ;;  %v19515_v34 = vld [vmem:[#allocation133_spill] sm:$0xff] }
 0x3be   : > { %v4728_v22 = vsel %vm843_vm3, %v19503_v49, %v19502_v52  ;;  %v8269_v44 = vrot.slane %v8261_v35, %v15295_v27  ;;  %v8844_v42 = vor.u32 %v8843_v28, %v8839_v6  ;;  %v19508_v7 = vrot.slane %v19507_v4, %v15347_v16 }
 0x3bf   : > { %v4729_v9 = vsel %vm843_vm3, %v19506_v33, %v19505_v51  ;;  %v8279_v26 = vcombine.low %v7719_v61, %v7720_v50  ;;  %v8286_v36 = vrot.slane %v8278_v39, %v15295_v27  ;;  %v19511_v24 = vcombine.high %v19506_v33, %v19506_v33  ;;  %v19516_v50 = vld [vmem:[#allocation132_spill] sm:$0xff] }
 0x3c0   : > { %v4730_v52 = vsel %vm843_vm3, %v19509_v15, %v19508_v7  ;;  %v19513_v35 = vcombine.high %v19509_v15, %v19509_v15  ;;  %v8276_v41 = vrot.slane %v8262_v45, %v15295_v27  ;;  %v17570_v6 = vsel %vm8729_vm1, %v8844_v42, %v8848_v10 }
 0x3c1   : > { %v4731_v20 = vsel %vm843_vm3, %v19511_v24, %v19510_v2  ;;  %19514 = vst [vmem:[#allocation56_spill] sm:$0xff] %v17570_v6  ;;  %v12408_v46 = vunpack.c.l.bf16 %v12523_v0  ;;  %v12409_v61 = vunpack.c.h.bf16 %v12523_v0  ;;  %v8293_v39 = vrot.slane %v8279_v26, %v15295_v27  ;;  %13234 = vmatmul.mubr.bf16.gmra.mxu1 %v17570_v6  ;;  %v19519_v26 = vld [vmem:[#allocation141_spill] sm:$0xff] }
 0x3c2   : > { %v4732_v28 = vsel %vm843_vm3, %v19513_v35, %v19512_v21  ;;  %v17576_v49 = vrot.slane %v19515_v34, %v15318_v14  ;;  %v19517_v38 = vcombine.high %v19516_v50, %v19516_v50  ;;  %v19518_v10 = vcombine.high %v19515_v34, %v19515_v34 }
 0x3c3   : > { %v8277_v0 = vcombine.low %v8269_v44, %v8276_v41  ;;  %v7251_v45 = vcombine.high %v12408_v46, %v12408_v46  ;;  %v7258_v42 = vrot.slane %v12408_v46, %v15295_v27  ;;  %v7268_v4 = vcombine.high %v12409_v61, %v12409_v61 }
 0x3c4   : > { %v5274_v51 = vrot.slane %v19517_v38, %v15318_v14  ;;  %v17586_v33 = vrot.slane %v19518_v10, %v15318_v14  ;;  %v8294_v7 = vcombine.low %v8286_v36, %v8293_v39  ;;  %v7275_v15 = vrot.slane %v12409_v61, %v15295_v27 }
 0x3c5   : > { %v5282_v2 = vcombine.high %v19519_v26, %v19519_v26  ;;  %v5283_v24 = vcombine.high %v17576_v49, %v17576_v49  ;;  %v8563_v21 = vrot.slane %v8277_v0, 7  ;;  %v7265_v35 = vrot.slane %v7251_v45, %v15295_v27 }
 0x3c6   : > { %v7266_v34 = vcombine.high %v7258_v42, %v7258_v42  ;;  %v7282_v50 = vrot.slane %v7268_v4, %v15295_v27  ;;  %v8564_v44 = vrot.slane %v8294_v7, 7  ;;  %v7283_v41 = vcombine.high %v7275_v15, %v7275_v15 }
 0x3c7   : > { %v7721_v46 = vadd.f32 %v7258_v42, %v17510_v56  ;;  %v7725_v38 = vadd.f32 %v7275_v15, %v4730_v52  ;;  %v8651_v36 = vsel %vm843_vm3, 0.0, %v8563_v21  ;;  %v7267_v61 = vcombine.high %v7265_v35, %v7265_v35  ;;  %v19520_v42 = vld [vmem:[#allocation110_spill] sm:$0xff] }
 0x3c8   : > { %v7284_v39 = vcombine.high %v7282_v50, %v7282_v50  ;;  %v7722_v10 = vadd.f32 %v7266_v34, %v17517_v40  ;;  %v8565_v26 = vsel %vm843_vm3, %v8563_v21, %v8564_v44  ;;  %v8669_v0 = vsel %vm843_vm3, %v8564_v44, 0.0 }
 0x3c9   : > { %v7723_v6 = vadd.f32 %v7265_v35, %v4728_v22  ;;  %v7726_v45 = vadd.f32 %v7283_v41, %v4731_v20  ;;  %v17601_v53 = vpack.c.bf16 %v8565_v26, %v8651_v36  ;;  %v17603_v4 = vpack.c.bf16 %v8565_v26, %v8563_v21 }
 0x3ca   : > { %v17605_v7 = vpack.c.bf16 %v8669_v0, %v8669_v0  ;;  %v7724_v56 = vadd.f32 %v7267_v61, %v4729_v9  ;;  %v7727_v52 = vadd.f32 %v7282_v50, %v4732_v28  ;;  %v7728_v15 = vadd.f32 %v7284_v39, %v19520_v42 }
 0x3cb   : > { %v8295_v1 = vcombine.low %v7721_v46, %v7722_v10  ;;  %v8312_v17 = vcombine.low %v7725_v38, %v7726_v45  ;;  %13285 = vmatprep.mubr.msk.bf16.mxu0 %vm16870_vm0, %v17603_v4  ;;  %v8851_v40 = vshrl.u32 %v17601_v53, 16  ;;  %v8853_v22 = vshll.u32 %v17601_v53, 16 }
 0x3cc   : > { %v8858_v20 = vshll.u32 %v17605_v7, 16  ;;  %v8296_v21 = vcombine.low %v7723_v6, %v7724_v56  ;;  %v8313_v34 = vcombine.low %v7727_v52, %v7728_v15  ;;  %v5284_v28 = vcombine.high %v5274_v51, %v5274_v51 }
 0x3cd   : > { %v8303_v35 = vrot.slane %v8295_v1, %v15295_v27  ;;  %v8320_v9 = vrot.slane %v8312_v17, %v15295_v27  ;;  %v8855_v50 = vrot.slane %v8853_v22, 1  ;;  %v5285_v46 = vcombine.high %v17586_v33, %v17586_v33 }
 0x3ce   : > { %v8860_v44 = vrot.slane %v8858_v20, 1  ;;  %v8310_v41 = vrot.slane %v8296_v21, %v15295_v27  ;;  %v8327_v38 = vrot.slane %v8313_v34, %v15295_v27  ;;  %v19521_v6 = vcombine.high %v16592_v29, %v16592_v29  ;;  %v12524_v20 = vld [vmem:[%s14581_s13 + $0x58] sm:$0xff]  }
 0x3cf   : > { %v6294_v1 = vrot.slane %v16607_v5, %v15347_v16  ;;  %v19522_v17 = vcombine.high %v16589_v3, %v16589_v3  ;;  %v8856_v39 = vor.u32 %v8855_v50, %v8851_v40  ;;  %v19523_v26 = vcombine.high %v16607_v5, %v16607_v5  ;;  %v19529_v50 = vld [vmem:[#allocation137_spill] sm:$0xff] }
 0x3d0   : > { %v6286_v36 = vrot.slane %v19521_v6, %v15347_v16  ;;  %v8311_v10 = vcombine.low %v8303_v35, %v8310_v41  ;;  %v19524_v45 = vrot.slane %v16592_v29, %v15347_v16  ;;  %v8328_v52 = vcombine.low %v8320_v9, %v8327_v38  ;;  %v19531_v41 = vld [vmem:[#allocation135_spill] sm:$0xff] }
 0x3d1   : > { %v6298_v61 = vrot.slane %v19522_v17, %v15347_v16  ;;  %v6302_v0 = vrot.slane %v19523_v26, %v15347_v16  ;;  %v6492_v42 = vsel %vm843_vm3, %v5282_v2, %v16622_v11  ;;  %v19525_v40 = vrot.slane %v16589_v3, %v15347_v16 }
 0x3d2   : > { %v6491_v56 = vsel %vm843_vm3, %v5274_v51, %v19524_v45  ;;  %v6493_v15 = vsel %vm843_vm3, %v5284_v28, %v6286_v36  ;;  %v17648_v5 = vsel %vm8729_vm1, %v8856_v39, %v8860_v44  ;;  %v8566_v21 = vrot.slane %v8311_v10, 7  ;;  %v19527_v28 = vld [vmem:[#allocation140_spill] sm:$0xff]  ;;  %v19530_v44 = vld [vmem:[#allocation142_spill] sm:$0xff] }
 0x3d3   : > { %v6494_v22 = vsel %vm843_vm3, %v17576_v49, %v19525_v40  ;;  %v6495_v29 = vsel %vm843_vm3, %v17586_v33, %v6294_v1  ;;  %v6496_v51 = vsel %vm843_vm3, %v5283_v24, %v6298_v61  ;;  %13237 = vmatprep.mubr.bf16.mxu1 %v17648_v5  ;;  %v8567_v11 = vrot.slane %v8328_v52, 7 }
 0x3d4   : > { %v6497_v2 = vsel %vm843_vm3, %v5285_v46, %v6302_v0  ;;  %v19526_v3 = vrot.slane %v16574_v58, %v15347_v16  ;;  %v12412_v35 = vunpack.c.l.bf16 %v12524_v20  ;;  %v12413_v34 = vunpack.c.h.bf16 %v12524_v20 }
 0x3d5   : > { %v8652_v9 = vsel %vm843_vm3, 0.0, %v8566_v21  ;;  %v19528_v33 = vrot.slane %v19527_v28, %v15347_v16  ;;  %v19532_v46 = vcombine.high %v19531_v41, %v19531_v41  ;;  %v8670_v36 = vsel %vm843_vm3, %v8567_v11, 0.0 }
 0x3d6   : > { %v6498_v49 = vsel %vm843_vm3, %v16595_v32, %v19526_v3  ;;  %v8568_v32 = vsel %vm843_vm3, %v8566_v21, %v8567_v11  ;;  %v7285_v38 = vcombine.high %v12412_v35, %v12412_v35  ;;  %v7292_v6 = vrot.slane %v12412_v35, %v15295_v27 }
 0x3d7   : > { %v17666_v24 = vsel %vm843_vm3, %v19529_v50, %v19528_v33  ;;  %v17673_v58 = vsel %vm843_vm3, %v19532_v46, %v19530_v44  ;;  %v17678_v1 = vpack.c.bf16 %v8568_v32, %v8566_v21  ;;  %v7302_v17 = vcombine.high %v12413_v34, %v12413_v34 }
 0x3d8   : > { %v7309_v61 = vrot.slane %v12413_v34, %v15295_v27  ;;  %v17681_v39 = vpack.c.bf16 %v8568_v32, %v8652_v9  ;;  %v7299_v10 = vrot.slane %v7285_v38, %v15295_v27  ;;  %v7300_v26 = vcombine.high %v7292_v6, %v7292_v6 }
 0x3d9   : > { %v7729_v0 = vadd.f32 %v7292_v6, %v6491_v56  ;;  %v17684_v45 = vpack.c.bf16 %v8670_v36, %v8670_v36  ;;  %13286 = vmatmul.mubr.msk.bf16.gmra.mxu0 %vm16870_vm0, %v17678_v1  ;;  %v7316_v52 = vrot.slane %v7302_v17, %v15295_v27  ;;  %v19536_v17 = vld [vmem:[#allocation136_spill] sm:$0xff] }
 0x3da   : > { %v7317_v40 = vcombine.high %v7309_v61, %v7309_v61  ;;  %v7733_v20 = vadd.f32 %v7309_v61, %v6495_v29  ;;  %v8863_v21 = vshrl.u32 %v17681_v39, 16  ;;  %v7301_v11 = vcombine.high %v7299_v10, %v7299_v10 }
 0x3db   : > { %v7730_v3 = vadd.f32 %v7300_v26, %v6492_v42  ;;  %v7731_v35 = vadd.f32 %v7299_v10, %v6493_v15  ;;  %v8865_v34 = vshll.u32 %v17681_v39, 16  ;;  %v7318_v9 = vcombine.high %v7316_v52, %v7316_v52  ;;  %v19534_v15 = vld [vmem:[#allocation139_spill] sm:$0xff] }
 0x3dc   : > { %v7734_v56 = vadd.f32 %v7317_v40, %v6496_v51  ;;  %v7735_v28 = vadd.f32 %v7316_v52, %v6497_v2  ;;  %v8870_v33 = vshll.u32 %v17684_v45, 16  ;;  %v7732_v44 = vadd.f32 %v7301_v11, %v6494_v22  ;;  %v12525_v2 = vld [vmem:[%s14581_s13 + $0x60] sm:$0xff]  }
 0x3dd   : > { %v8329_v41 = vcombine.low %v7729_v0, %v7730_v3  ;;  %v8867_v46 = vrot.slane %v8865_v34, 1  ;;  %v19533_v29 = vcombine.high %v19529_v50, %v19529_v50  ;;  %v7736_v38 = vadd.f32 %v7318_v9, %v6498_v49  ;;  %v19538_v50 = vld [vmem:[#allocation138_spill] sm:$0xff] }
 0x3de   : > { %v8346_v6 = vcombine.low %v7733_v20, %v7734_v56  ;;  %v8872_v42 = vrot.slane %v8870_v33, 1  ;;  %v19535_v36 = vrot.slane %v19534_v15, %v15347_v16  ;;  %v8330_v61 = vcombine.low %v7731_v35, %v7732_v44 }
 0x3df   : > { %v4736_v32 = vsel %vm843_vm3, %v19533_v29, %v16550_v8  ;;  %v8337_v22 = vrot.slane %v8329_v41, %v15295_v27  ;;  %v8868_v10 = vor.u32 %v8867_v46, %v8863_v21  ;;  %v19537_v26 = vrot.slane %v16511_v47, %v15347_v16 }
 0x3e0   : > { %v4737_v51 = vsel %vm843_vm3, %v19536_v17, %v19535_v36  ;;  %v8347_v49 = vcombine.low %v7735_v28, %v7736_v38  ;;  %v8354_v0 = vrot.slane %v8346_v6, %v15295_v27  ;;  %v19539_v52 = vcombine.high %v19536_v17, %v19536_v17 }
 0x3e1   : > { %v4738_v8 = vsel %vm843_vm3, %v19538_v50, %v19537_v26  ;;  %v19540_v20 = vcombine.high %v19538_v50, %v19538_v50  ;;  %v8344_v47 = vrot.slane %v8330_v61, %v15295_v27  ;;  %v17723_v11 = vsel %vm8729_vm1, %v8868_v10, %v8872_v42 }
 0x3e2   : > { %v4739_v40 = vsel %vm843_vm3, %v19539_v52, %v16563_v48  ;;  %v12416_v3 = vunpack.c.l.bf16 %v12525_v2  ;;  %v12417_v35 = vunpack.c.h.bf16 %v12525_v2  ;;  %v8361_v34 = vrot.slane %v8347_v49, %v15295_v27  ;;  %13238 = vmatmul.mubr.bf16.gmra.mxu1 %v17723_v11 }
 0x3e3   : > { %v4740_v21 = vsel %vm843_vm3, %v19540_v20, %v16586_v59  ;;  %v19541_v48 = vcombine.high %v16729_v13, %v16729_v13  ;;  %v6326_v56 = vrot.slane %v16735_v63, %v15347_v16  ;;  %v19542_v59 = vcombine.high %v16726_v54, %v16726_v54 }
 0x3e4   : > { %v8345_v33 = vcombine.low %v8337_v22, %v8344_v47  ;;  %v7319_v44 = vcombine.high %v12416_v3, %v12416_v3  ;;  %v7326_v41 = vrot.slane %v12416_v3, %v15295_v27  ;;  %v7336_v46 = vcombine.high %v12417_v35, %v12417_v35 }
 0x3e5   : > { %v6318_v9 = vrot.slane %v19541_v48, %v15347_v16  ;;  %v6330_v28 = vrot.slane %v19542_v59, %v15347_v16  ;;  %v8362_v29 = vcombine.low %v8354_v0, %v8361_v34  ;;  %v7343_v38 = vrot.slane %v12417_v35, %v15295_v27 }
 0x3e6   : > { %v19543_v6 = vcombine.high %v16735_v63, %v16735_v63  ;;  %v19544_v15 = vrot.slane %v16729_v13, %v15347_v16  ;;  %v8569_v17 = vrot.slane %v8345_v33, 7  ;;  %v7333_v2 = vrot.slane %v7319_v44, %v15295_v27  ;;  %v19545_v33 = vld [vmem:[#allocation134_spill] sm:$0xff] }
 0x3e7   : > { %v7334_v61 = vcombine.high %v7326_v41, %v7326_v41  ;;  %v7350_v22 = vrot.slane %v7336_v46, %v15295_v27  ;;  %v8570_v10 = vrot.slane %v8362_v29, 7  ;;  %v7351_v26 = vcombine.high %v7343_v38, %v7343_v38 }
 0x3e8   : > { %v6334_v42 = vrot.slane %v19543_v6, %v15347_v16  ;;  %v17748_v36 = vsel %vm843_vm3, %v16715_v30, %v19544_v15  ;;  %v7737_v50 = vadd.f32 %v7326_v41, %v17666_v24  ;;  %v7741_v49 = vadd.f32 %v7343_v38, %v4738_v8 }
 0x3e9   : > { %v8653_v63 = vsel %vm843_vm3, 0.0, %v8569_v17  ;;  %v7335_v0 = vcombine.high %v7333_v2, %v7333_v2  ;;  %v7352_v52 = vcombine.high %v7350_v22, %v7350_v22  ;;  %v7738_v13 = vadd.f32 %v7334_v61, %v17673_v58 }
 0x3ea   : > { %v8571_v20 = vsel %vm843_vm3, %v8569_v17, %v8570_v10  ;;  %v8671_v47 = vsel %vm843_vm3, %v8570_v10, 0.0  ;;  %v7739_v3 = vadd.f32 %v7333_v2, %v4736_v32  ;;  %v7742_v35 = vadd.f32 %v7351_v26, %v4739_v40  ;;  %v12526_v26 = vld [vmem:[%s14581_s13 + $0x68] sm:$0xff]  }
 0x3eb   : > { %v17757_v34 = vpack.c.bf16 %v8571_v20, %v8653_v63  ;;  %v17759_v48 = vpack.c.bf16 %v8571_v20, %v8569_v17  ;;  %v17761_v59 = vpack.c.bf16 %v8671_v47, %v8671_v47  ;;  %v7740_v24 = vadd.f32 %v7335_v0, %v4737_v51  ;;  %v19551_v20 = vld [vmem:[#allocation156_spill] sm:$0xff]  ;;  %v19553_v47 = vld [vmem:[#allocation153_spill] sm:$0xff] }
 0x3ec   : > { %v7743_v8 = vadd.f32 %v7350_v22, %v4740_v21  ;;  %v7744_v44 = vadd.f32 %v7352_v52, %v19545_v33  ;;  %v8363_v41 = vcombine.low %v7737_v50, %v7738_v13  ;;  %v8380_v46 = vcombine.low %v7741_v49, %v7742_v35 }
 0x3ed   : > { %13289 = vmatprep.mubr.msk.bf16.mxu0 %vm16870_vm0, %v17759_v48  ;;  %v8875_v58 = vshrl.u32 %v17757_v34, 16  ;;  %v8877_v32 = vshll.u32 %v17757_v34, 16  ;;  %v8882_v40 = vshll.u32 %v17761_v59, 16  ;;  %v8364_v29 = vcombine.low %v7739_v3, %v7740_v24 }
 0x3ee   : > { %v8371_v38 = vrot.slane %v8363_v41, %v15295_v27  ;;  %v8381_v51 = vcombine.low %v7743_v8, %v7744_v44  ;;  %v8388_v21 = vrot.slane %v8380_v46, %v15295_v27  ;;  %v19546_v6 = vcombine.high %v16695_v25, %v16695_v25  ;;  %v19554_v8 = vld [vmem:[#allocation147_spill] sm:$0xff]  ;;  %v19558_v41 = vld [vmem:[#allocation144_spill] sm:$0xff] }
 0x3ef   : > { %v8879_v17 = vrot.slane %v8877_v32, 1  ;;  %v8884_v2 = vrot.slane %v8882_v40, 1  ;;  %v8378_v61 = vrot.slane %v8364_v29, %v15295_v27  ;;  %v19547_v22 = vcombine.high %v16715_v30, %v16715_v30  ;;  %v19557_v44 = vld [vmem:[#allocation39_spill] sm:$0xff]  ;;  %v19560_v32 = vld [vmem:[#allocation37_spill] sm:$0xff] }
 0x3f0   : > { %v6500_v15 = vsel %vm843_vm3, %v19546_v6, %v16771_v23  ;;  %v8395_v50 = vrot.slane %v8381_v51, %v15295_v27  ;;  %v19548_v49 = vrot.slane %v16726_v54, %v15347_v16  ;;  %v6503_v23 = vsel %vm843_vm3, %v16718_v60, %v6326_v56 }
 0x3f1   : > { %v6501_v10 = vsel %vm843_vm3, %v19547_v22, %v6318_v9  ;;  %v19549_v63 = vcombine.high %v16698_v57, %v16698_v57  ;;  %v8880_v30 = vor.u32 %v8879_v17, %v8875_v58  ;;  %v8379_v52 = vcombine.low %v8371_v38, %v8378_v61  ;;  %v19562_v61 = vld [vmem:[#allocation148_spill] sm:$0xff] }
 0x3f2   : > { %v6502_v25 = vsel %vm843_vm3, %v16698_v57, %v19548_v49  ;;  %v19550_v9 = vcombine.high %v16718_v60, %v16718_v60  ;;  %v19552_v54 = vrot.slane %v19551_v20, %v15347_v16  ;;  %v8396_v35 = vcombine.low %v8388_v21, %v8395_v50  ;;  %v19565_v49 = vld [vmem:[#allocation149_spill] sm:$0xff] }
 0x3f3   : > { %v6504_v0 = vsel %vm843_vm3, %v19549_v63, %v6330_v28  ;;  %v12420_v56 = vunpack.c.l.bf16 %v12526_v26  ;;  %v12421_v24 = vunpack.c.h.bf16 %v12526_v26  ;;  %v19555_v57 = vrot.slane %v19554_v8, %v15347_v16  ;;  %v19556_v28 = vld [vmem:[#allocation145_spill] sm:$0xff]  ;;  %v19564_v26 = vld [vmem:[#allocation36_spill] sm:$0xff] }
 0x3f4   : > { %v6505_v13 = vsel %vm843_vm3, %v19550_v9, %v6334_v42  ;;  %v6506_v3 = vsel %vm843_vm3, %v19553_v47, %v19552_v54  ;;  %v17812_v60 = vsel %vm8729_vm1, %v8880_v30, %v8884_v2  ;;  %v8572_v42 = vrot.slane %v8379_v52, 7  ;;  %v19567_v30 = vld [vmem:[#allocation146_spill] sm:$0xff] }
 0x3f5   : > { %v17809_v33 = vsel %vm843_vm3, %v19556_v28, %v19555_v57  ;;  %v19559_v46 = vcombine.high %v19558_v41, %v19558_v41  ;;  %v19561_v40 = vcombine.high %v19556_v28, %v19556_v28  ;;  %13241 = vmatprep.mubr.bf16.mxu1 %v17812_v60  ;;  %v8573_v38 = vrot.slane %v8396_v35, 7 }
 0x3f6   : > { %v7353_v51 = vcombine.high %v12420_v56, %v12420_v56  ;;  %v7360_v21 = vrot.slane %v12420_v56, %v15295_v27  ;;  %v7370_v6 = vcombine.high %v12421_v24, %v12421_v24  ;;  %v7377_v17 = vrot.slane %v12421_v24, %v15295_v27 }
 0x3f7   : > { %v17819_v58 = vsel %vm843_vm3, %v19559_v46, %v19557_v44  ;;  %v17826_v29 = vsel %vm843_vm3, %v19561_v40, %v19560_v32  ;;  %v8654_v2 = vsel %vm843_vm3, 0.0, %v8572_v42  ;;  %v19563_v22 = vrot.slane %v19562_v61, %v15347_v16 }
 0x3f8   : > { %v19566_v63 = vrot.slane %v19565_v49, %v15347_v16  ;;  %v8574_v9 = vsel %vm843_vm3, %v8572_v42, %v8573_v38  ;;  %v7367_v20 = vrot.slane %v7353_v51, %v15295_v27  ;;  %v7368_v54 = vcombine.high %v7360_v21, %v7360_v21 }
 0x3f9   : > { %v17837_v50 = vsel %vm843_vm3, %v19564_v26, %v19563_v22  ;;  %v7384_v47 = vrot.slane %v7370_v6, %v15295_v27  ;;  %v17847_v35 = vpack.c.bf16 %v8574_v9, %v8572_v42  ;;  %v7385_v56 = vcombine.high %v7377_v17, %v7377_v17 }
 0x3fa   : > { %v4746_v52 = vsel %vm843_vm3, %v19567_v30, %v19566_v63  ;;  %v7745_v24 = vadd.f32 %v7360_v21, %v17748_v36  ;;  %v7749_v8 = vadd.f32 %v7377_v17, %v6503_v23  ;;  %v7369_v57 = vcombine.high %v7367_v20, %v7367_v20  ;;  %v19568_v23 = vld [vmem:[#allocation38_spill] sm:$0xff] }
 0x3fb   : > { %v7386_v28 = vcombine.high %v7384_v47, %v7384_v47  ;;  %v7746_v44 = vadd.f32 %v7368_v54, %v6500_v15  ;;  %v7747_v41 = vadd.f32 %v7367_v20, %v6501_v10  ;;  %13290 = vmatmul.mubr.msk.bf16.gmra.mxu0 %vm16870_vm0, %v17847_v35  ;;  %v7750_v46 = vadd.f32 %v7385_v56, %v6504_v0  ;;  %v19570_v0 = vld [vmem:[#allocation150_spill] sm:$0xff]  ;;  %v19572_v20 = vld [vmem:[#allocation152_spill] sm:$0xff] }
 0x3fc   : > { %v7751_v32 = vadd.f32 %v7384_v47, %v6505_v13  ;;  %v8672_v40 = vsel %vm843_vm3, %v8573_v38, 0.0  ;;  %v17854_v51 = vpack.c.bf16 %v8574_v9, %v8654_v2  ;;  %v7748_v42 = vadd.f32 %v7369_v57, %v6502_v25  ;;  %v12527_v25 = vld [vmem:[%s14581_s13 + $0x70] sm:$0xff]  }
 0x3fd   : > { %v7752_v6 = vadd.f32 %v7386_v28, %v6506_v3  ;;  %v8397_v61 = vcombine.low %v7745_v24, %v7746_v44  ;;  %v17856_v36 = vpack.c.bf16 %v8672_v40, %v8672_v40  ;;  %v19569_v15 = vcombine.high %v19568_v23, %v19568_v23 }
 0x3fe   : > { %v8414_v21 = vcombine.low %v7749_v8, %v7750_v46  ;;  %v8889_v17 = vshll.u32 %v17854_v51, 16  ;;  %v19571_v13 = vcombine.high %v19564_v26, %v19564_v26  ;;  %v8398_v3 = vcombine.low %v7747_v41, %v7748_v42 }
 0x3ff   : > { %v17862_v10 = vrot.slane %v19569_v15, %v15318_v14  ;;  %v8415_v2 = vcombine.low %v7751_v32, %v7752_v6  ;;  %v8887_v22 = vshrl.u32 %v17854_v51, 16  ;;  %v8894_v49 = vshll.u32 %v17856_v36, 16 }
 0x400   : > { %v4747_v38 = vsel %vm843_vm3, %v19571_v13, %v19570_v0  ;;  %v8405_v63 = vrot.slane %v8397_v61, %v15295_v27  ;;  %v8891_v9 = vrot.slane %v8889_v17, 1  ;;  %v19573_v54 = vcombine.high %v19567_v30, %v19567_v30 }
 0x401   : > { %v12424_v56 = vunpack.c.l.bf16 %v12527_v25  ;;  %v8412_v26 = vrot.slane %v8398_v3, %v15295_v27  ;;  %v8422_v24 = vrot.slane %v8414_v21, %v15295_v27  ;;  %v8429_v8 = vrot.slane %v8415_v2, %v15295_v27 }
 0x402   : > { %v4748_v47 = vsel %vm843_vm3, %v19573_v54, %v19572_v20  ;;  %v12425_v57 = vunpack.c.h.bf16 %v12527_v25  ;;  %v8892_v28 = vor.u32 %v8891_v9, %v8887_v22  ;;  %v8896_v44 = vrot.slane %v8894_v49, 1 }
 0x403   : > { %v7387_v41 = vcombine.high %v12424_v56, %v12424_v56  ;;  %v7394_v46 = vrot.slane %v12424_v56, %v15295_v27  ;;  %v8413_v32 = vcombine.low %v8405_v63, %v8412_v26  ;;  %v8430_v40 = vcombine.low %v8422_v24, %v8429_v8  ;;  %v19574_v8 = vld [vmem:[#allocation143_spill] sm:$0xff] }
 0x404   : > { %v7404_v42 = vcombine.high %v12425_v57, %v12425_v57  ;;  %v7411_v30 = vrot.slane %v12425_v57, %v15295_v27  ;;  %v17885_v6 = vsel %vm8729_vm1, %v8892_v28, %v8896_v44  ;;  %v19575_v57 = vld [vmem:[#allocation154_spill] sm:$0xff] }
 0x405   : > { %v7401_v61 = vrot.slane %v7387_v41, %v15295_v27  ;;  %v7402_v23 = vcombine.high %v7394_v46, %v7394_v46  ;;  %v7753_v15 = vadd.f32 %v7394_v46, %v17809_v33  ;;  %v8575_v21 = vrot.slane %v8413_v32, 7  ;;  %13242 = vmatmul.mubr.bf16.gmra.mxu1 %v17885_v6  ;;  %v19576_v32 = vld [vmem:[#allocation157_spill] sm:$0xff] }
 0x406   : > { %v8576_v17 = vrot.slane %v8430_v40, 7  ;;  %v7418_v0 = vrot.slane %v7404_v42, %v15295_v27  ;;  %v7419_v13 = vcombine.high %v7411_v30, %v7411_v30  ;;  %v7757_v22 = vadd.f32 %v7411_v30, %v4746_v52 }
 0x407   : > { %v7403_v25 = vcombine.high %v7401_v61, %v7401_v61  ;;  %v7754_v3 = vadd.f32 %v7402_v23, %v17819_v58  ;;  %v7755_v2 = vadd.f32 %v7401_v61, %v17826_v29  ;;  %v8655_v63 = vsel %vm843_vm3, 0.0, %v8575_v21 }
 0x408   : > { %v8577_v49 = vsel %vm843_vm3, %v8575_v21, %v8576_v17  ;;  %v8673_v9 = vsel %vm843_vm3, %v8576_v17, 0.0  ;;  %v7420_v33 = vcombine.high %v7418_v0, %v7418_v0  ;;  %v7758_v24 = vadd.f32 %v7419_v13, %v4747_v38 }
 0x409   : > { %v17896_v20 = vpack.c.bf16 %v8577_v49, %v8655_v63  ;;  %v17898_v54 = vpack.c.bf16 %v8577_v49, %v8575_v21  ;;  %v17900_v56 = vpack.c.bf16 %v8673_v9, %v8673_v9  ;;  %v7756_v26 = vadd.f32 %v7403_v25, %v17837_v50 }
 0x40a   : > { %v7759_v58 = vadd.f32 %v7418_v0, %v4748_v47  ;;  %v7760_v29 = vadd.f32 %v7420_v33, %v19574_v8  ;;  %v8431_v52 = vcombine.low %v7753_v15, %v7754_v3  ;;  %v5379_v28 = vcombine.high %v19575_v57, %v19575_v57 }
 0x40b   : > { %13293 = vmatprep.mubr.msk.bf16.mxu0 %vm16870_vm0, %v17898_v54  ;;  %v8901_v44 = vshll.u32 %v17896_v20, 16  ;;  %v8906_v41 = vshll.u32 %v17900_v56, 16  ;;  %v8432_v46 = vcombine.low %v7755_v2, %v7756_v26  ;;  %v6035_v50 = vcombine.high %v19576_v32, %v19576_v32  ;;  %v19577_v26 = vld [vmem:[#allocation151_spill] sm:$0xff] }
 0x40c   : > { %v6036_v38 = vcombine.high %v17862_v10, %v17862_v10  ;;  %v8448_v47 = vcombine.low %v7757_v22, %v7758_v24  ;;  %v8449_v40 = vcombine.low %v7759_v58, %v7760_v29  ;;  %v8899_v42 = vshrl.u32 %v17896_v20, 16  ;;  %v19579_v29 = vld [vmem:[#allocation155_spill] sm:$0xff] }
 0x40d   : > { %v8903_v30 = vrot.slane %v8901_v44, 1  ;;  %v8439_v61 = vrot.slane %v8431_v52, %v15295_v27  ;;  %v8446_v23 = vrot.slane %v8432_v46, %v15295_v27  ;;  %v17920_v15 = vrot.slane %v19575_v57, %v15318_v14 }
 0x40e   : > { %v6043_v21 = vrot.slane %v19576_v32, %v15318_v14  ;;  %v8456_v17 = vrot.slane %v8448_v47, %v15295_v27  ;;  %v8463_v0 = vrot.slane %v8449_v40, %v15295_v27  ;;  %v17928_v13 = vrot.slane %v17862_v10, %v15318_v14 }
 0x40f   : > { %v8904_v25 = vor.u32 %v8903_v30, %v8899_v42  ;;  %v8908_v3 = vrot.slane %v8906_v41, 1  ;;  %v8447_v2 = vcombine.low %v8439_v61, %v8446_v23  ;;  %v6057_v22 = vrot.slane %v6035_v50, %v15318_v14  ;;  %v19580_v61 = vld [vmem:[#allocation51_spill] sm:$0xff] }
 0x410   : > { %v8464_v49 = vcombine.low %v8456_v17, %v8463_v0  ;;  %v6064_v63 = vrot.slane %v6036_v38, %v15318_v14  ;;  %v19578_v24 = vcombine.high %v19577_v26, %v19577_v26  ;;  %v5407_v10 = vrot.slane %v5379_v28, %v15318_v14 }
 0x411   : > { %v17933_v9 = vsel %vm8729_vm1, %v8904_v25, %v8908_v3  ;;  %v8578_v33 = vrot.slane %v8447_v2, 7  ;;  %v5408_v52 = vcombine.high %v19579_v29, %v19579_v29  ;;  %v5409_v57 = vcombine.high %v17920_v15, %v17920_v15 }
 0x412   : > { %v5400_v58 = vrot.slane %v19578_v24, %v15318_v14  ;;  %13245 = vmatprep.mubr.bf16.mxu1 %v17933_v9  ;;  %v8579_v8 = vrot.slane %v8464_v49, 7  ;;  %v6065_v44 = vcombine.high %v6043_v21, %v6043_v21  ;;  %v6066_v41 = vcombine.high %v17928_v13, %v17928_v13  ;;  %v19581_v21 = vld [vmem:[#allocation48_spill] sm:$0xff] }
 0x413   : > { %v6067_v46 = vcombine.high %v6057_v22, %v6057_v22  ;;  %v8656_v50 = vsel %vm843_vm3, 0.0, %v8578_v33  ;;  %v6068_v28 = vcombine.high %v6064_v63, %v6064_v63  ;;  %v5411_v30 = vcombine.high %v5407_v10, %v5407_v10 }
 0x414   : > { %v8580_v32 = vsel %vm843_vm3, %v8578_v33, %v8579_v8  ;;  %v8674_v14 = vsel %vm843_vm3, %v8579_v8, 0.0  ;;  %v5410_v42 = vcombine.high %v5400_v58, %v5400_v58  ;;  %v9406_v23 = vrot.slane %v19580_v61, 1 }
 0x415   : > { %v17950_v38 = vpack.c.bf16 %v8580_v32, %v8578_v33  ;;  %v17952_v47 = vpack.c.bf16 %v8580_v32, %v8656_v50  ;;  %v17954_v40 = vpack.c.bf16 %v8674_v14, %v8674_v14  ;;  %v9407_v17 = vrot.slane %v19581_v21, 1 }
 0x416   : > { %v6342_v0 = vrot.slane %v6057_v22, %v15347_v16  ;;  %v6346_v25 = vrot.slane %v6065_v44, %v15347_v16  ;;  %v6350_v49 = vrot.slane %v6067_v46, %v15347_v16  ;;  %v6354_v33 = vrot.slane %v17928_v13, %v15347_v16  ;;  %v19582_v22 = vld [vmem:[#allocation52_spill] sm:$0xff] }
 0x417   : > { %13294 = vmatmul.mubr.msk.bf16.gmra.mxu0 %vm16870_vm0, %v17950_v38  ;;  %v8913_v3 = vshll.u32 %v17952_v47, 16  ;;  %v8918_v2 = vshll.u32 %v17954_v40, 16  ;;  %v6358_v26 = vrot.slane %v6064_v63, %v15347_v16  ;;  %v6362_v24 = vrot.slane %v6066_v41, %v15347_v16 }
 0x418   : > { %13361 = vmatprep.mubr.msk.bf16.mxu0 %vm16870_vm0, %v19582_v22  ;;  %v6366_v8 = vrot.slane %v6068_v28, %v15347_v16  ;;  %v8911_v29 = vshrl.u32 %v17952_v47, 16  ;;  %v9439_v32 = vrot.slane %v17681_v39, 1  ;;  %v9408_v46 = vsel %vm2914_vm13, %v9406_v23, %v9407_v17  ;;  %v12528_v23 = vld [vmem:[%s14581_s13 + $0x78] sm:$0xff]   ;;  %v19583_v22 = vld [vmem:[#allocation49_spill] sm:$0xff]  ;;  %s19678_s13 = sld [smem:[#allocation31_spill]] }
 0x419   : > { %v8915_v44 = vrot.slane %v8913_v3, 1  ;;  %v9440_v13 = vrot.slane %v17684_v45, 1  ;;  %v9442_v63 = vrot.slane %v17757_v34, 1  ;;  %v9443_v41 = vrot.slane %v17761_v59, 1  ;;  %v13887_v59 = vld [vmem:[#allocation14 + $0x170] sm:$0xff]  }
 0x41a   : > { %v8920_v14 = vrot.slane %v8918_v2, 1  ;;  %v9445_v61 = vrot.slane %v17854_v51, 1  ;;  %v9446_v16 = vrot.slane %v17856_v36, 1  ;;  %v9448_v39 = vrot.slane %v17896_v20, 1 }
 0x41b   : > { %v8916_v50 = vor.u32 %v8915_v44, %v8911_v29  ;;  %v17983_v28 = vsel %vm2914_vm13, %v9439_v32, %v9440_v13  ;;  %v17986_v21 = vsel %vm2914_vm13, %v9442_v63, %v9443_v41  ;;  %v9449_v45 = vrot.slane %v17900_v56, 1  ;;  %v13219_v29 = vpop.f32.mrf.mxu1  ;;  %v13267_v32 = vpop.f32.mrf.mxu0  ;;  %v19587_v63 = vld [vmem:[#allocation46_spill] sm:$0xff] }
 0x41c   : > { %v17995_v17 = vsel %vm2914_vm13, %v9445_v61, %v9446_v16  ;;  %v6507_v51 = vsel %vm843_vm3, %v5400_v58, %v6342_v0  ;;  %v6508_v36 = vsel %vm843_vm3, %v5408_v52, %v6346_v25  ;;  %v6509_v20 = vsel %vm843_vm3, %v5410_v42, %v6350_v49  ;;  %v19584_v42 = vld [vmem:[#allocation159_spill] sm:$0xff] }
 0x41d   : > { %v17992_v34 = vsel %vm8729_vm1, %v8916_v50, %v8920_v14  ;;  %v18001_v3 = vsel %vm2914_vm13, %v9448_v39, %v9449_v45  ;;  %v6510_v56 = vsel %vm843_vm3, %v17920_v15, %v6354_v33  ;;  %v6511_v2 = vsel %vm843_vm3, %v5407_v10, %v6358_v26  ;;  %v19585_v15 = vld [vmem:[#allocation160_spill] sm:$0xff] }
 0x41e   : > { %13246 = vmatmul.mubr.bf16.gmra.mxu1 %v17992_v34  ;;  %v6512_v58 = vsel %vm843_vm3, %v5409_v57, %v6362_v24  ;;  %v6513_v52 = vsel %vm843_vm3, %v5411_v30, %v6366_v8  ;;  %v12428_v0 = vunpack.c.l.bf16 %v12528_v23  ;;  %v12429_v25 = vunpack.c.h.bf16 %v12528_v23  ;;  %v13889_v57 = vld [vmem:[#allocation14 + $0x168] sm:$0xff]   ;;  %v13883_v23 = vld [vmem:[#allocation14 + $0x130] sm:$0xff]   ;;  %p19680_p11 = scmp.ne.s32.totalorder %s19678_s13, 0 }
 0x41f   : > { %13362 = vmatmul.mubr.msk.bf16.vlgmr.msra.gmra.mxu0 %vm16870_vm0, %v19583_v22  ;;  %13313 = vmatprep.mubr.bf16.mxu1 %v9408_v46  ;;  %v9409_v49 = vrot.slane %v19584_v42, 1  ;;  %v9410_v33 = vrot.slane %v19585_v15, 1  ;;  %v9451_v10 = vrot.slane %v17952_v47, 1  ;;  %v9452_v26 = vrot.slane %v17954_v40, 1  ;;  %v19586_v46 = vld [vmem:[#allocation47_spill] sm:$0xff] }
 0x420   : > { %13365 = vmatprep.mubr.msk.bf16.mxu0 %vm16870_vm0, %v17059_v19  ;;  %13442 = vmatpush3.bf16.msra.mxu0 %v17519_v62  ;;  %v7421_v30 = vcombine.high %v12428_v0, %v12428_v0  ;;  %v7428_v24 = vrot.slane %v12428_v0, %v15295_v27  ;;  %v7438_v8 = vcombine.high %v12429_v25, %v12429_v25  ;;  %v9412_v13 = vrot.slane %v19586_v46, 1  ;;  %p14148_p10 = pnand %p14147_p7, %p19680_p11 }
 0x421   : > { %13443 = vmatprep.subr.bf16.mxu0 %v13887_v59  ;;  %v7445_v44 = vrot.slane %v12429_v25, %v15295_v27  ;;  %v9413_v41 = vrot.slane %v19587_v63, 1  ;;  %v18025_v62 = vsel %vm2914_vm13, %v9451_v10, %v9452_v26  ;;  %v18027_v47 = vadd.f32 %v13267_v32, %v13219_v29  ;;  %v9246_v10 = vpop.f32.mrf.mxu0  ;;  %v13890_v29 = vld [vmem:[#allocation14 + $0x160] sm:$0xff]   ;;  %v13884_v32 = vld [vmem:[#allocation14 + $0x128] sm:$0xff]   ;;  %v19591_v63 = vld [vmem:[#allocation43_spill] sm:$0xff] }
 0x422   : > { %v7435_v40 = vrot.slane %v7421_v30, %v15295_v27  ;;  %v7436_v50 = vcombine.high %v7428_v24, %v7428_v24  ;;  %v7452_v14 = vrot.slane %v7438_v8, %v15295_v27  ;;  %v18032_v16 = vsel %vm2914_vm13, %v9409_v49, %v9410_v33  ;;  %v9037_v33 = vpop.f32.mrf.mxu1  ;;  %p14149_p13 = pneg %p14148_p10 }
 0x423   : > { %v7453_v61 = vcombine.high %v7445_v44, %v7445_v44  ;;  %v7761_v39 = vadd.f32 %v7428_v24, %v6507_v51  ;;  %v7765_v45 = vadd.f32 %v7445_v44, %v6511_v2  ;;  %v18036_v26 = vsel %vm2914_vm13, %v9412_v13, %v9413_v41  ;;  %v19588_v51 = vld [vmem:[#allocation158_spill] sm:$0xff]  ;;  %v19590_v24 = vld [vmem:[#allocation40_spill] sm:$0xff]  ;;  %v13268_v13 = vpop.f32.mrf.mxu0 }
 0x424   : > { %13444 = vmatpush3.bf16.msra.mxu0 %v13887_v59  ;;  %v7437_v0 = vcombine.high %v7435_v40, %v7435_v40  ;;  %v7454_v25 = vcombine.high %v7452_v14, %v7452_v14  ;;  %v7762_v42 = vadd.f32 %v7436_v50, %v6508_v36  ;;  %v7763_v15 = vadd.f32 %v7435_v40, %v6509_v20  ;;  %v13925_v20 = vld [vmem:[#allocation14 + $0x138] sm:$0xff]   ;;  %v19592_v40 = vld [vmem:[#allocation44_spill] sm:$0xff]  ;;  %p14156_p9 = pnand %p14155_p4, %p14149_p13 }
 0x425   : > { %13445 = vmatprep.subr.bf16.mxu0 %v13889_v57  ;;  %v7766_v30 = vadd.f32 %v7453_v61, %v6512_v58  ;;  %v7767_v8 = vadd.f32 %v7452_v14, %v6513_v52  ;;  %v19589_v58 = vld [vmem:[#allocation50_spill] sm:$0xff]  ;;  %v9416_v44 = vrot.slane %v19590_v24, 1  ;;  %v9418_v41 = vrot.slane %v19591_v63, 1  ;;  %v13892_v14 = vld [vmem:[#allocation14 + $0x158] sm:$0xff]  }
 0x426   : > { %13314 = vmatmul.mubr.bf16.vlgmr.msra.gmra.mxu1 %v18032_v16  ;;  %v7764_v59 = vadd.f32 %v7437_v0, %v6510_v56  ;;  %v7768_v2 = vadd.f32 %v7454_v25, %v19588_v51  ;;  %v8465_v36 = vcombine.low %v7761_v39, %v7762_v42  ;;  %v9415_v52 = vrot.slane %v19589_v58, 1 }
 0x427   : > { %13317 = vmatprep.mubr.bf16.mxu1 %v18036_v26  ;;  %13366 = vmatmul.mubr.msk.bf16.gmra.mxu0 %vm16870_vm0, %v17136_v37  ;;  %v8482_v49 = vcombine.low %v7765_v45, %v7766_v30  ;;  %v9419_v50 = vrot.slane %v19592_v40, 1  ;;  %v18051_v39 = vadd.f32 %v9246_v10, %v9037_v33  ;;  %v13220_v45 = vpop.f32.mrf.mxu1  ;;  %v13885_v30 = vld [vmem:[#allocation14 + $0x120] sm:$0xff]   ;;  %v18061_v10 = vpop.f32.mrf.mxu0  ;;  %v9424_v58 = vrot.slane %v17289_v12, 1 }
 0x428   : > { %13394 = vmatpush3.bf16.msra.mxu1 %v13925_v20  ;;  %13369 = vmatprep.mubr.msk.bf16.mxu0 %vm16870_vm0, %v17213_v55  ;;  %v8466_v46 = vcombine.low %v7763_v15, %v7764_v59  ;;  %v8483_v56 = vcombine.low %v7767_v8, %v7768_v2  ;;  %v8473_v61 = vrot.slane %v8465_v36, %v15295_v27  ;;  %v13893_v2 = vld [vmem:[#allocation14 + $0x150] sm:$0xff]  }
 0x429   : > { %13395 = vmatprep.subr.bf16.mxu1 %v13883_v23  ;;  %13446 = vmatpush3.bf16.msra.mxu0 %v13889_v57  ;;  %v8490_v25 = vrot.slane %v8482_v49, %v15295_v27  ;;  %v18056_v42 = vadd.f32 %v13268_v13, %v13220_v45  ;;  %v18059_v15 = vsel %vm2914_vm13, %v9415_v52, %v9416_v44  ;;  %v19596_v49 = vld [vmem:[#allocation59_spill] sm:$0xff]  ;;  %v19597_v52 = vld [vmem:[#allocation70_spill] sm:$0xff]  ;;  %v13271_v63 = vpop.f32.mrf.mxu0 }
 0x42a   : > { %13447 = vmatprep.subr.bf16.mxu0 %v13890_v29  ;;  %v8480_v0 = vrot.slane %v8466_v46, %v15295_v27  ;;  %v8497_v57 = vrot.slane %v8483_v56, %v15295_v27  ;;  %19594 = vst [vmem:[#allocation60_spill] sm:$0xff] %v18061_v10  ;;  %v18065_v51 = vsel %vm2914_vm13, %v9418_v41, %v9419_v50  ;;  %v9422_v33 = vrot.slane %v19596_v49, 1  ;;  %v13888_v44 = vld [vmem:[#allocation14 + $0x118] sm:$0xff]   ;;  %v18081_v41 = vpop.f32.mrf.mxu1  ;;  %v13895_v50 = vld [vmem:[#allocation14 + $0x148] sm:$0xff]  }
 0x42b   : > { %19593 = vst [vmem:[#allocation58_spill] sm:$0xff] %v18056_v42  ;;  %v9425_v24 = vrot.slane %v19597_v52, 1  ;;  %19598 = vst [vmem:[#allocation75_spill] sm:$0xff] %v18081_v41  ;;  %v13902_v10 = vld [vmem:[#allocation14 + $0x1f8] sm:$0xff]  }
 0x42c   : > { %13396 = vmatpush3.bf16.msra.mxu1 %v13883_v23  ;;  %v8481_v8 = vcombine.low %v8473_v61, %v8480_v0  ;;  %v8498_v59 = vcombine.low %v8490_v25, %v8497_v57  ;;  %v13891_v57 = vld [vmem:[#allocation14 + $0x110] sm:$0xff]  }
 0x42d   : > { %13397 = vmatprep.subr.bf16.mxu1 %v13884_v32  ;;  %13448 = vmatpush3.bf16.msra.mxu0 %v13890_v29  ;;  %v19595_v29 = vld [vmem:[#allocation53_spill] sm:$0xff]  ;;  %v18089_v25 = vsel %vm2914_vm13, %v9424_v58, %v9425_v24 }
 0x42e   : > { %13318 = vmatmul.mubr.bf16.gmra.mxu1 %v18059_v15  ;;  %13449 = vmatprep.subr.bf16.mxu0 %v13892_v14  ;;  %v8581_v23 = vrot.slane %v8481_v8, 7  ;;  %v8582_v36 = vrot.slane %v8498_v59, 7  ;;  %v9421_v20 = vrot.slane %v19595_v29, 1  ;;  %v9262_v59 = vpop.f32.mrf.mxu0  ;;  %v19601_v58 = vld [vmem:[#allocation57_spill] sm:$0xff] }
 0x42f   : > { %13321 = vmatprep.mubr.bf16.mxu1 %v18065_v51  ;;  %13370 = vmatmul.mubr.msk.bf16.gmra.mxu0 %vm16870_vm0, %v17291_v31 }
 0x430   : > { %13373 = vmatprep.mubr.msk.bf16.mxu0 %vm16870_vm0, %v17369_v18  ;;  %13398 = vmatpush3.bf16.msra.mxu1 %v13884_v32  ;;  %v8583_v46 = vsel %vm843_vm3, %v8581_v23, %v8582_v36  ;;  %v8657_v56 = vsel %vm843_vm3, 0.0, %v8581_v23  ;;  %v8675_v13 = vsel %vm843_vm3, %v8582_v36, 0.0  ;;  %v13896_v36 = vld [vmem:[#allocation14 + $0x140] sm:$0xff]  }
 0x431   : > { %13399 = vmatprep.subr.bf16.mxu1 %v13885_v30  ;;  %13450 = vmatpush3.bf16.msra.mxu0 %v13892_v14  ;;  %v18083_v40 = vpack.c.bf16 %v8583_v46, %v8581_v23  ;;  %v8709_v12 = vpack.c.bf16 %v8583_v46, %v8657_v56  ;;  %v8710_v32 = vpack.c.bf16 %v8675_v13, %v8675_v13  ;;  %v13223_v23 = vpop.f32.mrf.mxu1  ;;  %v19603_v56 = vld [vmem:[#allocation76_spill] sm:$0xff] }
 0x432   : > { %13451 = vmatprep.subr.bf16.mxu0 %v13893_v2  ;;  %v18086_v14 = vsel %vm2914_vm13, %v9421_v20, %v9422_v33  ;;  %v18095_v20 = vadd.f32 %v13271_v63, %v13223_v23  ;;  %v19600_v33 = vld [vmem:[#allocation63_spill] sm:$0xff]  ;;  %v9427_v13 = vrot.slane %v19603_v56, 1  ;;  %v19604_v63 = vld [vmem:[#allocation66_spill] sm:$0xff] }
 0x433   : > { %v10259_v61 = vrot.slane %v8709_v12, 1  ;;  %v10260_v45 = vrot.slane %v8710_v32, 1  ;;  %v9989_v0 = vshll.u32 %v8709_v12, 16  ;;  %v9994_v8 = vshll.u32 %v8710_v32, 16  ;;  %v13894_v32 = vld [vmem:[#allocation14 + $0x108] sm:$0xff]  }
 0x434   : > { %13400 = vmatpush3.bf16.msra.mxu1 %v13885_v30  ;;  %v9987_v29 = vshrl.u32 %v8709_v12, 16  ;;  %19599 = vst [vmem:[#allocation72_spill] sm:$0xff] %v18095_v20  ;;  %v9428_v12 = vrot.slane %v19604_v63, 1  ;;  %v19606_v20 = vld [vmem:[#allocation64_spill] sm:$0xff] }
 0x435   : > { %13401 = vmatprep.subr.bf16.mxu1 %v13888_v44  ;;  %13452 = vmatpush3.bf16.msra.mxu0 %v13893_v2  ;;  %v18093_v30 = vsel %vm2914_vm13, %v10259_v61, %v10260_v45  ;;  %v9991_v49 = vrot.slane %v9989_v0, 1  ;;  %v9053_v2 = vpop.f32.mrf.mxu1  ;;  %v9996_v24 = vrot.slane %v9994_v8, 1  ;;  %v13272_v61 = vpop.f32.mrf.mxu0  ;;  %v19605_v0 = vld [vmem:[#allocation62_spill] sm:$0xff]  ;;  %v9431_v42 = vrot.slane %v19606_v20, 1 }
 0x436   : > { %13322 = vmatmul.mubr.bf16.gmra.mxu1 %v18086_v14  ;;  %13453 = vmatprep.subr.bf16.mxu0 %v13895_v50  ;;  %v18104_v46 = vadd.f32 %v9262_v59, %v9053_v2  ;;  %v9430_v23 = vrot.slane %v19605_v0, 1  ;;  %v18116_v59 = vsel %vm2914_vm13, %v9427_v13, %v9428_v12  ;;  %v13898_v2 = vld [vmem:[#allocation14 + $0x1b8] sm:$0xff]  }
 0x437   : > { %13325 = vmatprep.mubr.bf16.mxu1 %v18089_v25  ;;  %13374 = vmatmul.mubr.msk.bf16.gmra.mxu0 %vm16870_vm0, %v19600_v33  ;;  %v9992_v52 = vor.u32 %v9991_v49, %v9987_v29  ;;  %v13224_v45 = vpop.f32.mrf.mxu1  ;;  %19608 = vst [vmem:[#allocation89_spill] sm:$0xff] %v18116_v59  ;;  %v19611_v49 = vld [vmem:[#allocation55_spill] sm:$0xff] }
 0x438   : > { %13377 = vmatprep.mubr.msk.bf16.mxu0 %vm16870_vm0, %v19601_v58  ;;  %13402 = vmatpush3.bf16.msra.mxu1 %v13888_v44  ;;  %19602 = vst [vmem:[#allocation81_spill] sm:$0xff] %v18104_v46  ;;  %v18113_v8 = vadd.f32 %v13272_v61, %v13224_v45  ;;  %v18120_v29 = vsel %vm2914_vm13, %v9430_v23, %v9431_v42  ;;  %v9434_v20 = vrot.slane %v19611_v49, 1  ;;  %v9436_v42 = vrot.slane %v17601_v53, 1  ;;  %v18147_v53 = vpop.f32.mrf.mxu0  ;;  %v13905_v49 = vld [vmem:[#allocation14 + $0x1e8] sm:$0xff]  }
 0x439   : > { %13403 = vmatprep.subr.bf16.mxu1 %v13891_v57  ;;  %13454 = vmatpush3.bf16.msra.mxu0 %v13895_v50  ;;  %v18111_v44 = vsel %vm8729_vm1, %v9992_v52, %v9996_v24  ;;  %v13897_v50 = vld [vmem:[#allocation14 + $0x100] sm:$0xff]   ;;  %19609 = vst [vmem:[#allocation86_spill] sm:$0xff] %v18120_v29  ;;  %v9437_v52 = vrot.slane %v17605_v7, 1  ;;  %19614 = vst [vmem:[#allocation83_spill] sm:$0xff] %v18147_v53  ;;  %v18149_v13 = vpop.f32.mrf.mxu1 }
 0x43a   : > { %13455 = vmatprep.subr.bf16.mxu0 %v13896_v36  ;;  %19607 = vst [vmem:[#allocation88_spill] sm:$0xff] %v18113_v8  ;;  %v13275_v7 = vpop.f32.mrf.mxu0  ;;  %19615 = vst [vmem:[#allocation80_spill] sm:$0xff] %v18149_v13 }
 0x43b   : > { %v18138_v56 = vsel %vm2914_vm13, %v9436_v42, %v9437_v52  ;;  %v19620_v42 = vld [vmem:[#allocation42_spill] sm:$0xff]  ;;  %v13906_v52 = vld [vmem:[#allocation14 + $0x1e0] sm:$0xff]  }
 0x43c   : > { %13404 = vmatpush3.bf16.msra.mxu1 %v13891_v57  ;;  %v19610_v57 = vld [vmem:[#allocation65_spill] sm:$0xff]  ;;  %19613 = vst [vmem:[#allocation91_spill] sm:$0xff] %v18138_v56  ;;  %v9278_v63 = vpop.f32.mrf.mxu0 }
 0x43d   : > { %13405 = vmatprep.subr.bf16.mxu1 %v13894_v32  ;;  %13456 = vmatpush3.bf16.msra.mxu0 %v13896_v36  ;;  %v9433_v36 = vrot.slane %v19610_v57, 1  ;;  %v13903_v57 = vld [vmem:[#allocation14 + $0x1f0] sm:$0xff]  }
 0x43e   : > { %13326 = vmatmul.mubr.bf16.gmra.mxu1 %v18116_v59  ;;  %13537 = vmatprep.subr.bf16.mxu0 %v13902_v10  ;;  %v13276_v0 = vpop.f32.mrf.mxu0 }
 0x43f   : > { %13329 = vmatprep.mubr.bf16.mxu1 %v18120_v29  ;;  %13378 = vmatmul.mubr.msk.bf16.gmra.mxu0 %vm16870_vm0, %v17603_v4  ;;  %v18134_v24 = vsel %vm2914_vm13, %v9433_v36, %v9434_v20  ;;  %v13227_v12 = vpop.f32.mrf.mxu1  ;;  %v19619_v36 = vld [vmem:[#allocation45_spill] sm:$0xff]  ;;  %v13899_v20 = vld [vmem:[#allocation14 + $0x1b0] sm:$0xff]  }
 0x440   : > { %13381 = vmatprep.mubr.msk.bf16.mxu0 %vm16870_vm0, %v17678_v1  ;;  %13406 = vmatpush3.bf16.msra.mxu1 %v13894_v32  ;;  %19612 = vst [vmem:[#allocation95_spill] sm:$0xff] %v18134_v24  ;;  %v18159_v32 = vadd.f32 %v13275_v7, %v13227_v12  ;;  %v18176_v7 = vpop.f32.mrf.mxu0 }
 0x441   : > { %13407 = vmatprep.subr.bf16.mxu1 %v13897_v50  ;;  %v9069_v61 = vpop.f32.mrf.mxu1  ;;  %19621 = vst [vmem:[#allocation85_spill] sm:$0xff] %v18176_v7  ;;  %v12431_v7 = vld [vmem:[%s620_s18] sm:$0xff]  }
 0x442   : > { %19616 = vst [vmem:[#allocation77_spill] sm:$0xff] %v18159_v32  ;;  %v18161_v45 = vadd.f32 %v9278_v63, %v9069_v61  ;;  %v13900_v63 = vld [vmem:[#allocation14 + $0x1a8] sm:$0xff]   ;;  %v12432_v53 = vunpack.c.l.bf16 %v12431_v7  ;;  %v12433_v13 = vunpack.c.h.bf16 %v12431_v7  ;;  %v18200_v7 = vld [vmem:[#allocation14 + $0x238] sm:$0xff]  }
 0x443   : > { %v13228_v23 = vpop.f32.mrf.mxu1 }
 0x444   : > { %13408 = vmatpush3.bf16.msra.mxu1 %v13897_v50  ;;  %19617 = vst [vmem:[#allocation84_spill] sm:$0xff] %v18161_v45  ;;  %v18164_v50 = vadd.f32 %v13276_v0, %v13228_v23  ;;  %v13901_v0 = vld [vmem:[#allocation14 + $0x1a0] sm:$0xff]   ;;  %v19624_v23 = vld [vmem:[#allocation54_spill] sm:$0xff]  ;;  %v13911_v45 = vld [vmem:[#allocation14 + $0x1c8] sm:$0xff]  }
 0x445   : > { %13489 = vmatprep.subr.bf16.mxu1 %v13898_v2  ;;  %v18181_v61 = vpop.f32.mrf.mxu1 }
 0x446   : > { %13330 = vmatmul.mubr.bf16.gmra.mxu1 %v18134_v24  ;;  %19618 = vst [vmem:[#allocation73_spill] sm:$0xff] %v18164_v50  ;;  %19623 = vst [vmem:[#allocation79_spill] sm:$0xff] %v18181_v61  ;;  %v19625_v50 = vld [vmem:[#allocation69_spill] sm:$0xff] }
 0x447   : > { %13333 = vmatprep.mubr.bf16.mxu1 %v18138_v56  ;;  %13382 = vmatmul.mubr.msk.bf16.gmra.mxu0 %vm16870_vm0, %v17759_v48 }
 0x448   : > { %13385 = vmatprep.mubr.msk.bf16.mxu0 %vm16870_vm0, %v17847_v35 }
 0x44e   : > { %13334 = vmatmul.mubr.bf16.gmra.mxu1 %v17983_v28 }
 0x44f   : > { %13337 = vmatprep.mubr.bf16.mxu1 %v17986_v21  ;;  %13386 = vmatmul.mubr.msk.bf16.gmra.mxu0 %vm16870_vm0, %v17898_v54 }
 0x450   : > { %13389 = vmatprep.mubr.msk.bf16.mxu0 %vm16870_vm0, %v17950_v38 }
 0x456   : > { %13338 = vmatmul.mubr.bf16.gmra.mxu1 %v17995_v17 }
 0x457   : > { %13341 = vmatprep.mubr.bf16.mxu1 %v18001_v3  ;;  %13390 = vmatmul.mubr.msk.bf16.gmra.mxu0 %vm16870_vm0, %v18083_v40  ;;  %v13279_v12 = vpop.f32.mrf.mxu0 }
 0x458   : > { %13457 = vmatprep.mubr.bf16.mxu0 %v18032_v16  ;;  %v19622_v16 = vld [vmem:[#allocation41_spill] sm:$0xff] }
 0x45e   : > { %13342 = vmatmul.mubr.bf16.gmra.mxu1 %v18025_v62 }
 0x45f   : > { %13409 = vmatprep.mubr.bf16.mxu1 %v19619_v36  ;;  %13458 = vmatmul.mubr.bf16.vlgmr.msra.gmra.mxu0 %v18036_v26 }
 0x460   : > { %13461 = vmatprep.mubr.bf16.mxu0 %v18059_v15  ;;  %13538 = vmatpush3.bf16.msra.mxu0 %v13902_v10  ;;  %v13908_v10 = vld [vmem:[#allocation14 + $0x1d8] sm:$0xff]   ;;  %v13231_v36 = vpop.f32.mrf.mxu1 }
 0x461   : > { %13539 = vmatprep.subr.bf16.mxu0 %v13903_v57 }
 0x464   : > { %13540 = vmatpush3.bf16.msra.mxu0 %v13903_v57  ;;  %v13909_v57 = vld [vmem:[#allocation14 + $0x1d0] sm:$0xff]  }
 0x465   : > { %13541 = vmatprep.subr.bf16.mxu0 %v13905_v49 }
 0x466   : > { %13410 = vmatmul.mubr.bf16.vlgmr.msra.gmra.mxu1 %v19620_v42 }
 0x467   : > { %13413 = vmatprep.mubr.bf16.mxu1 %v19622_v16  ;;  %13462 = vmatmul.mubr.bf16.gmra.mxu0 %v18065_v51 }
 0x468   : > { %13490 = vmatpush3.bf16.msra.mxu1 %v13898_v2  ;;  %13465 = vmatprep.mubr.bf16.mxu0 %v18086_v14  ;;  %v9294_v2 = vpop.f32.mrf.mxu0 }
 0x469   : > { %13491 = vmatprep.subr.bf16.mxu1 %v13899_v20  ;;  %13542 = vmatpush3.bf16.msra.mxu0 %v13905_v49  ;;  %v18186_v49 = vadd.f32 %v13279_v12, %v13231_v36  ;;  %v13907_v12 = vld [vmem:[#allocation14 + $0x190] sm:$0xff]   ;;  %v19629_v36 = vld [vmem:[#allocation68_spill] sm:$0xff] }
 0x46a   : > { %13543 = vmatprep.subr.bf16.mxu0 %v13906_v52  ;;  %v13280_v32 = vpop.f32.mrf.mxu0 }
 0x46b   : > { %19626 = vst [vmem:[#allocation74_spill] sm:$0xff] %v18186_v49  ;;  %v7455_v49 = vcombine.high %v12432_v53, %v12432_v53 }
 0x46c   : > { %13492 = vmatpush3.bf16.msra.mxu1 %v13899_v20  ;;  %v9085_v20 = vpop.f32.mrf.mxu1 }
 0x46d   : > { %13493 = vmatprep.subr.bf16.mxu1 %v13900_v63  ;;  %13544 = vmatpush3.bf16.msra.mxu0 %v13906_v52  ;;  %v13904_v52 = vld [vmem:[#allocation14 + $0x198] sm:$0xff]   ;;  %v18191_v61 = vadd.f32 %v9294_v2, %v9085_v20 }
 0x46e   : > { %13414 = vmatmul.mubr.bf16.gmra.mxu1 %v19624_v23  ;;  %13545 = vmatprep.subr.bf16.mxu0 %v13908_v10  ;;  %v13232_v8 = vpop.f32.mrf.mxu1  ;;  %v19630_v2 = vld [vmem:[#allocation67_spill] sm:$0xff] }
 0x46f   : > { %13417 = vmatprep.mubr.bf16.mxu1 %v19625_v50  ;;  %13466 = vmatmul.mubr.bf16.gmra.mxu0 %v18089_v25  ;;  %19627 = vst [vmem:[#allocation82_spill] sm:$0xff] %v18191_v61  ;;  %v18193_v46 = vadd.f32 %v13280_v32, %v13232_v8  ;;  %v13910_v8 = vld [vmem:[#allocation14 + $0x188] sm:$0xff]   ;;  %v7462_v32 = vrot.slane %v12432_v53, %v15295_v27 }
 0x470   : > { %13469 = vmatprep.mubr.bf16.mxu0 %v18116_v59  ;;  %13494 = vmatpush3.bf16.msra.mxu1 %v13900_v63  ;;  %v13912_v63 = vld [vmem:[#allocation14 + $0x1c0] sm:$0xff]  }
 0x471   : > { %13495 = vmatprep.subr.bf16.mxu1 %v13901_v0  ;;  %13546 = vmatpush3.bf16.msra.mxu0 %v13908_v10  ;;  %19628 = vst [vmem:[#allocation78_spill] sm:$0xff] %v18193_v46  ;;  %v7472_v10 = vcombine.high %v12433_v13, %v12433_v13  ;;  %v13913_v46 = vld [vmem:[#allocation14 + $0x180] sm:$0xff]   ;;  %v7470_v61 = vcombine.high %v7462_v32, %v7462_v32 }
 0x472   : > { %13547 = vmatprep.subr.bf16.mxu0 %v13909_v57 }
 0x473   : > { %v7486_v20 = vrot.slane %v7472_v10, %v15295_v27  ;;  %v18210_v10 = vpop.f32.mrf.mxu0 }
 0x474   : > { %13496 = vmatpush3.bf16.msra.mxu1 %v13901_v0  ;;  %v7469_v0 = vrot.slane %v7455_v49, %v15295_v27 }
 0x475   : > { %13497 = vmatprep.subr.bf16.mxu1 %v13904_v52  ;;  %13548 = vmatpush3.bf16.msra.mxu0 %v13909_v57  ;;  %v7479_v57 = vrot.slane %v12433_v13, %v15295_v27  ;;  %v8499_v13 = vcombine.low %v7462_v32, %v7470_v61  ;;  %v18220_v61 = vpop.f32.mrf.mxu1 }
 0x476   : > { %13418 = vmatmul.mubr.bf16.gmra.mxu1 %v19629_v36  ;;  %13549 = vmatprep.subr.bf16.mxu0 %v13911_v45 }
 0x477   : > { %13421 = vmatprep.mubr.bf16.mxu1 %v19630_v2  ;;  %13470 = vmatmul.mubr.bf16.gmra.mxu0 %v18120_v29  ;;  %v7487_v53 = vcombine.high %v7479_v57, %v7479_v57  ;;  %v19632_v29 = vld [vmem:[#allocation56_spill] sm:$0xff]  ;;  %v8507_v59 = vrot.slane %v8499_v13, %v15295_v27 }
 0x478   : > { %13473 = vmatprep.mubr.bf16.mxu0 %v18134_v24  ;;  %13498 = vmatpush3.bf16.msra.mxu1 %v13904_v52  ;;  %v19631_v52 = vld [vmem:[#allocation61_spill] sm:$0xff]  ;;  %v7488_v24 = vcombine.high %v7486_v20, %v7486_v20 }
 0x479   : > { %13499 = vmatprep.subr.bf16.mxu1 %v13907_v12  ;;  %13550 = vmatpush3.bf16.msra.mxu0 %v13911_v45  ;;  %v7471_v45 = vcombine.high %v7469_v0, %v7469_v0 }
 0x47a   : > { %13551 = vmatprep.subr.bf16.mxu0 %v13912_v63 }
 0x47b   : > { %v8500_v49 = vcombine.low %v7469_v0, %v7471_v45 }
 0x47c   : > { %13500 = vmatpush3.bf16.msra.mxu1 %v13907_v12  ;;  %v8516_v12 = vcombine.low %v7479_v57, %v7487_v53 }
 0x47d   : > { %13501 = vmatprep.subr.bf16.mxu1 %v13910_v8  ;;  %13552 = vmatpush3.bf16.msra.mxu0 %v13912_v63  ;;  %v8517_v63 = vcombine.low %v7486_v20, %v7488_v24  ;;  %v8514_v41 = vrot.slane %v8500_v49, %v15295_v27  ;;  %v13283_v24 = vpop.f32.mrf.mxu0 }
 0x47e   : > { %13422 = vmatmul.mubr.bf16.gmra.mxu1 %v19631_v52  ;;  %13585 = vmatprep.subr.bf16.mxu0 %v18200_v7 }
 0x47f   : > { %13425 = vmatprep.mubr.bf16.mxu1 %v19632_v29  ;;  %13474 = vmatmul.mubr.bf16.gmra.mxu0 %v18138_v56  ;;  %v8524_v56 = vrot.slane %v8516_v12, %v15295_v27  ;;  %v9310_v0 = vpop.f32.mrf.mxu0 }
 0x480   : > { %13477 = vmatprep.mubr.bf16.mxu0 %v17983_v28  ;;  %13502 = vmatpush3.bf16.msra.mxu1 %v13910_v8  ;;  %v8531_v8 = vrot.slane %v8517_v63, %v15295_v27 }
 0x481   : > { %13503 = vmatprep.subr.bf16.mxu1 %v13913_v46  ;;  %v13235_v57 = vpop.f32.mrf.mxu1  ;;  %v13284_v49 = vpop.f32.mrf.mxu0 }
 0x482   : > { %v8532_v32 = vcombine.low %v8524_v56, %v8531_v8  ;;  %v18223_v20 = vadd.f32 %v13283_v24, %v13235_v57  ;;  %v13915_v57 = vld [vmem:[#allocation14 + $0x230] sm:$0xff]  }
 0x483   : > { %v9101_v45 = vpop.f32.mrf.mxu1 }
 0x484   : > { %13504 = vmatpush3.bf16.msra.mxu1 %v13913_v46  ;;  %v8515_v46 = vcombine.low %v8507_v59, %v8514_v41  ;;  %v18226_v53 = vadd.f32 %v9310_v0, %v9101_v45  ;;  %v8585_v13 = vrot.slane %v8532_v32, 7  ;;  %v18257_v45 = vpop.f32.mrf.mxu0 }
 0x485   : > { %13633 = vmatprep.subr.bf16.mxu1 %v18200_v7  ;;  %v13236_v12 = vpop.f32.mrf.mxu1 }
 0x486   : > { %13426 = vmatmul.mubr.bf16.gmra.mxu1 %v17648_v5  ;;  %v18228_v27 = vrot.slane %v8515_v46, 7  ;;  %v18233_v41 = vadd.f32 %v13284_v49, %v13236_v12  ;;  %v8676_v63 = vsel %vm843_vm3, %v8585_v13, 0.0  ;;  %v13917_v12 = vld [vmem:[#allocation14 + $0x220] sm:$0xff]  }
 0x487   : > { %13429 = vmatprep.mubr.bf16.mxu1 %v17723_v11  ;;  %13478 = vmatmul.mubr.bf16.gmra.mxu0 %v17986_v21  ;;  %v18245_v24 = vpack.c.bf16 %v8676_v63, %v8676_v63  ;;  %v18265_v49 = vpop.f32.mrf.mxu1 }
 0x488   : > { %13481 = vmatprep.mubr.bf16.mxu0 %v17995_v17  ;;  %v18237_v59 = vsel %vm843_vm3, %v18228_v27, %v8585_v13  ;;  %v8658_v56 = vsel %vm843_vm3, 0.0, %v18228_v27  ;;  %v13916_v13 = vld [vmem:[#allocation14 + $0x228] sm:$0xff]  }
 0x489   : > { %v18243_v8 = vpack.c.bf16 %v18237_v59, %v8658_v56  ;;  %v11053_v32 = vrot.slane %v18245_v24, 1 }
 0x48b   : > { %v11052_v46 = vrot.slane %v18243_v8, 1 }
 0x48d   : > { %v18254_v0 = vsel %vm2914_vm13, %v11052_v46, %v11053_v32 }
 0x48e   : > { %13430 = vmatmul.mubr.bf16.gmra.mxu1 %v17812_v60 }
 0x48f   : > { %13433 = vmatprep.mubr.bf16.mxu1 %v17885_v6  ;;  %13482 = vmatmul.mubr.bf16.gmra.mxu0 %v18001_v3 }
 0x490   : > { %13485 = vmatprep.mubr.bf16.mxu0 %v18025_v62 }
 0x496   : > { %13434 = vmatmul.mubr.bf16.gmra.mxu1 %v17933_v9 }
 0x497   : > { %13437 = vmatprep.mubr.bf16.mxu1 %v17992_v34  ;;  %13486 = vmatmul.mubr.bf16.gmra.mxu0 %v18093_v30 }
 0x498   : > { %13553 = vmatprep.mubr.bf16.mxu0 %v19620_v42 }
 0x499   : > { %v13287_v42 = vpop.f32.mrf.mxu0 }
 0x49b   : > { %v9326_v56 = vpop.f32.mrf.mxu0 }
 0x49d   : > { %v13288_v63 = vpop.f32.mrf.mxu0 }
 0x49e   : > { %13438 = vmatmul.mubr.bf16.gmra.mxu1 %v18111_v44 }
 0x49f   : > { %13505 = vmatprep.mubr.msk.bf16.mxu1 %vm16870_vm0, %v19583_v22  ;;  %13554 = vmatmul.mubr.bf16.vlgmr.msra.gmra.mxu0 %v19622_v16 }
 0x4a0   : > { %13557 = vmatprep.mubr.bf16.mxu0 %v19624_v23  ;;  %13586 = vmatpush3.bf16.msra.mxu0 %v18200_v7  ;;  %v13918_v23 = vld [vmem:[#allocation14 + $0x218] sm:$0xff]  }
 0x4a1   : > { %13587 = vmatprep.subr.bf16.mxu0 %v13915_v57 }
 0x4a2   : > { %v13239_v22 = vpop.f32.mrf.mxu1 }
 0x4a3   : > { %v18276_v16 = vadd.f32 %v13287_v42, %v13239_v22  ;;  %v13920_v42 = vld [vmem:[#allocation14 + $0x208] sm:$0xff]  }
 0x4a4   : > { %13588 = vmatpush3.bf16.msra.mxu0 %v13915_v57 }
 0x4a5   : > { %13589 = vmatprep.subr.bf16.mxu0 %v13916_v13 }
 0x4a6   : > { %13506 = vmatmul.mubr.msk.bf16.vlgmr.msra.gmra.mxu1 %vm16870_vm0, %v17059_v19  ;;  %v9117_v19 = vpop.f32.mrf.mxu1 }
 0x4a7   : > { %13509 = vmatprep.mubr.msk.bf16.mxu1 %vm16870_vm0, %v17136_v37  ;;  %13558 = vmatmul.mubr.bf16.gmra.mxu0 %v19625_v50  ;;  %v18278_v46 = vadd.f32 %v9326_v56, %v9117_v19  ;;  %v9329_v50 = vpop.f32.mrf.mxu0 }
 0x4a8   : > { %13641 = vmatpush3.bf16.msra.mxu1 %v18200_v7  ;;  %13561 = vmatprep.mubr.bf16.mxu0 %v19629_v36  ;;  %v13240_v32 = vpop.f32.mrf.mxu1  ;;  %v13919_v36 = vld [vmem:[#allocation14 + $0x210] sm:$0xff]  }
 0x4a9   : > { %13634 = vmatprep.subr.bf16.mxu1 %v13915_v57  ;;  %13590 = vmatpush3.bf16.msra.mxu0 %v13916_v13  ;;  %v18280_v37 = vadd.f32 %v13288_v63, %v13240_v32 }
 0x4aa   : > { %13591 = vmatprep.subr.bf16.mxu0 %v13917_v12  ;;  %v9120_v7 = vpop.f32.mrf.mxu1 }
 0x4ac   : > { %13642 = vmatpush3.bf16.msra.mxu1 %v13915_v57  ;;  %v18289_v57 = vadd.f32 %v9329_v50, %v9120_v7 }
 0x4ad   : > { %13635 = vmatprep.subr.bf16.mxu1 %v13916_v13  ;;  %13592 = vmatpush3.bf16.msra.mxu0 %v13917_v12 }
 0x4ae   : > { %13510 = vmatmul.mubr.msk.bf16.gmra.mxu1 %vm16870_vm0, %v17213_v55  ;;  %13593 = vmatprep.subr.bf16.mxu0 %v13918_v23  ;;  %v13921_v55 = vld [vmem:[#allocation14 + $0x200] sm:$0xff]  }
 0x4af   : > { %13513 = vmatprep.mubr.msk.bf16.mxu1 %vm16870_vm0, %v17291_v31  ;;  %13562 = vmatmul.mubr.bf16.gmra.mxu0 %v19630_v2 }
 0x4b0   : > { %13565 = vmatprep.mubr.bf16.mxu0 %v19631_v52  ;;  %13643 = vmatpush3.bf16.msra.mxu1 %v13916_v13  ;;  %v10780_v52 = vshrl.u32 %v18243_v8, 16 }
 0x4b1   : > { %13636 = vmatprep.subr.bf16.mxu1 %v13917_v12  ;;  %13594 = vmatpush3.bf16.msra.mxu0 %v13918_v23 }
 0x4b2   : > { %13595 = vmatprep.subr.bf16.mxu0 %v13919_v36 }
 0x4b4   : > { %13644 = vmatpush3.bf16.msra.mxu1 %v13917_v12 }
 0x4b5   : > { %13637 = vmatprep.subr.bf16.mxu1 %v13918_v23  ;;  %13596 = vmatpush3.bf16.msra.mxu0 %v13919_v36 }
 0x4b6   : > { %13514 = vmatmul.mubr.msk.bf16.gmra.mxu1 %vm16870_vm0, %v17369_v18  ;;  %13597 = vmatprep.subr.bf16.mxu0 %v13920_v42 }
 0x4b7   : > { %13517 = vmatprep.mubr.msk.bf16.mxu1 %vm16870_vm0, %v19600_v33  ;;  %13566 = vmatmul.mubr.bf16.gmra.mxu0 %v19632_v29 }
 0x4b8   : > { %13569 = vmatprep.mubr.bf16.mxu0 %v17648_v5  ;;  %13645 = vmatpush3.bf16.msra.mxu1 %v13918_v23 }
 0x4b9   : > { %13638 = vmatprep.subr.bf16.mxu1 %v13919_v36  ;;  %13598 = vmatpush3.bf16.msra.mxu0 %v13920_v42 }
 0x4ba   : > { %13599 = vmatprep.subr.bf16.mxu0 %v13921_v55 }
 0x4bb   : > { %v13291_v31 = vpop.f32.mrf.mxu0 }
 0x4bc   : > { %13646 = vmatpush3.bf16.msra.mxu1 %v13919_v36 }
 0x4bd   : > { %13639 = vmatprep.subr.bf16.mxu1 %v13920_v42  ;;  %13600 = vmatpush3.bf16.msra.mxu0 %v13921_v55  ;;  %v9342_v18 = vpop.f32.mrf.mxu0 }
 0x4be   : > { %13518 = vmatmul.mubr.msk.bf16.gmra.mxu1 %vm16870_vm0, %v19601_v58 }
 0x4bf   : > { %13521 = vmatprep.mubr.msk.bf16.mxu1 %vm16870_vm0, %v17603_v4  ;;  %13570 = vmatmul.mubr.bf16.gmra.mxu0 %v17723_v11  ;;  %v13292_v11 = vpop.f32.mrf.mxu0 }
 0x4c0   : > { %13573 = vmatprep.mubr.bf16.mxu0 %v17812_v60  ;;  %13647 = vmatpush3.bf16.msra.mxu1 %v13920_v42  ;;  %v10782_v60 = vshll.u32 %v18243_v8, 16 }
 0x4c1   : > { %13640 = vmatprep.subr.bf16.mxu1 %v13921_v55 }
 0x4c2   : > { %v10784_v13 = vrot.slane %v10782_v60, 1 }
 0x4c4   : > { %13648 = vmatpush3.bf16.msra.mxu1 %v13921_v55 }
 0x4c5   : > { %v13243_v5 = vpop.f32.mrf.mxu1 }
 0x4c6   : > { %13522 = vmatmul.mubr.msk.bf16.gmra.mxu1 %vm16870_vm0, %v17678_v1  ;;  %v18315_v4 = vadd.f32 %v13291_v31, %v13243_v5  ;;  %v9345_v1 = vpop.f32.mrf.mxu0  ;;  %v19633_v5 = vld [vmem:[#allocation75_spill] sm:$0xff] }
 0x4c7   : > { %13525 = vmatprep.mubr.msk.bf16.mxu1 %vm16870_vm0, %v17759_v48  ;;  %13574 = vmatmul.mubr.bf16.gmra.mxu0 %v17885_v6  ;;  %v9133_v33 = vpop.f32.mrf.mxu1  ;;  %v10787_v48 = vshll.u32 %v18245_v24, 16 }
 0x4c8   : > { %13577 = vmatprep.mubr.bf16.mxu0 %v17933_v9  ;;  %v18319_v58 = vadd.f32 %v9342_v18, %v9133_v33  ;;  %v10785_v9 = vor.u32 %v10784_v13, %v10780_v52  ;;  %v19635_v33 = vld [vmem:[#allocation58_spill] sm:$0xff] }
 0x4c9   : > { %v13244_v29 = vpop.f32.mrf.mxu1  ;;  %v10789_v8 = vrot.slane %v10787_v48, 1 }
 0x4ca   : > { %v18321_v2 = vadd.f32 %v13292_v11, %v13244_v29  ;;  %v19634_v11 = vld [vmem:[#allocation60_spill] sm:$0xff] }
 0x4cb   : > { %v9136_v6 = vpop.f32.mrf.mxu1  ;;  %v10790_v56 = vsel %vm8729_vm1, %v10785_v9, %v10789_v8  ;;  %v9250_v60 = vadd.f32 %v19634_v11, %v19633_v5  ;;  %v19643_v11 = vld [vmem:[#allocation95_spill] sm:$0xff] }
 0x4cc   : > { %v18325_v12 = vadd.f32 %v9345_v1, %v9136_v6  ;;  %v19636_v6 = vld [vmem:[#allocation89_spill] sm:$0xff] }
 0x4ce   : > { %13526 = vmatmul.mubr.msk.bf16.gmra.mxu1 %vm16870_vm0, %v17847_v35 }
 0x4cf   : > { %13529 = vmatprep.mubr.msk.bf16.mxu1 %vm16870_vm0, %v17898_v54  ;;  %13578 = vmatmul.mubr.bf16.gmra.mxu0 %v17992_v34  ;;  %v12266_v54 = vpack.c.bf16 %v18237_v59, %v18228_v27 }
 0x4d0   : > { %13581 = vmatprep.mubr.bf16.mxu0 %v18111_v44 }
 0x4d6   : > { %13530 = vmatmul.mubr.msk.bf16.gmra.mxu1 %vm16870_vm0, %v17950_v38 }
 0x4d7   : > { %v13295_v24 = vpop.f32.mrf.mxu0  ;;  %13533 = vmatprep.mubr.msk.bf16.mxu1 %vm16870_vm0, %v18083_v40  ;;  %13582 = vmatmul.mubr.bf16.gmra.mxu0 %v10790_v56  ;;  %v19638_v56 = vld [vmem:[#allocation86_spill] sm:$0xff] }
 0x4d8   : > { %13601 = vmatprep.mubr.bf16.mxu0 %v18036_v26 }
 0x4d9   : > { %v9358_v35 = vpop.f32.mrf.mxu0 }
 0x4db   : > { %v13296_v34 = vpop.f32.mrf.mxu0 }
 0x4dd   : > { %v9361_v44 = vpop.f32.mrf.mxu0 }
 0x4de   : > { %v13247_v22 = vpop.f32.mrf.mxu1  ;;  %13534 = vmatmul.mubr.msk.bf16.gmra.mxu1 %vm16870_vm0, %v12266_v54  ;;  %v19639_v54 = vld [vmem:[#allocation81_spill] sm:$0xff] }
 0x4df   : > { %v18347_v23 = vadd.f32 %v13295_v24, %v13247_v22  ;;  %v13363_v38 = vpop.f32.mrf.mxu0  ;;  %13602 = vmatmul.mubr.bf16.vlgmr.msra.gmra.mxu0 %v18059_v15  ;;  %13605 = vmatprep.mubr.bf16.mxu1 %v18065_v51 }
 0x4e0   : > { %v9149_v40 = vpop.f32.mrf.mxu1 }
 0x4e1   : > { %v18351_v63 = vadd.f32 %v9358_v35, %v9149_v40  ;;  %v9827_v26 = vpop.f32.mrf.mxu0  ;;  %v19640_v40 = vld [vmem:[#allocation80_spill] sm:$0xff] }
 0x4e2   : > { %v13248_v19 = vpop.f32.mrf.mxu1 }
 0x4e3   : > { %v18353_v32 = vadd.f32 %v13296_v34, %v13248_v19  ;;  %v13364_v27 = vpop.f32.mrf.mxu0 }
 0x4e4   : > { %v9152_v59 = vpop.f32.mrf.mxu1 }
 0x4e5   : > { %v18355_v50 = vadd.f32 %v9361_v44, %v9152_v59  ;;  %v9830_v43 = vpop.f32.mrf.mxu0 }
 0x4e6   : > { %v13315_v36 = vpop.f32.mrf.mxu1  ;;  %13606 = vmatmul.mubr.bf16.vlgmr.msra.gmra.mxu1 %v18086_v14 }
 0x4e7   : > { %v9698_v7 = vadd.f32 %v13315_v36, %v18027_v47  ;;  %v13367_v15 = vpop.f32.mrf.mxu0  ;;  %13609 = vmatprep.mubr.bf16.mxu1 %v18089_v25 }
 0x4e8   : > { %v9569_v51 = vpop.f32.mrf.mxu1 }
 0x4e9   : > { %v9696_v42 = vadd.f32 %v9569_v51, %v18051_v39  ;;  %v9843_v55 = vpop.f32.mrf.mxu0  ;;  %v18361_v31 = vadd.f32 %v13363_v38, %v9698_v7  ;;  %v19637_v39 = vld [vmem:[#allocation72_spill] sm:$0xff] }
 0x4ea   : > { %v13316_v18 = vpop.f32.mrf.mxu1 }
 0x4eb   : > { %v9699_v29 = vadd.f32 %v13316_v18, %v19635_v33  ;;  %v13368_v1 = vpop.f32.mrf.mxu0  ;;  %v18366_v52 = vadd.f32 %v9827_v26, %v9696_v42  ;;  %v19641_v26 = vld [vmem:[#allocation83_spill] sm:$0xff] }
 0x4ec   : > { %v9572_v14 = vpop.f32.mrf.mxu1  ;;  %v9266_v19 = vadd.f32 %v19641_v26, %v19640_v40 }
 0x4ed   : > { %v9697_v47 = vadd.f32 %v9572_v14, %v9250_v60  ;;  %v9846_v13 = vpop.f32.mrf.mxu0  ;;  %v18368_v48 = vadd.f32 %v13364_v27, %v9699_v29  ;;  %v19642_v27 = vld [vmem:[#allocation88_spill] sm:$0xff]  ;;  %v19644_v60 = vld [vmem:[#allocation77_spill] sm:$0xff]  ;;  %v19645_v29 = vld [vmem:[#allocation91_spill] sm:$0xff] }
 0x4ee   : > { %v13319_v25 = vpop.f32.mrf.mxu1  ;;  %13610 = vmatmul.mubr.bf16.gmra.mxu1 %v19636_v6 }
 0x4ef   : > { %v9702_v9 = vadd.f32 %v13319_v25, %v19637_v39  ;;  %v13371_v8 = vpop.f32.mrf.mxu0  ;;  %13613 = vmatprep.mubr.bf16.mxu1 %v19638_v56  ;;  %v18373_v24 = vadd.f32 %v9830_v43, %v9697_v47  ;;  %v19646_v25 = vld [vmem:[#allocation84_spill] sm:$0xff]  ;;  %v19647_v56 = vld [vmem:[#allocation79_spill] sm:$0xff] }
 0x4f0   : > { %v9585_v35 = vpop.f32.mrf.mxu1 }
 0x4f1   : > { %v9700_v34 = vadd.f32 %v9585_v35, %v19639_v54  ;;  %v9859_v44 = vpop.f32.mrf.mxu0  ;;  %v18376_v22 = vadd.f32 %v13367_v15, %v9702_v9  ;;  %v19649_v54 = vld [vmem:[#allocation73_spill] sm:$0xff] }
 0x4f2   : > { %v13320_v38 = vpop.f32.mrf.mxu1 }
 0x4f3   : > { %v9703_v59 = vadd.f32 %v13320_v38, %v19642_v27  ;;  %v13372_v36 = vpop.f32.mrf.mxu0  ;;  %v18381_v7 = vadd.f32 %v9843_v55, %v9700_v34 }
 0x4f4   : > { %v9588_v51 = vpop.f32.mrf.mxu1 }
 0x4f5   : > { %v9701_v42 = vadd.f32 %v9588_v51, %v9266_v19  ;;  %v9862_v18 = vpop.f32.mrf.mxu0  ;;  %v18383_v43 = vadd.f32 %v13368_v1, %v9703_v59  ;;  %v19648_v1 = vld [vmem:[#allocation85_spill] sm:$0xff]  ;;  %v19650_v51 = vld [vmem:[#allocation74_spill] sm:$0xff] }
 0x4f6   : > { %v13323_v5 = vpop.f32.mrf.mxu1  ;;  %13614 = vmatmul.mubr.bf16.gmra.mxu1 %v19643_v11  ;;  %v9282_v35 = vadd.f32 %v19648_v1, %v19647_v56 }
 0x4f7   : > { %v9706_v15 = vadd.f32 %v13323_v5, %v19644_v60  ;;  %v13375_v33 = vpop.f32.mrf.mxu0  ;;  %13617 = vmatprep.mubr.bf16.mxu1 %v19645_v29  ;;  %v18388_v14 = vadd.f32 %v9846_v13, %v9701_v42  ;;  %v19651_v60 = vld [vmem:[#allocation82_spill] sm:$0xff] }
 0x4f8   : > { %v9601_v47 = vpop.f32.mrf.mxu1 }
 0x4f9   : > { %v9704_v6 = vadd.f32 %v9601_v47, %v19646_v25  ;;  %v9875_v55 = vpop.f32.mrf.mxu0  ;;  %v18391_v39 = vadd.f32 %v13371_v8, %v9706_v15  ;;  %v19652_v25 = vld [vmem:[#allocation78_spill] sm:$0xff] }
 0x4fa   : > { %v13324_v9 = vpop.f32.mrf.mxu1 }
 0x4fb   : > { %v9707_v34 = vadd.f32 %v13324_v9, %v19649_v54  ;;  %v13376_v38 = vpop.f32.mrf.mxu0  ;;  %v18396_v40 = vadd.f32 %v9859_v44, %v9704_v6 }
 0x4fc   : > { %v9604_v26 = vpop.f32.mrf.mxu1 }
 0x4fd   : > { %v9705_v19 = vadd.f32 %v9604_v26, %v9282_v35  ;;  %v9878_v27 = vpop.f32.mrf.mxu0  ;;  %v18398_v13 = vadd.f32 %v13372_v36, %v9707_v34  ;;  %v9298_v36 = vadd.f32 %v18210_v10, %v18220_v61 }
 0x4fe   : > { %v13327_v59 = vpop.f32.mrf.mxu1  ;;  %13618 = vmatmul.mubr.bf16.gmra.mxu1 %v17983_v28 }
 0x4ff   : > { %v9710_v8 = vadd.f32 %v13327_v59, %v19650_v51  ;;  %v13379_v42 = vpop.f32.mrf.mxu0  ;;  %13621 = vmatprep.mubr.bf16.mxu1 %v17986_v21  ;;  %v18403_v5 = vadd.f32 %v9862_v18, %v9705_v19 }
 0x500   : > { %v9617_v11 = vpop.f32.mrf.mxu1 }
 0x501   : > { %v9708_v15 = vadd.f32 %v9617_v11, %v19651_v60  ;;  %v9891_v44 = vpop.f32.mrf.mxu0  ;;  %v18406_v29 = vadd.f32 %v13375_v33, %v9710_v8 }
 0x502   : > { %v13328_v47 = vpop.f32.mrf.mxu1 }
 0x503   : > { %v9711_v6 = vadd.f32 %v13328_v47, %v19652_v25  ;;  %v13380_v28 = vpop.f32.mrf.mxu0  ;;  %v18411_v9 = vadd.f32 %v9875_v55, %v9708_v15 }
 0x504   : > { %v9620_v56 = vpop.f32.mrf.mxu1 }
 0x505   : > { %v9709_v1 = vadd.f32 %v9620_v56, %v9298_v36  ;;  %v9894_v21 = vpop.f32.mrf.mxu0  ;;  %v18413_v18 = vadd.f32 %v13376_v38, %v9711_v6  ;;  %v9314_v38 = vadd.f32 %v18257_v45, %v18265_v49 }
 0x506   : > { %v13331_v35 = vpop.f32.mrf.mxu1  ;;  %13622 = vmatmul.mubr.bf16.gmra.mxu1 %v17995_v17 }
 0x507   : > { %v9714_v33 = vadd.f32 %v13331_v35, %v18223_v20  ;;  %v13383_v54 = vpop.f32.mrf.mxu0  ;;  %13625 = vmatprep.mubr.bf16.mxu1 %v18001_v3  ;;  %v18418_v34 = vadd.f32 %v9878_v27, %v9709_v1 }
 0x508   : > { %v9633_v10 = vpop.f32.mrf.mxu1 }
 0x509   : > { %v9712_v61 = vadd.f32 %v9633_v10, %v18226_v53  ;;  %v9907_v55 = vpop.f32.mrf.mxu0  ;;  %v18421_v26 = vadd.f32 %v13379_v42, %v9714_v33 }
 0x50a   : > { %v13332_v19 = vpop.f32.mrf.mxu1 }
 0x50b   : > { %v9715_v59 = vadd.f32 %v13332_v19, %v18233_v41  ;;  %v13384_v17 = vpop.f32.mrf.mxu0  ;;  %v18426_v51 = vadd.f32 %v9891_v44, %v9712_v61 }
 0x50c   : > { %v9636_v20 = vpop.f32.mrf.mxu1 }
 0x50d   : > { %v9713_v8 = vadd.f32 %v9636_v20, %v9314_v38  ;;  %v9910_v3 = vpop.f32.mrf.mxu0  ;;  %v18428_v27 = vadd.f32 %v13380_v28, %v9715_v59 }
 0x50e   : > { %v13335_v11 = vpop.f32.mrf.mxu1  ;;  %13626 = vmatmul.mubr.bf16.gmra.mxu1 %v18025_v62 }
 0x50f   : > { %v9718_v53 = vadd.f32 %v13335_v11, %v18276_v16  ;;  %v13387_v42 = vpop.f32.mrf.mxu0  ;;  %13629 = vmatprep.mubr.bf16.mxu1 %v18093_v30  ;;  %v18433_v60 = vadd.f32 %v9894_v21, %v9713_v8 }
 0x510   : > { %v9649_v45 = vpop.f32.mrf.mxu1 }
 0x511   : > { %v9716_v41 = vadd.f32 %v9649_v45, %v18278_v46  ;;  %v9923_v49 = vpop.f32.mrf.mxu0  ;;  %v18436_v15 = vadd.f32 %v13383_v54, %v9718_v53 }
 0x512   : > { %v13336_v44 = vpop.f32.mrf.mxu1 }
 0x513   : > { %v9719_v47 = vadd.f32 %v13336_v44, %v18280_v37  ;;  %v13388_v36 = vpop.f32.mrf.mxu0  ;;  %v18439_v25 = vadd.f32 %v9907_v55, %v9716_v41 }
 0x514   : > { %v9652_v62 = vpop.f32.mrf.mxu1 }
 0x515   : > { %v9717_v16 = vadd.f32 %v9652_v62, %v18289_v57  ;;  %v9926_v6 = vpop.f32.mrf.mxu0  ;;  %v18442_v28 = vadd.f32 %v13384_v17, %v9719_v47 }
 0x516   : > { %v13339_v30 = vpop.f32.mrf.mxu1  ;;  %13630 = vmatmul.mubr.bf16.gmra.mxu1 %v18254_v0 }
 0x517   : > { %v9722_v46 = vadd.f32 %v13339_v30, %v18315_v4  ;;  %v13391_v56 = vpop.f32.mrf.mxu0  ;;  %v18446_v1 = vadd.f32 %v9910_v3, %v9717_v16 }
 0x518   : > { %v9665_v21 = vpop.f32.mrf.mxu1 }
 0x519   : > { %v9720_v37 = vadd.f32 %v9665_v21, %v18319_v58  ;;  %v9939_v35 = vpop.f32.mrf.mxu0  ;;  %v18449_v33 = vadd.f32 %v13387_v42, %v9722_v46 }
 0x51a   : > { %v13340_v54 = vpop.f32.mrf.mxu1 }
 0x51b   : > { %v9723_v57 = vadd.f32 %v13340_v54, %v18321_v2  ;;  %v13392_v10 = vpop.f32.mrf.mxu0  ;;  %v18452_v61 = vadd.f32 %v9923_v49, %v9720_v37 }
 0x51c   : > { %v9668_v55 = vpop.f32.mrf.mxu1 }
 0x51d   : > { %v9721_v0 = vadd.f32 %v9668_v55, %v18325_v12  ;;  %v9942_v19 = vpop.f32.mrf.mxu0  ;;  %v18455_v4 = vadd.f32 %v13388_v36, %v9723_v57 }
 0x51e   : > { %v13343_v38 = vpop.f32.mrf.mxu1 }
 0x51f   : > { %v9726_v59 = vadd.f32 %v13343_v38, %v18347_v23  ;;  %v13459_v17 = vpop.f32.mrf.mxu0  ;;  %v18458_v58 = vadd.f32 %v9926_v6, %v9721_v0 }
 0x520   : > { %v9681_v20 = vpop.f32.mrf.mxu1 }
 0x521   : > { %v9724_v8 = vadd.f32 %v9681_v20, %v18351_v63  ;;  %v10362_v3 = vpop.f32.mrf.mxu0  ;;  %v18461_v2 = vadd.f32 %v13391_v56, %v9726_v59 }
 0x522   : > { %v13344_v11 = vpop.f32.mrf.mxu1 }
 0x523   : > { %v9727_v53 = vadd.f32 %v13344_v11, %v18353_v32  ;;  %v13460_v42 = vpop.f32.mrf.mxu0  ;;  %v18464_v12 = vadd.f32 %v9939_v35, %v9724_v8 }
 0x524   : > { %v9684_v45 = vpop.f32.mrf.mxu1 }
 0x525   : > { %v9725_v41 = vadd.f32 %v9684_v45, %v18355_v50  ;;  %v10365_v49 = vpop.f32.mrf.mxu0  ;;  %v18467_v23 = vadd.f32 %v13392_v10, %v9727_v53 }
 0x526   : > { %v13411_v44 = vpop.f32.mrf.mxu1 }
 0x527   : > { %v10227_v47 = vadd.f32 %v13411_v44, %v18361_v31  ;;  %v13463_v36 = vpop.f32.mrf.mxu0  ;;  %v18470_v63 = vadd.f32 %v9942_v19, %v9725_v41 }
 0x528   : > { %v10098_v62 = vpop.f32.mrf.mxu1 }
 0x529   : > { %v10225_v16 = vadd.f32 %v10098_v62, %v18366_v52  ;;  %v10378_v6 = vpop.f32.mrf.mxu0  ;;  %v18473_v32 = vadd.f32 %v13459_v17, %v10227_v47 }
 0x52a   : > { %v13412_v30 = vpop.f32.mrf.mxu1 }
 0x52b   : > { %v10228_v46 = vadd.f32 %v13412_v30, %v18368_v48  ;;  %v13464_v56 = vpop.f32.mrf.mxu0  ;;  %v18476_v50 = vadd.f32 %v10362_v3, %v10225_v16 }
 0x52c   : > { %v10101_v21 = vpop.f32.mrf.mxu1 }
 0x52d   : > { %v10226_v37 = vadd.f32 %v10101_v21, %v18373_v24  ;;  %v10381_v35 = vpop.f32.mrf.mxu0  ;;  %v18479_v31 = vadd.f32 %v13460_v42, %v10228_v46 }
 0x52e   : > { %v13415_v54 = vpop.f32.mrf.mxu1 }
 0x52f   : > { %v10231_v57 = vadd.f32 %v13415_v54, %v18376_v22  ;;  %v13467_v10 = vpop.f32.mrf.mxu0  ;;  %v18482_v52 = vadd.f32 %v10365_v49, %v10226_v37 }
 0x530   : > { %v10114_v55 = vpop.f32.mrf.mxu1 }
 0x531   : > { %v10229_v0 = vadd.f32 %v10114_v55, %v18381_v7  ;;  %v10394_v19 = vpop.f32.mrf.mxu0  ;;  %v18485_v48 = vadd.f32 %v13463_v36, %v10231_v57 }
 0x532   : > { %v13416_v38 = vpop.f32.mrf.mxu1 }
 0x533   : > { %v10232_v59 = vadd.f32 %v13416_v38, %v18383_v43  ;;  %v13468_v17 = vpop.f32.mrf.mxu0  ;;  %v18488_v24 = vadd.f32 %v10378_v6, %v10229_v0 }
 0x534   : > { %v10117_v20 = vpop.f32.mrf.mxu1 }
 0x535   : > { %v10230_v8 = vadd.f32 %v10117_v20, %v18388_v14  ;;  %v10397_v3 = vpop.f32.mrf.mxu0  ;;  %v18491_v22 = vadd.f32 %v13464_v56, %v10232_v59 }
 0x536   : > { %v13419_v11 = vpop.f32.mrf.mxu1 }
 0x537   : > { %v10235_v53 = vadd.f32 %v13419_v11, %v18391_v39  ;;  %v13471_v42 = vpop.f32.mrf.mxu0  ;;  %v18494_v7 = vadd.f32 %v10381_v35, %v10230_v8 }
 0x538   : > { %v10130_v45 = vpop.f32.mrf.mxu1 }
 0x539   : > { %v10233_v41 = vadd.f32 %v10130_v45, %v18396_v40  ;;  %v10410_v49 = vpop.f32.mrf.mxu0  ;;  %v18497_v43 = vadd.f32 %v13467_v10, %v10235_v53 }
 0x53a   : > { %v13420_v44 = vpop.f32.mrf.mxu1 }
 0x53b   : > { %v10236_v47 = vadd.f32 %v13420_v44, %v18398_v13  ;;  %v13472_v36 = vpop.f32.mrf.mxu0  ;;  %v18500_v14 = vadd.f32 %v10394_v19, %v10233_v41 }
 0x53c   : > { %v10133_v62 = vpop.f32.mrf.mxu1 }
 0x53d   : > { %v10234_v16 = vadd.f32 %v10133_v62, %v18403_v5  ;;  %v10413_v6 = vpop.f32.mrf.mxu0  ;;  %v18503_v39 = vadd.f32 %v13468_v17, %v10236_v47 }
 0x53e   : > { %v13423_v30 = vpop.f32.mrf.mxu1 }
 0x53f   : > { %v10239_v46 = vadd.f32 %v13423_v30, %v18406_v29  ;;  %v13475_v56 = vpop.f32.mrf.mxu0  ;;  %v18506_v40 = vadd.f32 %v10397_v3, %v10234_v16 }
 0x540   : > { %v10146_v21 = vpop.f32.mrf.mxu1 }
 0x541   : > { %v10237_v37 = vadd.f32 %v10146_v21, %v18411_v9  ;;  %v10426_v35 = vpop.f32.mrf.mxu0  ;;  %v18509_v13 = vadd.f32 %v13471_v42, %v10239_v46 }
 0x542   : > { %v13424_v54 = vpop.f32.mrf.mxu1 }
 0x543   : > { %v10240_v57 = vadd.f32 %v13424_v54, %v18413_v18  ;;  %v13476_v10 = vpop.f32.mrf.mxu0  ;;  %v18512_v5 = vadd.f32 %v10410_v49, %v10237_v37 }
 0x544   : > { %v10149_v55 = vpop.f32.mrf.mxu1 }
 0x545   : > { %v10238_v0 = vadd.f32 %v10149_v55, %v18418_v34  ;;  %v10429_v19 = vpop.f32.mrf.mxu0  ;;  %v18515_v29 = vadd.f32 %v13472_v36, %v10240_v57 }
 0x546   : > { %v13427_v38 = vpop.f32.mrf.mxu1 }
 0x547   : > { %v10243_v59 = vadd.f32 %v13427_v38, %v18421_v26  ;;  %v13479_v17 = vpop.f32.mrf.mxu0  ;;  %v18518_v9 = vadd.f32 %v10413_v6, %v10238_v0 }
 0x548   : > { %v10162_v20 = vpop.f32.mrf.mxu1 }
 0x549   : > { %v10241_v8 = vadd.f32 %v10162_v20, %v18426_v51  ;;  %v10442_v3 = vpop.f32.mrf.mxu0  ;;  %v18521_v18 = vadd.f32 %v13475_v56, %v10243_v59 }
 0x54a   : > { %v13428_v11 = vpop.f32.mrf.mxu1 }
 0x54b   : > { %v10244_v53 = vadd.f32 %v13428_v11, %v18428_v27  ;;  %v13480_v42 = vpop.f32.mrf.mxu0  ;;  %v18524_v34 = vadd.f32 %v10426_v35, %v10241_v8 }
 0x54c   : > { %v10165_v45 = vpop.f32.mrf.mxu1 }
 0x54d   : > { %v10242_v41 = vadd.f32 %v10165_v45, %v18433_v60  ;;  %v10445_v49 = vpop.f32.mrf.mxu0  ;;  %v18527_v26 = vadd.f32 %v13476_v10, %v10244_v53 }
 0x54e   : > { %v13431_v44 = vpop.f32.mrf.mxu1 }
 0x54f   : > { %v10247_v47 = vadd.f32 %v13431_v44, %v18436_v15  ;;  %v13483_v36 = vpop.f32.mrf.mxu0  ;;  %v18530_v51 = vadd.f32 %v10429_v19, %v10242_v41 }
 0x550   : > { %v10178_v62 = vpop.f32.mrf.mxu1 }
 0x551   : > { %v10245_v16 = vadd.f32 %v10178_v62, %v18439_v25  ;;  %v10458_v6 = vpop.f32.mrf.mxu0  ;;  %v18533_v27 = vadd.f32 %v13479_v17, %v10247_v47 }
 0x552   : > { %v13432_v30 = vpop.f32.mrf.mxu1 }
 0x553   : > { %v10248_v46 = vadd.f32 %v13432_v30, %v18442_v28  ;;  %v13484_v56 = vpop.f32.mrf.mxu0  ;;  %v18536_v60 = vadd.f32 %v10442_v3, %v10245_v16 }
 0x554   : > { %v10181_v21 = vpop.f32.mrf.mxu1 }
 0x555   : > { %v10246_v37 = vadd.f32 %v10181_v21, %v18446_v1  ;;  %v10461_v35 = vpop.f32.mrf.mxu0  ;;  %v18539_v15 = vadd.f32 %v13480_v42, %v10248_v46 }
 0x556   : > { %v13435_v54 = vpop.f32.mrf.mxu1 }
 0x557   : > { %v10251_v57 = vadd.f32 %v13435_v54, %v18449_v33  ;;  %v13487_v10 = vpop.f32.mrf.mxu0  ;;  %v18542_v25 = vadd.f32 %v10445_v49, %v10246_v37 }
 0x558   : > { %v10194_v55 = vpop.f32.mrf.mxu1 }
 0x559   : > { %v10249_v0 = vadd.f32 %v10194_v55, %v18452_v61  ;;  %v10474_v19 = vpop.f32.mrf.mxu0  ;;  %v18545_v28 = vadd.f32 %v13483_v36, %v10251_v57 }
 0x55a   : > { %v13436_v38 = vpop.f32.mrf.mxu1 }
 0x55b   : > { %v10252_v59 = vadd.f32 %v13436_v38, %v18455_v4  ;;  %v13488_v17 = vpop.f32.mrf.mxu0  ;;  %v18548_v1 = vadd.f32 %v10458_v6, %v10249_v0 }
 0x55c   : > { %v10197_v20 = vpop.f32.mrf.mxu1 }
 0x55d   : > { %v10250_v8 = vadd.f32 %v10197_v20, %v18458_v58  ;;  %v10477_v3 = vpop.f32.mrf.mxu0  ;;  %v18551_v33 = vadd.f32 %v13484_v56, %v10252_v59 }
 0x55e   : > { %v13439_v11 = vpop.f32.mrf.mxu1 }
 0x55f   : > { %19653 = vst [vmem:[#allocation87_spill] sm:$0xff] %v18551_v33  ;;  %v10255_v53 = vadd.f32 %v13439_v11, %v18461_v2  ;;  %v13555_v42 = vpop.f32.mrf.mxu0  ;;  %v18554_v61 = vadd.f32 %v10461_v35, %v10250_v8 }
 0x560   : > { %v10210_v45 = vpop.f32.mrf.mxu1 }
 0x561   : > { %19654 = vst [vmem:[#allocation90_spill] sm:$0xff] %v18554_v61  ;;  %v10253_v41 = vadd.f32 %v10210_v45, %v18464_v12  ;;  %v10891_v49 = vpop.f32.mrf.mxu0  ;;  %v18557_v4 = vadd.f32 %v13487_v10, %v10255_v53 }
 0x562   : > { %v13440_v44 = vpop.f32.mrf.mxu1 }
 0x563   : > { %v10256_v47 = vadd.f32 %v13440_v44, %v18467_v23  ;;  %v18560_v36 = vpop.f32.mrf.mxu0  ;;  %v18562_v58 = vadd.f32 %v10474_v19, %v10253_v41 }
 0x564   : > { %v10213_v62 = vpop.f32.mrf.mxu1 }
 0x565   : > { %v10254_v16 = vadd.f32 %v10213_v62, %v18470_v63  ;;  %v18565_v2 = vpop.f32.mrf.mxu0  ;;  %v18567_v6 = vadd.f32 %v13488_v17, %v10256_v47 }
 0x566   : > { %v13507_v30 = vpop.f32.mrf.mxu1 }
 0x567   : > { %19655 = vst [vmem:[#allocation93_spill] sm:$0xff] %v18567_v6  ;;  %v10749_v12 = vadd.f32 %v13507_v30, %v18473_v32  ;;  %v13559_v46 = vpop.f32.mrf.mxu0  ;;  %v18570_v56 = vadd.f32 %v10477_v3, %v10254_v16 }
 0x568   : > { %v10620_v21 = vpop.f32.mrf.mxu1 }
 0x569   : > { %19656 = vst [vmem:[#allocation92_spill] sm:$0xff] %v18570_v56  ;;  %v10747_v23 = vadd.f32 %v10620_v21, %v18476_v50  ;;  %v10907_v37 = vpop.f32.mrf.mxu0  ;;  %v18573_v35 = vadd.f32 %v13555_v42, %v10749_v12 }
 0x56a   : > { %v18575_v54 = vpop.f32.mrf.mxu1 }
 0x56b   : > { %v18577_v57 = vpop.f32.mrf.mxu0  ;;  %v18579_v63 = vadd.f32 %v10891_v49, %v10747_v23 }
 0x56c   : > { %v18581_v10 = vpop.f32.mrf.mxu1 }
 0x56d   : > { %v18583_v55 = vpop.f32.mrf.mxu0 }
 0x56e   : > { %v13511_v32 = vpop.f32.mrf.mxu1 }
 0x56f   : > { %v10753_v0 = vadd.f32 %v13511_v32, %v18485_v48  ;;  %v13563_v19 = vpop.f32.mrf.mxu0 }
 0x570   : > { %v10636_v38 = vpop.f32.mrf.mxu1 }
 0x571   : > { %v10751_v50 = vadd.f32 %v10636_v38, %v18488_v24  ;;  %v10923_v59 = vpop.f32.mrf.mxu0  ;;  %v18587_v17 = vadd.f32 %v13559_v46, %v10753_v0 }
 0x572   : > { %v18589_v20 = vpop.f32.mrf.mxu1 }
 0x573   : > { %v18591_v8 = vpop.f32.mrf.mxu0  ;;  %v18593_v3 = vadd.f32 %v10907_v37, %v10751_v50 }
 0x574   : > { %v18595_v11 = vpop.f32.mrf.mxu1 }
 0x575   : > { %v18597_v53 = vpop.f32.mrf.mxu0 }
 0x576   : > { %v13515_v42 = vpop.f32.mrf.mxu1 }
 0x577   : > { %v10757_v48 = vadd.f32 %v13515_v42, %v18497_v43  ;;  %v13567_v45 = vpop.f32.mrf.mxu0 }
 0x578   : > { %v10652_v41 = vpop.f32.mrf.mxu1 }
 0x579   : > { %v10755_v24 = vadd.f32 %v10652_v41, %v18500_v14  ;;  %v10939_v49 = vpop.f32.mrf.mxu0  ;;  %v18601_v44 = vadd.f32 %v13563_v19, %v10757_v48 }
 0x57a   : > { %v18603_v47 = vpop.f32.mrf.mxu1 }
 0x57b   : > { %v18605_v62 = vpop.f32.mrf.mxu0  ;;  %v18607_v16 = vadd.f32 %v10923_v59, %v10755_v24 }
 0x57c   : > { %v18609_v30 = vpop.f32.mrf.mxu1 }
 0x57d   : > { %v18611_v12 = vpop.f32.mrf.mxu0 }
 0x57e   : > { %v13519_v46 = vpop.f32.mrf.mxu1 }
 0x57f   : > { %v10761_v43 = vadd.f32 %v13519_v46, %v18509_v13  ;;  %v13571_v21 = vpop.f32.mrf.mxu0 }
 0x580   : > { %v10668_v23 = vpop.f32.mrf.mxu1 }
 0x581   : > { %v10759_v14 = vadd.f32 %v10668_v23, %v18512_v5  ;;  %v10955_v37 = vpop.f32.mrf.mxu0  ;;  %v18615_v32 = vadd.f32 %v13567_v45, %v10761_v43 }
 0x582   : > { %v18617_v0 = vpop.f32.mrf.mxu1 }
 0x583   : > { %v18619_v19 = vpop.f32.mrf.mxu0  ;;  %v18621_v38 = vadd.f32 %v10939_v49, %v10759_v14 }
 0x584   : > { %v18623_v50 = vpop.f32.mrf.mxu1 }
 0x585   : > { %v18625_v59 = vpop.f32.mrf.mxu0 }
 0x586   : > { %v13523_v42 = vpop.f32.mrf.mxu1 }
 0x587   : > { %v10765_v13 = vadd.f32 %v13523_v42, %v18521_v18  ;;  %v13575_v48 = vpop.f32.mrf.mxu0 }
 0x588   : > { %v10684_v41 = vpop.f32.mrf.mxu1 }
 0x589   : > { %v10763_v5 = vadd.f32 %v10684_v41, %v18524_v34  ;;  %v10971_v24 = vpop.f32.mrf.mxu0  ;;  %v18629_v45 = vadd.f32 %v13571_v21, %v10765_v13 }
 0x58a   : > { %v18631_v46 = vpop.f32.mrf.mxu1 }
 0x58b   : > { %v18633_v43 = vpop.f32.mrf.mxu0  ;;  %v18635_v49 = vadd.f32 %v10955_v37, %v10763_v5 }
 0x58c   : > { %19657 = vst [vmem:[#allocation101_spill] sm:$0xff] %v18633_v43  ;;  %v18637_v23 = vpop.f32.mrf.mxu1 }
 0x58d   : > { %v18639_v14 = vpop.f32.mrf.mxu0 }
 0x58e   : > { %19658 = vst [vmem:[#allocation71_spill] sm:$0xff] %v18639_v14  ;;  %v13527_v56 = vpop.f32.mrf.mxu1 }
 0x58f   : > { %v10769_v18 = vadd.f32 %v13527_v56, %v18533_v27  ;;  %v13579_v42 = vpop.f32.mrf.mxu0 }
 0x590   : > { %v10700_v6 = vpop.f32.mrf.mxu1 }
 0x591   : > { %v10767_v34 = vadd.f32 %v10700_v6, %v18536_v60  ;;  %v10987_v41 = vpop.f32.mrf.mxu0  ;;  %v18643_v21 = vadd.f32 %v13575_v48, %v10769_v18 }
 0x592   : > { %v18645_v13 = vpop.f32.mrf.mxu1 }
 0x593   : > { %19659 = vst [vmem:[#allocation114_spill] sm:$0xff] %v18643_v21  ;;  %v18647_v61 = vpop.f32.mrf.mxu0  ;;  %v18649_v37 = vadd.f32 %v10971_v24, %v10767_v34 }
 0x594   : > { %19660 = vst [vmem:[#allocation106_spill] sm:$0xff] %v18647_v61  ;;  %v18651_v5 = vpop.f32.mrf.mxu1 }
 0x595   : > { %v18653_v33 = vpop.f32.mrf.mxu0 }
 0x596   : > { %19661 = vst [vmem:[#allocation109_spill] sm:$0xff] %v18653_v33  ;;  %v13531_v14 = vpop.f32.mrf.mxu1 }
 0x597   : > { %v10773_v27 = vadd.f32 %v13531_v14, %v18545_v28  ;;  %v13583_v56 = vpop.f32.mrf.mxu0  ;;  %v10750_v28 = vadd.f32 %v18575_v54, %v18479_v31 }
 0x598   : > { %v10716_v43 = vpop.f32.mrf.mxu1 }
 0x599   : > { %v10771_v60 = vadd.f32 %v10716_v43, %v18548_v1  ;;  %v11003_v6 = vpop.f32.mrf.mxu0  ;;  %v18657_v48 = vadd.f32 %v13579_v42, %v10773_v27  ;;  %v18675_v43 = vld [vmem:[%s19664_s17] ss:$0 sm:$0xff]  ;;  %v10748_v42 = vadd.f32 %v18581_v10, %v18482_v52 }
 0x59a   : > { %v18659_v18 = vpop.f32.mrf.mxu1  ;;  %v18691_v52 = vld [vmem:[%s19665_s23] ss:$0 sm:$0xff] }
 0x59b   : > { %v18661_v21 = vpop.f32.mrf.mxu0  ;;  %v18663_v24 = vadd.f32 %v10987_v41, %v10771_v60 }
 0x59c   : > { %19662 = vst [vmem:[#allocation100_spill] sm:$0xff] %v18661_v21  ;;  %v18665_v34 = vpop.f32.mrf.mxu1 }
 0x59d   : > { %v18667_v61 = vpop.f32.mrf.mxu0 }
 0x59e   : > { %19663 = vst [vmem:[#allocation98_spill] sm:$0xff] %v18667_v61  ;;  %v13535_v14 = vpop.f32.mrf.mxu1 }
 0x59f   : > { %v10777_v33 = vadd.f32 %v13535_v14, %v18557_v4  ;;  %v13603_v1 = vpop.f32.mrf.mxu0  ;;  %v11021_v14 = vadd.f32 %v18560_v36, %v10750_v28 }
 0x5a0   : > { %v11284_v41 = vadd.f32 %v13603_v1, %v18573_v35  ;;  %v10732_v27 = vpop.f32.mrf.mxu1  ;;  %v11019_v1 = vadd.f32 %v18565_v2, %v10748_v42 }
 0x5a1   : > { %v10775_v60 = vadd.f32 %v10732_v27, %v18562_v58  ;;  %v11155_v61 = vpop.f32.mrf.mxu0  ;;  %v18681_v21 = vadd.f32 %v13583_v56, %v10777_v33 }
 0x5a2   : > { %v11323_v31 = vmul.f32 %v18675_v43, %v11284_v41  ;;  %v11282_v4 = vadd.f32 %v11155_v61, %v18579_v63  ;;  %v18685_v54 = vpop.f32.mrf.mxu1  ;;  %v10754_v61 = vadd.f32 %v18589_v20, %v18491_v22 }
 0x5a3   : > { %v13604_v35 = vpop.f32.mrf.mxu0  ;;  %v18693_v10 = vadd.f32 %v11003_v6, %v10775_v60  ;;  %v10752_v6 = vadd.f32 %v18595_v11, %v18494_v7 }
 0x5a4   : > { %v11321_v58 = vmul.f32 %v18675_v43, %v11282_v4  ;;  %v11285_v33 = vadd.f32 %v13604_v35, %v11021_v14  ;;  %v18696_v56 = vpop.f32.mrf.mxu1  ;;  %v11362_v36 = vadd.f32 %v18691_v52, %v11323_v31  ;;  %v11025_v31 = vadd.f32 %v18577_v57, %v10754_v61 }
 0x5a5   : > { %v11158_v63 = vpop.f32.mrf.mxu0  ;;  %v10758_v61 = vadd.f32 %v18603_v47, %v18503_v39 }
 0x5a6   : > { %v11324_v28 = vmul.f32 %v18675_v43, %v11285_v33  ;;  %v11283_v41 = vadd.f32 %v11158_v63, %v11019_v1  ;;  %v13607_v27 = vpop.f32.mrf.mxu1  ;;  %v11360_v4 = vadd.f32 %v18691_v52, %v11321_v58  ;;  %v11394_v35 = vmax.f32 %v11362_v36, 0.0 }
 0x5a7   : > { %v11288_v60 = vadd.f32 %v13607_v27, %v18587_v17  ;;  %v11023_v1 = vadd.f32 %v18583_v55, %v10752_v6  ;;  %v10756_v36 = vadd.f32 %v18609_v30, %v18506_v40 }
 0x5a8   : > { %v11363_v14 = vadd.f32 %v18691_v52, %v11324_v28  ;;  %v11322_v2 = vmul.f32 %v18675_v43, %v11283_v41  ;;  %v11171_v42 = vpop.f32.mrf.mxu1  ;;  %v11392_v63 = vmax.f32 %v11360_v4, 0.0 }
 0x5a9   : > { %v11327_v22 = vmul.f32 %v18675_v43, %v11288_v60  ;;  %v11286_v20 = vadd.f32 %v11171_v42, %v18593_v3 }
 0x5aa   : > { %v11395_v33 = vmax.f32 %v11363_v14, 0.0  ;;  %v11361_v7 = vadd.f32 %v18691_v52, %v11322_v2  ;;  %v13608_v11 = vpop.f32.mrf.mxu1 }
 0x5ab   : > { %v11325_v17 = vmul.f32 %v18675_v43, %v11286_v20  ;;  %v11289_v58 = vadd.f32 %v13608_v11, %v11025_v31  ;;  %v11366_v60 = vadd.f32 %v18691_v52, %v11327_v22  ;;  %v11029_v31 = vadd.f32 %v18591_v8, %v10758_v61 }
 0x5ac   : > { %v12442_v28 = vpack.c.bf16 %v11395_v33, %v11394_v35  ;;  %v11393_v41 = vmax.f32 %v11361_v7, 0.0  ;;  %v11174_v27 = vpop.f32.mrf.mxu1  ;;  %v11027_v33 = vadd.f32 %v18597_v53, %v10756_v36 }
 0x5ad   : > { %v11328_v3 = vmul.f32 %v18675_v43, %v11289_v58  ;;  %v11287_v57 = vadd.f32 %v11174_v27, %v11023_v1  ;;  %v11364_v4 = vadd.f32 %v18691_v52, %v11325_v17  ;;  %v11398_v40 = vmax.f32 %v11366_v60, 0.0 }
 0x5ae   : > { %12529 = vst [vmem:[%s18723_s26 + $0x8] sm:$0xff] %v12442_v28   ;;  %v12437_v55 = vpack.c.bf16 %v11393_v41, %v11392_v63  ;;  %v13611_v6 = vpop.f32.mrf.mxu1  ;;  %v10762_v63 = vadd.f32 %v18617_v0, %v18515_v29 }
 0x5af   : > { %v11367_v14 = vadd.f32 %v18691_v52, %v11328_v3  ;;  %v11326_v2 = vmul.f32 %v18675_v43, %v11287_v57  ;;  %v11292_v42 = vadd.f32 %v13611_v6, %v18601_v44  ;;  %v11396_v7 = vmax.f32 %v11364_v4, 0.0 }
 0x5b0   : > { %12438 = vst [vmem:[%s18723_s26] sm:$0xff] %v12437_v55   ;;  %v11187_v39 = vpop.f32.mrf.mxu1  ;;  %v10760_v57 = vadd.f32 %v18623_v50, %v18518_v9  ;;  %v11033_v6 = vadd.f32 %v18605_v62, %v10762_v63  ;;  %v10766_v9 = vadd.f32 %v18631_v46, %v18527_v26 }
 0x5b1   : > { %v11399_v47 = vmax.f32 %v11367_v14, 0.0  ;;  %v11365_v30 = vadd.f32 %v18691_v52, %v11326_v2  ;;  %v11290_v22 = vadd.f32 %v11187_v39, %v18607_v16  ;;  %v11331_v20 = vmul.f32 %v18675_v43, %v11292_v42 }
 0x5b2   : > { %v13612_v35 = vpop.f32.mrf.mxu1 }
 0x5b3   : > { %v12452_v11 = vpack.c.bf16 %v11399_v47, %v11398_v40  ;;  %v11397_v44 = vmax.f32 %v11365_v30, 0.0  ;;  %v11329_v17 = vmul.f32 %v18675_v43, %v11290_v22  ;;  %v11293_v58 = vadd.f32 %v13612_v35, %v11029_v31 }
 0x5b4   : > { %v11190_v1 = vpop.f32.mrf.mxu1  ;;  %v11370_v41 = vadd.f32 %v18691_v52, %v11331_v20  ;;  %v11031_v47 = vadd.f32 %v18611_v12, %v10760_v57  ;;  %v10764_v35 = vadd.f32 %v18637_v23, %v18530_v51 }
 0x5b5   : > { %12531 = vst [vmem:[%s18723_s26 + $0x18] sm:$0xff] %v12452_v11   ;;  %v12447_v16 = vpack.c.bf16 %v11397_v44, %v11396_v7  ;;  %v11291_v28 = vadd.f32 %v11190_v1, %v11027_v33  ;;  %v11332_v8 = vmul.f32 %v18675_v43, %v11293_v58  ;;  %v11368_v53 = vadd.f32 %v18691_v52, %v11329_v17 }
 0x5b6   : > { %v13615_v27 = vpop.f32.mrf.mxu1  ;;  %v11402_v4 = vmax.f32 %v11370_v41, 0.0  ;;  %v11037_v11 = vadd.f32 %v18619_v19, %v10766_v9 }
 0x5b7   : > { %12530 = vst [vmem:[%s18723_s26 + $0x10] sm:$0xff] %v12447_v16   ;;  %v11330_v60 = vmul.f32 %v18675_v43, %v11291_v28  ;;  %v11296_v3 = vadd.f32 %v13615_v27, %v18615_v32  ;;  %v11371_v29 = vadd.f32 %v18691_v52, %v11332_v8  ;;  %v11400_v32 = vmax.f32 %v11368_v53, 0.0 }
 0x5b8   : > { %v11203_v0 = vpop.f32.mrf.mxu1  ;;  %v11035_v28 = vadd.f32 %v18625_v59, %v10764_v35 }
 0x5b9   : > { %v11369_v61 = vadd.f32 %v18691_v52, %v11330_v60  ;;  %v11335_v36 = vmul.f32 %v18675_v43, %v11296_v3  ;;  %v11294_v55 = vadd.f32 %v11203_v0, %v18621_v38  ;;  %v11403_v14 = vmax.f32 %v11371_v29, 0.0 }
 0x5ba   : > { %v13616_v2 = vpop.f32.mrf.mxu1  ;;  %v10768_v3 = vadd.f32 %v18651_v5, %v18542_v25  ;;  %v19667_v5 = vld [vmem:[#allocation101_spill] sm:$0xff] }
 0x5bb   : > { %v11401_v42 = vmax.f32 %v11369_v61, 0.0  ;;  %v11297_v39 = vadd.f32 %v13616_v2, %v11033_v6  ;;  %v12462_v50 = vpack.c.bf16 %v11403_v14, %v11402_v4  ;;  %v11333_v40 = vmul.f32 %v18675_v43, %v11294_v55 }
 0x5bc   : > { %v11206_v30 = vpop.f32.mrf.mxu1  ;;  %v11374_v22 = vadd.f32 %v18691_v52, %v11335_v36  ;;  %v19666_v36 = vld [vmem:[#allocation114_spill] sm:$0xff] }
 0x5bd   : > { %v12457_v38 = vpack.c.bf16 %v11401_v42, %v11400_v32  ;;  %v11336_v62 = vmul.f32 %v18675_v43, %v11297_v39  ;;  %12533 = vst [vmem:[%s18723_s26 + $0x28] sm:$0xff] %v12462_v50   ;;  %v11295_v20 = vadd.f32 %v11206_v30, %v11031_v47  ;;  %v11372_v33 = vadd.f32 %v18691_v52, %v11333_v40  ;;  %v19668_v42 = vld [vmem:[#allocation71_spill] sm:$0xff] }
 0x5be   : > { %v13619_v31 = vpop.f32.mrf.mxu1  ;;  %v11406_v44 = vmax.f32 %v11374_v22, 0.0  ;;  %v11039_v39 = vadd.f32 %v19668_v42, %v10768_v3  ;;  %v19669_v22 = vld [vmem:[#allocation87_spill] sm:$0xff] }
 0x5bf   : > { %12532 = vst [vmem:[%s18723_s26 + $0x20] sm:$0xff] %v12457_v38   ;;  %v11375_v26 = vadd.f32 %v18691_v52, %v11336_v62  ;;  %v11300_v46 = vadd.f32 %v13619_v31, %v18629_v45  ;;  %v11334_v12 = vmul.f32 %v18675_v43, %v11295_v20  ;;  %v11404_v41 = vmax.f32 %v11372_v33, 0.0 }
 0x5c0   : > { %v11219_v7 = vpop.f32.mrf.mxu1  ;;  %v10774_v62 = vadd.f32 %v18659_v18, %v19669_v22 }
 0x5c1   : > { %v11407_v17 = vmax.f32 %v11375_v26, 0.0  ;;  %v11339_v58 = vmul.f32 %v18675_v43, %v11300_v46  ;;  %v11298_v1 = vadd.f32 %v11219_v7, %v18635_v49  ;;  %v11373_v51 = vadd.f32 %v18691_v52, %v11334_v12  ;;  %v19670_v7 = vld [vmem:[#allocation90_spill] sm:$0xff] }
 0x5c2   : > { %v13620_v23 = vpop.f32.mrf.mxu1  ;;  %v10770_v49 = vadd.f32 %v18645_v13, %v18539_v15 }
 0x5c3   : > { %v12472_v63 = vpack.c.bf16 %v11407_v17, %v11406_v44  ;;  %v11337_v45 = vmul.f32 %v18675_v43, %v11298_v1  ;;  %v11301_v16 = vadd.f32 %v13620_v23, %v11037_v11  ;;  %v11405_v8 = vmax.f32 %v11373_v51, 0.0  ;;  %v19671_v51 = vld [vmem:[#allocation106_spill] sm:$0xff] }
 0x5c4   : > { %v11222_v27 = vpop.f32.mrf.mxu1  ;;  %v11378_v19 = vadd.f32 %v18691_v52, %v11339_v58  ;;  %v11041_v2 = vadd.f32 %v19667_v5, %v10770_v49  ;;  %v10772_v11 = vadd.f32 %v18665_v34, %v19670_v7  ;;  %v11045_v23 = vadd.f32 %v19671_v51, %v10774_v62  ;;  %v19672_v34 = vld [vmem:[#allocation93_spill] sm:$0xff] }
 0x5c5   : > { %12535 = vst [vmem:[%s18723_s26 + $0x38] sm:$0xff] %v12472_v63   ;;  %v11340_v53 = vmul.f32 %v18675_v43, %v11301_v16  ;;  %v11299_v60 = vadd.f32 %v11222_v27, %v11035_v28  ;;  %v12467_v57 = vpack.c.bf16 %v11405_v8, %v11404_v41  ;;  %v11376_v59 = vadd.f32 %v18691_v52, %v11337_v45 }
 0x5c6   : > { %v13623_v29 = vpop.f32.mrf.mxu1  ;;  %v11410_v4 = vmax.f32 %v11378_v19, 0.0  ;;  %v10778_v8 = vadd.f32 %v18685_v54, %v19672_v34 }
 0x5c7   : > { %v11379_v0 = vadd.f32 %v18691_v52, %v11340_v53  ;;  %v11338_v61 = vmul.f32 %v18675_v43, %v11299_v60  ;;  %v11304_v55 = vadd.f32 %v13623_v29, %v19666_v36  ;;  %12534 = vst [vmem:[%s18723_s26 + $0x30] sm:$0xff] %v12467_v57   ;;  %v11408_v9 = vmax.f32 %v11376_v59, 0.0  ;;  %v19673_v53 = vld [vmem:[#allocation109_spill] sm:$0xff] }
 0x5c8   : > { %v11235_v6 = vpop.f32.mrf.mxu1  ;;  %v11043_v60 = vadd.f32 %v19673_v53, %v10772_v11 }
 0x5c9   : > { %v11411_v14 = vmax.f32 %v11379_v0, 0.0  ;;  %v11377_v15 = vadd.f32 %v18691_v52, %v11338_v61  ;;  %v11302_v13 = vadd.f32 %v11235_v6, %v18649_v37  ;;  %v11343_v25 = vmul.f32 %v18675_v43, %v11304_v55  ;;  %v19674_v0 = vld [vmem:[#allocation92_spill] sm:$0xff] }
 0x5ca   : > { %v13624_v32 = vpop.f32.mrf.mxu1  ;;  %v10776_v61 = vadd.f32 %v18696_v56, %v19674_v0 }
 0x5cb   : > { %v12482_v50 = vpack.c.bf16 %v11411_v14, %v11410_v4  ;;  %v11409_v40 = vmax.f32 %v11377_v15, 0.0  ;;  %v11341_v47 = vmul.f32 %v18675_v43, %v11302_v13  ;;  %v11305_v30 = vadd.f32 %v13624_v32, %v11041_v2  ;;  %v19675_v14 = vld [vmem:[#allocation100_spill] sm:$0xff] }
 0x5cc   : > { %v11238_v38 = vpop.f32.mrf.mxu1  ;;  %v11382_v31 = vadd.f32 %v18691_v52, %v11343_v25  ;;  %v11049_v15 = vadd.f32 %v19675_v14, %v10778_v8 }
 0x5cd   : > { %12537 = vst [vmem:[%s18723_s26 + $0x48] sm:$0xff] %v12482_v50   ;;  %v12477_v37 = vpack.c.bf16 %v11409_v40, %v11408_v9  ;;  %v11303_v20 = vadd.f32 %v11238_v38, %v11039_v39  ;;  %v11344_v35 = vmul.f32 %v18675_v43, %v11305_v30  ;;  %v11380_v46 = vadd.f32 %v18691_v52, %v11341_v47  ;;  %v19676_v9 = vld [vmem:[#allocation98_spill] sm:$0xff] }
 0x5ce   : > { %v13627_v26 = vpop.f32.mrf.mxu1  ;;  %v11414_v63 = vmax.f32 %v11382_v31, 0.0  ;;  %v11047_v50 = vadd.f32 %v19676_v9, %v10776_v61 }
 0x5cf   : > { %12536 = vst [vmem:[%s18723_s26 + $0x40] sm:$0xff] %v12477_v37   ;;  %v11342_v33 = vmul.f32 %v18675_v43, %v11303_v20  ;;  %v11308_v12 = vadd.f32 %v13627_v26, %v18657_v48  ;;  %v11383_v18 = vadd.f32 %v18691_v52, %v11344_v35  ;;  %v11412_v48 = vmax.f32 %v11380_v46, 0.0 }
 0x5d0   : > { %v11251_v44 = vpop.f32.mrf.mxu1 }
 0x5d1   : > { %v11381_v17 = vadd.f32 %v18691_v52, %v11342_v33  ;;  %v11347_v58 = vmul.f32 %v18675_v43, %v11308_v12  ;;  %v11306_v1 = vadd.f32 %v11251_v44, %v18663_v24  ;;  %v11415_v45 = vmax.f32 %v11383_v18, 0.0 }
 0x5d2   : > { %v13628_v16 = vpop.f32.mrf.mxu1 }
 0x5d3   : > { %v11413_v28 = vmax.f32 %v11381_v17, 0.0  ;;  %v11309_v41 = vadd.f32 %v13628_v16, %v11045_v23  ;;  %v12492_v27 = vpack.c.bf16 %v11415_v45, %v11414_v63  ;;  %v11345_v19 = vmul.f32 %v18675_v43, %v11306_v1 }
 0x5d4   : > { %v11254_v49 = vpop.f32.mrf.mxu1  ;;  %v11386_v3 = vadd.f32 %v18691_v52, %v11347_v58 }
 0x5d5   : > { %v12487_v24 = vpack.c.bf16 %v11413_v28, %v11412_v48  ;;  %v11348_v57 = vmul.f32 %v18675_v43, %v11309_v41  ;;  %12539 = vst [vmem:[%s18723_s26 + $0x58] sm:$0xff] %v12492_v27   ;;  %v11307_v29 = vadd.f32 %v11254_v49, %v11043_v60  ;;  %v11384_v55 = vadd.f32 %v18691_v52, %v11345_v19 }
 0x5d6   : > { %v13631_v59 = vpop.f32.mrf.mxu1  ;;  %v11418_v13 = vmax.f32 %v11386_v3, 0.0 }
 0x5d7   : > { %12538 = vst [vmem:[%s18723_s26 + $0x50] sm:$0xff] %v12487_v24   ;;  %v11387_v54 = vadd.f32 %v18691_v52, %v11348_v57  ;;  %v11312_v36 = vadd.f32 %v13631_v59, %v18681_v21  ;;  %v11346_v6 = vmul.f32 %v18675_v43, %v11307_v29  ;;  %v11416_v40 = vmax.f32 %v11384_v55, 0.0 }
 0x5d8   : > { %v11267_v4 = vpop.f32.mrf.mxu1 }
 0x5d9   : > { %v11419_v25 = vmax.f32 %v11387_v54, 0.0  ;;  %v11351_v5 = vmul.f32 %v18675_v43, %v11312_v36  ;;  %v11310_v2 = vadd.f32 %v11267_v4, %v18693_v10  ;;  %v11385_v56 = vadd.f32 %v18691_v52, %v11346_v6 }
 0x5da   : > { %v13632_v32 = vpop.f32.mrf.mxu1 }
 0x5db   : > { %v12502_v42 = vpack.c.bf16 %v11419_v25, %v11418_v13  ;;  %v11349_v21 = vmul.f32 %v18675_v43, %v11310_v2  ;;  %v11313_v39 = vadd.f32 %v13632_v32, %v11049_v15  ;;  %v11417_v47 = vmax.f32 %v11385_v56, 0.0 }
 0x5dc   : > { %v11270_v30 = vpop.f32.mrf.mxu1  ;;  %v11390_v38 = vadd.f32 %v18691_v52, %v11351_v5 }
 0x5dd   : > { %12541 = vst [vmem:[%s18723_s26 + $0x68] sm:$0xff] %v12502_v42   ;;  %v11352_v10 = vmul.f32 %v18675_v43, %v11313_v39  ;;  %v11311_v22 = vadd.f32 %v11270_v30, %v11047_v50  ;;  %v12497_v62 = vpack.c.bf16 %v11417_v47, %v11416_v40  ;;  %v11388_v37 = vadd.f32 %v18691_v52, %v11349_v21 }
 0x5de   : > { %v11422_v35 = vmax.f32 %v11390_v38, 0.0 }
 0x5df   : > { %v11391_v20 = vadd.f32 %v18691_v52, %v11352_v10  ;;  %v11350_v31 = vmul.f32 %v18675_v43, %v11311_v22  ;;  %12540 = vst [vmem:[%s18723_s26 + $0x60] sm:$0xff] %v12497_v62   ;;  %v11420_v33 = vmax.f32 %v11388_v37, 0.0 }
 0x5e1   : > { %v11423_v26 = vmax.f32 %v11391_v20, 0.0  ;;  %v11389_v46 = vadd.f32 %v18691_v52, %v11350_v31 }
 0x5e3   : > { %v12512_v12 = vpack.c.bf16 %v11423_v26, %v11422_v35  ;;  %v11421_v7 = vmax.f32 %v11389_v46, 0.0 }
 0x5e5   : > { %12543 = vst [vmem:[%s18723_s26 + $0x78] sm:$0xff] %v12512_v12   ;;  %v12507_v43 = vpack.c.bf16 %v11421_v7, %v11420_v33 }
 0x5e7   : > { %12542 = vst [vmem:[%s18723_s26 + $0x70] sm:$0xff] %v12507_v43  }
 0x5e8   : > { %14159 = shalt.err (!%p14156_p9)
}
 0x5e9   : > { %s14160_s30 = scalar_lea.hbm %s18840_s21, 2048  ;;  %s14164_s17 = scalar_lea.hbm %s19679_s19, 4096 }
 0x5ea   : > { %p14161_p0 = scmp.ne.s32.totalorder %s18840_s21, %s14160_s30  ;;  %p14165_p2 = scmp.lt.s32.totalorder %s18840_s21, %s19679_s19 }
 0x5eb   : > { %p14166_p8 = scmp.lt.s32.totalorder %s14164_s17, %s14160_s30 }
 0x5ec   : > { %p14162_p1 = pnand %p14161_p0, %p19680_p11 }
 0x5ed   : > { %p14167_p6 = por %p14166_p8, %p14165_p2 }
 0x5ee   : > { %p14163_p12 = pneg %p14162_p1 }
 0x5f0   : > { %p14168_p7 = pnand %p14167_p6, %p14163_p12 }
 0x5f2   : > { %14171 = shalt.err (!%p14168_p7)
}
 0x5f3   : > { %s14264_s23 = smov 64   ;;  %s14265_s26 = smov 4  }
 0x5f4   : > { %13669 = dma.vmem_to_hbm [thread:$0]  (%p19680_p11), %s18842_s16, 2048, %s18840_s21, %s11585_s1, %s14264_s23, %s14264_s23, %s14265_s26  }
 0x5f5 PF: > { %s19681_s6 = sld [smem:[#allocation24_spill]] }
 0x5f6   : > { %s19682_s27 = sld [smem:[#allocation32_spill]] }
 0x5f7   : > { %s19683_s18 = sld [smem:[#allocation28_spill]] }
 0x5fb   : > { %s11616_s29 = sand.u32 1, %s19681_s6  }
 0x5fc   : > { %p19684_p10 = scmp.ne.s32.totalorder %s19682_s27, 0  ;;  %s11617_s7 = scalar_lea.sflag [#allocation4], %s11616_s29 }
 0x5fd   : > { %p19685_p13 = scmp.ge.s32.totalorder %s19683_s18, 2 }
 0x5ff   : > { %p13698_p5 = pnand %p19685_p13, %p19684_p10 }
 0x601   : > { %p13699_p3 = pneg %p13698_p5 }
 0x603   : > { %14221 = dma.done.wait (%p13699_p3), %s11617_s7, 2048  }
 0x604   : > { %14223 = vsyncadd (%p13699_p3), %s11617_s7, 4294965248  ;;  %s38_s26 = sadd.s32 1, %s19683_s18   ;;  %s19686_s21 = sld [smem:[#allocation25_spill]] }
 0x605   : > { %p35_p4 = scmp.ge.s32.totalorder %s38_s26, 4   ;;  %s19687_s22 = sld [smem:[#allocation26_spill]] }
 0x606   : > { %s19688_s23 = sld [smem:[#allocation35_spill]]  ;;  %s19690_s24 = smov %s14242_s25 }
 0x607   : > { %s19689_s13 = sld [smem:[#allocation34_spill]] }
 0x609   :  { %37 = sbr.rel (!%p35_p4) target bundleno = 21 (0x15), region = 198 }
 0x60d   : > { %s19691_s25 = smov %s19689_s13 }
 0x60e   :  { %11622 = vsyncpa [#allocation3], 1 }
 0x60f   :  { %11624 = vsyncpa [#allocation3 + $0x1], 1 }
 0x610   :  { %11625 = vsyncpa [#allocation6], 1 }
 0x611   :  { %11627 = vsyncpa [#allocation6 + $0x1], 1 }
 0x612   :  { %11628 = vsyncpa [#allocation9], 1 }
 0x613   :  { %11630 = vsyncpa [#allocation9 + $0x1], 1 }
 0x614   :  { %11631 = vsyncpa [#allocation12], 1 }
 0x615   :  { %11633 = vsyncpa [#allocation12 + $0x1], 1 }
 0x616   :  { %11634 = vsyncpa [#allocation15], 1 }
 0x617   :  { %11635 = vsyncpa [#allocation4], 1 }
 0x618   :  { %11637 = vsyncpa [#allocation4 + $0x1], 1 }

</bundles_post_ra>
